<compile_context>
chip_gen: v6e
topology: v6e:2x2x1
jax: 0.10.0
libtpu: 0.0.40
codegen_flags: <defaults>
</compile_context>

<pallas_src>
import jax
import jax.numpy as jnp
from jax.experimental import pallas as pl
from jax.experimental.pallas import tpu as pltpu

F_IN = 150        # max(ceil(150 / 2**l_ind), 150) == 150 for all l_ind >= 0
GROUP_CIN = 3     # channels per group (groups = 150 // 3 = 50)
KS = 7            # conv_vh spatial kernel size
PAD = 3           # reflection padding on each side of H and W
CP = 256          # input-channel dim padded to 2 * lane width (150 -> 256)
NO = 8            # output channels padded to a sublane tile (3 -> 8)
KN = KS * NO      # 7 kw taps packed into the MXU N dimension (56 columns)


def _round_up(v, m):
    return (v + m - 1) // m * m


def _make_kernel(Wp, L, LS):
    """Kernel for one sample of the flattened, channel-padded image."""

    def kernel(x_ref, w_ref, o_ref, acc_ref):
        # x_ref  : (1, Lin, CP) bf16  reflection-padded image, channels-last,
        #                              flattened over (Hp, Wp), zero row-padded.
        # w_ref  : (KS, CP, KN) bf16  folded weights; column kw*NO + co holds
        #                              W_comb[kh, kw][cin, co].
        # acc_ref: (LS, KN)     f32   VMEM accumulator (kh-sum, per-kw columns).
        # o_ref  : (1, L, NO)   f32

        # ---- stage 1: 7 aligned slab matmuls, kw packed into MXU N dim ----
        for kh in range(KS):
            base = kh * Wp                          # multiple of 16 -> aligned bf16 slab
            slab = x_ref[0, base:base + LS, :]      # (LS, CP) bf16
            contrib = jnp.dot(slab, w_ref[kh],
                              preferred_element_type=jnp.float32)  # (LS, KN)
            if kh == 0:
                acc_ref[...] = contrib
            else:
                acc_ref[...] += contrib

        # ---- stage 2 (finalize): 7 tiny kw shift-adds into the kw=0 block ----
        # out[r, co] = sum_kw acc[r + kw, kw*NO + co]; accumulate in place into
        # columns [0, NO) (read columns are disjoint from the written ones).
        for kw in range(1, KS):
            acc_ref[0:L, 0:NO] += acc_ref[kw:kw + L, kw * NO:(kw + 1) * NO]

        # Output is tiny (L*NO f32) after the conv_f fold; store it directly and
        # let the wrapper do the final (cheap) channel-first reorder.
        o_ref[0] = acc_ref[0:L, 0:NO]

    return kernel


def _fold_weights(w_vh, w_f):
    """Fold conv_f (1x1) into the grouped 7x7 tap weights.

    Returns wk of shape (KS, CP, KN) bf16 with wk[kh, cin, kw*NO + co] equal to
    the combined tap weight W_comb[kh, kw][cin, co] (zero in the padded region).
    """
    # conv_vh.weight: (150, 3, 7, 7) [cout_mid, cin_in_group, kh, kw]
    wt = jnp.transpose(w_vh, (2, 3, 1, 0))                 # (7, 7, 3, 150)
    ci = jnp.arange(F_IN)
    dense = jnp.take(wt, ci % GROUP_CIN, axis=2)           # (7, 7, 150cin, 150cout)
    same_group = (ci[:, None] // GROUP_CIN) == (ci[None, :] // GROUP_CIN)
    dense = dense * same_group[None, None].astype(dense.dtype)

    # conv_f.weight: (3, 150, 1, 1) -> (150 cout_mid, 3 co)
    wf_mat = jnp.transpose(w_f[:, :, 0, 0], (1, 0))
    # Combined per-tap dense (no structural zeros left): (7, 7, 150, 3)
    wc = jnp.einsum('abio,oc->abic', dense, wf_mat,
                    precision=jax.lax.Precision.HIGHEST)

    # Pad channels, then pack kw into the matmul N dimension: (7, CP, 7*NO)
    wc = jnp.pad(wc, ((0, 0), (0, 0), (0, CP - F_IN), (0, NO - 3)))
    wk = jnp.transpose(wc, (0, 2, 1, 3)).reshape(KS, CP, KN)
    return wk.astype(jnp.bfloat16)


def sep_conv_out_2d(x, w_vh, w_f):
    """SepConvOut2D forward.

    x    : (N, 1, 150, H, W) float32
    w_vh : (150, 3, 7, 7)  conv_vh.weight (groups=50)
    w_f  : (3, 150, 1, 1)  conv_f.weight
    returns (N, 3, H, W) float32
    """
    N = x.shape[0]
    H, W = x.shape[3], x.shape[4]
    Hp = H + 2 * PAD
    Wvp = W + 2 * PAD                       # valid padded width
    Wp = _round_up(Wvp, 16)                 # 16-aligned rows for bf16 slab slices
    L = _round_up(H * Wp, 8)                # flat output rows (incl. garbage cols)
    LS = _round_up(L + 2 * PAD, 16)         # slab length fed to the MXU
    Lin = _round_up(2 * PAD * Wp + LS, 16)  # padded flat input rows

    # --- wrapper prep: bf16 first, then reflect-pad + channels-last + zero-pad ---
    xb = x[:, 0].astype(jnp.bfloat16)                               # squeeze(1), cast
    xp = jnp.pad(xb, ((0, 0), (0, 0), (PAD, PAD), (PAD, PAD)), mode="reflect")
    xcl = jnp.transpose(xp, (0, 2, 3, 1))                           # (N, Hp, Wvp, 150)
    xcl = jnp.pad(xcl, ((0, 0), (0, 0), (0, Wp - Wvp), (0, CP - F_IN)))
    xflat = xcl.reshape(N, Hp * Wp, CP)
    xflat = jnp.pad(xflat, ((0, 0), (0, Lin - Hp * Wp), (0, 0)))    # (N, Lin, CP) bf16

    wk = _fold_weights(w_vh, w_f)                                    # (KS, CP, KN) bf16

    out = pl.pallas_call(
        _make_kernel(Wp, L, LS),
        out_shape=jax.ShapeDtypeStruct((N, L, NO), jnp.float32),
        grid=(N,),
        in_specs=[
            pl.BlockSpec((1, Lin, CP), lambda n: (n, 0, 0)),
            pl.BlockSpec((KS, CP, KN), lambda n: (0, 0, 0)),   # grid-invariant weight
        ],
        out_specs=pl.BlockSpec((1, L, NO), lambda n: (n, 0, 0)),
        scratch_shapes=[pltpu.VMEM((LS, KN), jnp.float32)],
        compiler_params=pltpu.CompilerParams(
            dimension_semantics=("parallel",),
            vmem_limit_bytes=64 * 1024 * 1024),
    )(xflat, wk)

    # Drop padded channels / garbage columns, reorder to (N, 3, H, W).
    out = out[:, :H * Wp, :3].reshape(N, H, Wp, 3)[:, :, :W, :]
    return jnp.transpose(out, (0, 3, 1, 2))


def _reference(x, w_vh, w_f):
    """Pure-JAX reference (matches the torch module)."""
    xs = x[:, 0]
    xp = jnp.pad(xs, ((0, 0), (0, 0), (PAD, PAD), (PAD, PAD)), mode="reflect")
    dn = ("NCHW", "OIHW", "NCHW")
    v = jax.lax.conv_general_dilated(
        xp, w_vh, (1, 1), "VALID", dimension_numbers=dn,
        feature_group_count=F_IN // GROUP_CIN,
        precision=jax.lax.Precision.HIGHEST)
    y = jax.lax.conv_general_dilated(
        v, w_f, (1, 1), "VALID", dimension_numbers=dn,
        precision=jax.lax.Precision.HIGHEST)
    return y


if __name__ == "__main__":
    key = jax.random.PRNGKey(0)
    kx, kv, kf = jax.random.split(key, 3)
    N, H, W = 2, 16, 16
    x = jax.random.normal(kx, (N, 1, F_IN, H, W), jnp.float32)
    w_vh = jax.random.normal(kv, (F_IN, GROUP_CIN, KS, KS), jnp.float32) \
        / (GROUP_CIN * KS * KS) ** 0.5
    w_f = jax.random.normal(kf, (3, F_IN, 1, 1), jnp.float32) / F_IN ** 0.5

    fwd = jax.jit(sep_conv_out_2d)
    out = jax.block_until_ready(fwd(x, w_vh, w_f))
    assert out.shape == (N, 3, H, W) and out.dtype == jnp.float32

    ref = jax.block_until_ready(jax.jit(_reference)(x, w_vh, w_f))
    err = float(jnp.max(jnp.abs(out - ref)))
    scale = float(jnp.max(jnp.abs(ref)))
    assert err <= 5e-2 * scale + 1e-3, f"max|err|={err:.4e} vs max|ref|={scale:.4e}"
    print("KERNEL_OK")
</pallas_src>

<mosaic_0001>
module attributes {stable_mosaic.version = 11 : i64} {
  func.func @kernel(%arg0: i32, %arg1: memref<1x720x256xbf16, #tpu.memory_space<vmem>>, %arg2: memref<7x256x56xbf16, #tpu.memory_space<vmem>>, %arg3: memref<1x512x8xf32, #tpu.memory_space<vmem>>, %arg4: memref<528x56xf32, #tpu.memory_space<vmem>>) attributes {dimension_semantics = [#tpu.dimension_semantics<parallel>], iteration_bounds = array<i64: 2>, scalar_prefetch = 0 : i64, scratch_operands = 1 : i64, tpu.core_type = #tpu.core_type<tc>, window_params = [{transform_indices = @transform_0, window_bounds = array<i64: 1, 720, 256>}, {pipeline_mode = #tpu.pipeline_mode<synchronous>, transform_indices = @transform_1, window_bounds = array<i64: 7, 256, 56>}, {transform_indices = @transform_2, window_bounds = array<i64: 1, 512, 8>}]} {
    %c0 = arith.constant 0 : index
    %c0_0 = arith.constant 0 : index
    %c0_1 = arith.constant 0 : index
    %0 = vector.load %arg1[%c0, %c0_0, %c0_1] : memref<1x720x256xbf16, #tpu.memory_space<vmem>>, vector<1x528x256xbf16>
    %1 = vector.shape_cast %0 : vector<1x528x256xbf16> to vector<528x256xbf16>
    %c0_2 = arith.constant 0 : index
    %c0_3 = arith.constant 0 : index
    %c0_4 = arith.constant 0 : index
    %2 = vector.load %arg2[%c0_2, %c0_3, %c0_4] : memref<7x256x56xbf16, #tpu.memory_space<vmem>>, vector<1x256x56xbf16>
    %3 = vector.shape_cast %2 : vector<1x256x56xbf16> to vector<256x56xbf16>
    %cst = arith.constant dense<0.000000e+00> : vector<528x56xf32>
    %4 = tpu.matmul %1, %3, %cst {dimension_numbers = #tpu.dot_dimension_numbers<[1], [0], [0], [1], [0, 0, 1, 1], [], []>} : vector<528x256xbf16>, vector<256x56xbf16>, vector<528x56xf32> -> vector<528x56xf32>
    %c0_5 = arith.constant 0 : index
    %c0_6 = arith.constant 0 : index
    %5 = vector.load %arg4[%c0_5, %c0_6] : memref<528x56xf32, #tpu.memory_space<vmem>>, vector<528x56xf32>
    tpu.vector_store %arg4[%c0_5, %c0_6], %4 {strides = array<i32>} : memref<528x56xf32, #tpu.memory_space<vmem>>, vector<528x56xf32>,
    %c0_7 = arith.constant 0 : index
    %c32 = arith.constant 32 : index
    %c0_8 = arith.constant 0 : index
    %6 = vector.load %arg1[%c0_7, %c32, %c0_8] : memref<1x720x256xbf16, #tpu.memory_space<vmem>>, vector<1x528x256xbf16>
    %7 = vector.shape_cast %6 : vector<1x528x256xbf16> to vector<528x256xbf16>
    %c1 = arith.constant 1 : index
    %c0_9 = arith.constant 0 : index
    %c0_10 = arith.constant 0 : index
    %8 = vector.load %arg2[%c1, %c0_9, %c0_10] : memref<7x256x56xbf16, #tpu.memory_space<vmem>>, vector<1x256x56xbf16>
    %9 = vector.shape_cast %8 : vector<1x256x56xbf16> to vector<256x56xbf16>
    %cst_11 = arith.constant dense<0.000000e+00> : vector<528x56xf32>
    %10 = tpu.matmul %7, %9, %cst_11 {dimension_numbers = #tpu.dot_dimension_numbers<[1], [0], [0], [1], [0, 0, 1, 1], [], []>} : vector<528x256xbf16>, vector<256x56xbf16>, vector<528x56xf32> -> vector<528x56xf32>
    %c0_12 = arith.constant 0 : index
    %c0_13 = arith.constant 0 : index
    %11 = vector.load %arg4[%c0_12, %c0_13] : memref<528x56xf32, #tpu.memory_space<vmem>>, vector<528x56xf32>
    %12 = arith.addf %11, %10 : vector<528x56xf32>
    %c0_14 = arith.constant 0 : index
    %c0_15 = arith.constant 0 : index
    %13 = vector.load %arg4[%c0_14, %c0_15] : memref<528x56xf32, #tpu.memory_space<vmem>>, vector<528x56xf32>
    tpu.vector_store %arg4[%c0_14, %c0_15], %12 {strides = array<i32>} : memref<528x56xf32, #tpu.memory_space<vmem>>, vector<528x56xf32>,
    %c0_16 = arith.constant 0 : index
    %c64 = arith.constant 64 : index
    %c0_17 = arith.constant 0 : index
    %14 = vector.load %arg1[%c0_16, %c64, %c0_17] : memref<1x720x256xbf16, #tpu.memory_space<vmem>>, vector<1x528x256xbf16>
    %15 = vector.shape_cast %14 : vector<1x528x256xbf16> to vector<528x256xbf16>
    %c2 = arith.constant 2 : index
    %c0_18 = arith.constant 0 : index
    %c0_19 = arith.constant 0 : index
    %16 = vector.load %arg2[%c2, %c0_18, %c0_19] : memref<7x256x56xbf16, #tpu.memory_space<vmem>>, vector<1x256x56xbf16>
    %17 = vector.shape_cast %16 : vector<1x256x56xbf16> to vector<256x56xbf16>
    %cst_20 = arith.constant dense<0.000000e+00> : vector<528x56xf32>
    %18 = tpu.matmul %15, %17, %cst_20 {dimension_numbers = #tpu.dot_dimension_numbers<[1], [0], [0], [1], [0, 0, 1, 1], [], []>} : vector<528x256xbf16>, vector<256x56xbf16>, vector<528x56xf32> -> vector<528x56xf32>
    %c0_21 = arith.constant 0 : index
    %c0_22 = arith.constant 0 : index
    %19 = vector.load %arg4[%c0_21, %c0_22] : memref<528x56xf32, #tpu.memory_space<vmem>>, vector<528x56xf32>
    %20 = arith.addf %19, %18 : vector<528x56xf32>
    %c0_23 = arith.constant 0 : index
    %c0_24 = arith.constant 0 : index
    %21 = vector.load %arg4[%c0_23, %c0_24] : memref<528x56xf32, #tpu.memory_space<vmem>>, vector<528x56xf32>
    tpu.vector_store %arg4[%c0_23, %c0_24], %20 {strides = array<i32>} : memref<528x56xf32, #tpu.memory_space<vmem>>, vector<528x56xf32>,
    %c0_25 = arith.constant 0 : index
    %c96 = arith.constant 96 : index
    %c0_26 = arith.constant 0 : index
    %22 = vector.load %arg1[%c0_25, %c96, %c0_26] : memref<1x720x256xbf16, #tpu.memory_space<vmem>>, vector<1x528x256xbf16>
    %23 = vector.shape_cast %22 : vector<1x528x256xbf16> to vector<528x256xbf16>
    %c3 = arith.constant 3 : index
    %c0_27 = arith.constant 0 : index
    %c0_28 = arith.constant 0 : index
    %24 = vector.load %arg2[%c3, %c0_27, %c0_28] : memref<7x256x56xbf16, #tpu.memory_space<vmem>>, vector<1x256x56xbf16>
    %25 = vector.shape_cast %24 : vector<1x256x56xbf16> to vector<256x56xbf16>
    %cst_29 = arith.constant dense<0.000000e+00> : vector<528x56xf32>
    %26 = tpu.matmul %23, %25, %cst_29 {dimension_numbers = #tpu.dot_dimension_numbers<[1], [0], [0], [1], [0, 0, 1, 1], [], []>} : vector<528x256xbf16>, vector<256x56xbf16>, vector<528x56xf32> -> vector<528x56xf32>
    %c0_30 = arith.constant 0 : index
    %c0_31 = arith.constant 0 : index
    %27 = vector.load %arg4[%c0_30, %c0_31] : memref<528x56xf32, #tpu.memory_space<vmem>>, vector<528x56xf32>
    %28 = arith.addf %27, %26 : vector<528x56xf32>
    %c0_32 = arith.constant 0 : index
    %c0_33 = arith.constant 0 : index
    %29 = vector.load %arg4[%c0_32, %c0_33] : memref<528x56xf32, #tpu.memory_space<vmem>>, vector<528x56xf32>
    tpu.vector_store %arg4[%c0_32, %c0_33], %28 {strides = array<i32>} : memref<528x56xf32, #tpu.memory_space<vmem>>, vector<528x56xf32>,
    %c0_34 = arith.constant 0 : index
    %c128 = arith.constant 128 : index
    %c0_35 = arith.constant 0 : index
    %30 = vector.load %arg1[%c0_34, %c128, %c0_35] : memref<1x720x256xbf16, #tpu.memory_space<vmem>>, vector<1x528x256xbf16>
    %31 = vector.shape_cast %30 : vector<1x528x256xbf16> to vector<528x256xbf16>
    %c4 = arith.constant 4 : index
    %c0_36 = arith.constant 0 : index
    %c0_37 = arith.constant 0 : index
    %32 = vector.load %arg2[%c4, %c0_36, %c0_37] : memref<7x256x56xbf16, #tpu.memory_space<vmem>>, vector<1x256x56xbf16>
    %33 = vector.shape_cast %32 : vector<1x256x56xbf16> to vector<256x56xbf16>
    %cst_38 = arith.constant dense<0.000000e+00> : vector<528x56xf32>
    %34 = tpu.matmul %31, %33, %cst_38 {dimension_numbers = #tpu.dot_dimension_numbers<[1], [0], [0], [1], [0, 0, 1, 1], [], []>} : vector<528x256xbf16>, vector<256x56xbf16>, vector<528x56xf32> -> vector<528x56xf32>
    %c0_39 = arith.constant 0 : index
    %c0_40 = arith.constant 0 : index
    %35 = vector.load %arg4[%c0_39, %c0_40] : memref<528x56xf32, #tpu.memory_space<vmem>>, vector<528x56xf32>
    %36 = arith.addf %35, %34 : vector<528x56xf32>
    %c0_41 = arith.constant 0 : index
    %c0_42 = arith.constant 0 : index
    %37 = vector.load %arg4[%c0_41, %c0_42] : memref<528x56xf32, #tpu.memory_space<vmem>>, vector<528x56xf32>
    tpu.vector_store %arg4[%c0_41, %c0_42], %36 {strides = array<i32>} : memref<528x56xf32, #tpu.memory_space<vmem>>, vector<528x56xf32>,
    %c0_43 = arith.constant 0 : index
    %c160 = arith.constant 160 : index
    %c0_44 = arith.constant 0 : index
    %38 = vector.load %arg1[%c0_43, %c160, %c0_44] : memref<1x720x256xbf16, #tpu.memory_space<vmem>>, vector<1x528x256xbf16>
    %39 = vector.shape_cast %38 : vector<1x528x256xbf16> to vector<528x256xbf16>
    %c5 = arith.constant 5 : index
    %c0_45 = arith.constant 0 : index
    %c0_46 = arith.constant 0 : index
    %40 = vector.load %arg2[%c5, %c0_45, %c0_46] : memref<7x256x56xbf16, #tpu.memory_space<vmem>>, vector<1x256x56xbf16>
    %41 = vector.shape_cast %40 : vector<1x256x56xbf16> to vector<256x56xbf16>
    %cst_47 = arith.constant dense<0.000000e+00> : vector<528x56xf32>
    %42 = tpu.matmul %39, %41, %cst_47 {dimension_numbers = #tpu.dot_dimension_numbers<[1], [0], [0], [1], [0, 0, 1, 1], [], []>} : vector<528x256xbf16>, vector<256x56xbf16>, vector<528x56xf32> -> vector<528x56xf32>
    %c0_48 = arith.constant 0 : index
    %c0_49 = arith.constant 0 : index
    %43 = vector.load %arg4[%c0_48, %c0_49] : memref<528x56xf32, #tpu.memory_space<vmem>>, vector<528x56xf32>
    %44 = arith.addf %43, %42 : vector<528x56xf32>
    %c0_50 = arith.constant 0 : index
    %c0_51 = arith.constant 0 : index
    %45 = vector.load %arg4[%c0_50, %c0_51] : memref<528x56xf32, #tpu.memory_space<vmem>>, vector<528x56xf32>
    tpu.vector_store %arg4[%c0_50, %c0_51], %44 {strides = array<i32>} : memref<528x56xf32, #tpu.memory_space<vmem>>, vector<528x56xf32>,
    %c0_52 = arith.constant 0 : index
    %c192 = arith.constant 192 : index
    %c0_53 = arith.constant 0 : index
    %46 = vector.load %arg1[%c0_52, %c192, %c0_53] : memref<1x720x256xbf16, #tpu.memory_space<vmem>>, vector<1x528x256xbf16>
    %47 = vector.shape_cast %46 : vector<1x528x256xbf16> to vector<528x256xbf16>
    %c6 = arith.constant 6 : index
    %c0_54 = arith.constant 0 : index
    %c0_55 = arith.constant 0 : index
    %48 = vector.load %arg2[%c6, %c0_54, %c0_55] : memref<7x256x56xbf16, #tpu.memory_space<vmem>>, vector<1x256x56xbf16>
    %49 = vector.shape_cast %48 : vector<1x256x56xbf16> to vector<256x56xbf16>
    %cst_56 = arith.constant dense<0.000000e+00> : vector<528x56xf32>
    %50 = tpu.matmul %47, %49, %cst_56 {dimension_numbers = #tpu.dot_dimension_numbers<[1], [0], [0], [1], [0, 0, 1, 1], [], []>} : vector<528x256xbf16>, vector<256x56xbf16>, vector<528x56xf32> -> vector<528x56xf32>
    %c0_57 = arith.constant 0 : index
    %c0_58 = arith.constant 0 : index
    %51 = vector.load %arg4[%c0_57, %c0_58] : memref<528x56xf32, #tpu.memory_space<vmem>>, vector<528x56xf32>
    %52 = arith.addf %51, %50 : vector<528x56xf32>
    %c0_59 = arith.constant 0 : index
    %c0_60 = arith.constant 0 : index
    %53 = vector.load %arg4[%c0_59, %c0_60] : memref<528x56xf32, #tpu.memory_space<vmem>>, vector<528x56xf32>
    tpu.vector_store %arg4[%c0_59, %c0_60], %52 {strides = array<i32>} : memref<528x56xf32, #tpu.memory_space<vmem>>, vector<528x56xf32>,
    %c0_61 = arith.constant 0 : index
    %c0_62 = arith.constant 0 : index
    %54 = vector.load %arg4[%c0_61, %c0_62] : memref<528x56xf32, #tpu.memory_space<vmem>>, vector<512x8xf32>
    %c1_63 = arith.constant 1 : index
    %c8 = arith.constant 8 : index
    %55 = vector.load %arg4[%c1_63, %c8] : memref<528x56xf32, #tpu.memory_space<vmem>>, vector<512x8xf32>
    %56 = arith.addf %54, %55 : vector<512x8xf32>
    %c0_64 = arith.constant 0 : index
    %c0_65 = arith.constant 0 : index
    %57 = vector.load %arg4[%c0_64, %c0_65] : memref<528x56xf32, #tpu.memory_space<vmem>>, vector<512x8xf32>
    tpu.vector_store %arg4[%c0_64, %c0_65], %56 {strides = array<i32>} : memref<528x56xf32, #tpu.memory_space<vmem>>, vector<512x8xf32>,
    %c0_66 = arith.constant 0 : index
    %c0_67 = arith.constant 0 : index
    %58 = vector.load %arg4[%c0_66, %c0_67] : memref<528x56xf32, #tpu.memory_space<vmem>>, vector<512x8xf32>
    %c2_68 = arith.constant 2 : index
    %c16 = arith.constant 16 : index
    %59 = vector.load %arg4[%c2_68, %c16] : memref<528x56xf32, #tpu.memory_space<vmem>>, vector<512x8xf32>
    %60 = arith.addf %58, %59 : vector<512x8xf32>
    %c0_69 = arith.constant 0 : index
    %c0_70 = arith.constant 0 : index
    %61 = vector.load %arg4[%c0_69, %c0_70] : memref<528x56xf32, #tpu.memory_space<vmem>>, vector<512x8xf32>
    tpu.vector_store %arg4[%c0_69, %c0_70], %60 {strides = array<i32>} : memref<528x56xf32, #tpu.memory_space<vmem>>, vector<512x8xf32>,
    %c0_71 = arith.constant 0 : index
    %c0_72 = arith.constant 0 : index
    %62 = vector.load %arg4[%c0_71, %c0_72] : memref<528x56xf32, #tpu.memory_space<vmem>>, vector<512x8xf32>
    %c3_73 = arith.constant 3 : index
    %c24 = arith.constant 24 : index
    %63 = vector.load %arg4[%c3_73, %c24] : memref<528x56xf32, #tpu.memory_space<vmem>>, vector<512x8xf32>
    %64 = arith.addf %62, %63 : vector<512x8xf32>
    %c0_74 = arith.constant 0 : index
    %c0_75 = arith.constant 0 : index
    %65 = vector.load %arg4[%c0_74, %c0_75] : memref<528x56xf32, #tpu.memory_space<vmem>>, vector<512x8xf32>
    tpu.vector_store %arg4[%c0_74, %c0_75], %64 {strides = array<i32>} : memref<528x56xf32, #tpu.memory_space<vmem>>, vector<512x8xf32>,
    %c0_76 = arith.constant 0 : index
    %c0_77 = arith.constant 0 : index
    %66 = vector.load %arg4[%c0_76, %c0_77] : memref<528x56xf32, #tpu.memory_space<vmem>>, vector<512x8xf32>
    %c4_78 = arith.constant 4 : index
    %c32_79 = arith.constant 32 : index
    %67 = vector.load %arg4[%c4_78, %c32_79] : memref<528x56xf32, #tpu.memory_space<vmem>>, vector<512x8xf32>
    %68 = arith.addf %66, %67 : vector<512x8xf32>
    %c0_80 = arith.constant 0 : index
    %c0_81 = arith.constant 0 : index
    %69 = vector.load %arg4[%c0_80, %c0_81] : memref<528x56xf32, #tpu.memory_space<vmem>>, vector<512x8xf32>
    tpu.vector_store %arg4[%c0_80, %c0_81], %68 {strides = array<i32>} : memref<528x56xf32, #tpu.memory_space<vmem>>, vector<512x8xf32>,
    %c0_82 = arith.constant 0 : index
    %c0_83 = arith.constant 0 : index
    %70 = vector.load %arg4[%c0_82, %c0_83] : memref<528x56xf32, #tpu.memory_space<vmem>>, vector<512x8xf32>
    %c5_84 = arith.constant 5 : index
    %c40 = arith.constant 40 : index
    %71 = vector.load %arg4[%c5_84, %c40] : memref<528x56xf32, #tpu.memory_space<vmem>>, vector<512x8xf32>
    %72 = arith.addf %70, %71 : vector<512x8xf32>
    %c0_85 = arith.constant 0 : index
    %c0_86 = arith.constant 0 : index
    %73 = vector.load %arg4[%c0_85, %c0_86] : memref<528x56xf32, #tpu.memory_space<vmem>>, vector<512x8xf32>
    tpu.vector_store %arg4[%c0_85, %c0_86], %72 {strides = array<i32>} : memref<528x56xf32, #tpu.memory_space<vmem>>, vector<512x8xf32>,
    %c0_87 = arith.constant 0 : index
    %c0_88 = arith.constant 0 : index
    %74 = vector.load %arg4[%c0_87, %c0_88] : memref<528x56xf32, #tpu.memory_space<vmem>>, vector<512x8xf32>
    %c6_89 = arith.constant 6 : index
    %c48 = arith.constant 48 : index
    %75 = vector.load %arg4[%c6_89, %c48] : memref<528x56xf32, #tpu.memory_space<vmem>>, vector<512x8xf32>
    %76 = arith.addf %74, %75 : vector<512x8xf32>
    %c0_90 = arith.constant 0 : index
    %c0_91 = arith.constant 0 : index
    %77 = vector.load %arg4[%c0_90, %c0_91] : memref<528x56xf32, #tpu.memory_space<vmem>>, vector<512x8xf32>
    tpu.vector_store %arg4[%c0_90, %c0_91], %76 {strides = array<i32>} : memref<528x56xf32, #tpu.memory_space<vmem>>, vector<512x8xf32>,
    %c0_92 = arith.constant 0 : index
    %c0_93 = arith.constant 0 : index
    %78 = vector.load %arg4[%c0_92, %c0_93] : memref<528x56xf32, #tpu.memory_space<vmem>>, vector<512x8xf32>
    %c0_94 = arith.constant 0 : index
    %c0_95 = arith.constant 0 : index
    %c0_96 = arith.constant 0 : index
    %79 = vector.load %arg3[%c0_94, %c0_95, %c0_96] : memref<1x512x8xf32, #tpu.memory_space<vmem>>, vector<1x512x8xf32>
    %80 = vector.shape_cast %79 : vector<1x512x8xf32> to vector<512x8xf32>
    %81 = vector.shape_cast %78 : vector<512x8xf32> to vector<1x512x8xf32>
    tpu.vector_store %arg3[%c0_94, %c0_95, %c0_96], %81 {strides = array<i32>} : memref<1x512x8xf32, #tpu.memory_space<vmem>>, vector<1x512x8xf32>,
    return
  }
  func.func @transform_0(%arg0: i32) -> (i32, i32, i32) {
    %c0_i32 = arith.constant 0 : i32
    %c0_i32_0 = arith.constant 0 : i32
    %c0_i32_1 = arith.constant 0 : i32
    return %arg0, %c0_i32, %c0_i32_0 : i32, i32, i32
  }
  func.func @transform_1(%arg0: i32) -> (i32, i32, i32) {
    %c0_i32 = arith.constant 0 : i32
    %c0_i32_0 = arith.constant 0 : i32
    %c0_i32_1 = arith.constant 0 : i32
    %c0_i32_2 = arith.constant 0 : i32
    return %c0_i32, %c0_i32_0, %c0_i32_1 : i32, i32, i32
  }
  func.func @transform_2(%arg0: i32) -> (i32, i32, i32) {
    %c0_i32 = arith.constant 0 : i32
    %c0_i32_0 = arith.constant 0 : i32
    %c0_i32_1 = arith.constant 0 : i32
    return %arg0, %c0_i32, %c0_i32_0 : i32, i32, i32
  }
}

</mosaic_0001>

<bundles_post_ra>
// kernel: sep_conv_out_2d.1
= control target key start
LH: loop header
LB: loop body
LE: loop exit
PB: predicated region body
PF: predicated region fallthrough
CT: control target
= control target key end

     0   :  { %s11745_s9 = smov 0   ;;  %s13984_s0 = inlined_call_operand.vmem [shape: bf16[2,720,256], index: 0, kind: input, shape index: {}]   ;;  %s13985_s1 = inlined_call_operand.vmem [shape: bf16[7,256,56], index: 1, kind: input, shape index: {}]   ;;  %s13986_s2 = inlined_call_operand.vmem [shape: f32[2,512,8], index: 2, kind: output, shape index: {}]  }
   0x1 LB: > { %s10409_s10 = sadd.s32 4294967295, %s11721_s9   ;;  %p10413_p0 = scmp.ge.s32.totalorder %s11721_s9, 1  ;;  %s11721_s9 = sphi %s11745_s9, %s12_s9  }
   0x2   : > { %p112_p1 = scmp.lt.s32.totalorder %s11721_s9, 3 }
   0x4   : > { %p113_p2 = pnand %p10413_p0, %p112_p1 }
   0x5   : > { %p134_p3 = scmp.lt.s32.totalorder (!%p113_p2), %s10409_s10, 1  ;;  %s11724_s13 = smov (!%p113_p2), 120  }
   0x6   : > { %116 = sbr.rel (%p113_p2) target bundleno = 1966 (0x7ae), region = 28  ;;  %s11726_s14 = smov (!%p113_p2), 104  }
   0x7   : > { %s11727_s15 = smov (!%p113_p2), 96   ;;  %s11728_s16 = smov (!%p113_p2), 88  }
   0x8   : > { %s11729_s17 = smov (!%p113_p2), 80  }
   0xb   : > { %v11234_v0 = vld [vmem:[%s13985_s1 + $0x38] sm:$0xff]   ;;  %v11723_v1 = vmov 0   ;;  %v11235_v2 = vld [vmem:[%s13985_s1 + $0x30] sm:$0xff]   ;;  %v11236_v3 = vld [vmem:[%s13985_s1 + $0x28] sm:$0xff]   ;;  %s13988_s10 = smov (!%p134_p3, %s10409_s10), 1  ;;  %vm966_vm0 = vcmask 457728  }
   0xc   : > { %669 = vmatprep.subr.bf16.mxu0 %v11723_v1  ;;  %11186 = vmatprep.subr.bf16.mxu1 %v11723_v1  ;;  %v11237_v4 = vld [vmem:[%s13985_s1 + $0x20] sm:$0xff]   ;;  %s11218_s19 = smul.u32 720, %s13988_s10  ;;  %v11238_v5 = vld [vmem:[%s13985_s1 + $0x18] sm:$0xff]   ;;  %v11239_v7 = vld [vmem:[%s13985_s1 + $0x10] sm:$0xff]   ;;  %vm7601_vm1 = vcmask 64512   ;;  %s11185_s18 = sshll.u32 %s13988_s10, 9 }
   0xd   : > { %670 = vmatpush1.bf16.msra.mxu0 %v11234_v0  ;;  %11202 = vmatpush1.bf16.msra.mxu1 %v11234_v0  ;;  %v11240_v9 = vld [vmem:[%s13985_s1 + $0x8] sm:$0xff]   ;;  %v11241_v10 = vld [vmem:[%s13985_s1] sm:$0xff]   ;;  %v11242_v11 = vld [vmem:[%s13985_s1 + $0x78] sm:$0xff]   ;;  %s13727_s21 = scalar_lea.vmem %s13986_s2, %s11185_s18 }
   0xe   : > { %671 = vmatprep.subr.bf16.mxu0 %v11723_v1  ;;  %11187 = vmatprep.subr.bf16.mxu1 %v11723_v1  ;;  %s11782_s24 = scalar_lea.vmem %s13984_s0, %s11218_s19  ;;  %v11243_v12 = vld [vmem:[%s13985_s1 + $0x70] sm:$0xff]   ;;  %v11244_v13 = vld [vmem:[%s13985_s1 + $0x68] sm:$0xff]   ;;  %v11245_v14 = vld [vmem:[%s13985_s1 + $0x60] sm:$0xff]  }
   0xf   : > { %v11252_v6 = vld [vmem:[%s11782_s24 + $0x4] ss:$8 sps:$4 sm:$0xff]   ;;  %v11255_v8 = vld [vmem:[%s11782_s24 + $0x114] ss:$8 sps:$4 sm:$0xff]   ;;  %v11250_v19 = vld [vmem:[%s11782_s24] ss:$8 sps:$4 sm:$0xff]  }
  0x10   : > { %701 = vmatprep.mubr.bf16.mxu0 %v11252_v6  ;;  %837 = vmatprep.mubr.bf16.mxu1 %v11255_v8  ;;  %v11246_v15 = vld [vmem:[%s13985_s1 + $0x58] sm:$0xff]   ;;  %v11247_v16 = vld [vmem:[%s13985_s1 + $0x50] sm:$0xff]   ;;  %v11248_v17 = vld [vmem:[%s13985_s1 + $0x48] sm:$0xff]  }
  0x11   : > { %672 = vmatpush1.bf16.msra.mxu0 %v11235_v2  ;;  %11203 = vmatpush1.bf16.msra.mxu1 %v11235_v2  ;;  %v11249_v18 = vld [vmem:[%s13985_s1 + $0x40] sm:$0xff]   ;;  %v11253_v20 = vld [vmem:[%s11782_s24 + $0x110] ss:$8 sps:$4 sm:$0xff]   ;;  %v11258_v23 = vld [vmem:[%s11782_s24 + $0x14] ss:$8 sps:$4 sm:$0xff]  }
  0x12   : > { %673 = vmatprep.subr.bf16.mxu0 %v11723_v1  ;;  %11188 = vmatprep.subr.bf16.mxu1 %v11723_v1  ;;  %v11256_v21 = vld [vmem:[%s13985_s1 + $0xb8] sm:$0xff]   ;;  %v11260_v24 = vld [vmem:[%s11782_s24 + $0x124] ss:$8 sps:$4 sm:$0xff]   ;;  %v11264_v25 = vld [vmem:[%s13985_s1 + $0xb0] sm:$0xff]  }
  0x13   : > { %v11257_v22 = vld [vmem:[%s13985_s1 + $0x138] sm:$0xff]   ;;  %v11265_v26 = vld [vmem:[%s13985_s1 + $0x130] sm:$0xff]   ;;  %v11263_v28 = vld [vmem:[%s11782_s24 + $0x120] ss:$8 sps:$4 sm:$0xff]  }
  0x14   : > { %v11262_v27 = vld [vmem:[%s11782_s24 + $0x10] ss:$8 sps:$4 sm:$0xff]   ;;  %v11866_v29 = vld [vmem:[%s11782_s24 + $0x24] ss:$8 sps:$4 sm:$0xff]   ;;  %v11268_v30 = vld [vmem:[%s11782_s24 + $0x134] ss:$8 sps:$4 sm:$0xff]  }
  0x15   : > { %674 = vmatpush1.bf16.msra.mxu0 %v11236_v3  ;;  %11204 = vmatpush1.bf16.msra.mxu1 %v11236_v3  ;;  %v11272_v31 = vld [vmem:[%s13985_s1 + $0xa8] sm:$0xff]   ;;  %v11280_v33 = vld [vmem:[%s13985_s1 + $0xa0] sm:$0xff]   ;;  %v11271_v36 = vld [vmem:[%s11782_s24 + $0x130] ss:$8 sps:$4 sm:$0xff]  }
  0x16   : > { %675 = vmatprep.subr.bf16.mxu0 %v11723_v1  ;;  %11189 = vmatprep.subr.bf16.mxu1 %v11723_v1  ;;  %v11273_v32 = vld [vmem:[%s13985_s1 + $0x128] sm:$0xff]   ;;  %v11281_v35 = vld [vmem:[%s13985_s1 + $0x120] sm:$0xff]   ;;  %v11891_v37 = vld [vmem:[%s11782_s24 + $0x34] ss:$8 sps:$4 sm:$0xff]  }
  0x17   : > { %v11882_v34 = vld [vmem:[%s11782_s24 + $0x20] ss:$8 sps:$4 sm:$0xff]   ;;  %v11276_v38 = vld [vmem:[%s11782_s24 + $0x144] ss:$8 sps:$4 sm:$0xff]   ;;  %v11288_v39 = vld [vmem:[%s13985_s1 + $0x98] sm:$0xff]  }
  0x18   : > { %v11289_v40 = vld [vmem:[%s13985_s1 + $0x118] sm:$0xff]   ;;  %v11296_v41 = vld [vmem:[%s13985_s1 + $0x90] sm:$0xff]   ;;  %v11279_v44 = vld [vmem:[%s11782_s24 + $0x140] ss:$8 sps:$4 sm:$0xff]  }
  0x19   : > { %676 = vmatpush1.bf16.msra.mxu0 %v11237_v4  ;;  %11205 = vmatpush1.bf16.msra.mxu1 %v11237_v4  ;;  %v11908_v42 = vld [vmem:[%s11782_s24 + $0x30] ss:$8 sps:$4 sm:$0xff]   ;;  %v11917_v45 = vld [vmem:[%s11782_s24 + $0x44] ss:$8 sps:$4 sm:$0xff]   ;;  %v11284_v46 = vld [vmem:[%s11782_s24 + $0x154] ss:$8 sps:$4 sm:$0xff]  }
  0x1a   : > { %677 = vmatprep.subr.bf16.mxu0 %v11723_v1  ;;  %11190 = vmatprep.subr.bf16.mxu1 %v11723_v1  ;;  %v11297_v43 = vld [vmem:[%s13985_s1 + $0x110] sm:$0xff]   ;;  %v11304_v47 = vld [vmem:[%s13985_s1 + $0x88] sm:$0xff]   ;;  %v11312_v49 = vld [vmem:[%s13985_s1 + $0x80] sm:$0xff]  }
  0x1b   : > { %v11305_v48 = vld [vmem:[%s13985_s1 + $0x108] sm:$0xff]   ;;  %v11287_v51 = vld [vmem:[%s11782_s24 + $0x150] ss:$8 sps:$4 sm:$0xff]   ;;  %v11317_v52 = vld [vmem:[%s13985_s1 + $0x100] sm:$0xff]  }
  0x1c   : > { %v11934_v50 = vld [vmem:[%s11782_s24 + $0x40] ss:$8 sps:$4 sm:$0xff]   ;;  %v11941_v53 = vld [vmem:[%s11782_s24 + $0x54] ss:$8 sps:$4 sm:$0xff]   ;;  %v11292_v54 = vld [vmem:[%s11782_s24 + $0x164] ss:$8 sps:$4 sm:$0xff]  }
  0x1d   : > { %678 = vmatpush1.bf16.msra.mxu0 %v11238_v5  ;;  %11206 = vmatpush1.bf16.msra.mxu1 %v11238_v5  ;;  %v11320_v55 = vld [vmem:[%s13985_s1 + $0xf8] sm:$0xff]   ;;  %v11328_v57 = vld [vmem:[%s13985_s1 + $0xf0] sm:$0xff]   ;;  %v11295_v60 = vld [vmem:[%s11782_s24 + $0x160] ss:$8 sps:$4 sm:$0xff]  }
  0x1e   : > { %679 = vmatprep.subr.bf16.mxu0 %v11723_v1  ;;  %11191 = vmatprep.subr.bf16.mxu1 %v11723_v1  ;;  %v11325_v56 = vld [vmem:[%s13985_s1 + $0x178] sm:$0xff]   ;;  %v11335_v58 = vld [vmem:[%s13985_s1 + $0x170] sm:$0xff]   ;;  %v11967_v61 = vld [vmem:[%s11782_s24 + $0x64] ss:$8 sps:$4 sm:$0xff]  }
  0x1f   : > { %v11963_v59 = vld [vmem:[%s11782_s24 + $0x50] ss:$8 sps:$4 sm:$0xff]   ;;  %v11300_v62 = vld [vmem:[%s11782_s24 + $0x174] ss:$8 sps:$4 sm:$0xff]   ;;  %v11336_v63 = vld [vmem:[%s13985_s1 + $0xe8] sm:$0xff]  }
  0x20   : > { %v11343_v0 = vld [vmem:[%s13985_s1 + $0x168] sm:$0xff]   ;;  %v11344_v2 = vld [vmem:[%s13985_s1 + $0xe0] sm:$0xff]   ;;  %v11303_v5 = vld [vmem:[%s11782_s24 + $0x170] ss:$8 sps:$4 sm:$0xff]  }
  0x21   : > { %680 = vmatpush1.bf16.msra.mxu0 %v11239_v7  ;;  %11207 = vmatpush1.bf16.msra.mxu1 %v11239_v7  ;;  %v11352_v3 = vld [vmem:[%s13985_s1 + $0x160] sm:$0xff]   ;;  %v11993_v6 = vld [vmem:[%s11782_s24 + $0x74] ss:$8 sps:$4 sm:$0xff]  }
  0x22   : > { %681 = vmatprep.subr.bf16.mxu0 %v11723_v1  ;;  %11192 = vmatprep.subr.bf16.mxu1 %v11723_v1  ;;  %v11989_v4 = vld [vmem:[%s11782_s24 + $0x60] ss:$8 sps:$4 sm:$0xff]   ;;  %v11308_v7 = vld [vmem:[%s11782_s24 + $0x184] ss:$8 sps:$4 sm:$0xff]   ;;  %v11351_v8 = vld [vmem:[%s13985_s1 + $0xd8] sm:$0xff]  }
  0x25   : > { %682 = vmatpush1.bf16.msra.mxu0 %v11240_v9  ;;  %11208 = vmatpush1.bf16.msra.mxu1 %v11240_v9  ;;  %v11360_v9 = vld [vmem:[%s13985_s1 + $0x158] sm:$0xff]  }
  0x26   : > { %683 = vmatprep.subr.bf16.mxu0 %v11723_v1  ;;  %11193 = vmatprep.subr.bf16.mxu1 %v11723_v1 }
  0x29   : > { %684 = vmatpush1.bf16.msra.mxu0 %v11241_v10  ;;  %11209 = vmatpush1.bf16.msra.mxu1 %v11241_v10  ;;  %v11359_v10 = vld [vmem:[%s13985_s1 + $0xd0] sm:$0xff]  }
  0x2a   : > { %685 = vmatprep.subr.bf16.mxu0 %v11723_v1  ;;  %11194 = vmatprep.subr.bf16.mxu1 %v11723_v1 }
  0x2d   : > { %686 = vmatpush2.bf16.msra.mxu0 %v11242_v11  ;;  %11210 = vmatpush2.bf16.msra.mxu1 %v11242_v11  ;;  %v11368_v11 = vld [vmem:[%s13985_s1 + $0x150] sm:$0xff]  }
  0x2e   : > { %687 = vmatprep.subr.bf16.mxu0 %v11723_v1  ;;  %11195 = vmatprep.subr.bf16.mxu1 %v11723_v1 }
  0x31   : > { %688 = vmatpush2.bf16.msra.mxu0 %v11243_v12  ;;  %11211 = vmatpush2.bf16.msra.mxu1 %v11243_v12  ;;  %v12015_v12 = vld [vmem:[%s11782_s24 + $0x70] ss:$8 sps:$4 sm:$0xff]  }
  0x32   : > { %689 = vmatprep.subr.bf16.mxu0 %v11723_v1  ;;  %11196 = vmatprep.subr.bf16.mxu1 %v11723_v1 }
  0x35   : > { %690 = vmatpush2.bf16.msra.mxu0 %v11244_v13  ;;  %11212 = vmatpush2.bf16.msra.mxu1 %v11244_v13  ;;  %v11311_v13 = vld [vmem:[%s11782_s24 + $0x180] ss:$8 sps:$4 sm:$0xff]  }
  0x36   : > { %691 = vmatprep.subr.bf16.mxu0 %v11723_v1  ;;  %11197 = vmatprep.subr.bf16.mxu1 %v11723_v1 }
  0x39   : > { %692 = vmatpush2.bf16.msra.mxu0 %v11245_v14  ;;  %11213 = vmatpush2.bf16.msra.mxu1 %v11245_v14  ;;  %v12019_v14 = vld [vmem:[%s11782_s24 + $0x84] ss:$8 sps:$4 sm:$0xff]  }
  0x3a   : > { %693 = vmatprep.subr.bf16.mxu0 %v11723_v1  ;;  %11198 = vmatprep.subr.bf16.mxu1 %v11723_v1 }
  0x3d   : > { %694 = vmatpush2.bf16.msra.mxu0 %v11246_v15  ;;  %11214 = vmatpush2.bf16.msra.mxu1 %v11246_v15  ;;  %v11315_v15 = vld [vmem:[%s11782_s24 + $0x194] ss:$8 sps:$4 sm:$0xff]  }
  0x3e   : > { %695 = vmatprep.subr.bf16.mxu0 %v11723_v1  ;;  %11199 = vmatprep.subr.bf16.mxu1 %v11723_v1 }
  0x41   : > { %696 = vmatpush2.bf16.msra.mxu0 %v11247_v16  ;;  %11215 = vmatpush2.bf16.msra.mxu1 %v11247_v16  ;;  %v11367_v16 = vld [vmem:[%s13985_s1 + $0xc8] sm:$0xff]  }
  0x42   : > { %697 = vmatprep.subr.bf16.mxu0 %v11723_v1  ;;  %11200 = vmatprep.subr.bf16.mxu1 %v11723_v1 }
  0x45   : > { %698 = vmatpush2.bf16.msra.mxu0 %v11248_v17  ;;  %11216 = vmatpush2.bf16.msra.mxu1 %v11248_v17  ;;  %v11376_v17 = vld [vmem:[%s13985_s1 + $0x148] sm:$0xff]  }
  0x46   : > { %699 = vmatprep.subr.bf16.mxu0 %v11723_v1  ;;  %11201 = vmatprep.subr.bf16.mxu1 %v11723_v1 }
  0x49   : > { %700 = vmatpush2.bf16.msra.mxu0 %v11249_v18  ;;  %11217 = vmatpush2.bf16.msra.mxu1 %v11249_v18  ;;  %v11375_v18 = vld [vmem:[%s13985_s1 + $0xc0] sm:$0xff]  }
  0x4a   : > { %1558 = vmatprep.subr.bf16.mxu1 %v11723_v1  ;;  %2578 = vmatprep.subr.bf16.mxu0 %v11723_v1 }
  0x4c   : > { %702 = vmatmul.mubr.bf16.vlgmr.msra.gmra.mxu0 %v11250_v19  ;;  %838 = vmatmul.mubr.bf16.vlgmr.msra.gmra.mxu1 %v11253_v20  ;;  %v11381_v19 = vld [vmem:[%s13985_s1 + $0x140] sm:$0xff]  }
  0x4d   : > { %1559 = vmatpush1.bf16.msra.mxu1 %v11256_v21  ;;  %2579 = vmatpush1.bf16.msra.mxu0 %v11257_v22  ;;  %v12041_v20 = vld [vmem:[%s11782_s24 + $0x80] ss:$8 sps:$4 sm:$0xff]   ;;  %v11319_v21 = vld [vmem:[%s11782_s24 + $0x190] ss:$8 sps:$4 sm:$0xff]   ;;  %v12045_v22 = vld [vmem:[%s11782_s24 + $0x94] ss:$8 sps:$4 sm:$0xff]  }
  0x4e   : > { %709 = vmatprep.mubr.bf16.mxu0 %v11258_v23  ;;  %845 = vmatprep.mubr.bf16.mxu1 %v11260_v24  ;;  %v11323_v23 = vld [vmem:[%s11782_s24 + $0x1a4] ss:$8 sps:$4 sm:$0xff]   ;;  %v12055_v24 = vld [vmem:[%s11782_s24 + $0x90] ss:$8 sps:$4 sm:$0xff]  }
  0x4f   : > { %1560 = vmatprep.subr.bf16.mxu1 %v11723_v1  ;;  %2580 = vmatprep.subr.bf16.mxu0 %v11723_v1 }
  0x51   : > { %1561 = vmatpush1.bf16.msra.mxu1 %v11264_v25  ;;  %2581 = vmatpush1.bf16.msra.mxu0 %v11265_v26  ;;  %v11327_v25 = vld [vmem:[%s11782_s24 + $0x1a0] ss:$8 sps:$4 sm:$0xff]   ;;  %v12059_v26 = vld [vmem:[%s11782_s24 + $0xa4] ss:$8 sps:$4 sm:$0xff]  }
  0x52   : > { %1562 = vmatprep.subr.bf16.mxu1 %v11723_v1  ;;  %2582 = vmatprep.subr.bf16.mxu0 %v11723_v1 }
  0x54   : > { %710 = vmatmul.mubr.bf16.gmra.mxu0 %v11262_v27  ;;  %846 = vmatmul.mubr.bf16.gmra.mxu1 %v11263_v28  ;;  %v11331_v27 = vld [vmem:[%s11782_s24 + $0x1b4] ss:$8 sps:$4 sm:$0xff]   ;;  %v12065_v28 = vld [vmem:[%s11782_s24 + $0xa0] ss:$8 sps:$4 sm:$0xff]  }
  0x55   : > { %717 = vmatprep.mubr.bf16.mxu0 %v11866_v29  ;;  %853 = vmatprep.mubr.bf16.mxu1 %v11268_v30  ;;  %v11334_v30 = vld [vmem:[%s11782_s24 + $0x1b0] ss:$8 sps:$4 sm:$0xff]  }
  0x56   : > { %1563 = vmatpush1.bf16.msra.mxu1 %v11272_v31  ;;  %2583 = vmatpush1.bf16.msra.mxu0 %v11273_v32  ;;  %v12069_v31 = vld [vmem:[%s11782_s24 + $0xb4] ss:$8 sps:$4 sm:$0xff]   ;;  %v11339_v32 = vld [vmem:[%s11782_s24 + $0x1c4] ss:$8 sps:$4 sm:$0xff]  }
  0x57   : > { %1564 = vmatprep.subr.bf16.mxu1 %v11723_v1  ;;  %2584 = vmatprep.subr.bf16.mxu0 %v11723_v1 }
  0x5a   : > { %1565 = vmatpush1.bf16.msra.mxu1 %v11280_v33  ;;  %2585 = vmatpush1.bf16.msra.mxu0 %v11281_v35  ;;  %v12075_v33 = vld [vmem:[%s11782_s24 + $0xb0] ss:$8 sps:$4 sm:$0xff]   ;;  %v11342_v35 = vld [vmem:[%s11782_s24 + $0x1c0] ss:$8 sps:$4 sm:$0xff]  }
  0x5b   : > { %1566 = vmatprep.subr.bf16.mxu1 %v11723_v1  ;;  %2586 = vmatprep.subr.bf16.mxu0 %v11723_v1 }
  0x5c   : > { %718 = vmatmul.mubr.bf16.gmra.mxu0 %v11882_v34  ;;  %854 = vmatmul.mubr.bf16.gmra.mxu1 %v11271_v36  ;;  %v12079_v36 = vld [vmem:[%s11782_s24 + $0xc4] ss:$8 sps:$4 sm:$0xff]  }
  0x5d   : > { %725 = vmatprep.mubr.bf16.mxu0 %v11891_v37  ;;  %861 = vmatprep.mubr.bf16.mxu1 %v11276_v38  ;;  %v11347_v38 = vld [vmem:[%s11782_s24 + $0x1d4] ss:$8 sps:$4 sm:$0xff]  }
  0x5e   : > { %1567 = vmatpush1.bf16.msra.mxu1 %v11288_v39  ;;  %2587 = vmatpush1.bf16.msra.mxu0 %v11289_v40  ;;  %v12085_v39 = vld [vmem:[%s11782_s24 + $0xc0] ss:$8 sps:$4 sm:$0xff]   ;;  %v11350_v40 = vld [vmem:[%s11782_s24 + $0x1d0] ss:$8 sps:$4 sm:$0xff]  }
  0x5f   : > { %1568 = vmatprep.subr.bf16.mxu1 %v11723_v1  ;;  %2588 = vmatprep.subr.bf16.mxu0 %v11723_v1 }
  0x62   : > { %1569 = vmatpush1.bf16.msra.mxu1 %v11296_v41  ;;  %2589 = vmatpush1.bf16.msra.mxu0 %v11297_v43  ;;  %v12089_v41 = vld [vmem:[%s11782_s24 + $0xd4] ss:$8 sps:$4 sm:$0xff]   ;;  %v11355_v43 = vld [vmem:[%s11782_s24 + $0x1e4] ss:$8 sps:$4 sm:$0xff]  }
  0x63   : > { %1570 = vmatprep.subr.bf16.mxu1 %v11723_v1  ;;  %2590 = vmatprep.subr.bf16.mxu0 %v11723_v1 }
  0x64   : > { %726 = vmatmul.mubr.bf16.gmra.mxu0 %v11908_v42  ;;  %862 = vmatmul.mubr.bf16.gmra.mxu1 %v11279_v44  ;;  %v12095_v44 = vld [vmem:[%s11782_s24 + $0xd0] ss:$8 sps:$4 sm:$0xff]  }
  0x65   : > { %733 = vmatprep.mubr.bf16.mxu0 %v11917_v45  ;;  %869 = vmatprep.mubr.bf16.mxu1 %v11284_v46  ;;  %v11358_v46 = vld [vmem:[%s11782_s24 + $0x1e0] ss:$8 sps:$4 sm:$0xff]  }
  0x66   : > { %1571 = vmatpush1.bf16.msra.mxu1 %v11304_v47  ;;  %2591 = vmatpush1.bf16.msra.mxu0 %v11305_v48  ;;  %v12099_v47 = vld [vmem:[%s11782_s24 + $0xe4] ss:$8 sps:$4 sm:$0xff]   ;;  %v11363_v48 = vld [vmem:[%s11782_s24 + $0x1f4] ss:$8 sps:$4 sm:$0xff]  }
  0x67   : > { %1572 = vmatprep.subr.bf16.mxu1 %v11723_v1  ;;  %2592 = vmatprep.subr.bf16.mxu0 %v11723_v1 }
  0x6a   : > { %1573 = vmatpush1.bf16.msra.mxu1 %v11312_v49  ;;  %2593 = vmatpush1.bf16.msra.mxu0 %v11317_v52  ;;  %v12105_v49 = vld [vmem:[%s11782_s24 + $0xe0] ss:$8 sps:$4 sm:$0xff]   ;;  %v12109_v52 = vld [vmem:[%s11782_s24 + $0xf4] ss:$8 sps:$4 sm:$0xff]  }
  0x6b   : > { %1574 = vmatprep.subr.bf16.mxu1 %v11723_v1  ;;  %2594 = vmatprep.subr.bf16.mxu0 %v11723_v1 }
  0x6c   : > { %734 = vmatmul.mubr.bf16.gmra.mxu0 %v11934_v50  ;;  %870 = vmatmul.mubr.bf16.gmra.mxu1 %v11287_v51  ;;  %v11366_v51 = vld [vmem:[%s11782_s24 + $0x1f0] ss:$8 sps:$4 sm:$0xff]  }
  0x6d   : > { %741 = vmatprep.mubr.bf16.mxu0 %v11941_v53  ;;  %877 = vmatprep.mubr.bf16.mxu1 %v11292_v54  ;;  %v11371_v54 = vld [vmem:[%s11782_s24 + $0x204] ss:$8 sps:$4 sm:$0xff]  }
  0x6e   : > { %1575 = vmatpush2.bf16.msra.mxu1 %v11320_v55  ;;  %2595 = vmatpush2.bf16.msra.mxu0 %v11325_v56  ;;  %v12115_v55 = vld [vmem:[%s11782_s24 + $0xf0] ss:$8 sps:$4 sm:$0xff]   ;;  %v11374_v56 = vld [vmem:[%s11782_s24 + $0x200] ss:$8 sps:$4 sm:$0xff]  }
  0x6f   : > { %1576 = vmatprep.subr.bf16.mxu1 %v11723_v1  ;;  %2596 = vmatprep.subr.bf16.mxu0 %v11723_v1 }
  0x72   : > { %1577 = vmatpush2.bf16.msra.mxu1 %v11328_v57  ;;  %2597 = vmatpush2.bf16.msra.mxu0 %v11335_v58  ;;  %v12119_v57 = vld [vmem:[%s11782_s24 + $0x104] ss:$8 sps:$4 sm:$0xff]   ;;  %v12125_v58 = vld [vmem:[%s11782_s24 + $0x100] ss:$8 sps:$4 sm:$0xff]  }
  0x73   : > { %1578 = vmatprep.subr.bf16.mxu1 %v11723_v1  ;;  %2598 = vmatprep.subr.bf16.mxu0 %v11723_v1 }
  0x74   : > { %742 = vmatmul.mubr.bf16.gmra.mxu0 %v11963_v59  ;;  %878 = vmatmul.mubr.bf16.gmra.mxu1 %v11295_v60  ;;  %v11380_v60 = vld [vmem:[%s13985_s1 + $0x1b8] sm:$0xff]  }
  0x75   : > { %749 = vmatprep.mubr.bf16.mxu0 %v11967_v61  ;;  %885 = vmatprep.mubr.bf16.mxu1 %v11300_v62  ;;  %v11383_v62 = vld [vmem:[%s13985_s1 + $0x1b0] sm:$0xff]  }
  0x76   : > { %1579 = vmatpush2.bf16.msra.mxu1 %v11336_v63  ;;  %2599 = vmatpush2.bf16.msra.mxu0 %v11343_v0  ;;  %v11385_v63 = vld [vmem:[%s13985_s1 + $0x1a8] sm:$0xff]   ;;  %v11388_v0 = vld [vmem:[%s13985_s1 + $0x220] sm:$0xff]  }
  0x77   : > { %1580 = vmatprep.subr.bf16.mxu1 %v11723_v1  ;;  %2600 = vmatprep.subr.bf16.mxu0 %v11723_v1 }
  0x7a   : > { %1581 = vmatpush2.bf16.msra.mxu1 %v11344_v2  ;;  %2601 = vmatpush2.bf16.msra.mxu0 %v11352_v3  ;;  %v11393_v2 = vld [vmem:[%s13985_s1 + $0x188] sm:$0xff]   ;;  %v11392_v3 = vld [vmem:[%s13985_s1 + $0x210] sm:$0xff]  }
  0x7b   : > { %1582 = vmatprep.subr.bf16.mxu1 %v11723_v1  ;;  %2602 = vmatprep.subr.bf16.mxu0 %v11723_v1 }
  0x7c   : > { %750 = vmatmul.mubr.bf16.gmra.mxu0 %v11989_v4  ;;  %886 = vmatmul.mubr.bf16.gmra.mxu1 %v11303_v5  ;;  %v11406_v5 = vld [vmem:[%s13985_s1 + $0x1f8] sm:$0xff]  }
  0x7d   : > { %757 = vmatprep.mubr.bf16.mxu0 %v11993_v6  ;;  %893 = vmatprep.mubr.bf16.mxu1 %v11308_v7  ;;  %v11405_v7 = vld [vmem:[%s13985_s1 + $0x200] sm:$0xff]  }
  0x7e   : > { %1583 = vmatpush2.bf16.msra.mxu1 %v11351_v8  ;;  %2603 = vmatpush2.bf16.msra.mxu0 %v11360_v9  ;;  %v11422_v8 = vld [vmem:[%s13985_s1 + $0x1e8] sm:$0xff]   ;;  %v11421_v9 = vld [vmem:[%s13985_s1 + $0x270] sm:$0xff]  }
  0x7f   : > { %1584 = vmatprep.subr.bf16.mxu1 %v11723_v1  ;;  %2604 = vmatprep.subr.bf16.mxu0 %v11723_v1 }
  0x82   : > { %1585 = vmatpush2.bf16.msra.mxu1 %v11359_v10  ;;  %2605 = vmatpush2.bf16.msra.mxu0 %v11368_v11  ;;  %v11429_v10 = vld [vmem:[%s13985_s1 + $0x268] sm:$0xff]   ;;  %v11433_v11 = vld [vmem:[%s13985_s1 + $0x1e0] sm:$0xff]  }
  0x83   : > { %1586 = vmatprep.subr.bf16.mxu1 %v11723_v1  ;;  %2606 = vmatprep.subr.bf16.mxu0 %v11723_v1 }
  0x84   : > { %758 = vmatmul.mubr.bf16.gmra.mxu0 %v12015_v12  ;;  %894 = vmatmul.mubr.bf16.gmra.mxu1 %v11311_v13 }
  0x85   : > { %765 = vmatprep.mubr.bf16.mxu0 %v12019_v14  ;;  %901 = vmatprep.mubr.bf16.mxu1 %v11315_v15 }
  0x86   : > { %1587 = vmatpush2.bf16.msra.mxu1 %v11367_v16  ;;  %2607 = vmatpush2.bf16.msra.mxu0 %v11376_v17  ;;  %v11437_v16 = vld [vmem:[%s13985_s1 + $0x260] sm:$0xff]  }
  0x87   : > { %1588 = vmatprep.subr.bf16.mxu1 %v11723_v1  ;;  %2608 = vmatprep.subr.bf16.mxu0 %v11723_v1 }
  0x8a   : > { %1589 = vmatpush2.bf16.msra.mxu1 %v11375_v18  ;;  %2609 = vmatpush2.bf16.msra.mxu0 %v11381_v19 }
  0x8b   : > { %3598 = vmatprep.subr.bf16.mxu1 %v11723_v1  ;;  %4618 = vmatprep.subr.bf16.mxu0 %v11723_v1 }
  0x8c   : > { %766 = vmatmul.mubr.bf16.gmra.mxu0 %v12041_v20  ;;  %902 = vmatmul.mubr.bf16.gmra.mxu1 %v11319_v21  ;;  %v11441_v21 = vld [vmem:[%s13985_s1 + $0x1d8] sm:$0xff]  }
  0x8d   : > { %773 = vmatprep.mubr.bf16.mxu0 %v12045_v22  ;;  %909 = vmatprep.mubr.bf16.mxu1 %v11323_v23 }
  0x94   : > { %774 = vmatmul.mubr.bf16.gmra.mxu0 %v12055_v24  ;;  %910 = vmatmul.mubr.bf16.gmra.mxu1 %v11327_v25 }
  0x95   : > { %781 = vmatprep.mubr.bf16.mxu0 %v12059_v26  ;;  %917 = vmatprep.mubr.bf16.mxu1 %v11331_v27 }
  0x9c   : > { %782 = vmatmul.mubr.bf16.gmra.mxu0 %v12065_v28  ;;  %918 = vmatmul.mubr.bf16.gmra.mxu1 %v11334_v30 }
  0x9d   : > { %789 = vmatprep.mubr.bf16.mxu0 %v12069_v31  ;;  %925 = vmatprep.mubr.bf16.mxu1 %v11339_v32 }
  0xa4   : > { %790 = vmatmul.mubr.bf16.gmra.mxu0 %v12075_v33  ;;  %926 = vmatmul.mubr.bf16.gmra.mxu1 %v11342_v35 }
  0xa5   : > { %797 = vmatprep.mubr.bf16.mxu0 %v12079_v36  ;;  %933 = vmatprep.mubr.bf16.mxu1 %v11347_v38 }
  0xac   : > { %798 = vmatmul.mubr.bf16.gmra.mxu0 %v12085_v39  ;;  %934 = vmatmul.mubr.bf16.gmra.mxu1 %v11350_v40 }
  0xad   : > { %805 = vmatprep.mubr.bf16.mxu0 %v12089_v41  ;;  %941 = vmatprep.mubr.bf16.mxu1 %v11355_v43 }
  0xb4   : > { %806 = vmatmul.mubr.bf16.gmra.mxu0 %v12095_v44  ;;  %942 = vmatmul.mubr.bf16.gmra.mxu1 %v11358_v46 }
  0xb5   : > { %813 = vmatprep.mubr.bf16.mxu0 %v12099_v47  ;;  %949 = vmatprep.mubr.bf16.mxu1 %v11363_v48 }
  0xbc   : > { %814 = vmatmul.mubr.bf16.gmra.mxu0 %v12105_v49  ;;  %950 = vmatmul.mubr.bf16.gmra.mxu1 %v11366_v51 }
  0xbd   : > { %821 = vmatprep.mubr.bf16.mxu0 %v12109_v52  ;;  %957 = vmatprep.mubr.bf16.mxu1 %v11371_v54 }
  0xc4   : > { %822 = vmatmul.mubr.bf16.gmra.mxu0 %v12115_v55  ;;  %958 = vmatmul.mubr.bf16.gmra.mxu1 %v11374_v56 }
  0xc5   : > { %829 = vmatprep.mubr.bf16.mxu0 %v12119_v57  ;;  %1590 = vmatprep.mubr.bf16.mxu1 %v11866_v29  ;;  %v11382_v29 = vld [vmem:[%s13985_s1 + $0x238] sm:$0xff]  }
  0xcc   : > { %830 = vmatmul.mubr.bf16.gmra.mxu0 %v12125_v58  ;;  %1591 = vmatmul.mubr.bf16.vlgmr.msra.gmra.mxu1 %v11882_v34  ;;  %v11384_v34 = vld [vmem:[%s13985_s1 + $0x230] sm:$0xff]  }
  0xcd   : > { %3599 = vmatpush1.bf16.msra.mxu1 %v11380_v60  ;;  %1598 = vmatprep.mubr.bf16.mxu1 %v11891_v37  ;;  %v11387_v37 = vld [vmem:[%s13985_s1 + $0x1a0] sm:$0xff]  }
  0xce   : > { %2610 = vmatprep.mubr.bf16.mxu0 %v11917_v45  ;;  %3600 = vmatprep.subr.bf16.mxu1 %v11723_v1 }
  0xd1   : > { %3601 = vmatpush1.bf16.msra.mxu1 %v11383_v62 }
  0xd2   : > { %3602 = vmatprep.subr.bf16.mxu1 %v11723_v1 }
  0xd4   : > { %1599 = vmatmul.mubr.bf16.gmra.mxu1 %v11908_v42  ;;  %2611 = vmatmul.mubr.bf16.vlgmr.msra.gmra.mxu0 %v11934_v50  ;;  %v11386_v42 = vld [vmem:[%s13985_s1 + $0x228] sm:$0xff]  }
  0xd5   : > { %4619 = vmatpush1.bf16.msra.mxu0 %v11382_v29  ;;  %1606 = vmatprep.mubr.bf16.mxu1 %v11917_v45  ;;  %v11389_v45 = vld [vmem:[%s13985_s1 + $0x198] sm:$0xff]  }
  0xd6   : > { %2618 = vmatprep.mubr.bf16.mxu0 %v11941_v53  ;;  %4620 = vmatprep.subr.bf16.mxu0 %v11723_v1 }
  0xd7   : > { %3603 = vmatpush1.bf16.msra.mxu1 %v11385_v63 }
  0xd8   : > { %3604 = vmatprep.subr.bf16.mxu1 %v11723_v1 }
  0xd9   : > { %4621 = vmatpush1.bf16.msra.mxu0 %v11384_v34 }
  0xda   : > { %4622 = vmatprep.subr.bf16.mxu0 %v11723_v1 }
  0xdb   : > { %3605 = vmatpush1.bf16.msra.mxu1 %v11387_v37 }
  0xdc   : > { %1607 = vmatmul.mubr.bf16.gmra.mxu1 %v11934_v50  ;;  %2619 = vmatmul.mubr.bf16.gmra.mxu0 %v11963_v59  ;;  %v11391_v50 = vld [vmem:[%s13985_s1 + $0x190] sm:$0xff]  }
  0xdd   : > { %1614 = vmatprep.mubr.bf16.mxu1 %v11941_v53  ;;  %2626 = vmatprep.mubr.bf16.mxu0 %v11967_v61  ;;  %v11390_v53 = vld [vmem:[%s13985_s1 + $0x218] sm:$0xff]  }
  0xde   : > { %4623 = vmatpush1.bf16.msra.mxu0 %v11386_v42  ;;  %3606 = vmatprep.subr.bf16.mxu1 %v11723_v1 }
  0xdf   : > { %4624 = vmatprep.subr.bf16.mxu0 %v11723_v1  ;;  %3607 = vmatpush1.bf16.msra.mxu1 %v11389_v45  ;;  %v11453_v45 = vld [vmem:[%s13985_s1 + $0x250] sm:$0xff]  }
  0xe0   : > { %3608 = vmatprep.subr.bf16.mxu1 %v11723_v1 }
  0xe2   : > { %4625 = vmatpush1.bf16.msra.mxu0 %v11388_v0 }
  0xe3   : > { %4626 = vmatprep.subr.bf16.mxu0 %v11723_v1  ;;  %3609 = vmatpush1.bf16.msra.mxu1 %v11391_v50 }
  0xe4   : > { %1615 = vmatmul.mubr.bf16.gmra.mxu1 %v11963_v59  ;;  %2627 = vmatmul.mubr.bf16.gmra.mxu0 %v11989_v4  ;;  %v11398_v59 = vld [vmem:[%s13985_s1 + $0x180] sm:$0xff]  }
  0xe5   : > { %1622 = vmatprep.mubr.bf16.mxu1 %v11967_v61  ;;  %2634 = vmatprep.mubr.bf16.mxu0 %v11993_v6  ;;  %v11394_v61 = vld [vmem:[%s13985_s1 + $0x208] sm:$0xff]  }
  0xe6   : > { %4627 = vmatpush1.bf16.msra.mxu0 %v11390_v53  ;;  %3610 = vmatprep.subr.bf16.mxu1 %v11723_v1 }
  0xe7   : > { %4628 = vmatprep.subr.bf16.mxu0 %v11723_v1  ;;  %3611 = vmatpush1.bf16.msra.mxu1 %v11393_v2 }
  0xe8   : > { %3612 = vmatprep.subr.bf16.mxu1 %v11723_v1 }
  0xea   : > { %4629 = vmatpush1.bf16.msra.mxu0 %v11392_v3 }
  0xeb   : > { %4630 = vmatprep.subr.bf16.mxu0 %v11723_v1  ;;  %3613 = vmatpush1.bf16.msra.mxu1 %v11398_v59 }
  0xec   : > { %1623 = vmatmul.mubr.bf16.gmra.mxu1 %v11989_v4  ;;  %2635 = vmatmul.mubr.bf16.gmra.mxu0 %v12015_v12  ;;  %v11414_v4 = vld [vmem:[%s13985_s1 + $0x1f0] sm:$0xff]  }
  0xed   : > { %1630 = vmatprep.mubr.bf16.mxu1 %v11993_v6  ;;  %2642 = vmatprep.mubr.bf16.mxu0 %v12019_v14  ;;  %v11413_v6 = vld [vmem:[%s13985_s1 + $0x278] sm:$0xff]  }
  0xee   : > { %4631 = vmatpush1.bf16.msra.mxu0 %v11394_v61  ;;  %3614 = vmatprep.subr.bf16.mxu1 %v11723_v1 }
  0xef   : > { %4632 = vmatprep.subr.bf16.mxu0 %v11723_v1  ;;  %3615 = vmatpush2.bf16.msra.mxu1 %v11406_v5  ;;  %v11395_v5 = vld [vmem:[%s11782_s24 + $0x110] ss:$8 sps:$4 sm:$0xff]  }
  0xf0   : > { %3616 = vmatprep.subr.bf16.mxu1 %v11723_v1 }
  0xf2   : > { %4633 = vmatpush1.bf16.msra.mxu0 %v11405_v7  ;;  %v11457_v7 = vld [vmem:[%s13985_s1 + $0x1c8] sm:$0xff]  }
  0xf3   : > { %4634 = vmatprep.subr.bf16.mxu0 %v11723_v1  ;;  %3617 = vmatpush2.bf16.msra.mxu1 %v11414_v4 }
  0xf4   : > { %1631 = vmatmul.mubr.bf16.gmra.mxu1 %v12015_v12  ;;  %2643 = vmatmul.mubr.bf16.gmra.mxu0 %v12041_v20 }
  0xf5   : > { %1638 = vmatprep.mubr.bf16.mxu1 %v12019_v14  ;;  %2650 = vmatprep.mubr.bf16.mxu0 %v12045_v22 }
  0xf6   : > { %4635 = vmatpush2.bf16.msra.mxu0 %v11413_v6  ;;  %3618 = vmatprep.subr.bf16.mxu1 %v11723_v1 }
  0xf7   : > { %4636 = vmatprep.subr.bf16.mxu0 %v11723_v1  ;;  %3619 = vmatpush2.bf16.msra.mxu1 %v11422_v8 }
  0xf8   : > { %3620 = vmatprep.subr.bf16.mxu1 %v11723_v1 }
  0xfa   : > { %4637 = vmatpush2.bf16.msra.mxu0 %v11421_v9 }
  0xfb   : > { %4638 = vmatprep.subr.bf16.mxu0 %v11723_v1  ;;  %3621 = vmatpush2.bf16.msra.mxu1 %v11433_v11 }
  0xfc   : > { %1639 = vmatmul.mubr.bf16.gmra.mxu1 %v12041_v20  ;;  %2651 = vmatmul.mubr.bf16.gmra.mxu0 %v12055_v24 }
  0xfd   : > { %1646 = vmatprep.mubr.bf16.mxu1 %v12045_v22  ;;  %2658 = vmatprep.mubr.bf16.mxu0 %v12059_v26 }
  0xfe   : > { %4639 = vmatpush2.bf16.msra.mxu0 %v11429_v10  ;;  %3622 = vmatprep.subr.bf16.mxu1 %v11723_v1 }
  0xff   : > { %4640 = vmatprep.subr.bf16.mxu0 %v11723_v1  ;;  %3623 = vmatpush2.bf16.msra.mxu1 %v11441_v21 }
 0x100   : > { %3624 = vmatprep.subr.bf16.mxu1 %v11723_v1 }
 0x102   : > { %4641 = vmatpush2.bf16.msra.mxu0 %v11437_v16 }
 0x103   : > { %4642 = vmatprep.subr.bf16.mxu0 %v11723_v1 }
 0x104   : > { %1647 = vmatmul.mubr.bf16.gmra.mxu1 %v12055_v24  ;;  %2659 = vmatmul.mubr.bf16.gmra.mxu0 %v12065_v28 }
 0x105   : > { %1654 = vmatprep.mubr.bf16.mxu1 %v12059_v26  ;;  %2666 = vmatprep.mubr.bf16.mxu0 %v12069_v31 }
 0x10c   : > { %v703_v12 = vpop.f32.mrf.mxu0  ;;  %v839_v13 = vpop.f32.mrf.mxu1  ;;  %1655 = vmatmul.mubr.bf16.gmra.mxu1 %v12065_v28  ;;  %2667 = vmatmul.mubr.bf16.gmra.mxu0 %v12075_v33 }
 0x10d   : > { %967 = vst.msk [vmem:[#allocation2] sm:$0xff] %vm966_vm0, %v703_v12  ;;  %1001 = vst.msk [vmem:[#allocation2 + $0x110] sm:$0xff] %vm966_vm0, %v839_v13  ;;  %1662 = vmatprep.mubr.bf16.mxu1 %v12069_v31  ;;  %2674 = vmatprep.mubr.bf16.mxu0 %v12079_v36  ;;  %v11399_v13 = vld [vmem:[%s11782_s24 + $0x120] ss:$8 sps:$4 sm:$0xff]  }
 0x10e   : > { %v705_v14 = vpop.f32.mrf.mxu0  ;;  %v841_v15 = vpop.f32.mrf.mxu1 }
 0x10f   : > { %v11404_v14 = vld [vmem:[%s11782_s24 + $0x134] ss:$8 sps:$4 sm:$0xff]  }
 0x110   : > { %v706_v17 = vpop.f32.mrf.mxu0  ;;  %v842_v18 = vpop.f32.mrf.mxu1 }
 0x111   : > { %968 = vst.msk [vmem:[#allocation2 + $0x8] sm:$0xff] %vm966_vm0, %v706_v17  ;;  %1002 = vst.msk [vmem:[#allocation2 + $0x118] sm:$0xff] %vm966_vm0, %v842_v18 }
 0x112   : > { %v708_v19 = vpop.f32.mrf.mxu0  ;;  %v844_v20 = vpop.f32.mrf.mxu1 }
 0x114   : > { %v711_v22 = vpop.f32.mrf.mxu0  ;;  %v847_v23 = vpop.f32.mrf.mxu1  ;;  %1663 = vmatmul.mubr.bf16.gmra.mxu1 %v12075_v33  ;;  %2675 = vmatmul.mubr.bf16.gmra.mxu0 %v12085_v39 }
 0x115   : > { %969 = vst.msk [vmem:[#allocation2 + $0x10] sm:$0xff] %vm966_vm0, %v711_v22  ;;  %1003 = vst.msk [vmem:[#allocation2 + $0x120] sm:$0xff] %vm966_vm0, %v847_v23  ;;  %1670 = vmatprep.mubr.bf16.mxu1 %v12079_v36  ;;  %2682 = vmatprep.mubr.bf16.mxu0 %v12089_v41  ;;  %v11402_v23 = vld [vmem:[%s11782_s24 + $0x130] ss:$8 sps:$4 sm:$0xff]  }
 0x116   : > { %v713_v24 = vpop.f32.mrf.mxu0  ;;  %v849_v25 = vpop.f32.mrf.mxu1 }
 0x117   : > { %v11409_v24 = vld [vmem:[%s11782_s24 + $0x144] ss:$8 sps:$4 sm:$0xff]  }
 0x118   : > { %v714_v26 = vpop.f32.mrf.mxu0  ;;  %v850_v27 = vpop.f32.mrf.mxu1  ;;  %v11465_v25 = vld [vmem:[%s13985_s1 + $0x1c0] sm:$0xff]  }
 0x119   : > { %970 = vst.msk [vmem:[#allocation2 + $0x18] sm:$0xff] %vm966_vm0, %v714_v26  ;;  %1004 = vst.msk [vmem:[#allocation2 + $0x128] sm:$0xff] %vm966_vm0, %v850_v27 }
 0x11a   : > { %v716_v28 = vpop.f32.mrf.mxu0  ;;  %v852_v30 = vpop.f32.mrf.mxu1 }
 0x11c   : > { %v719_v31 = vpop.f32.mrf.mxu0  ;;  %v855_v32 = vpop.f32.mrf.mxu1  ;;  %1671 = vmatmul.mubr.bf16.gmra.mxu1 %v12085_v39  ;;  %2683 = vmatmul.mubr.bf16.gmra.mxu0 %v12095_v44  ;;  %v11445_v39 = vld [vmem:[%s13985_s1 + $0x258] sm:$0xff]  }
 0x11d   : > { %971 = vst.msk [vmem:[#allocation2 + $0x20] sm:$0xff] %vm966_vm0, %v719_v31  ;;  %1005 = vst.msk [vmem:[#allocation2 + $0x130] sm:$0xff] %vm966_vm0, %v855_v32  ;;  %1678 = vmatprep.mubr.bf16.mxu1 %v12089_v41  ;;  %2690 = vmatprep.mubr.bf16.mxu0 %v12099_v47 }
 0x11e   : > { %v721_v33 = vpop.f32.mrf.mxu0  ;;  %v857_v35 = vpop.f32.mrf.mxu1  ;;  %4643 = vmatpush2.bf16.msra.mxu0 %v11445_v39  ;;  %v11469_v39 = vld [vmem:[%s13985_s1 + $0x240] sm:$0xff]  }
 0x11f   : > { %4644 = vmatprep.subr.bf16.mxu0 %v11723_v1 }
 0x120   : > { %v722_v36 = vpop.f32.mrf.mxu0  ;;  %v858_v38 = vpop.f32.mrf.mxu1 }
 0x121   : > { %972 = vst.msk [vmem:[#allocation2 + $0x28] sm:$0xff] %vm966_vm0, %v722_v36  ;;  %1006 = vst.msk [vmem:[#allocation2 + $0x138] sm:$0xff] %vm966_vm0, %v858_v38  ;;  %v11407_v36 = vld [vmem:[%s11782_s24 + $0x140] ss:$8 sps:$4 sm:$0xff]   ;;  %v11412_v38 = vld [vmem:[%s11782_s24 + $0x154] ss:$8 sps:$4 sm:$0xff]  }
 0x122   : > { %v724_v40 = vpop.f32.mrf.mxu0  ;;  %v860_v43 = vpop.f32.mrf.mxu1  ;;  %4645 = vmatpush2.bf16.msra.mxu0 %v11453_v45  ;;  %v11415_v45 = vld [vmem:[%s11782_s24 + $0x160] ss:$8 sps:$4 sm:$0xff]  }
 0x123   : > { %4646 = vmatprep.subr.bf16.mxu0 %v11723_v1 }
 0x124   : > { %v727_v46 = vpop.f32.mrf.mxu0  ;;  %v863_v48 = vpop.f32.mrf.mxu1  ;;  %1679 = vmatmul.mubr.bf16.gmra.mxu1 %v12095_v44  ;;  %2691 = vmatmul.mubr.bf16.gmra.mxu0 %v12105_v49  ;;  %v11449_v44 = vld [vmem:[%s13985_s1 + $0x1d0] sm:$0xff]  }
 0x125   : > { %973 = vst.msk [vmem:[#allocation2 + $0x30] sm:$0xff] %vm966_vm0, %v727_v46  ;;  %1007 = vst.msk [vmem:[#allocation2 + $0x140] sm:$0xff] %vm966_vm0, %v863_v48  ;;  %1686 = vmatprep.mubr.bf16.mxu1 %v12099_v47  ;;  %2698 = vmatprep.mubr.bf16.mxu0 %v12109_v52 }
 0x126   : > { %v729_v41 = vpop.f32.mrf.mxu0  ;;  %v865_v51 = vpop.f32.mrf.mxu1  ;;  %3625 = vmatpush2.bf16.msra.mxu1 %v11449_v44  ;;  %v11410_v44 = vld [vmem:[%s11782_s24 + $0x150] ss:$8 sps:$4 sm:$0xff]  }
 0x127   : > { %3626 = vmatprep.subr.bf16.mxu1 %v11723_v1 }
 0x128   : > { %v730_v54 = vpop.f32.mrf.mxu0  ;;  %v866_v56 = vpop.f32.mrf.mxu1 }
 0x129   : > { %974 = vst.msk [vmem:[#allocation2 + $0x38] sm:$0xff] %vm966_vm0, %v730_v54  ;;  %1008 = vst.msk [vmem:[#allocation2 + $0x148] sm:$0xff] %vm966_vm0, %v866_v56 }
 0x12a   : > { %v732_v60 = vpop.f32.mrf.mxu0  ;;  %v868_v62 = vpop.f32.mrf.mxu1  ;;  %3627 = vmatpush2.bf16.msra.mxu1 %v11457_v7  ;;  %v11425_v7 = vld [vmem:[%s11782_s24 + $0x184] ss:$8 sps:$4 sm:$0xff]  }
 0x12b   : > { %3628 = vmatprep.subr.bf16.mxu1 %v11723_v1  ;;  %v11417_v60 = vld [vmem:[%s11782_s24 + $0x164] ss:$8 sps:$4 sm:$0xff]  }
 0x12c   : > { %v735_v47 = vpop.f32.mrf.mxu0  ;;  %v871_v29 = vpop.f32.mrf.mxu1  ;;  %1687 = vmatmul.mubr.bf16.gmra.mxu1 %v12105_v49  ;;  %2699 = vmatmul.mubr.bf16.gmra.mxu0 %v12115_v55  ;;  %v11397_v49 = vld [vmem:[%s11782_s24 + $0x114] ss:$8 sps:$4 sm:$0xff]  }
 0x12d   : > { %975 = vst.msk [vmem:[#allocation2 + $0x40] sm:$0xff] %vm966_vm0, %v735_v47  ;;  %1009 = vst.msk [vmem:[#allocation2 + $0x150] sm:$0xff] %vm966_vm0, %v871_v29  ;;  %1694 = vmatprep.mubr.bf16.mxu1 %v12109_v52  ;;  %2706 = vmatprep.mubr.bf16.mxu0 %v12119_v57 }
 0x12e   : > { %v737_v63 = vpop.f32.mrf.mxu0  ;;  %v873_v34 = vpop.f32.mrf.mxu1  ;;  %3629 = vmatpush2.bf16.msra.mxu1 %v11465_v25 }
 0x12f   : > { %5638 = vmatprep.subr.bf16.mxu1 %v11723_v1 }
 0x130   : > { %v738_v37 = vpop.f32.mrf.mxu0  ;;  %v874_v42 = vpop.f32.mrf.mxu1 }
 0x131   : > { %976 = vst.msk [vmem:[#allocation2 + $0x48] sm:$0xff] %vm966_vm0, %v738_v37  ;;  %1010 = vst.msk [vmem:[#allocation2 + $0x158] sm:$0xff] %vm966_vm0, %v874_v42 }
 0x132   : > { %v740_v0 = vpop.f32.mrf.mxu0  ;;  %v876_v52 = vpop.f32.mrf.mxu1 }
 0x133   : > { %v11420_v0 = vld [vmem:[%s11782_s24 + $0x174] ss:$8 sps:$4 sm:$0xff]  }
 0x134   : > { %v743_v50 = vpop.f32.mrf.mxu0  ;;  %v879_v53 = vpop.f32.mrf.mxu1  ;;  %1695 = vmatmul.mubr.bf16.gmra.mxu1 %v12115_v55  ;;  %2707 = vmatmul.mubr.bf16.gmra.mxu0 %v12125_v58  ;;  %v11401_v55 = vld [vmem:[%s11782_s24 + $0x124] ss:$8 sps:$4 sm:$0xff]  }
 0x135   : > { %977 = vst.msk [vmem:[#allocation2 + $0x50] sm:$0xff] %vm966_vm0, %v743_v50  ;;  %1011 = vst.msk [vmem:[#allocation2 + $0x160] sm:$0xff] %vm966_vm0, %v879_v53  ;;  %1702 = vmatprep.mubr.bf16.mxu1 %v12119_v57  ;;  %2714 = vmatprep.mubr.bf16.mxu0 %v11397_v49 }
 0x136   : > { %v745_v2 = vpop.f32.mrf.mxu0  ;;  %v881_v3 = vpop.f32.mrf.mxu1 }
 0x138   : > { %v746_v59 = vpop.f32.mrf.mxu0  ;;  %v882_v61 = vpop.f32.mrf.mxu1 }
 0x139   : > { %978 = vst.msk [vmem:[#allocation2 + $0x58] sm:$0xff] %vm966_vm0, %v746_v59  ;;  %1012 = vst.msk [vmem:[#allocation2 + $0x168] sm:$0xff] %vm966_vm0, %v882_v61 }
 0x13a   : > { %v748_v4 = vpop.f32.mrf.mxu0  ;;  %v884_v57 = vpop.f32.mrf.mxu1 }
 0x13c   : > { %v751_v6 = vpop.f32.mrf.mxu0  ;;  %v887_v8 = vpop.f32.mrf.mxu1  ;;  %1703 = vmatmul.mubr.bf16.gmra.mxu1 %v12125_v58  ;;  %2715 = vmatmul.mubr.bf16.gmra.mxu0 %v11395_v5  ;;  %v11461_v58 = vld [vmem:[%s13985_s1 + $0x248] sm:$0xff]  }
 0x13d   : > { %979 = vst.msk [vmem:[#allocation2 + $0x60] sm:$0xff] %vm966_vm0, %v751_v6  ;;  %1013 = vst.msk [vmem:[#allocation2 + $0x170] sm:$0xff] %vm966_vm0, %v887_v8  ;;  %1710 = vmatprep.mubr.bf16.mxu1 %v11397_v49  ;;  %2722 = vmatprep.mubr.bf16.mxu0 %v11401_v55 }
 0x13e   : > { %v753_v9 = vpop.f32.mrf.mxu0  ;;  %v889_v10 = vpop.f32.mrf.mxu1  ;;  %4647 = vmatpush2.bf16.msra.mxu0 %v11461_v58 }
 0x13f   : > { %4648 = vmatprep.subr.bf16.mxu0 %v11723_v1 }
 0x140   : > { %v754_v11 = vpop.f32.mrf.mxu0  ;;  %v890_v12 = vpop.f32.mrf.mxu1 }
 0x141   : > { %980 = vst.msk [vmem:[#allocation2 + $0x68] sm:$0xff] %vm966_vm0, %v754_v11  ;;  %1014 = vst.msk [vmem:[#allocation2 + $0x178] sm:$0xff] %vm966_vm0, %v890_v12 }
 0x142   : > { %v756_v15 = vpop.f32.mrf.mxu0  ;;  %v892_v16 = vpop.f32.mrf.mxu1  ;;  %4649 = vmatpush2.bf16.msra.mxu0 %v11469_v39 }
 0x143   : > { %6658 = vmatprep.subr.bf16.mxu0 %v11723_v1 }
 0x144   : > { %v759_v17 = vpop.f32.mrf.mxu0  ;;  %v895_v18 = vpop.f32.mrf.mxu1  ;;  %1711 = vmatmul.mubr.bf16.gmra.mxu1 %v11395_v5  ;;  %2723 = vmatmul.mubr.bf16.gmra.mxu0 %v11399_v13 }
 0x145   : > { %981 = vst.msk [vmem:[#allocation2 + $0x70] sm:$0xff] %vm966_vm0, %v759_v17  ;;  %1015 = vst.msk [vmem:[#allocation2 + $0x180] sm:$0xff] %vm966_vm0, %v895_v18  ;;  %1718 = vmatprep.mubr.bf16.mxu1 %v11401_v55  ;;  %2730 = vmatprep.mubr.bf16.mxu0 %v11404_v14  ;;  %v11418_v55 = vld [vmem:[%s11782_s24 + $0x170] ss:$8 sps:$4 sm:$0xff]  }
 0x146   : > { %v761_v19 = vpop.f32.mrf.mxu0  ;;  %v897_v20 = vpop.f32.mrf.mxu1 }
 0x148   : > { %v762_v21 = vpop.f32.mrf.mxu0  ;;  %v898_v22 = vpop.f32.mrf.mxu1 }
 0x149   : > { %982 = vst.msk [vmem:[#allocation2 + $0x78] sm:$0xff] %vm966_vm0, %v762_v21  ;;  %1016 = vst.msk [vmem:[#allocation2 + $0x188] sm:$0xff] %vm966_vm0, %v898_v22  ;;  %v11426_v22 = vld [vmem:[%s11782_s24 + $0x190] ss:$8 sps:$4 sm:$0xff]  }
 0x14a   : > { %v764_v26 = vpop.f32.mrf.mxu0  ;;  %v900_v27 = vpop.f32.mrf.mxu1 }
 0x14c   : > { %v767_v28 = vpop.f32.mrf.mxu0  ;;  %v903_v30 = vpop.f32.mrf.mxu1  ;;  %1719 = vmatmul.mubr.bf16.gmra.mxu1 %v11399_v13  ;;  %2731 = vmatmul.mubr.bf16.gmra.mxu0 %v11402_v23  ;;  %v11423_v13 = vld [vmem:[%s11782_s24 + $0x180] ss:$8 sps:$4 sm:$0xff]  }
 0x14d   : > { %983 = vst.msk [vmem:[#allocation2 + $0x80] sm:$0xff] %vm966_vm0, %v767_v28  ;;  %1017 = vst.msk [vmem:[#allocation2 + $0x190] sm:$0xff] %vm966_vm0, %v903_v30  ;;  %1726 = vmatprep.mubr.bf16.mxu1 %v11404_v14  ;;  %2738 = vmatprep.mubr.bf16.mxu0 %v11409_v24  ;;  %v11428_v14 = vld [vmem:[%s11782_s24 + $0x194] ss:$8 sps:$4 sm:$0xff]  }
 0x14e   : > { %v769_v31 = vpop.f32.mrf.mxu0  ;;  %v905_v32 = vpop.f32.mrf.mxu1 }
 0x150   : > { %v770_v33 = vpop.f32.mrf.mxu0  ;;  %v906_v35 = vpop.f32.mrf.mxu1 }
 0x151   : > { %984 = vst.msk [vmem:[#allocation2 + $0x88] sm:$0xff] %vm966_vm0, %v770_v33  ;;  %1018 = vst.msk [vmem:[#allocation2 + $0x198] sm:$0xff] %vm966_vm0, %v906_v35  ;;  %v11430_v33 = vld [vmem:[%s11782_s24 + $0x1a0] ss:$8 sps:$4 sm:$0xff]   ;;  %v11436_v35 = vld [vmem:[%s11782_s24 + $0x1b4] ss:$8 sps:$4 sm:$0xff]  }
 0x152   : > { %v772_v40 = vpop.f32.mrf.mxu0  ;;  %v908_v43 = vpop.f32.mrf.mxu1 }
 0x154   : > { %v775_v46 = vpop.f32.mrf.mxu0  ;;  %v911_v48 = vpop.f32.mrf.mxu1  ;;  %1727 = vmatmul.mubr.bf16.gmra.mxu1 %v11402_v23  ;;  %2739 = vmatmul.mubr.bf16.gmra.mxu0 %v11407_v36  ;;  %v11432_v23 = vld [vmem:[%s11782_s24 + $0x1a4] ss:$8 sps:$4 sm:$0xff]  }
 0x155   : > { %985 = vst.msk [vmem:[#allocation2 + $0x90] sm:$0xff] %vm966_vm0, %v775_v46  ;;  %1019 = vst.msk [vmem:[#allocation2 + $0x1a0] sm:$0xff] %vm966_vm0, %v911_v48  ;;  %1734 = vmatprep.mubr.bf16.mxu1 %v11409_v24  ;;  %2746 = vmatprep.mubr.bf16.mxu0 %v11412_v38 }
 0x156   : > { %v777_v41 = vpop.f32.mrf.mxu0  ;;  %v913_v51 = vpop.f32.mrf.mxu1 }
 0x157   : > { %v11434_v51 = vld [vmem:[%s11782_s24 + $0x1b0] ss:$8 sps:$4 sm:$0xff]  }
 0x158   : > { %v778_v54 = vpop.f32.mrf.mxu0  ;;  %v914_v56 = vpop.f32.mrf.mxu1 }
 0x159   : > { %986 = vst.msk [vmem:[#allocation2 + $0x98] sm:$0xff] %vm966_vm0, %v778_v54  ;;  %1020 = vst.msk [vmem:[#allocation2 + $0x1a8] sm:$0xff] %vm966_vm0, %v914_v56  ;;  %v11440_v54 = vld [vmem:[%s11782_s24 + $0x1c4] ss:$8 sps:$4 sm:$0xff]  }
 0x15a   : > { %v780_v62 = vpop.f32.mrf.mxu0  ;;  %v916_v47 = vpop.f32.mrf.mxu1 }
 0x15b   : > { %v1855_v47 = vld [vmem:[#allocation2] sm:$0xff] }
 0x15c   : > { %v783_v29 = vpop.f32.mrf.mxu0  ;;  %v919_v63 = vpop.f32.mrf.mxu1  ;;  %1735 = vmatmul.mubr.bf16.gmra.mxu1 %v11407_v36  ;;  %2747 = vmatmul.mubr.bf16.gmra.mxu0 %v11410_v44 }
 0x15d   : > { %987 = vst.msk [vmem:[#allocation2 + $0xa0] sm:$0xff] %vm966_vm0, %v783_v29  ;;  %1021 = vst.msk [vmem:[#allocation2 + $0x1b0] sm:$0xff] %vm966_vm0, %v919_v63  ;;  %1742 = vmatprep.mubr.bf16.mxu1 %v11412_v38  ;;  %2754 = vmatprep.mubr.bf16.mxu0 %v11417_v60 }
 0x15e   : > { %v785_v34 = vpop.f32.mrf.mxu0  ;;  %v921_v37 = vpop.f32.mrf.mxu1 }
 0x160   : > { %v786_v42 = vpop.f32.mrf.mxu0  ;;  %v922_v49 = vpop.f32.mrf.mxu1 }
 0x161   : > { %988 = vst.msk [vmem:[#allocation2 + $0xa8] sm:$0xff] %vm966_vm0, %v786_v42  ;;  %1022 = vst.msk [vmem:[#allocation2 + $0x1b8] sm:$0xff] %vm966_vm0, %v922_v49  ;;  %v1856_v49 = vld [vmem:[#allocation2 + $0x8] sm:$0xff] }
 0x162   : > { %v788_v52 = vpop.f32.mrf.mxu0  ;;  %v924_v50 = vpop.f32.mrf.mxu1 }
 0x163   : > { %v11444_v52 = vld [vmem:[%s11782_s24 + $0x1d4] ss:$8 sps:$4 sm:$0xff]  }
 0x164   : > { %v791_v53 = vpop.f32.mrf.mxu0  ;;  %v927_v2 = vpop.f32.mrf.mxu1  ;;  %1743 = vmatmul.mubr.bf16.gmra.mxu1 %v11410_v44  ;;  %2755 = vmatmul.mubr.bf16.gmra.mxu0 %v11415_v45 }
 0x165   : > { %989 = vst.msk [vmem:[#allocation2 + $0xb0] sm:$0xff] %vm966_vm0, %v791_v53  ;;  %1023 = vst.msk [vmem:[#allocation2 + $0x1c0] sm:$0xff] %vm966_vm0, %v927_v2  ;;  %1750 = vmatprep.mubr.bf16.mxu1 %v11417_v60  ;;  %2762 = vmatprep.mubr.bf16.mxu0 %v11420_v0 }
 0x166   : > { %v793_v3 = vpop.f32.mrf.mxu0  ;;  %v929_v59 = vpop.f32.mrf.mxu1 }
 0x167   : > { %v1857_v3 = vld [vmem:[#allocation2 + $0x10] sm:$0xff] }
 0x168   : > { %v794_v61 = vpop.f32.mrf.mxu0  ;;  %v930_v5 = vpop.f32.mrf.mxu1 }
 0x169   : > { %990 = vst.msk [vmem:[#allocation2 + $0xb8] sm:$0xff] %vm966_vm0, %v794_v61  ;;  %1024 = vst.msk [vmem:[#allocation2 + $0x1c8] sm:$0xff] %vm966_vm0, %v930_v5 }
 0x16a   : > { %v796_v4 = vpop.f32.mrf.mxu0  ;;  %v932_v57 = vpop.f32.mrf.mxu1 }
 0x16c   : > { %v799_v6 = vpop.f32.mrf.mxu0  ;;  %v935_v8 = vpop.f32.mrf.mxu1  ;;  %1751 = vmatmul.mubr.bf16.gmra.mxu1 %v11415_v45  ;;  %2763 = vmatmul.mubr.bf16.gmra.mxu0 %v11418_v55  ;;  %v11438_v45 = vld [vmem:[%s11782_s24 + $0x1c0] ss:$8 sps:$4 sm:$0xff]  }
 0x16d   : > { %991 = vst.msk [vmem:[#allocation2 + $0xc0] sm:$0xff] %vm966_vm0, %v799_v6  ;;  %1025 = vst.msk [vmem:[#allocation2 + $0x1d0] sm:$0xff] %vm966_vm0, %v935_v8  ;;  %1758 = vmatprep.mubr.bf16.mxu1 %v11420_v0  ;;  %2770 = vmatprep.mubr.bf16.mxu0 %v11425_v7  ;;  %v1858_v6 = vld [vmem:[#allocation2 + $0x18] sm:$0xff] }
 0x16e   : > { %v801_v9 = vpop.f32.mrf.mxu0  ;;  %v937_v10 = vpop.f32.mrf.mxu1 }
 0x16f   : > { %v11442_v9 = vld [vmem:[%s11782_s24 + $0x1d0] ss:$8 sps:$4 sm:$0xff]  }
 0x170   : > { %v802_v11 = vpop.f32.mrf.mxu0  ;;  %v938_v12 = vpop.f32.mrf.mxu1 }
 0x171   : > { %992 = vst.msk [vmem:[#allocation2 + $0xc8] sm:$0xff] %vm966_vm0, %v802_v11  ;;  %1026 = vst.msk [vmem:[#allocation2 + $0x1d8] sm:$0xff] %vm966_vm0, %v938_v12  ;;  %v11448_v11 = vld [vmem:[%s11782_s24 + $0x1e4] ss:$8 sps:$4 sm:$0xff]  }
 0x172   : > { %v804_v58 = vpop.f32.mrf.mxu0  ;;  %v940_v15 = vpop.f32.mrf.mxu1 }
 0x174   : > { %v807_v16 = vpop.f32.mrf.mxu0  ;;  %v943_v17 = vpop.f32.mrf.mxu1  ;;  %1759 = vmatmul.mubr.bf16.gmra.mxu1 %v11418_v55  ;;  %2771 = vmatmul.mubr.bf16.gmra.mxu0 %v11423_v13 }
 0x175   : > { %993 = vst.msk [vmem:[#allocation2 + $0xd0] sm:$0xff] %vm966_vm0, %v807_v16  ;;  %1027 = vst.msk [vmem:[#allocation2 + $0x1e0] sm:$0xff] %vm966_vm0, %v943_v17  ;;  %1766 = vmatprep.mubr.bf16.mxu1 %v11425_v7  ;;  %2778 = vmatprep.mubr.bf16.mxu0 %v11428_v14  ;;  %v1859_v16 = vld [vmem:[#allocation2 + $0x20] sm:$0xff] }
 0x176   : > { %v809_v18 = vpop.f32.mrf.mxu0  ;;  %v945_v19 = vpop.f32.mrf.mxu1 }
 0x178   : > { %v810_v20 = vpop.f32.mrf.mxu0  ;;  %v946_v21 = vpop.f32.mrf.mxu1 }
 0x179   : > { %994 = vst.msk [vmem:[#allocation2 + $0xd8] sm:$0xff] %vm966_vm0, %v810_v20  ;;  %1028 = vst.msk [vmem:[#allocation2 + $0x1e8] sm:$0xff] %vm966_vm0, %v946_v21 }
 0x17a   : > { %v812_v24 = vpop.f32.mrf.mxu0  ;;  %v948_v25 = vpop.f32.mrf.mxu1 }
 0x17b   : > { %v1860_v24 = vld [vmem:[#allocation2 + $0x28] sm:$0xff] }
 0x17c   : > { %v815_v26 = vpop.f32.mrf.mxu0  ;;  %v951_v27 = vpop.f32.mrf.mxu1  ;;  %1767 = vmatmul.mubr.bf16.gmra.mxu1 %v11423_v13  ;;  %2779 = vmatmul.mubr.bf16.gmra.mxu0 %v11426_v22 }
 0x17d   : > { %995 = vst.msk [vmem:[#allocation2 + $0xe0] sm:$0xff] %vm966_vm0, %v815_v26  ;;  %1029 = vst.msk [vmem:[#allocation2 + $0x1f0] sm:$0xff] %vm966_vm0, %v951_v27  ;;  %1774 = vmatprep.mubr.bf16.mxu1 %v11428_v14  ;;  %2786 = vmatprep.mubr.bf16.mxu0 %v11432_v23  ;;  %v11446_v26 = vld [vmem:[%s11782_s24 + $0x1e0] ss:$8 sps:$4 sm:$0xff]  }
 0x17e   : > { %v817_v28 = vpop.f32.mrf.mxu0  ;;  %v953_v30 = vpop.f32.mrf.mxu1 }
 0x17f   : > { %v11452_v28 = vld [vmem:[%s11782_s24 + $0x1f4] ss:$8 sps:$4 sm:$0xff]  }
 0x180   : > { %v818_v31 = vpop.f32.mrf.mxu0  ;;  %v954_v32 = vpop.f32.mrf.mxu1 }
 0x181   : > { %996 = vst.msk [vmem:[#allocation2 + $0xe8] sm:$0xff] %vm966_vm0, %v818_v31  ;;  %1030 = vst.msk [vmem:[#allocation2 + $0x1f8] sm:$0xff] %vm966_vm0, %v954_v32 }
 0x182   : > { %v820_v36 = vpop.f32.mrf.mxu0  ;;  %v956_v38 = vpop.f32.mrf.mxu1 }
 0x183   : > { %v1861_v36 = vld [vmem:[#allocation2 + $0x30] sm:$0xff] }
 0x184   : > { %v823_v39 = vpop.f32.mrf.mxu0  ;;  %v959_v40 = vpop.f32.mrf.mxu1  ;;  %1775 = vmatmul.mubr.bf16.gmra.mxu1 %v11426_v22  ;;  %2787 = vmatmul.mubr.bf16.gmra.mxu0 %v11430_v33 }
 0x185   : > { %997 = vst.msk [vmem:[#allocation2 + $0xf0] sm:$0xff] %vm966_vm0, %v823_v39  ;;  %1031 = vst.msk [vmem:[#allocation2 + $0x200] sm:$0xff] %vm966_vm0, %v959_v40  ;;  %1782 = vmatprep.mubr.bf16.mxu1 %v11432_v23  ;;  %2794 = vmatprep.mubr.bf16.mxu0 %v11436_v35 }
 0x186   : > { %v825_v43 = vpop.f32.mrf.mxu0  ;;  %v961_v46 = vpop.f32.mrf.mxu1 }
 0x188   : > { %v826_v48 = vpop.f32.mrf.mxu0  ;;  %v962_v41 = vpop.f32.mrf.mxu1 }
 0x189   : > { %998 = vst.msk [vmem:[#allocation2 + $0xf8] sm:$0xff] %vm966_vm0, %v826_v48  ;;  %1032 = vst.msk [vmem:[#allocation2 + $0x208] sm:$0xff] %vm966_vm0, %v962_v41 }
 0x18a   : > { %v828_v56 = vpop.f32.mrf.mxu0  ;;  %v964_v44 = vpop.f32.mrf.mxu1 }
 0x18b   : > { %v11450_v56 = vld [vmem:[%s11782_s24 + $0x1f0] ss:$8 sps:$4 sm:$0xff]  }
 0x18c   : > { %v831_v60 = vpop.f32.mrf.mxu0  ;;  %v1592_v62 = vpop.f32.mrf.mxu1  ;;  %1783 = vmatmul.mubr.bf16.gmra.mxu1 %v11430_v33  ;;  %2795 = vmatmul.mubr.bf16.gmra.mxu0 %v11434_v51 }
 0x18d   : > { %999 = vst.msk [vmem:[#allocation2 + $0x100] sm:$0xff] %vm966_vm0, %v831_v60  ;;  %v1921_v29 = vadd.f32 %v1855_v47, %v1592_v62  ;;  %1790 = vmatprep.mubr.bf16.mxu1 %v11436_v35  ;;  %2802 = vmatprep.mubr.bf16.mxu0 %v11440_v54  ;;  %v11456_v60 = vld [vmem:[%s11782_s24 + $0x204] ss:$8 sps:$4 sm:$0xff]  }
 0x18e   : > { %v833_v63 = vpop.f32.mrf.mxu0  ;;  %v1594_v34 = vpop.f32.mrf.mxu1 }
 0x18f   : > { %1987 = vst.msk [vmem:[#allocation2] sm:$0xff] %vm966_vm0, %v1921_v29 }
 0x190   : > { %v834_v37 = vpop.f32.mrf.mxu0  ;;  %v1595_v42 = vpop.f32.mrf.mxu1 }
 0x191   : > { %1000 = vst.msk [vmem:[#allocation2 + $0x108] sm:$0xff] %vm966_vm0, %v834_v37  ;;  %v1922_v0 = vadd.f32 %v1856_v49, %v1595_v42  ;;  %v1863_v37 = vld [vmem:[#allocation2 + $0x40] sm:$0xff] }
 0x192   : > { %v836_v50 = vpop.f32.mrf.mxu0  ;;  %v1597_v53 = vpop.f32.mrf.mxu1 }
 0x193   : > { %1988 = vst.msk [vmem:[#allocation2 + $0x8] sm:$0xff] %vm966_vm0, %v1922_v0 }
 0x194   : > { %v1600_v2 = vpop.f32.mrf.mxu1  ;;  %1791 = vmatmul.mubr.bf16.gmra.mxu1 %v11434_v51  ;;  %v2612_v59 = vpop.f32.mrf.mxu0  ;;  %2803 = vmatmul.mubr.bf16.gmra.mxu0 %v11438_v45  ;;  %v1862_v51 = vld [vmem:[#allocation2 + $0x38] sm:$0xff] }
 0x195   : > { %v1923_v61 = vadd.f32 %v1857_v3, %v1600_v2  ;;  %1798 = vmatprep.mubr.bf16.mxu1 %v11440_v54  ;;  %2810 = vmatprep.mubr.bf16.mxu0 %v11444_v52  ;;  %v1864_v2 = vld [vmem:[#allocation2 + $0x48] sm:$0xff] }
 0x196   : > { %v2875_v5 = vld [vmem:[#allocation2] sm:$0xff]  ;;  %v1602_v55 = vpop.f32.mrf.mxu1  ;;  %v2614_v7 = vpop.f32.mrf.mxu0 }
 0x197   : > { %1989 = vst.msk [vmem:[#allocation2 + $0x10] sm:$0xff] %vm966_vm0, %v1923_v61  ;;  %v2941_v4 = vadd.f32 %v2875_v5, %v2612_v59  ;;  %v11454_v59 = vld [vmem:[%s11782_s24 + $0x200] ss:$8 sps:$4 sm:$0xff]   ;;  %v11460_v5 = vld [vmem:[%s11782_s24 + $0x214] ss:$8 sps:$4 sm:$0xff]  }
 0x198   : > { %v1603_v57 = vpop.f32.mrf.mxu1  ;;  %v2615_v8 = vpop.f32.mrf.mxu0 }
 0x199   : > { %3007 = vst.msk [vmem:[#allocation2] sm:$0xff] %vm966_vm0, %v2941_v4  ;;  %v1924_v10 = vadd.f32 %v1858_v6, %v1603_v57 }
 0x19a   : > { %v2876_v12 = vld [vmem:[#allocation2 + $0x8] sm:$0xff]  ;;  %v1605_v13 = vpop.f32.mrf.mxu1  ;;  %v2617_v14 = vpop.f32.mrf.mxu0 }
 0x19b   : > { %1990 = vst.msk [vmem:[#allocation2 + $0x18] sm:$0xff] %vm966_vm0, %v1924_v10  ;;  %v2942_v58 = vadd.f32 %v2876_v12, %v2615_v8  ;;  %v1865_v8 = vld [vmem:[#allocation2 + $0x50] sm:$0xff] }
 0x19c   : > { %v1608_v15 = vpop.f32.mrf.mxu1  ;;  %1799 = vmatmul.mubr.bf16.gmra.mxu1 %v11438_v45  ;;  %v2620_v17 = vpop.f32.mrf.mxu0  ;;  %2811 = vmatmul.mubr.bf16.gmra.mxu0 %v11442_v9 }
 0x19d   : > { %3008 = vst.msk [vmem:[#allocation2 + $0x8] sm:$0xff] %vm966_vm0, %v2942_v58  ;;  %v1925_v18 = vadd.f32 %v1859_v16, %v1608_v15  ;;  %1806 = vmatprep.mubr.bf16.mxu1 %v11444_v52  ;;  %2818 = vmatprep.mubr.bf16.mxu0 %v11448_v11  ;;  %v1866_v15 = vld [vmem:[#allocation2 + $0x58] sm:$0xff] }
 0x19e   : > { %v2877_v19 = vld [vmem:[#allocation2 + $0x10] sm:$0xff]  ;;  %v1610_v20 = vpop.f32.mrf.mxu1  ;;  %v2622_v21 = vpop.f32.mrf.mxu0 }
 0x19f   : > { %1991 = vst.msk [vmem:[#allocation2 + $0x20] sm:$0xff] %vm966_vm0, %v1925_v18  ;;  %v2943_v22 = vadd.f32 %v2877_v19, %v2620_v17  ;;  %v11458_v17 = vld [vmem:[%s11782_s24 + $0x210] ss:$8 sps:$4 sm:$0xff]   ;;  %v11464_v19 = vld [vmem:[%s11782_s24 + $0x224] ss:$8 sps:$4 sm:$0xff]  }
 0x1a0   : > { %v1611_v23 = vpop.f32.mrf.mxu1  ;;  %v2623_v25 = vpop.f32.mrf.mxu0 }
 0x1a1   : > { %3009 = vst.msk [vmem:[#allocation2 + $0x10] sm:$0xff] %vm966_vm0, %v2943_v22  ;;  %v1926_v27 = vadd.f32 %v1860_v24, %v1611_v23 }
 0x1a2   : > { %v2878_v30 = vld [vmem:[#allocation2 + $0x18] sm:$0xff]  ;;  %v1613_v31 = vpop.f32.mrf.mxu1  ;;  %v2625_v32 = vpop.f32.mrf.mxu0 }
 0x1a3   : > { %1992 = vst.msk [vmem:[#allocation2 + $0x28] sm:$0xff] %vm966_vm0, %v1926_v27  ;;  %v2944_v33 = vadd.f32 %v2878_v30, %v2623_v25  ;;  %v1867_v25 = vld [vmem:[#allocation2 + $0x60] sm:$0xff] }
 0x1a4   : > { %v1616_v35 = vpop.f32.mrf.mxu1  ;;  %1807 = vmatmul.mubr.bf16.gmra.mxu1 %v11442_v9  ;;  %v2628_v38 = vpop.f32.mrf.mxu0  ;;  %2819 = vmatmul.mubr.bf16.gmra.mxu0 %v11446_v26 }
 0x1a5   : > { %3010 = vst.msk [vmem:[#allocation2 + $0x18] sm:$0xff] %vm966_vm0, %v2944_v33  ;;  %v1927_v39 = vadd.f32 %v1861_v36, %v1616_v35  ;;  %1814 = vmatprep.mubr.bf16.mxu1 %v11448_v11  ;;  %2826 = vmatprep.mubr.bf16.mxu0 %v11452_v28  ;;  %v1868_v35 = vld [vmem:[#allocation2 + $0x68] sm:$0xff] }
 0x1a6   : > { %v2879_v40 = vld [vmem:[#allocation2 + $0x20] sm:$0xff]  ;;  %v1618_v43 = vpop.f32.mrf.mxu1  ;;  %v2630_v46 = vpop.f32.mrf.mxu0 }
 0x1a7   : > { %1993 = vst.msk [vmem:[#allocation2 + $0x30] sm:$0xff] %vm966_vm0, %v1927_v39  ;;  %v2945_v48 = vadd.f32 %v2879_v40, %v2628_v38  ;;  %v11462_v38 = vld [vmem:[%s11782_s24 + $0x220] ss:$8 sps:$4 sm:$0xff]   ;;  %v11468_v40 = vld [vmem:[%s11782_s24 + $0x234] ss:$8 sps:$4 sm:$0xff]  }
 0x1a8   : > { %v1619_v41 = vpop.f32.mrf.mxu1  ;;  %v2631_v54 = vpop.f32.mrf.mxu0 }
 0x1a9   : > { %3011 = vst.msk [vmem:[#allocation2 + $0x20] sm:$0xff] %vm966_vm0, %v2945_v48  ;;  %v1928_v44 = vadd.f32 %v1862_v51, %v1619_v41 }
 0x1aa   : > { %v2880_v62 = vld [vmem:[#allocation2 + $0x28] sm:$0xff]  ;;  %v1621_v47 = vpop.f32.mrf.mxu1  ;;  %v2633_v29 = vpop.f32.mrf.mxu0 }
 0x1ab   : > { %1994 = vst.msk [vmem:[#allocation2 + $0x38] sm:$0xff] %vm966_vm0, %v1928_v44  ;;  %v2946_v63 = vadd.f32 %v2880_v62, %v2631_v54  ;;  %v1869_v54 = vld [vmem:[#allocation2 + $0x70] sm:$0xff] }
 0x1ac   : > { %v1624_v34 = vpop.f32.mrf.mxu1  ;;  %1815 = vmatmul.mubr.bf16.gmra.mxu1 %v11446_v26  ;;  %v2636_v42 = vpop.f32.mrf.mxu0  ;;  %2827 = vmatmul.mubr.bf16.gmra.mxu0 %v11450_v56 }
 0x1ad   : > { %3012 = vst.msk [vmem:[#allocation2 + $0x28] sm:$0xff] %vm966_vm0, %v2946_v63  ;;  %v1929_v49 = vadd.f32 %v1863_v37, %v1624_v34  ;;  %1822 = vmatprep.mubr.bf16.mxu1 %v11452_v28  ;;  %2834 = vmatprep.mubr.bf16.mxu0 %v11456_v60  ;;  %v1870_v34 = vld [vmem:[#allocation2 + $0x78] sm:$0xff] }
 0x1ae   : > { %v2881_v45 = vld [vmem:[#allocation2 + $0x30] sm:$0xff]  ;;  %v1626_v0 = vpop.f32.mrf.mxu1  ;;  %v2638_v52 = vpop.f32.mrf.mxu0 }
 0x1af   : > { %1995 = vst.msk [vmem:[#allocation2 + $0x40] sm:$0xff] %vm966_vm0, %v1929_v49  ;;  %v2947_v50 = vadd.f32 %v2881_v45, %v2636_v42  ;;  %v11466_v42 = vld [vmem:[%s11782_s24 + $0x230] ss:$8 sps:$4 sm:$0xff]   ;;  %v11472_v45 = vld [vmem:[%s11782_s24 + $0x244] ss:$8 sps:$4 sm:$0xff]  }
 0x1b0   : > { %v1627_v53 = vpop.f32.mrf.mxu1  ;;  %v2639_v3 = vpop.f32.mrf.mxu0  ;;  %v11475_v0 = vld [vmem:[%s11782_s24 + $0x64] ss:$8 sps:$4 sm:$0xff]  }
 0x1b1   : > { %3013 = vst.msk [vmem:[#allocation2 + $0x30] sm:$0xff] %vm966_vm0, %v2947_v50  ;;  %v1930_v61 = vadd.f32 %v1864_v2, %v1627_v53 }
 0x1b2   : > { %v2882_v55 = vld [vmem:[#allocation2 + $0x38] sm:$0xff]  ;;  %v1629_v7 = vpop.f32.mrf.mxu1  ;;  %v2641_v4 = vpop.f32.mrf.mxu0 }
 0x1b3   : > { %1996 = vst.msk [vmem:[#allocation2 + $0x48] sm:$0xff] %vm966_vm0, %v1930_v61  ;;  %v2948_v57 = vadd.f32 %v2882_v55, %v2639_v3 }
 0x1b4   : > { %v1632_v6 = vpop.f32.mrf.mxu1  ;;  %1823 = vmatmul.mubr.bf16.gmra.mxu1 %v11450_v56  ;;  %v2644_v9 = vpop.f32.mrf.mxu0  ;;  %2835 = vmatmul.mubr.bf16.gmra.mxu0 %v11454_v59 }
 0x1b5   : > { %3014 = vst.msk [vmem:[#allocation2 + $0x38] sm:$0xff] %vm966_vm0, %v2948_v57  ;;  %v1931_v10 = vadd.f32 %v1865_v8, %v1632_v6  ;;  %1830 = vmatprep.mubr.bf16.mxu1 %v11456_v60  ;;  %2842 = vmatprep.mubr.bf16.mxu0 %v11460_v5  ;;  %v1872_v8 = vld [vmem:[#allocation2 + $0x88] sm:$0xff] }
 0x1b6   : > { %v2883_v11 = vld [vmem:[#allocation2 + $0x40] sm:$0xff]  ;;  %v1634_v12 = vpop.f32.mrf.mxu1  ;;  %v2646_v13 = vpop.f32.mrf.mxu0 }
 0x1b7   : > { %1997 = vst.msk [vmem:[#allocation2 + $0x50] sm:$0xff] %vm966_vm0, %v1931_v10  ;;  %v2949_v14 = vadd.f32 %v2883_v11, %v2644_v9  ;;  %v11470_v10 = vld [vmem:[%s11782_s24 + $0x240] ss:$8 sps:$4 sm:$0xff]   ;;  %v11476_v13 = vld [vmem:[%s13985_s1 + $0x2b8] sm:$0xff]  }
 0x1b8   : > { %v1635_v58 = vpop.f32.mrf.mxu1  ;;  %v2647_v16 = vpop.f32.mrf.mxu0  ;;  %v11473_v11 = vld [vmem:[%s11782_s24 + $0x60] ss:$8 sps:$4 sm:$0xff]  }
 0x1b9   : > { %3015 = vst.msk [vmem:[#allocation2 + $0x40] sm:$0xff] %vm966_vm0, %v2949_v14  ;;  %v1932_v18 = vadd.f32 %v1866_v15, %v1635_v58  ;;  %v11479_v14 = vld [vmem:[%s11782_s24 + $0x74] ss:$8 sps:$4 sm:$0xff]  }
 0x1ba   : > { %v2884_v20 = vld [vmem:[#allocation2 + $0x48] sm:$0xff]  ;;  %v1637_v21 = vpop.f32.mrf.mxu1  ;;  %v2649_v22 = vpop.f32.mrf.mxu0 }
 0x1bb   : > { %1998 = vst.msk [vmem:[#allocation2 + $0x58] sm:$0xff] %vm966_vm0, %v1932_v18  ;;  %v2950_v23 = vadd.f32 %v2884_v20, %v2647_v16  ;;  %v1873_v20 = vld [vmem:[#allocation2 + $0x90] sm:$0xff] }
 0x1bc   : > { %v1640_v24 = vpop.f32.mrf.mxu1  ;;  %1831 = vmatmul.mubr.bf16.gmra.mxu1 %v11454_v59  ;;  %v2652_v26 = vpop.f32.mrf.mxu0  ;;  %2843 = vmatmul.mubr.bf16.gmra.mxu0 %v11458_v17  ;;  %v1871_v59 = vld [vmem:[#allocation2 + $0x80] sm:$0xff] }
 0x1bd   : > { %3016 = vst.msk [vmem:[#allocation2 + $0x48] sm:$0xff] %vm966_vm0, %v2950_v23  ;;  %v1933_v27 = vadd.f32 %v1867_v25, %v1640_v24  ;;  %1838 = vmatprep.mubr.bf16.mxu1 %v11460_v5  ;;  %2850 = vmatprep.mubr.bf16.mxu0 %v11464_v19  ;;  %v11487_v23 = vld [vmem:[%s13985_s1 + $0x2b0] sm:$0xff]  }
 0x1be   : > { %v2885_v28 = vld [vmem:[#allocation2 + $0x50] sm:$0xff]  ;;  %v1642_v30 = vpop.f32.mrf.mxu1  ;;  %v2654_v31 = vpop.f32.mrf.mxu0 }
 0x1bf   : > { %1999 = vst.msk [vmem:[#allocation2 + $0x60] sm:$0xff] %vm966_vm0, %v1933_v27  ;;  %v2951_v32 = vadd.f32 %v2885_v28, %v2652_v26  ;;  %v1874_v30 = vld [vmem:[#allocation2 + $0x98] sm:$0xff] }
 0x1c0   : > { %v1643_v33 = vpop.f32.mrf.mxu1  ;;  %v2655_v36 = vpop.f32.mrf.mxu0 }
 0x1c1   : > { %3017 = vst.msk [vmem:[#allocation2 + $0x50] sm:$0xff] %vm966_vm0, %v2951_v32  ;;  %v1934_v39 = vadd.f32 %v1868_v35, %v1643_v33  ;;  %v11477_v32 = vld [vmem:[%s11782_s24 + $0x70] ss:$8 sps:$4 sm:$0xff]   ;;  %v11480_v33 = vld [vmem:[%s11782_s24 + $0x80] ss:$8 sps:$4 sm:$0xff]  }
 0x1c2   : > { %v2886_v43 = vld [vmem:[#allocation2 + $0x58] sm:$0xff]  ;;  %v1645_v46 = vpop.f32.mrf.mxu1  ;;  %v2657_v48 = vpop.f32.mrf.mxu0 }
 0x1c3   : > { %2000 = vst.msk [vmem:[#allocation2 + $0x68] sm:$0xff] %vm966_vm0, %v1934_v39  ;;  %v2952_v41 = vadd.f32 %v2886_v43, %v2655_v36  ;;  %v11483_v36 = vld [vmem:[%s13985_s1 + $0x338] sm:$0xff]   ;;  %v11495_v48 = vld [vmem:[%s13985_s1 + $0x2a8] sm:$0xff]  }
 0x1c4   : > { %v1648_v51 = vpop.f32.mrf.mxu1  ;;  %1839 = vmatmul.mubr.bf16.gmra.mxu1 %v11458_v17  ;;  %v2660_v56 = vpop.f32.mrf.mxu0  ;;  %2851 = vmatmul.mubr.bf16.gmra.mxu0 %v11462_v38  ;;  %v11482_v17 = vld [vmem:[%s11782_s24 + $0x84] ss:$8 sps:$4 sm:$0xff]   ;;  %v11486_v43 = vld [vmem:[%s11782_s24 + $0x94] ss:$8 sps:$4 sm:$0xff]  }
 0x1c5   : > { %3018 = vst.msk [vmem:[#allocation2 + $0x58] sm:$0xff] %vm966_vm0, %v2952_v41  ;;  %v1935_v44 = vadd.f32 %v1869_v54, %v1648_v51  ;;  %1846 = vmatprep.mubr.bf16.mxu1 %v11464_v19  ;;  %2858 = vmatprep.mubr.bf16.mxu0 %v11468_v40  ;;  %v1875_v51 = vld [vmem:[#allocation2 + $0xa0] sm:$0xff] }
 0x1c6   : > { %v2887_v60 = vld [vmem:[#allocation2 + $0x60] sm:$0xff]  ;;  %v1650_v62 = vpop.f32.mrf.mxu1  ;;  %v2662_v47 = vpop.f32.mrf.mxu0 }
 0x1c7   : > { %2001 = vst.msk [vmem:[#allocation2 + $0x70] sm:$0xff] %vm966_vm0, %v1935_v44  ;;  %v2953_v29 = vadd.f32 %v2887_v60, %v2660_v56  ;;  %v11491_v44 = vld [vmem:[%s13985_s1 + $0x330] sm:$0xff]  }
 0x1c8   : > { %v1651_v63 = vpop.f32.mrf.mxu1  ;;  %v2663_v37 = vpop.f32.mrf.mxu0 }
 0x1c9   : > { %3019 = vst.msk [vmem:[#allocation2 + $0x60] sm:$0xff] %vm966_vm0, %v2953_v29  ;;  %v1936_v49 = vadd.f32 %v1870_v34, %v1651_v63  ;;  %v11503_v63 = vld [vmem:[%s13985_s1 + $0x2a0] sm:$0xff]  }
 0x1ca   : > { %v2888_v52 = vld [vmem:[#allocation2 + $0x68] sm:$0xff]  ;;  %v1653_v50 = vpop.f32.mrf.mxu1  ;;  %v2665_v53 = vpop.f32.mrf.mxu0 }
 0x1cb   : > { %2002 = vst.msk [vmem:[#allocation2 + $0x78] sm:$0xff] %vm966_vm0, %v1936_v49  ;;  %v2954_v2 = vadd.f32 %v2888_v52, %v2663_v37  ;;  %v1876_v37 = vld [vmem:[#allocation2 + $0xa8] sm:$0xff]  ;;  %v11484_v49 = vld [vmem:[%s11782_s24 + $0x90] ss:$8 sps:$4 sm:$0xff]  }
 0x1cc   : > { %v1656_v3 = vpop.f32.mrf.mxu1  ;;  %1847 = vmatmul.mubr.bf16.gmra.mxu1 %v11462_v38  ;;  %v2668_v61 = vpop.f32.mrf.mxu0  ;;  %2859 = vmatmul.mubr.bf16.gmra.mxu0 %v11466_v42 }
 0x1cd   : > { %3020 = vst.msk [vmem:[#allocation2 + $0x68] sm:$0xff] %vm966_vm0, %v2954_v2  ;;  %v1937_v5 = vadd.f32 %v1871_v59, %v1656_v3  ;;  %2866 = vmatprep.mubr.bf16.mxu0 %v11472_v45  ;;  %3630 = vmatprep.mubr.bf16.mxu1 %v11475_v0  ;;  %v11490_v0 = vld [vmem:[%s11782_s24 + $0xa4] ss:$8 sps:$4 sm:$0xff]   ;;  %v11511_v59 = vld [vmem:[%s13985_s1 + $0x298] sm:$0xff]  }
 0x1ce   : > { %v2889_v55 = vld [vmem:[#allocation2 + $0x70] sm:$0xff]  ;;  %v1658_v7 = vpop.f32.mrf.mxu1  ;;  %v2670_v4 = vpop.f32.mrf.mxu0  ;;  %v11499_v2 = vld [vmem:[%s13985_s1 + $0x328] sm:$0xff]  }
 0x1cf   : > { %2003 = vst.msk [vmem:[#allocation2 + $0x80] sm:$0xff] %vm966_vm0, %v1937_v5  ;;  %v2955_v57 = vadd.f32 %v2889_v55, %v2668_v61  ;;  %v1877_v5 = vld [vmem:[#allocation2 + $0xb0] sm:$0xff] }
 0x1d0   : > { %v1659_v6 = vpop.f32.mrf.mxu1  ;;  %v2671_v9 = vpop.f32.mrf.mxu0 }
 0x1d1   : > { %3021 = vst.msk [vmem:[#allocation2 + $0x70] sm:$0xff] %vm966_vm0, %v2955_v57  ;;  %v1938_v12 = vadd.f32 %v1872_v8, %v1659_v6  ;;  %v11507_v8 = vld [vmem:[%s13985_s1 + $0x320] sm:$0xff]  }
 0x1d2   : > { %v2890_v58 = vld [vmem:[#allocation2 + $0x78] sm:$0xff]  ;;  %v1661_v15 = vpop.f32.mrf.mxu1  ;;  %v2673_v16 = vpop.f32.mrf.mxu0 }
 0x1d3   : > { %2004 = vst.msk [vmem:[#allocation2 + $0x88] sm:$0xff] %vm966_vm0, %v1938_v12  ;;  %v2956_v18 = vadd.f32 %v2890_v58, %v2671_v9  ;;  %v1878_v12 = vld [vmem:[#allocation2 + $0xb8] sm:$0xff] }
 0x1d4   : > { %v1664_v19 = vpop.f32.mrf.mxu1  ;;  %v2676_v21 = vpop.f32.mrf.mxu0  ;;  %2867 = vmatmul.mubr.bf16.gmra.mxu0 %v11470_v10  ;;  %3631 = vmatmul.mubr.bf16.vlgmr.msra.gmra.mxu1 %v11473_v11  ;;  %v11519_v10 = vld [vmem:[%s13985_s1 + $0x290] sm:$0xff]  }
 0x1d5   : > { %3022 = vst.msk [vmem:[#allocation2 + $0x78] sm:$0xff] %vm966_vm0, %v2956_v18  ;;  %v1939_v22 = vadd.f32 %v1873_v20, %v1664_v19  ;;  %5639 = vmatpush1.bf16.msra.mxu1 %v11476_v13  ;;  %3638 = vmatprep.mubr.bf16.mxu1 %v11479_v14  ;;  %v11488_v14 = vld [vmem:[%s11782_s24 + $0xa0] ss:$8 sps:$4 sm:$0xff]   ;;  %v11494_v15 = vld [vmem:[%s11782_s24 + $0xb4] ss:$8 sps:$4 sm:$0xff]  }
 0x1d6   : > { %v2891_v24 = vld [vmem:[#allocation2 + $0x80] sm:$0xff]  ;;  %v1666_v25 = vpop.f32.mrf.mxu1  ;;  %v2678_v26 = vpop.f32.mrf.mxu0  ;;  %4650 = vmatprep.mubr.bf16.mxu0 %v11482_v17  ;;  %5640 = vmatprep.subr.bf16.mxu1 %v11723_v1  ;;  %v11515_v19 = vld [vmem:[%s13985_s1 + $0x318] sm:$0xff]  }
 0x1d7   : > { %2005 = vst.msk [vmem:[#allocation2 + $0x90] sm:$0xff] %vm966_vm0, %v1939_v22  ;;  %v2957_v27 = vadd.f32 %v2891_v24, %v2676_v21  ;;  %v11527_v21 = vld [vmem:[%s13985_s1 + $0x288] sm:$0xff]  }
 0x1d8   : > { %v1667_v28 = vpop.f32.mrf.mxu1  ;;  %v2679_v31 = vpop.f32.mrf.mxu0 }
 0x1d9   : > { %3023 = vst.msk [vmem:[#allocation2 + $0x80] sm:$0xff] %vm966_vm0, %v2957_v27  ;;  %v1940_v35 = vadd.f32 %v1874_v30, %v1667_v28  ;;  %5641 = vmatpush1.bf16.msra.mxu1 %v11487_v23  ;;  %v1879_v23 = vld [vmem:[#allocation2 + $0xc0] sm:$0xff]  ;;  %v11523_v30 = vld [vmem:[%s13985_s1 + $0x310] sm:$0xff]  }
 0x1da   : > { %v2892_v38 = vld [vmem:[#allocation2 + $0x88] sm:$0xff]  ;;  %v1669_v39 = vpop.f32.mrf.mxu1  ;;  %v2681_v40 = vpop.f32.mrf.mxu0  ;;  %5642 = vmatprep.subr.bf16.mxu1 %v11723_v1 }
 0x1db   : > { %2006 = vst.msk [vmem:[#allocation2 + $0x98] sm:$0xff] %vm966_vm0, %v1940_v35  ;;  %v2958_v46 = vadd.f32 %v2892_v38, %v2679_v31  ;;  %v1880_v35 = vld [vmem:[#allocation2 + $0xc8] sm:$0xff]  ;;  %v11492_v38 = vld [vmem:[%s11782_s24 + $0xb0] ss:$8 sps:$4 sm:$0xff]  }
 0x1dc   : > { %v1672_v41 = vpop.f32.mrf.mxu1  ;;  %v2684_v54 = vpop.f32.mrf.mxu0  ;;  %3639 = vmatmul.mubr.bf16.gmra.mxu1 %v11477_v32  ;;  %4651 = vmatmul.mubr.bf16.vlgmr.msra.gmra.mxu0 %v11480_v33  ;;  %v11535_v32 = vld [vmem:[%s13985_s1 + $0x280] sm:$0xff]  }
 0x1dd   : > { %3024 = vst.msk [vmem:[#allocation2 + $0x88] sm:$0xff] %vm966_vm0, %v2958_v46  ;;  %v1941_v56 = vadd.f32 %v1875_v51, %v1672_v41  ;;  %6659 = vmatpush1.bf16.msra.mxu0 %v11483_v36  ;;  %3646 = vmatprep.mubr.bf16.mxu1 %v11482_v17  ;;  %v11498_v40 = vld [vmem:[%s11782_s24 + $0xc4] ss:$8 sps:$4 sm:$0xff]  }
 0x1de   : > { %v2893_v60 = vld [vmem:[#allocation2 + $0x90] sm:$0xff]  ;;  %v1674_v62 = vpop.f32.mrf.mxu1  ;;  %v2686_v47 = vpop.f32.mrf.mxu0  ;;  %4658 = vmatprep.mubr.bf16.mxu0 %v11486_v43  ;;  %6660 = vmatprep.subr.bf16.mxu0 %v11723_v1  ;;  %v11531_v41 = vld [vmem:[%s13985_s1 + $0x308] sm:$0xff]  }
 0x1df   : > { %2007 = vst.msk [vmem:[#allocation2 + $0xa0] sm:$0xff] %vm966_vm0, %v1941_v56  ;;  %v2959_v29 = vadd.f32 %v2893_v60, %v2684_v54  ;;  %5643 = vmatpush1.bf16.msra.mxu1 %v11495_v48  ;;  %v11543_v54 = vld [vmem:[%s13985_s1 + $0x2f8] sm:$0xff]  }
 0x1e0   : > { %v1675_v34 = vpop.f32.mrf.mxu1  ;;  %v2687_v42 = vpop.f32.mrf.mxu0  ;;  %5644 = vmatprep.subr.bf16.mxu1 %v11723_v1 }
 0x1e1   : > { %3025 = vst.msk [vmem:[#allocation2 + $0x90] sm:$0xff] %vm966_vm0, %v2959_v29  ;;  %v1942_v45 = vadd.f32 %v1876_v37, %v1675_v34  ;;  %6661 = vmatpush1.bf16.msra.mxu0 %v11491_v44  ;;  %v1881_v44 = vld [vmem:[#allocation2 + $0xd0] sm:$0xff]  ;;  %v11542_v34 = vld [vmem:[%s13985_s1 + $0x300] sm:$0xff]  }
 0x1e2   : > { %v2894_v52 = vld [vmem:[#allocation2 + $0x98] sm:$0xff]  ;;  %v1677_v50 = vpop.f32.mrf.mxu1  ;;  %v2689_v53 = vpop.f32.mrf.mxu0  ;;  %6662 = vmatprep.subr.bf16.mxu0 %v11723_v1 }
 0x1e3   : > { %2008 = vst.msk [vmem:[#allocation2 + $0xa8] sm:$0xff] %vm966_vm0, %v1942_v45  ;;  %v2960_v3 = vadd.f32 %v2894_v52, %v2687_v42  ;;  %5645 = vmatpush1.bf16.msra.mxu1 %v11503_v63  ;;  %v11551_v42 = vld [vmem:[%s13985_s1 + $0x2f0] sm:$0xff]   ;;  %v1882_v45 = vld [vmem:[#allocation2 + $0xd8] sm:$0xff]  ;;  %v11496_v52 = vld [vmem:[%s11782_s24 + $0xc0] ss:$8 sps:$4 sm:$0xff]  }
 0x1e4   : > { %v1680_v61 = vpop.f32.mrf.mxu1  ;;  %v2692_v55 = vpop.f32.mrf.mxu0  ;;  %3647 = vmatmul.mubr.bf16.gmra.mxu1 %v11480_v33  ;;  %4659 = vmatmul.mubr.bf16.gmra.mxu0 %v11484_v49  ;;  %v11502_v53 = vld [vmem:[%s11782_s24 + $0xd4] ss:$8 sps:$4 sm:$0xff]  }
 0x1e5   : > { %3026 = vst.msk [vmem:[#allocation2 + $0x98] sm:$0xff] %vm966_vm0, %v2960_v3  ;;  %v1943_v7 = vadd.f32 %v1877_v5, %v1680_v61  ;;  %3654 = vmatprep.mubr.bf16.mxu1 %v11486_v43  ;;  %4666 = vmatprep.mubr.bf16.mxu0 %v11490_v0  ;;  %v11550_v61 = vld [vmem:[%s13985_s1 + $0x378] sm:$0xff]  }
 0x1e6   : > { %v2895_v4 = vld [vmem:[#allocation2 + $0xa0] sm:$0xff]  ;;  %v1682_v57 = vpop.f32.mrf.mxu1  ;;  %v2694_v6 = vpop.f32.mrf.mxu0  ;;  %6663 = vmatpush1.bf16.msra.mxu0 %v11499_v2  ;;  %5646 = vmatprep.subr.bf16.mxu1 %v11723_v1 }
 0x1e7   : > { %2009 = vst.msk [vmem:[#allocation2 + $0xb0] sm:$0xff] %vm966_vm0, %v1943_v7  ;;  %v2961_v9 = vadd.f32 %v2895_v4, %v2692_v55  ;;  %6664 = vmatprep.subr.bf16.mxu0 %v11723_v1  ;;  %5647 = vmatpush1.bf16.msra.mxu1 %v11511_v59  ;;  %v1883_v7 = vld [vmem:[#allocation2 + $0xe0] sm:$0xff]  ;;  %v11559_v6 = vld [vmem:[%s13985_s1 + $0x2e8] sm:$0xff]  }
 0x1e8   : > { %v1683_v11 = vpop.f32.mrf.mxu1  ;;  %v2695_v13 = vpop.f32.mrf.mxu0  ;;  %5648 = vmatprep.subr.bf16.mxu1 %v11723_v1 }
 0x1e9   : > { %3027 = vst.msk [vmem:[#allocation2 + $0xa0] sm:$0xff] %vm966_vm0, %v2961_v9  ;;  %v1944_v58 = vadd.f32 %v1878_v12, %v1683_v11  ;;  %v11558_v11 = vld [vmem:[%s13985_s1 + $0x370] sm:$0xff]  }
 0x1ea   : > { %v2896_v16 = vld [vmem:[#allocation2 + $0xa8] sm:$0xff]  ;;  %v1685_v17 = vpop.f32.mrf.mxu1  ;;  %v2697_v18 = vpop.f32.mrf.mxu0  ;;  %6665 = vmatpush1.bf16.msra.mxu0 %v11507_v8 }
 0x1eb   : > { %2010 = vst.msk [vmem:[#allocation2 + $0xb8] sm:$0xff] %vm966_vm0, %v1944_v58  ;;  %v2962_v20 = vadd.f32 %v2896_v16, %v2695_v13  ;;  %6666 = vmatprep.subr.bf16.mxu0 %v11723_v1  ;;  %5649 = vmatpush1.bf16.msra.mxu1 %v11519_v10  ;;  %v11506_v17 = vld [vmem:[%s11782_s24 + $0xe4] ss:$8 sps:$4 sm:$0xff]  }
 0x1ec   : > { %v1688_v22 = vpop.f32.mrf.mxu1  ;;  %v2700_v24 = vpop.f32.mrf.mxu0  ;;  %3655 = vmatmul.mubr.bf16.gmra.mxu1 %v11484_v49  ;;  %4667 = vmatmul.mubr.bf16.gmra.mxu0 %v11488_v14 }
 0x1ed   : > { %3028 = vst.msk [vmem:[#allocation2 + $0xa8] sm:$0xff] %vm966_vm0, %v2962_v20  ;;  %v1945_v25 = vadd.f32 %v1879_v23, %v1688_v22  ;;  %3662 = vmatprep.mubr.bf16.mxu1 %v11490_v0  ;;  %4674 = vmatprep.mubr.bf16.mxu0 %v11494_v15  ;;  %v1885_v23 = vld [vmem:[#allocation2 + $0xf0] sm:$0xff] }
 0x1ee   : > { %v2897_v26 = vld [vmem:[#allocation2 + $0xb0] sm:$0xff]  ;;  %v1690_v27 = vpop.f32.mrf.mxu1  ;;  %v2702_v28 = vpop.f32.mrf.mxu0  ;;  %6667 = vmatpush1.bf16.msra.mxu0 %v11515_v19  ;;  %5650 = vmatprep.subr.bf16.mxu1 %v11723_v1 }
 0x1ef   : > { %2011 = vst.msk [vmem:[#allocation2 + $0xc0] sm:$0xff] %vm966_vm0, %v1945_v25  ;;  %v2963_v31 = vadd.f32 %v2897_v26, %v2700_v24  ;;  %6668 = vmatprep.subr.bf16.mxu0 %v11723_v1  ;;  %5651 = vmatpush1.bf16.msra.mxu1 %v11527_v21 }
 0x1f0   : > { %v1691_v33 = vpop.f32.mrf.mxu1  ;;  %v2703_v36 = vpop.f32.mrf.mxu0  ;;  %5652 = vmatprep.subr.bf16.mxu1 %v11723_v1 }
 0x1f1   : > { %3029 = vst.msk [vmem:[#allocation2 + $0xb0] sm:$0xff] %vm966_vm0, %v2963_v31  ;;  %v1946_v39 = vadd.f32 %v1880_v35, %v1691_v33  ;;  %v11504_v35 = vld [vmem:[%s11782_s24 + $0xe0] ss:$8 sps:$4 sm:$0xff]  }
 0x1f2   : > { %v2898_v43 = vld [vmem:[#allocation2 + $0xb8] sm:$0xff]  ;;  %v1693_v46 = vpop.f32.mrf.mxu1  ;;  %v2705_v48 = vpop.f32.mrf.mxu0  ;;  %6669 = vmatpush1.bf16.msra.mxu0 %v11523_v30 }
 0x1f3   : > { %2012 = vst.msk [vmem:[#allocation2 + $0xc8] sm:$0xff] %vm966_vm0, %v1946_v39  ;;  %v2964_v51 = vadd.f32 %v2898_v43, %v2703_v36  ;;  %6670 = vmatprep.subr.bf16.mxu0 %v11723_v1  ;;  %5653 = vmatpush1.bf16.msra.mxu1 %v11535_v32  ;;  %v1886_v32 = vld [vmem:[#allocation2 + $0xf8] sm:$0xff]  ;;  %v11566_v39 = vld [vmem:[%s13985_s1 + $0x368] sm:$0xff]  }
 0x1f4   : > { %v1696_v56 = vpop.f32.mrf.mxu1  ;;  %v2708_v60 = vpop.f32.mrf.mxu0  ;;  %3663 = vmatmul.mubr.bf16.gmra.mxu1 %v11488_v14  ;;  %4675 = vmatmul.mubr.bf16.gmra.mxu0 %v11492_v38  ;;  %v1884_v14 = vld [vmem:[#allocation2 + $0xe8] sm:$0xff] }
 0x1f5   : > { %3030 = vst.msk [vmem:[#allocation2 + $0xb8] sm:$0xff] %vm966_vm0, %v2964_v51  ;;  %v1947_v62 = vadd.f32 %v1881_v44, %v1696_v56  ;;  %3670 = vmatprep.mubr.bf16.mxu1 %v11494_v15  ;;  %4682 = vmatprep.mubr.bf16.mxu0 %v11498_v40  ;;  %v11500_v15 = vld [vmem:[%s11782_s24 + $0xd0] ss:$8 sps:$4 sm:$0xff]   ;;  %v1887_v51 = vld [vmem:[#allocation2 + $0x100] sm:$0xff] }
 0x1f6   : > { %v2899_v47 = vld [vmem:[#allocation2 + $0xc0] sm:$0xff]  ;;  %v1698_v29 = vpop.f32.mrf.mxu1  ;;  %v2710_v63 = vpop.f32.mrf.mxu0  ;;  %6671 = vmatpush1.bf16.msra.mxu0 %v11531_v41  ;;  %5654 = vmatprep.subr.bf16.mxu1 %v11723_v1 }
 0x1f7   : > { %2013 = vst.msk [vmem:[#allocation2 + $0xd0] sm:$0xff] %vm966_vm0, %v1947_v62  ;;  %v2965_v37 = vadd.f32 %v2899_v47, %v2708_v60  ;;  %6672 = vmatprep.subr.bf16.mxu0 %v11723_v1  ;;  %5655 = vmatpush2.bf16.msra.mxu1 %v11543_v54  ;;  %v11570_v44 = vld [vmem:[%s13985_s1 + $0x2e0] sm:$0xff]  }
 0x1f8   : > { %v1699_v49 = vpop.f32.mrf.mxu1  ;;  %v2711_v0 = vpop.f32.mrf.mxu0  ;;  %5656 = vmatprep.subr.bf16.mxu1 %v11723_v1 }
 0x1f9   : > { %3031 = vst.msk [vmem:[#allocation2 + $0xc0] sm:$0xff] %vm966_vm0, %v2965_v37  ;;  %v1948_v50 = vadd.f32 %v1882_v45, %v1699_v49  ;;  %v11514_v45 = vld [vmem:[%s11782_s24 + $0x104] ss:$8 sps:$4 sm:$0xff]  }
 0x1fa   : > { %v2900_v2 = vld [vmem:[#allocation2 + $0xc8] sm:$0xff]  ;;  %v1701_v3 = vpop.f32.mrf.mxu1  ;;  %v2713_v59 = vpop.f32.mrf.mxu0  ;;  %6673 = vmatpush1.bf16.msra.mxu0 %v11542_v34 }
 0x1fb   : > { %2014 = vst.msk [vmem:[#allocation2 + $0xd8] sm:$0xff] %vm966_vm0, %v1948_v50  ;;  %v2966_v5 = vadd.f32 %v2900_v2, %v2711_v0  ;;  %6674 = vmatprep.subr.bf16.mxu0 %v11723_v1  ;;  %5657 = vmatpush2.bf16.msra.mxu1 %v11551_v42  ;;  %v1888_v34 = vld [vmem:[#allocation2 + $0x108] sm:$0xff]  ;;  %v11508_v42 = vld [vmem:[%s11782_s24 + $0xf0] ss:$8 sps:$4 sm:$0xff]  }
 0x1fc   : > { %v1704_v55 = vpop.f32.mrf.mxu1  ;;  %v2716_v4 = vpop.f32.mrf.mxu0  ;;  %3671 = vmatmul.mubr.bf16.gmra.mxu1 %v11492_v38  ;;  %4683 = vmatmul.mubr.bf16.gmra.mxu0 %v11496_v52  ;;  %v11510_v38 = vld [vmem:[%s11782_s24 + $0xf4] ss:$8 sps:$4 sm:$0xff]  }
 0x1fd   : > { %3032 = vst.msk [vmem:[#allocation2 + $0xc8] sm:$0xff] %vm966_vm0, %v2966_v5  ;;  %v1949_v57 = vadd.f32 %v1883_v7, %v1704_v55  ;;  %3678 = vmatprep.mubr.bf16.mxu1 %v11498_v40  ;;  %4690 = vmatprep.mubr.bf16.mxu0 %v11502_v53  ;;  %v1889_v3 = vld [vmem:[#allocation2 + $0x110] sm:$0xff] }
 0x1fe   : > { %v2901_v8 = vld [vmem:[#allocation2 + $0xd0] sm:$0xff]  ;;  %v1706_v9 = vpop.f32.mrf.mxu1  ;;  %v2718_v10 = vpop.f32.mrf.mxu0  ;;  %6675 = vmatpush2.bf16.msra.mxu0 %v11550_v61  ;;  %5658 = vmatprep.subr.bf16.mxu1 %v11723_v1 }
 0x1ff   : > { %2015 = vst.msk [vmem:[#allocation2 + $0xe0] sm:$0xff] %vm966_vm0, %v1949_v57  ;;  %v2967_v12 = vadd.f32 %v2901_v8, %v2716_v4  ;;  %6676 = vmatprep.subr.bf16.mxu0 %v11723_v1  ;;  %5659 = vmatpush2.bf16.msra.mxu1 %v11559_v6  ;;  %v1890_v6 = vld [vmem:[#allocation2 + $0x118] sm:$0xff]  ;;  %v11512_v9 = vld [vmem:[%s11782_s24 + $0x100] ss:$8 sps:$4 sm:$0xff]  }
 0x200   : > { %v1707_v13 = vpop.f32.mrf.mxu1  ;;  %v2719_v58 = vpop.f32.mrf.mxu0  ;;  %5660 = vmatprep.subr.bf16.mxu1 %v11723_v1 }
 0x201   : > { %3033 = vst.msk [vmem:[#allocation2 + $0xd0] sm:$0xff] %vm966_vm0, %v2967_v12  ;;  %v1950_v16 = vadd.f32 %v1884_v14, %v1707_v13  ;;  %v11574_v12 = vld [vmem:[%s13985_s1 + $0x360] sm:$0xff]  }
 0x202   : > { %v2902_v18 = vld [vmem:[#allocation2 + $0xd8] sm:$0xff]  ;;  %v1709_v19 = vpop.f32.mrf.mxu1  ;;  %v2721_v20 = vpop.f32.mrf.mxu0  ;;  %6677 = vmatpush2.bf16.msra.mxu0 %v11558_v11 }
 0x203   : > { %2016 = vst.msk [vmem:[#allocation2 + $0xe8] sm:$0xff] %vm966_vm0, %v1950_v16  ;;  %v2968_v21 = vadd.f32 %v2902_v18, %v2719_v58  ;;  %6678 = vmatprep.subr.bf16.mxu0 %v11723_v1  ;;  %5661 = vmatpush2.bf16.msra.mxu1 %v11570_v44  ;;  %v11518_v11 = vld [vmem:[%s11782_s24 + $0x114] ss:$8 sps:$4 sm:$0xff]  }
 0x204   : > { %v1712_v22 = vpop.f32.mrf.mxu1  ;;  %v2724_v24 = vpop.f32.mrf.mxu0  ;;  %3679 = vmatmul.mubr.bf16.gmra.mxu1 %v11496_v52  ;;  %4691 = vmatmul.mubr.bf16.gmra.mxu0 %v11500_v15  ;;  %v11578_v20 = vld [vmem:[%s13985_s1 + $0x2d8] sm:$0xff]  }
 0x205   : > { %3034 = vst.msk [vmem:[#allocation2 + $0xd8] sm:$0xff] %vm966_vm0, %v2968_v21  ;;  %v1951_v25 = vadd.f32 %v1885_v23, %v1712_v22  ;;  %3686 = vmatprep.mubr.bf16.mxu1 %v11502_v53  ;;  %4698 = vmatprep.mubr.bf16.mxu0 %v11506_v17 }
 0x206   : > { %v2903_v26 = vld [vmem:[#allocation2 + $0xe0] sm:$0xff]  ;;  %v1714_v27 = vpop.f32.mrf.mxu1  ;;  %v2726_v28 = vpop.f32.mrf.mxu0  ;;  %6679 = vmatpush2.bf16.msra.mxu0 %v11566_v39  ;;  %5662 = vmatprep.subr.bf16.mxu1 %v11723_v1  ;;  %v1893_v39 = vld [vmem:[#allocation2 + $0x130] sm:$0xff] }
 0x207   : > { %2017 = vst.msk [vmem:[#allocation2 + $0xf0] sm:$0xff] %vm966_vm0, %v1951_v25  ;;  %v2969_v30 = vadd.f32 %v2903_v26, %v2724_v24  ;;  %6680 = vmatprep.subr.bf16.mxu0 %v11723_v1  ;;  %5663 = vmatpush2.bf16.msra.mxu1 %v11578_v20  ;;  %v1892_v26 = vld [vmem:[#allocation2 + $0x128] sm:$0xff]  ;;  %v11516_v28 = vld [vmem:[%s11782_s24 + $0x110] ss:$8 sps:$4 sm:$0xff]  }
 0x208   : > { %v1715_v31 = vpop.f32.mrf.mxu1  ;;  %v2727_v33 = vpop.f32.mrf.mxu0  ;;  %5664 = vmatprep.subr.bf16.mxu1 %v11723_v1 }
 0x209   : > { %3035 = vst.msk [vmem:[#allocation2 + $0xe0] sm:$0xff] %vm966_vm0, %v2969_v30  ;;  %v1952_v36 = vadd.f32 %v1886_v32, %v1715_v31  ;;  %v11522_v31 = vld [vmem:[%s11782_s24 + $0x124] ss:$8 sps:$4 sm:$0xff]  }
 0x20a   : > { %v2904_v40 = vld [vmem:[#allocation2 + $0xe8] sm:$0xff]  ;;  %v1717_v43 = vpop.f32.mrf.mxu1  ;;  %v2729_v46 = vpop.f32.mrf.mxu0  ;;  %6681 = vmatpush2.bf16.msra.mxu0 %v11574_v12  ;;  %v1897_v12 = vld [vmem:[#allocation2 + $0x150] sm:$0xff] }
 0x20b   : > { %2018 = vst.msk [vmem:[#allocation2 + $0xf8] sm:$0xff] %vm966_vm0, %v1952_v36  ;;  %v2970_v48 = vadd.f32 %v2904_v40, %v2727_v33  ;;  %6682 = vmatprep.subr.bf16.mxu0 %v11723_v1 }
 0x20c   : > { %v1720_v41 = vpop.f32.mrf.mxu1  ;;  %v2732_v54 = vpop.f32.mrf.mxu0  ;;  %3687 = vmatmul.mubr.bf16.gmra.mxu1 %v11500_v15  ;;  %4699 = vmatmul.mubr.bf16.gmra.mxu0 %v11504_v35 }
 0x20d   : > { %3036 = vst.msk [vmem:[#allocation2 + $0xe8] sm:$0xff] %vm966_vm0, %v2970_v48  ;;  %v1953_v56 = vadd.f32 %v1887_v51, %v1720_v41  ;;  %3694 = vmatprep.mubr.bf16.mxu1 %v11506_v17  ;;  %4706 = vmatprep.mubr.bf16.mxu0 %v11510_v38  ;;  %v1891_v17 = vld [vmem:[#allocation2 + $0x120] sm:$0xff] }
 0x20e   : > { %v2905_v60 = vld [vmem:[#allocation2 + $0xf0] sm:$0xff]  ;;  %v1722_v62 = vpop.f32.mrf.mxu1  ;;  %v2734_v47 = vpop.f32.mrf.mxu0 }
 0x20f   : > { %2019 = vst.msk [vmem:[#allocation2 + $0x100] sm:$0xff] %vm966_vm0, %v1953_v56  ;;  %v2971_v29 = vadd.f32 %v2905_v60, %v2732_v54  ;;  %v1894_v56 = vld [vmem:[#allocation2 + $0x138] sm:$0xff]  ;;  %v11520_v60 = vld [vmem:[%s11782_s24 + $0x120] ss:$8 sps:$4 sm:$0xff]  }
 0x210   : > { %v1723_v63 = vpop.f32.mrf.mxu1  ;;  %v2735_v37 = vpop.f32.mrf.mxu0  ;;  %v11526_v47 = vld [vmem:[%s11782_s24 + $0x134] ss:$8 sps:$4 sm:$0xff]  }
 0x211   : > { %3037 = vst.msk [vmem:[#allocation2 + $0xf0] sm:$0xff] %vm966_vm0, %v2971_v29  ;;  %v1954_v49 = vadd.f32 %v1888_v34, %v1723_v63  ;;  %v11582_v29 = vld [vmem:[%s13985_s1 + $0x358] sm:$0xff]  }
 0x212   : > { %v2906_v0 = vld [vmem:[#allocation2 + $0xf8] sm:$0xff]  ;;  %v1725_v52 = vpop.f32.mrf.mxu1  ;;  %v2737_v50 = vpop.f32.mrf.mxu0  ;;  %6683 = vmatpush2.bf16.msra.mxu0 %v11582_v29  ;;  %v1901_v29 = vld [vmem:[#allocation2 + $0x170] sm:$0xff] }
 0x213   : > { %2020 = vst.msk [vmem:[#allocation2 + $0x108] sm:$0xff] %vm966_vm0, %v1954_v49  ;;  %v2972_v53 = vadd.f32 %v2906_v0, %v2735_v37  ;;  %6684 = vmatprep.subr.bf16.mxu0 %v11723_v1 }
 0x214   : > { %v1728_v2 = vpop.f32.mrf.mxu1  ;;  %v2740_v59 = vpop.f32.mrf.mxu0  ;;  %3695 = vmatmul.mubr.bf16.gmra.mxu1 %v11504_v35  ;;  %4707 = vmatmul.mubr.bf16.gmra.mxu0 %v11508_v42 }
 0x215   : > { %3038 = vst.msk [vmem:[#allocation2 + $0xf8] sm:$0xff] %vm966_vm0, %v2972_v53  ;;  %v1955_v61 = vadd.f32 %v1889_v3, %v1728_v2  ;;  %3702 = vmatprep.mubr.bf16.mxu1 %v11510_v38  ;;  %4714 = vmatprep.mubr.bf16.mxu0 %v11514_v45 }
 0x216   : > { %v2907_v5 = vld [vmem:[#allocation2 + $0x100] sm:$0xff]  ;;  %v1730_v55 = vpop.f32.mrf.mxu1  ;;  %v2742_v7 = vpop.f32.mrf.mxu0 }
 0x217   : > { %2021 = vst.msk [vmem:[#allocation2 + $0x110] sm:$0xff] %vm966_vm0, %v1955_v61  ;;  %v2973_v4 = vadd.f32 %v2907_v5, %v2740_v59  ;;  %v1896_v61 = vld [vmem:[#allocation2 + $0x148] sm:$0xff]  ;;  %v11524_v55 = vld [vmem:[%s11782_s24 + $0x130] ss:$8 sps:$4 sm:$0xff]  }
 0x218   : > { %v1731_v57 = vpop.f32.mrf.mxu1  ;;  %v2743_v8 = vpop.f32.mrf.mxu0 }
 0x219   : > { %3039 = vst.msk [vmem:[#allocation2 + $0x100] sm:$0xff] %vm966_vm0, %v2973_v4  ;;  %v1956_v10 = vadd.f32 %v1890_v6, %v1731_v57  ;;  %v11530_v4 = vld [vmem:[%s11782_s24 + $0x144] ss:$8 sps:$4 sm:$0xff]   ;;  %v11586_v57 = vld [vmem:[%s13985_s1 + $0x2d0] sm:$0xff]  }
 0x21a   : > { %v2908_v13 = vld [vmem:[#allocation2 + $0x108] sm:$0xff]  ;;  %v1733_v14 = vpop.f32.mrf.mxu1  ;;  %v2745_v58 = vpop.f32.mrf.mxu0  ;;  %5665 = vmatpush2.bf16.msra.mxu1 %v11586_v57  ;;  %v1903_v57 = vld [vmem:[#allocation2 + $0x180] sm:$0xff] }
 0x21b   : > { %2022 = vst.msk [vmem:[#allocation2 + $0x118] sm:$0xff] %vm966_vm0, %v1956_v10  ;;  %v2974_v15 = vadd.f32 %v2908_v13, %v2743_v8  ;;  %5666 = vmatprep.subr.bf16.mxu1 %v11723_v1 }
 0x21c   : > { %v1736_v16 = vpop.f32.mrf.mxu1  ;;  %v2748_v18 = vpop.f32.mrf.mxu0  ;;  %3703 = vmatmul.mubr.bf16.gmra.mxu1 %v11508_v42  ;;  %4715 = vmatmul.mubr.bf16.gmra.mxu0 %v11512_v9 }
 0x21d   : > { %3040 = vst.msk [vmem:[#allocation2 + $0x108] sm:$0xff] %vm966_vm0, %v2974_v15  ;;  %v1957_v19 = vadd.f32 %v1891_v17, %v1736_v16  ;;  %3710 = vmatprep.mubr.bf16.mxu1 %v11514_v45  ;;  %4722 = vmatprep.mubr.bf16.mxu0 %v11518_v11  ;;  %v1895_v45 = vld [vmem:[#allocation2 + $0x140] sm:$0xff] }
 0x21e   : > { %v2909_v21 = vld [vmem:[#allocation2 + $0x110] sm:$0xff]  ;;  %v1738_v22 = vpop.f32.mrf.mxu1  ;;  %v2750_v23 = vpop.f32.mrf.mxu0 }
 0x21f   : > { %2023 = vst.msk [vmem:[#allocation2 + $0x120] sm:$0xff] %vm966_vm0, %v1957_v19  ;;  %v2975_v24 = vadd.f32 %v2909_v21, %v2748_v18  ;;  %v1898_v19 = vld [vmem:[#allocation2 + $0x158] sm:$0xff]  ;;  %v11528_v21 = vld [vmem:[%s11782_s24 + $0x140] ss:$8 sps:$4 sm:$0xff]  }
 0x220   : > { %v1739_v25 = vpop.f32.mrf.mxu1  ;;  %v2751_v27 = vpop.f32.mrf.mxu0  ;;  %v11534_v23 = vld [vmem:[%s11782_s24 + $0x154] ss:$8 sps:$4 sm:$0xff]  }
 0x221   : > { %3041 = vst.msk [vmem:[#allocation2 + $0x110] sm:$0xff] %vm966_vm0, %v2975_v24  ;;  %v1958_v30 = vadd.f32 %v1892_v26, %v1739_v25  ;;  %v11590_v24 = vld [vmem:[%s13985_s1 + $0x350] sm:$0xff]  }
 0x222   : > { %v2910_v32 = vld [vmem:[#allocation2 + $0x118] sm:$0xff]  ;;  %v1741_v33 = vpop.f32.mrf.mxu1  ;;  %v2753_v35 = vpop.f32.mrf.mxu0  ;;  %6685 = vmatpush2.bf16.msra.mxu0 %v11590_v24 }
 0x223   : > { %2024 = vst.msk [vmem:[#allocation2 + $0x128] sm:$0xff] %vm966_vm0, %v1958_v30  ;;  %v2976_v36 = vadd.f32 %v2910_v32, %v2751_v27  ;;  %6686 = vmatprep.subr.bf16.mxu0 %v11723_v1 }
 0x224   : > { %v1744_v38 = vpop.f32.mrf.mxu1  ;;  %v2756_v40 = vpop.f32.mrf.mxu0  ;;  %3711 = vmatmul.mubr.bf16.gmra.mxu1 %v11512_v9  ;;  %4723 = vmatmul.mubr.bf16.gmra.mxu0 %v11516_v28 }
 0x225   : > { %3042 = vst.msk [vmem:[#allocation2 + $0x118] sm:$0xff] %vm966_vm0, %v2976_v36  ;;  %v1959_v43 = vadd.f32 %v1893_v39, %v1744_v38  ;;  %3718 = vmatprep.mubr.bf16.mxu1 %v11518_v11  ;;  %4730 = vmatprep.mubr.bf16.mxu0 %v11522_v31 }
 0x226   : > { %v2911_v46 = vld [vmem:[#allocation2 + $0x120] sm:$0xff]  ;;  %v1746_v48 = vpop.f32.mrf.mxu1  ;;  %v2758_v41 = vpop.f32.mrf.mxu0 }
 0x227   : > { %2025 = vst.msk [vmem:[#allocation2 + $0x130] sm:$0xff] %vm966_vm0, %v1959_v43  ;;  %v2977_v51 = vadd.f32 %v2911_v46, %v2756_v40  ;;  %v1900_v43 = vld [vmem:[#allocation2 + $0x168] sm:$0xff]  ;;  %v11532_v48 = vld [vmem:[%s11782_s24 + $0x150] ss:$8 sps:$4 sm:$0xff]  }
 0x228   : > { %v1747_v54 = vpop.f32.mrf.mxu1  ;;  %v2759_v44 = vpop.f32.mrf.mxu0 }
 0x229   : > { %3043 = vst.msk [vmem:[#allocation2 + $0x120] sm:$0xff] %vm966_vm0, %v2977_v51  ;;  %v1960_v62 = vadd.f32 %v1894_v56, %v1747_v54  ;;  %v11538_v51 = vld [vmem:[%s11782_s24 + $0x164] ss:$8 sps:$4 sm:$0xff]  }
 0x22a   : > { %v2912_v63 = vld [vmem:[#allocation2 + $0x128] sm:$0xff]  ;;  %v1749_v34 = vpop.f32.mrf.mxu1  ;;  %v2761_v37 = vpop.f32.mrf.mxu0 }
 0x22b   : > { %2026 = vst.msk [vmem:[#allocation2 + $0x138] sm:$0xff] %vm966_vm0, %v1960_v62  ;;  %v2978_v42 = vadd.f32 %v2912_v63, %v2759_v44  ;;  %v11594_v54 = vld [vmem:[%s13985_s1 + $0x2c8] sm:$0xff]  }
 0x22c   : > { %v1752_v49 = vpop.f32.mrf.mxu1  ;;  %v2764_v0 = vpop.f32.mrf.mxu0  ;;  %3719 = vmatmul.mubr.bf16.gmra.mxu1 %v11516_v28  ;;  %4731 = vmatmul.mubr.bf16.gmra.mxu0 %v11520_v60 }
 0x22d   : > { %3044 = vst.msk [vmem:[#allocation2 + $0x128] sm:$0xff] %vm966_vm0, %v2978_v42  ;;  %v1961_v52 = vadd.f32 %v1895_v45, %v1752_v49  ;;  %3726 = vmatprep.mubr.bf16.mxu1 %v11522_v31  ;;  %4738 = vmatprep.mubr.bf16.mxu0 %v11526_v47  ;;  %v1899_v31 = vld [vmem:[#allocation2 + $0x160] sm:$0xff] }
 0x22e   : > { %v2913_v50 = vld [vmem:[#allocation2 + $0x130] sm:$0xff]  ;;  %v1754_v53 = vpop.f32.mrf.mxu1  ;;  %v2766_v2 = vpop.f32.mrf.mxu0  ;;  %5667 = vmatpush2.bf16.msra.mxu1 %v11594_v54 }
 0x22f   : > { %2027 = vst.msk [vmem:[#allocation2 + $0x140] sm:$0xff] %vm966_vm0, %v1961_v52  ;;  %v2979_v3 = vadd.f32 %v2913_v50, %v2764_v0  ;;  %5668 = vmatprep.subr.bf16.mxu1 %v11723_v1  ;;  %v1902_v52 = vld [vmem:[#allocation2 + $0x178] sm:$0xff]  ;;  %v11536_v53 = vld [vmem:[%s11782_s24 + $0x160] ss:$8 sps:$4 sm:$0xff]  }
 0x230   : > { %v1755_v59 = vpop.f32.mrf.mxu1  ;;  %v2767_v5 = vpop.f32.mrf.mxu0 }
 0x231   : > { %3045 = vst.msk [vmem:[#allocation2 + $0x130] sm:$0xff] %vm966_vm0, %v2979_v3  ;;  %v1962_v7 = vadd.f32 %v1896_v61, %v1755_v59  ;;  %v11541_v3 = vld [vmem:[%s11782_s24 + $0x174] ss:$8 sps:$4 sm:$0xff]   ;;  %v11598_v59 = vld [vmem:[%s13985_s1 + $0x348] sm:$0xff]  }
 0x232   : > { %v2914_v6 = vld [vmem:[#allocation2 + $0x138] sm:$0xff]  ;;  %v1757_v8 = vpop.f32.mrf.mxu1  ;;  %v2769_v9 = vpop.f32.mrf.mxu0  ;;  %6687 = vmatpush2.bf16.msra.mxu0 %v11598_v59 }
 0x233   : > { %2028 = vst.msk [vmem:[#allocation2 + $0x148] sm:$0xff] %vm966_vm0, %v1962_v7  ;;  %v2980_v10 = vadd.f32 %v2914_v6, %v2767_v5  ;;  %6688 = vmatprep.subr.bf16.mxu0 %v11723_v1 }
 0x234   : > { %v1760_v11 = vpop.f32.mrf.mxu1  ;;  %v2772_v13 = vpop.f32.mrf.mxu0  ;;  %3727 = vmatmul.mubr.bf16.gmra.mxu1 %v11520_v60  ;;  %4739 = vmatmul.mubr.bf16.gmra.mxu0 %v11524_v55 }
 0x235   : > { %3046 = vst.msk [vmem:[#allocation2 + $0x138] sm:$0xff] %vm966_vm0, %v2980_v10  ;;  %v1963_v14 = vadd.f32 %v1897_v12, %v1760_v11  ;;  %3734 = vmatprep.mubr.bf16.mxu1 %v11526_v47  ;;  %4746 = vmatprep.mubr.bf16.mxu0 %v11530_v4 }
 0x236   : > { %v2915_v58 = vld [vmem:[#allocation2 + $0x140] sm:$0xff]  ;;  %v1762_v15 = vpop.f32.mrf.mxu1  ;;  %v2774_v16 = vpop.f32.mrf.mxu0 }
 0x237   : > { %2029 = vst.msk [vmem:[#allocation2 + $0x150] sm:$0xff] %vm966_vm0, %v1963_v14  ;;  %v2981_v17 = vadd.f32 %v2915_v58, %v2772_v13  ;;  %v1904_v14 = vld [vmem:[#allocation2 + $0x188] sm:$0xff]  ;;  %v11539_v15 = vld [vmem:[%s11782_s24 + $0x170] ss:$8 sps:$4 sm:$0xff]  }
 0x238   : > { %v1763_v18 = vpop.f32.mrf.mxu1  ;;  %v2775_v20 = vpop.f32.mrf.mxu0 }
 0x239   : > { %3047 = vst.msk [vmem:[#allocation2 + $0x140] sm:$0xff] %vm966_vm0, %v2981_v17  ;;  %v1964_v22 = vadd.f32 %v1898_v19, %v1763_v18  ;;  %v11546_v17 = vld [vmem:[%s11782_s24 + $0x184] ss:$8 sps:$4 sm:$0xff]  }
 0x23a   : > { %v2916_v25 = vld [vmem:[#allocation2 + $0x148] sm:$0xff]  ;;  %v1765_v26 = vpop.f32.mrf.mxu1  ;;  %v2777_v27 = vpop.f32.mrf.mxu0  ;;  %v11602_v18 = vld [vmem:[%s13985_s1 + $0x2c0] sm:$0xff]  }
 0x23b   : > { %2030 = vst.msk [vmem:[#allocation2 + $0x158] sm:$0xff] %vm966_vm0, %v1964_v22  ;;  %v2982_v28 = vadd.f32 %v2916_v25, %v2775_v20  ;;  %5669 = vmatpush2.bf16.msra.mxu1 %v11602_v18 }
 0x23c   : > { %v1768_v30 = vpop.f32.mrf.mxu1  ;;  %v2780_v32 = vpop.f32.mrf.mxu0  ;;  %3735 = vmatmul.mubr.bf16.gmra.mxu1 %v11524_v55  ;;  %4747 = vmatmul.mubr.bf16.gmra.mxu0 %v11528_v21 }
 0x23d   : > { %3048 = vst.msk [vmem:[#allocation2 + $0x148] sm:$0xff] %vm966_vm0, %v2982_v28  ;;  %v1965_v33 = vadd.f32 %v1899_v31, %v1768_v30  ;;  %3742 = vmatprep.mubr.bf16.mxu1 %v11530_v4  ;;  %4754 = vmatprep.mubr.bf16.mxu0 %v11534_v23 }
 0x23e   : > { %v2917_v35 = vld [vmem:[#allocation2 + $0x150] sm:$0xff]  ;;  %v1770_v36 = vpop.f32.mrf.mxu1  ;;  %v2782_v38 = vpop.f32.mrf.mxu0 }
 0x23f   : > { %2031 = vst.msk [vmem:[#allocation2 + $0x160] sm:$0xff] %vm966_vm0, %v1965_v33  ;;  %v2983_v39 = vadd.f32 %v2917_v35, %v2780_v32  ;;  %v1906_v32 = vld [vmem:[#allocation2 + $0x198] sm:$0xff]  ;;  %v11544_v35 = vld [vmem:[%s11782_s24 + $0x180] ss:$8 sps:$4 sm:$0xff]  }
 0x240   : > { %v1771_v40 = vpop.f32.mrf.mxu1  ;;  %v2783_v46 = vpop.f32.mrf.mxu0  ;;  %v11549_v38 = vld [vmem:[%s11782_s24 + $0x194] ss:$8 sps:$4 sm:$0xff]  }
 0x241   : > { %3049 = vst.msk [vmem:[#allocation2 + $0x150] sm:$0xff] %vm966_vm0, %v2983_v39  ;;  %v1966_v41 = vadd.f32 %v1900_v43, %v1771_v40  ;;  %v11606_v39 = vld [vmem:[%s13985_s1 + $0x340] sm:$0xff]  }
 0x242   : > { %v2918_v56 = vld [vmem:[#allocation2 + $0x158] sm:$0xff]  ;;  %v1773_v44 = vpop.f32.mrf.mxu1  ;;  %v2785_v60 = vpop.f32.mrf.mxu0  ;;  %6689 = vmatpush2.bf16.msra.mxu0 %v11606_v39 }
 0x243   : > { %2032 = vst.msk [vmem:[#allocation2 + $0x168] sm:$0xff] %vm966_vm0, %v1966_v41  ;;  %v2984_v62 = vadd.f32 %v2918_v56, %v2783_v46 }
 0x244   : > { %v1776_v47 = vpop.f32.mrf.mxu1  ;;  %v2788_v63 = vpop.f32.mrf.mxu0  ;;  %3743 = vmatmul.mubr.bf16.gmra.mxu1 %v11528_v21  ;;  %4755 = vmatmul.mubr.bf16.gmra.mxu0 %v11532_v48 }
 0x245   : > { %3050 = vst.msk [vmem:[#allocation2 + $0x158] sm:$0xff] %vm966_vm0, %v2984_v62  ;;  %v1967_v34 = vadd.f32 %v1901_v29, %v1776_v47  ;;  %3750 = vmatprep.mubr.bf16.mxu1 %v11534_v23  ;;  %4762 = vmatprep.mubr.bf16.mxu0 %v11538_v51  ;;  %v1905_v23 = vld [vmem:[#allocation2 + $0x190] sm:$0xff] }
 0x246   : > { %v2919_v37 = vld [vmem:[#allocation2 + $0x160] sm:$0xff]  ;;  %v1778_v42 = vpop.f32.mrf.mxu1  ;;  %v2790_v49 = vpop.f32.mrf.mxu0 }
 0x247   : > { %2033 = vst.msk [vmem:[#allocation2 + $0x170] sm:$0xff] %vm966_vm0, %v1967_v34  ;;  %v2985_v45 = vadd.f32 %v2919_v37, %v2788_v63  ;;  %v1908_v63 = vld [vmem:[#allocation2 + $0x1a8] sm:$0xff]  ;;  %v11547_v37 = vld [vmem:[%s11782_s24 + $0x190] ss:$8 sps:$4 sm:$0xff]  }
 0x248   : > { %v1779_v0 = vpop.f32.mrf.mxu1  ;;  %v2791_v50 = vpop.f32.mrf.mxu0  ;;  %v11554_v49 = vld [vmem:[%s11782_s24 + $0x1a4] ss:$8 sps:$4 sm:$0xff]  }
 0x249   : > { %3051 = vst.msk [vmem:[#allocation2 + $0x160] sm:$0xff] %vm966_vm0, %v2985_v45  ;;  %v1968_v2 = vadd.f32 %v1902_v52, %v1779_v0 }
 0x24a   : > { %v2920_v61 = vld [vmem:[#allocation2 + $0x168] sm:$0xff]  ;;  %v1781_v5 = vpop.f32.mrf.mxu1  ;;  %v2793_v55 = vpop.f32.mrf.mxu0 }
 0x24b   : > { %2034 = vst.msk [vmem:[#allocation2 + $0x178] sm:$0xff] %vm966_vm0, %v1968_v2  ;;  %v2986_v7 = vadd.f32 %v2920_v61, %v2791_v50  ;;  %v1909_v2 = vld [vmem:[#allocation2 + $0x1b0] sm:$0xff] }
 0x24c   : > { %v1784_v4 = vpop.f32.mrf.mxu1  ;;  %v2796_v6 = vpop.f32.mrf.mxu0  ;;  %3751 = vmatmul.mubr.bf16.gmra.mxu1 %v11532_v48  ;;  %4763 = vmatmul.mubr.bf16.gmra.mxu0 %v11536_v53 }
 0x24d   : > { %3052 = vst.msk [vmem:[#allocation2 + $0x168] sm:$0xff] %vm966_vm0, %v2986_v7  ;;  %v1969_v8 = vadd.f32 %v1903_v57, %v1784_v4  ;;  %3758 = vmatprep.mubr.bf16.mxu1 %v11538_v51  ;;  %4770 = vmatprep.mubr.bf16.mxu0 %v11541_v3  ;;  %v1907_v51 = vld [vmem:[#allocation2 + $0x1a0] sm:$0xff]  ;;  %v1910_v57 = vld [vmem:[#allocation2 + $0x1b8] sm:$0xff] }
 0x24e   : > { %v2921_v9 = vld [vmem:[#allocation2 + $0x170] sm:$0xff]  ;;  %v1786_v10 = vpop.f32.mrf.mxu1  ;;  %v2798_v11 = vpop.f32.mrf.mxu0 }
 0x24f   : > { %2035 = vst.msk [vmem:[#allocation2 + $0x180] sm:$0xff] %vm966_vm0, %v1969_v8  ;;  %v2987_v12 = vadd.f32 %v2921_v9, %v2796_v6  ;;  %v11552_v8 = vld [vmem:[%s11782_s24 + $0x1a0] ss:$8 sps:$4 sm:$0xff]   ;;  %v11557_v10 = vld [vmem:[%s11782_s24 + $0x1b4] ss:$8 sps:$4 sm:$0xff]  }
 0x250   : > { %v1787_v13 = vpop.f32.mrf.mxu1  ;;  %v2799_v58 = vpop.f32.mrf.mxu0 }
 0x251   : > { %3053 = vst.msk [vmem:[#allocation2 + $0x170] sm:$0xff] %vm966_vm0, %v2987_v12  ;;  %v1970_v16 = vadd.f32 %v1904_v14, %v1787_v13 }
 0x252   : > { %v2922_v19 = vld [vmem:[#allocation2 + $0x178] sm:$0xff]  ;;  %v1789_v20 = vpop.f32.mrf.mxu1  ;;  %v2801_v21 = vpop.f32.mrf.mxu0 }
 0x253   : > { %2036 = vst.msk [vmem:[#allocation2 + $0x188] sm:$0xff] %vm966_vm0, %v1970_v16  ;;  %v2988_v1 = vadd.f32 %v2922_v19, %v2799_v58 }
 0x254   : > { %v1792_v22 = vpop.f32.mrf.mxu1  ;;  %v2804_v24 = vpop.f32.mrf.mxu0  ;;  %3759 = vmatmul.mubr.bf16.gmra.mxu1 %v11536_v53  ;;  %4771 = vmatmul.mubr.bf16.gmra.mxu0 %v11539_v15 }
 0x255   : > { %3054 = vst.msk [vmem:[#allocation2 + $0x178] sm:$0xff] %vm966_vm0, %v2988_v1  ;;  %v1971_v25 = vadd.f32 %v1905_v23, %v1792_v22  ;;  %3766 = vmatprep.mubr.bf16.mxu1 %v11541_v3  ;;  %4778 = vmatprep.mubr.bf16.mxu0 %v11546_v17  ;;  %v1912_v22 = vld [vmem:[#allocation2 + $0x1c8] sm:$0xff] }
 0x256   : > { %v2923_v26 = vld [vmem:[#allocation2 + $0x180] sm:$0xff]  ;;  %v1794_v27 = vpop.f32.mrf.mxu1  ;;  %v2806_v28 = vpop.f32.mrf.mxu0 }
 0x257   : > { %2037 = vst.msk [vmem:[#allocation2 + $0x190] sm:$0xff] %vm966_vm0, %v1971_v25  ;;  %v2989_v30 = vadd.f32 %v2923_v26, %v2804_v24  ;;  %v11555_v24 = vld [vmem:[%s11782_s24 + $0x1b0] ss:$8 sps:$4 sm:$0xff]   ;;  %v11562_v26 = vld [vmem:[%s11782_s24 + $0x1c4] ss:$8 sps:$4 sm:$0xff]  }
 0x258   : > { %v1795_v31 = vpop.f32.mrf.mxu1  ;;  %v2807_v33 = vpop.f32.mrf.mxu0 }
 0x259   : > { %3055 = vst.msk [vmem:[#allocation2 + $0x180] sm:$0xff] %vm966_vm0, %v2989_v30  ;;  %v1972_v36 = vadd.f32 %v1906_v32, %v1795_v31 }
 0x25a   : > { %v2924_v40 = vld [vmem:[#allocation2 + $0x188] sm:$0xff]  ;;  %v1797_v43 = vpop.f32.mrf.mxu1  ;;  %v2809_v46 = vpop.f32.mrf.mxu0 }
 0x25b   : > { %2038 = vst.msk [vmem:[#allocation2 + $0x198] sm:$0xff] %vm966_vm0, %v1972_v36  ;;  %v2990_v48 = vadd.f32 %v2924_v40, %v2807_v33  ;;  %v1913_v33 = vld [vmem:[#allocation2 + $0x1d0] sm:$0xff] }
 0x25c   : > { %v1800_v41 = vpop.f32.mrf.mxu1  ;;  %v2812_v54 = vpop.f32.mrf.mxu0  ;;  %3767 = vmatmul.mubr.bf16.gmra.mxu1 %v11539_v15  ;;  %4779 = vmatmul.mubr.bf16.gmra.mxu0 %v11544_v35  ;;  %v1911_v15 = vld [vmem:[#allocation2 + $0x1c0] sm:$0xff] }
 0x25d   : > { %3056 = vst.msk [vmem:[#allocation2 + $0x188] sm:$0xff] %vm966_vm0, %v2990_v48  ;;  %v1973_v56 = vadd.f32 %v1907_v51, %v1800_v41  ;;  %3774 = vmatprep.mubr.bf16.mxu1 %v11546_v17  ;;  %4786 = vmatprep.mubr.bf16.mxu0 %v11549_v38  ;;  %v1914_v48 = vld [vmem:[#allocation2 + $0x1d8] sm:$0xff]  ;;  %v11560_v51 = vld [vmem:[%s11782_s24 + $0x1c0] ss:$8 sps:$4 sm:$0xff]  }
 0x25e   : > { %v2925_v44 = vld [vmem:[#allocation2 + $0x190] sm:$0xff]  ;;  %v1802_v60 = vpop.f32.mrf.mxu1  ;;  %v2814_v62 = vpop.f32.mrf.mxu0 }
 0x25f   : > { %2039 = vst.msk [vmem:[#allocation2 + $0x1a0] sm:$0xff] %vm966_vm0, %v1973_v56  ;;  %v2991_v47 = vadd.f32 %v2925_v44, %v2812_v54  ;;  %v11565_v56 = vld [vmem:[%s11782_s24 + $0x1d4] ss:$8 sps:$4 sm:$0xff]  }
 0x260   : > { %v1803_v29 = vpop.f32.mrf.mxu1  ;;  %v2815_v34 = vpop.f32.mrf.mxu0 }
 0x261   : > { %3057 = vst.msk [vmem:[#allocation2 + $0x190] sm:$0xff] %vm966_vm0, %v2991_v47  ;;  %v1974_v42 = vadd.f32 %v1908_v63, %v1803_v29  ;;  %v1915_v63 = vld [vmem:[#allocation2 + $0x1e0] sm:$0xff] }
 0x262   : > { %v2926_v45 = vld [vmem:[#allocation2 + $0x198] sm:$0xff]  ;;  %v1805_v0 = vpop.f32.mrf.mxu1  ;;  %v2817_v52 = vpop.f32.mrf.mxu0 }
 0x263   : > { %2040 = vst.msk [vmem:[#allocation2 + $0x1a8] sm:$0xff] %vm966_vm0, %v1974_v42  ;;  %v2992_v50 = vadd.f32 %v2926_v45, %v2815_v34 }
 0x264   : > { %v1808_v53 = vpop.f32.mrf.mxu1  ;;  %v2820_v3 = vpop.f32.mrf.mxu0  ;;  %3775 = vmatmul.mubr.bf16.gmra.mxu1 %v11544_v35  ;;  %4787 = vmatmul.mubr.bf16.gmra.mxu0 %v11547_v37 }
 0x265   : > { %3058 = vst.msk [vmem:[#allocation2 + $0x198] sm:$0xff] %vm966_vm0, %v2992_v50  ;;  %v1975_v59 = vadd.f32 %v1909_v2, %v1808_v53  ;;  %3782 = vmatprep.mubr.bf16.mxu1 %v11549_v38  ;;  %4794 = vmatprep.mubr.bf16.mxu0 %v11554_v49  ;;  %v1916_v50 = vld [vmem:[#allocation2 + $0x1e8] sm:$0xff]  ;;  %v11563_v2 = vld [vmem:[%s11782_s24 + $0x1d0] ss:$8 sps:$4 sm:$0xff]  }
 0x266   : > { %v2927_v61 = vld [vmem:[#allocation2 + $0x1a0] sm:$0xff]  ;;  %v1810_v5 = vpop.f32.mrf.mxu1  ;;  %v2822_v55 = vpop.f32.mrf.mxu0 }
 0x267   : > { %2041 = vst.msk [vmem:[#allocation2 + $0x1b0] sm:$0xff] %vm966_vm0, %v1975_v59  ;;  %v2993_v7 = vadd.f32 %v2927_v61, %v2820_v3  ;;  %v11569_v59 = vld [vmem:[%s11782_s24 + $0x1e4] ss:$8 sps:$4 sm:$0xff]  }
 0x268   : > { %v1811_v4 = vpop.f32.mrf.mxu1  ;;  %v2823_v6 = vpop.f32.mrf.mxu0 }
 0x269   : > { %3059 = vst.msk [vmem:[#allocation2 + $0x1a0] sm:$0xff] %vm966_vm0, %v2993_v7  ;;  %v1976_v9 = vadd.f32 %v1910_v57, %v1811_v4  ;;  %v1917_v57 = vld [vmem:[#allocation2 + $0x1f0] sm:$0xff] }
 0x26a   : > { %v2928_v11 = vld [vmem:[#allocation2 + $0x1a8] sm:$0xff]  ;;  %v1813_v12 = vpop.f32.mrf.mxu1  ;;  %v2825_v13 = vpop.f32.mrf.mxu0 }
 0x26b   : > { %2042 = vst.msk [vmem:[#allocation2 + $0x1b8] sm:$0xff] %vm966_vm0, %v1976_v9  ;;  %v2994_v14 = vadd.f32 %v2928_v11, %v2823_v6 }
 0x26c   : > { %v1816_v58 = vpop.f32.mrf.mxu1  ;;  %v2828_v16 = vpop.f32.mrf.mxu0  ;;  %3783 = vmatmul.mubr.bf16.gmra.mxu1 %v11547_v37  ;;  %4795 = vmatmul.mubr.bf16.gmra.mxu0 %v11552_v8 }
 0x26d   : > { %3060 = vst.msk [vmem:[#allocation2 + $0x1a8] sm:$0xff] %vm966_vm0, %v2994_v14  ;;  %v1977_v17 = vadd.f32 %v1911_v15, %v1816_v58  ;;  %3790 = vmatprep.mubr.bf16.mxu1 %v11554_v49  ;;  %4802 = vmatprep.mubr.bf16.mxu0 %v11557_v10  ;;  %v1918_v14 = vld [vmem:[#allocation2 + $0x1f8] sm:$0xff]  ;;  %v11567_v15 = vld [vmem:[%s11782_s24 + $0x1e0] ss:$8 sps:$4 sm:$0xff]  }
 0x26e   : > { %v2929_v18 = vld [vmem:[#allocation2 + $0x1b0] sm:$0xff]  ;;  %v1818_v19 = vpop.f32.mrf.mxu1  ;;  %v2830_v20 = vpop.f32.mrf.mxu0 }
 0x26f   : > { %2043 = vst.msk [vmem:[#allocation2 + $0x1c0] sm:$0xff] %vm966_vm0, %v1977_v17  ;;  %v2995_v21 = vadd.f32 %v2929_v18, %v2828_v16  ;;  %v11573_v17 = vld [vmem:[%s11782_s24 + $0x1f4] ss:$8 sps:$4 sm:$0xff]  }
 0x270   : > { %v1819_v1 = vpop.f32.mrf.mxu1  ;;  %v2831_v23 = vpop.f32.mrf.mxu0 }
 0x271   : > { %3061 = vst.msk [vmem:[#allocation2 + $0x1b0] sm:$0xff] %vm966_vm0, %v2995_v21  ;;  %v1978_v25 = vadd.f32 %v1912_v22, %v1819_v1  ;;  %v1919_v22 = vld [vmem:[#allocation2 + $0x200] sm:$0xff] }
 0x272   : > { %v2930_v27 = vld [vmem:[#allocation2 + $0x1b8] sm:$0xff]  ;;  %v1821_v28 = vpop.f32.mrf.mxu1  ;;  %v2833_v30 = vpop.f32.mrf.mxu0 }
 0x273   : > { %2044 = vst.msk [vmem:[#allocation2 + $0x1c8] sm:$0xff] %vm966_vm0, %v1978_v25  ;;  %v2996_v31 = vadd.f32 %v2930_v27, %v2831_v23 }
 0x274   : > { %v1824_v32 = vpop.f32.mrf.mxu1  ;;  %v2836_v35 = vpop.f32.mrf.mxu0  ;;  %3791 = vmatmul.mubr.bf16.gmra.mxu1 %v11552_v8  ;;  %4803 = vmatmul.mubr.bf16.gmra.mxu0 %v11555_v24 }
 0x275   : > { %3062 = vst.msk [vmem:[#allocation2 + $0x1b8] sm:$0xff] %vm966_vm0, %v2996_v31  ;;  %v1979_v36 = vadd.f32 %v1913_v33, %v1824_v32  ;;  %3798 = vmatprep.mubr.bf16.mxu1 %v11557_v10  ;;  %4810 = vmatprep.mubr.bf16.mxu0 %v11562_v26  ;;  %v1920_v31 = vld [vmem:[#allocation2 + $0x208] sm:$0xff]  ;;  %v11571_v33 = vld [vmem:[%s11782_s24 + $0x1f0] ss:$8 sps:$4 sm:$0xff]  }
 0x276   : > { %v2931_v38 = vld [vmem:[#allocation2 + $0x1c0] sm:$0xff]  ;;  %v1826_v39 = vpop.f32.mrf.mxu1  ;;  %v2838_v40 = vpop.f32.mrf.mxu0 }
 0x277   : > { %2045 = vst.msk [vmem:[#allocation2 + $0x1d0] sm:$0xff] %vm966_vm0, %v1979_v36  ;;  %v2997_v43 = vadd.f32 %v2931_v38, %v2836_v35  ;;  %v11577_v36 = vld [vmem:[%s11782_s24 + $0x204] ss:$8 sps:$4 sm:$0xff]  }
 0x278   : > { %v1827_v46 = vpop.f32.mrf.mxu1  ;;  %v2839_v41 = vpop.f32.mrf.mxu0 }
 0x279   : > { %3063 = vst.msk [vmem:[#allocation2 + $0x1c0] sm:$0xff] %vm966_vm0, %v2997_v43  ;;  %v1980_v54 = vadd.f32 %v1914_v48, %v1827_v46 }
 0x27a   : > { %v2932_v44 = vld [vmem:[#allocation2 + $0x1c8] sm:$0xff]  ;;  %v1829_v60 = vpop.f32.mrf.mxu1  ;;  %v2841_v62 = vpop.f32.mrf.mxu0 }
 0x27b   : > { %2046 = vst.msk [vmem:[#allocation2 + $0x1d8] sm:$0xff] %vm966_vm0, %v1980_v54  ;;  %v2998_v47 = vadd.f32 %v2932_v44, %v2839_v41  ;;  %v3895_v41 = vld [vmem:[#allocation2] sm:$0xff] }
 0x27c   : > { %v1832_v29 = vpop.f32.mrf.mxu1  ;;  %v2844_v34 = vpop.f32.mrf.mxu0  ;;  %3799 = vmatmul.mubr.bf16.gmra.mxu1 %v11555_v24  ;;  %4811 = vmatmul.mubr.bf16.gmra.mxu0 %v11560_v51 }
 0x27d   : > { %3064 = vst.msk [vmem:[#allocation2 + $0x1c8] sm:$0xff] %vm966_vm0, %v2998_v47  ;;  %v1981_v37 = vadd.f32 %v1915_v63, %v1832_v29  ;;  %3806 = vmatprep.mubr.bf16.mxu1 %v11562_v26  ;;  %4818 = vmatprep.mubr.bf16.mxu0 %v11565_v56  ;;  %v3896_v29 = vld [vmem:[#allocation2 + $0x8] sm:$0xff] }
 0x27e   : > { %v2933_v42 = vld [vmem:[#allocation2 + $0x1d0] sm:$0xff]  ;;  %v1834_v49 = vpop.f32.mrf.mxu1  ;;  %v2846_v45 = vpop.f32.mrf.mxu0  ;;  %v11575_v63 = vld [vmem:[%s11782_s24 + $0x200] ss:$8 sps:$4 sm:$0xff]  }
 0x27f   : > { %2047 = vst.msk [vmem:[#allocation2 + $0x1e0] sm:$0xff] %vm966_vm0, %v1981_v37  ;;  %v2999_v0 = vadd.f32 %v2933_v42, %v2844_v34  ;;  %v11581_v37 = vld [vmem:[%s11782_s24 + $0x214] ss:$8 sps:$4 sm:$0xff]  }
 0x280   : > { %v1835_v52 = vpop.f32.mrf.mxu1  ;;  %v2847_v53 = vpop.f32.mrf.mxu0 }
 0x281   : > { %3065 = vst.msk [vmem:[#allocation2 + $0x1d0] sm:$0xff] %vm966_vm0, %v2999_v0  ;;  %v1982_v3 = vadd.f32 %v1916_v50, %v1835_v52  ;;  %v3897_v50 = vld [vmem:[#allocation2 + $0x10] sm:$0xff] }
 0x282   : > { %v2934_v61 = vld [vmem:[#allocation2 + $0x1d8] sm:$0xff]  ;;  %v1837_v5 = vpop.f32.mrf.mxu1  ;;  %v2849_v55 = vpop.f32.mrf.mxu0 }
 0x283   : > { %2048 = vst.msk [vmem:[#allocation2 + $0x1e8] sm:$0xff] %vm966_vm0, %v1982_v3  ;;  %v3000_v7 = vadd.f32 %v2934_v61, %v2847_v53 }
 0x284   : > { %v1840_v4 = vpop.f32.mrf.mxu1  ;;  %v2852_v6 = vpop.f32.mrf.mxu0  ;;  %3807 = vmatmul.mubr.bf16.gmra.mxu1 %v11560_v51  ;;  %4819 = vmatmul.mubr.bf16.gmra.mxu0 %v11563_v2 }
 0x285   : > { %3066 = vst.msk [vmem:[#allocation2 + $0x1d8] sm:$0xff] %vm966_vm0, %v3000_v7  ;;  %v1983_v8 = vadd.f32 %v1917_v57, %v1840_v4  ;;  %3814 = vmatprep.mubr.bf16.mxu1 %v11565_v56  ;;  %4826 = vmatprep.mubr.bf16.mxu0 %v11569_v59  ;;  %v3898_v7 = vld [vmem:[#allocation2 + $0x18] sm:$0xff] }
 0x286   : > { %v2935_v9 = vld [vmem:[#allocation2 + $0x1e0] sm:$0xff]  ;;  %v1842_v10 = vpop.f32.mrf.mxu1  ;;  %v2854_v11 = vpop.f32.mrf.mxu0  ;;  %v11579_v57 = vld [vmem:[%s11782_s24 + $0x210] ss:$8 sps:$4 sm:$0xff]  }
 0x287   : > { %2049 = vst.msk [vmem:[#allocation2 + $0x1f0] sm:$0xff] %vm966_vm0, %v1983_v8  ;;  %v3001_v12 = vadd.f32 %v2935_v9, %v2852_v6  ;;  %v11585_v8 = vld [vmem:[%s11782_s24 + $0x224] ss:$8 sps:$4 sm:$0xff]  }
 0x288   : > { %v1843_v13 = vpop.f32.mrf.mxu1  ;;  %v2855_v58 = vpop.f32.mrf.mxu0 }
 0x289   : > { %3067 = vst.msk [vmem:[#allocation2 + $0x1e0] sm:$0xff] %vm966_vm0, %v3001_v12  ;;  %v1984_v16 = vadd.f32 %v1918_v14, %v1843_v13  ;;  %v3899_v14 = vld [vmem:[#allocation2 + $0x20] sm:$0xff] }
 0x28a   : > { %v2936_v18 = vld [vmem:[#allocation2 + $0x1e8] sm:$0xff]  ;;  %v1845_v19 = vpop.f32.mrf.mxu1  ;;  %v2857_v20 = vpop.f32.mrf.mxu0 }
 0x28b   : > { %2050 = vst.msk [vmem:[#allocation2 + $0x1f8] sm:$0xff] %vm966_vm0, %v1984_v16  ;;  %v3002_v21 = vadd.f32 %v2936_v18, %v2855_v58 }
 0x28c   : > { %v1848_v1 = vpop.f32.mrf.mxu1  ;;  %v2860_v23 = vpop.f32.mrf.mxu0  ;;  %3815 = vmatmul.mubr.bf16.gmra.mxu1 %v11563_v2  ;;  %4827 = vmatmul.mubr.bf16.gmra.mxu0 %v11567_v15 }
 0x28d   : > { %3068 = vst.msk [vmem:[#allocation2 + $0x1e8] sm:$0xff] %vm966_vm0, %v3002_v21  ;;  %v1985_v24 = vadd.f32 %v1919_v22, %v1848_v1  ;;  %3822 = vmatprep.mubr.bf16.mxu1 %v11569_v59  ;;  %4834 = vmatprep.mubr.bf16.mxu0 %v11573_v17  ;;  %v3900_v21 = vld [vmem:[#allocation2 + $0x28] sm:$0xff] }
 0x28e   : > { %v2937_v25 = vld [vmem:[#allocation2 + $0x1f0] sm:$0xff]  ;;  %v1850_v26 = vpop.f32.mrf.mxu1  ;;  %v2862_v27 = vpop.f32.mrf.mxu0  ;;  %v11583_v22 = vld [vmem:[%s11782_s24 + $0x220] ss:$8 sps:$4 sm:$0xff]  }
 0x28f   : > { %2051 = vst.msk [vmem:[#allocation2 + $0x200] sm:$0xff] %vm966_vm0, %v1985_v24  ;;  %v3003_v28 = vadd.f32 %v2937_v25, %v2860_v23  ;;  %v11589_v24 = vld [vmem:[%s11782_s24 + $0x234] ss:$8 sps:$4 sm:$0xff]  }
 0x290   : > { %v1851_v30 = vpop.f32.mrf.mxu1  ;;  %v2863_v32 = vpop.f32.mrf.mxu0 }
 0x291   : > { %3069 = vst.msk [vmem:[#allocation2 + $0x1f0] sm:$0xff] %vm966_vm0, %v3003_v28  ;;  %v1986_v35 = vadd.f32 %v1920_v31, %v1851_v30  ;;  %v3901_v31 = vld [vmem:[#allocation2 + $0x30] sm:$0xff] }
 0x292   : > { %v2938_v38 = vld [vmem:[#allocation2 + $0x1f8] sm:$0xff]  ;;  %v1853_v39 = vpop.f32.mrf.mxu1  ;;  %v2865_v40 = vpop.f32.mrf.mxu0 }
 0x293   : > { %2052 = vst.msk [vmem:[#allocation2 + $0x208] sm:$0xff] %vm966_vm0, %v1986_v35  ;;  %v3004_v43 = vadd.f32 %v2938_v38, %v2863_v32 }
 0x294   : > { %v2868_v46 = vpop.f32.mrf.mxu0  ;;  %v3632_v48 = vpop.f32.mrf.mxu1  ;;  %3823 = vmatmul.mubr.bf16.gmra.mxu1 %v11567_v15  ;;  %4835 = vmatmul.mubr.bf16.gmra.mxu0 %v11571_v33 }
 0x295   : > { %3070 = vst.msk [vmem:[#allocation2 + $0x1f8] sm:$0xff] %vm966_vm0, %v3004_v43  ;;  %v3961_v51 = vadd.f32 %v3895_v41, %v3632_v48  ;;  %3830 = vmatprep.mubr.bf16.mxu1 %v11573_v17  ;;  %4842 = vmatprep.mubr.bf16.mxu0 %v11577_v36  ;;  %v3902_v43 = vld [vmem:[#allocation2 + $0x38] sm:$0xff] }
 0x296   : > { %v2939_v54 = vld [vmem:[#allocation2 + $0x200] sm:$0xff]  ;;  %v2870_v56 = vpop.f32.mrf.mxu0  ;;  %v3634_v44 = vpop.f32.mrf.mxu1  ;;  %v11587_v48 = vld [vmem:[%s11782_s24 + $0x230] ss:$8 sps:$4 sm:$0xff]  }
 0x297   : > { %v3005_v60 = vadd.f32 %v2939_v54, %v2868_v46  ;;  %4027 = vst.msk [vmem:[#allocation2] sm:$0xff] %vm966_vm0, %v3961_v51  ;;  %v11593_v51 = vld [vmem:[%s11782_s24 + $0x244] ss:$8 sps:$4 sm:$0xff]  }
 0x298   : > { %v2871_v62 = vpop.f32.mrf.mxu0  ;;  %v3635_v47 = vpop.f32.mrf.mxu1 }
 0x299   : > { %3071 = vst.msk [vmem:[#allocation2 + $0x200] sm:$0xff] %vm966_vm0, %v3005_v60  ;;  %v3962_v34 = vadd.f32 %v3896_v29, %v3635_v47  ;;  %v3903_v47 = vld [vmem:[#allocation2 + $0x40] sm:$0xff] }
 0x29a   : > { %v2940_v42 = vld [vmem:[#allocation2 + $0x208] sm:$0xff]  ;;  %v2873_v49 = vpop.f32.mrf.mxu0  ;;  %v3637_v45 = vpop.f32.mrf.mxu1 }
 0x29b   : > { %v3006_v0 = vadd.f32 %v2940_v42, %v2871_v62  ;;  %4028 = vst.msk [vmem:[#allocation2 + $0x8] sm:$0xff] %vm966_vm0, %v3962_v34 }
 0x29c   : > { %v3640_v52 = vpop.f32.mrf.mxu1  ;;  %3831 = vmatmul.mubr.bf16.gmra.mxu1 %v11571_v33  ;;  %v4652_v53 = vpop.f32.mrf.mxu0  ;;  %4843 = vmatmul.mubr.bf16.gmra.mxu0 %v11575_v63 }
 0x29d   : > { %3072 = vst.msk [vmem:[#allocation2 + $0x208] sm:$0xff] %vm966_vm0, %v3006_v0  ;;  %v3963_v2 = vadd.f32 %v3897_v50, %v3640_v52  ;;  %3838 = vmatprep.mubr.bf16.mxu1 %v11577_v36  ;;  %4850 = vmatprep.mubr.bf16.mxu0 %v11581_v37  ;;  %v3904_v0 = vld [vmem:[#allocation2 + $0x48] sm:$0xff] }
 0x29e   : > { %v4915_v3 = vld [vmem:[#allocation2] sm:$0xff]  ;;  %v3642_v59 = vpop.f32.mrf.mxu1  ;;  %v4654_v61 = vpop.f32.mrf.mxu0 }
 0x29f   : > { %4029 = vst.msk [vmem:[#allocation2 + $0x10] sm:$0xff] %vm966_vm0, %v3963_v2  ;;  %v4981_v5 = vadd.f32 %v4915_v3, %v4652_v53  ;;  %v11591_v50 = vld [vmem:[%s11782_s24 + $0x240] ss:$8 sps:$4 sm:$0xff]   ;;  %v11597_v2 = vld [vmem:[%s11782_s24 + $0x254] ss:$8 sps:$4 sm:$0xff]  }
 0x2a0   : > { %v3643_v55 = vpop.f32.mrf.mxu1  ;;  %v4655_v4 = vpop.f32.mrf.mxu0 }
 0x2a1   : > { %5047 = vst.msk [vmem:[#allocation2] sm:$0xff] %vm966_vm0, %v4981_v5  ;;  %v3964_v6 = vadd.f32 %v3898_v7, %v3643_v55  ;;  %v3905_v7 = vld [vmem:[#allocation2 + $0x50] sm:$0xff] }
 0x2a2   : > { %v4916_v9 = vld [vmem:[#allocation2 + $0x8] sm:$0xff]  ;;  %v3645_v10 = vpop.f32.mrf.mxu1  ;;  %v4657_v11 = vpop.f32.mrf.mxu0 }
 0x2a3   : > { %4030 = vst.msk [vmem:[#allocation2 + $0x18] sm:$0xff] %vm966_vm0, %v3964_v6  ;;  %v4982_v12 = vadd.f32 %v4916_v9, %v4655_v4 }
 0x2a4   : > { %v3648_v13 = vpop.f32.mrf.mxu1  ;;  %3839 = vmatmul.mubr.bf16.gmra.mxu1 %v11575_v63  ;;  %v4660_v58 = vpop.f32.mrf.mxu0  ;;  %4851 = vmatmul.mubr.bf16.gmra.mxu0 %v11579_v57 }
 0x2a5   : > { %5048 = vst.msk [vmem:[#allocation2 + $0x8] sm:$0xff] %vm966_vm0, %v4982_v12  ;;  %v3965_v15 = vadd.f32 %v3899_v14, %v3648_v13  ;;  %3846 = vmatprep.mubr.bf16.mxu1 %v11581_v37  ;;  %4858 = vmatprep.mubr.bf16.mxu0 %v11585_v8  ;;  %v3906_v12 = vld [vmem:[#allocation2 + $0x58] sm:$0xff] }
 0x2a6   : > { %v4917_v16 = vld [vmem:[#allocation2 + $0x10] sm:$0xff]  ;;  %v3650_v17 = vpop.f32.mrf.mxu1  ;;  %v4662_v18 = vpop.f32.mrf.mxu0 }
 0x2a7   : > { %4031 = vst.msk [vmem:[#allocation2 + $0x20] sm:$0xff] %vm966_vm0, %v3965_v15  ;;  %v4983_v19 = vadd.f32 %v4917_v16, %v4660_v58  ;;  %v11595_v14 = vld [vmem:[%s11782_s24 + $0x250] ss:$8 sps:$4 sm:$0xff]   ;;  %v11601_v15 = vld [vmem:[%s11782_s24 + $0x264] ss:$8 sps:$4 sm:$0xff]  }
 0x2a8   : > { %v3651_v20 = vpop.f32.mrf.mxu1  ;;  %v4663_v1 = vpop.f32.mrf.mxu0 }
 0x2a9   : > { %5049 = vst.msk [vmem:[#allocation2 + $0x10] sm:$0xff] %vm966_vm0, %v4983_v19  ;;  %v3966_v23 = vadd.f32 %v3900_v21, %v3651_v20  ;;  %v3907_v21 = vld [vmem:[#allocation2 + $0x60] sm:$0xff] }
 0x2aa   : > { %v4918_v25 = vld [vmem:[#allocation2 + $0x18] sm:$0xff]  ;;  %v3653_v26 = vpop.f32.mrf.mxu1  ;;  %v4665_v27 = vpop.f32.mrf.mxu0 }
 0x2ab   : > { %4032 = vst.msk [vmem:[#allocation2 + $0x28] sm:$0xff] %vm966_vm0, %v3966_v23  ;;  %v4984_v28 = vadd.f32 %v4918_v25, %v4663_v1 }
 0x2ac   : > { %v3656_v30 = vpop.f32.mrf.mxu1  ;;  %3847 = vmatmul.mubr.bf16.gmra.mxu1 %v11579_v57  ;;  %v4668_v32 = vpop.f32.mrf.mxu0  ;;  %4859 = vmatmul.mubr.bf16.gmra.mxu0 %v11583_v22 }
 0x2ad   : > { %5050 = vst.msk [vmem:[#allocation2 + $0x18] sm:$0xff] %vm966_vm0, %v4984_v28  ;;  %v3967_v33 = vadd.f32 %v3901_v31, %v3656_v30  ;;  %3854 = vmatprep.mubr.bf16.mxu1 %v11585_v8  ;;  %4866 = vmatprep.mubr.bf16.mxu0 %v11589_v24  ;;  %v3908_v28 = vld [vmem:[#allocation2 + $0x68] sm:$0xff] }
 0x2ae   : > { %v4919_v35 = vld [vmem:[#allocation2 + $0x20] sm:$0xff]  ;;  %v3658_v36 = vpop.f32.mrf.mxu1  ;;  %v4670_v38 = vpop.f32.mrf.mxu0 }
 0x2af   : > { %4033 = vst.msk [vmem:[#allocation2 + $0x30] sm:$0xff] %vm966_vm0, %v3967_v33  ;;  %v4985_v39 = vadd.f32 %v4919_v35, %v4668_v32  ;;  %v11599_v31 = vld [vmem:[%s11782_s24 + $0x260] ss:$8 sps:$4 sm:$0xff]   ;;  %v11605_v33 = vld [vmem:[%s11782_s24 + $0x274] ss:$8 sps:$4 sm:$0xff]  }
 0x2b0   : > { %v3659_v40 = vpop.f32.mrf.mxu1  ;;  %v4671_v46 = vpop.f32.mrf.mxu0 }
 0x2b1   : > { %5051 = vst.msk [vmem:[#allocation2 + $0x20] sm:$0xff] %vm966_vm0, %v4985_v39  ;;  %v3968_v41 = vadd.f32 %v3902_v43, %v3659_v40  ;;  %v3909_v43 = vld [vmem:[#allocation2 + $0x70] sm:$0xff] }
 0x2b2   : > { %v4920_v54 = vld [vmem:[#allocation2 + $0x28] sm:$0xff]  ;;  %v3661_v56 = vpop.f32.mrf.mxu1  ;;  %v4673_v44 = vpop.f32.mrf.mxu0 }
 0x2b3   : > { %4034 = vst.msk [vmem:[#allocation2 + $0x38] sm:$0xff] %vm966_vm0, %v3968_v41  ;;  %v4986_v60 = vadd.f32 %v4920_v54, %v4671_v46 }
 0x2b4   : > { %v3664_v62 = vpop.f32.mrf.mxu1  ;;  %3855 = vmatmul.mubr.bf16.gmra.mxu1 %v11583_v22  ;;  %v4676_v29 = vpop.f32.mrf.mxu0  ;;  %4867 = vmatmul.mubr.bf16.gmra.mxu0 %v11587_v48 }
 0x2b5   : > { %5052 = vst.msk [vmem:[#allocation2 + $0x28] sm:$0xff] %vm966_vm0, %v4986_v60  ;;  %v3969_v63 = vadd.f32 %v3903_v47, %v3664_v62  ;;  %3862 = vmatprep.mubr.bf16.mxu1 %v11589_v24  ;;  %4874 = vmatprep.mubr.bf16.mxu0 %v11593_v51  ;;  %v3910_v60 = vld [vmem:[#allocation2 + $0x78] sm:$0xff] }
 0x2b6   : > { %v4921_v34 = vld [vmem:[#allocation2 + $0x30] sm:$0xff]  ;;  %v3666_v37 = vpop.f32.mrf.mxu1  ;;  %v4678_v42 = vpop.f32.mrf.mxu0 }
 0x2b7   : > { %4035 = vst.msk [vmem:[#allocation2 + $0x40] sm:$0xff] %vm966_vm0, %v3969_v63  ;;  %v4987_v49 = vadd.f32 %v4921_v34, %v4676_v29  ;;  %v11603_v47 = vld [vmem:[%s11782_s24 + $0x270] ss:$8 sps:$4 sm:$0xff]   ;;  %v11609_v63 = vld [vmem:[%s11782_s24 + $0x284] ss:$8 sps:$4 sm:$0xff]  }
 0x2b8   : > { %v3667_v45 = vpop.f32.mrf.mxu1  ;;  %v4679_v52 = vpop.f32.mrf.mxu0  ;;  %v11612_v34 = vld [vmem:[%s11782_s24 + $0xa4] ss:$8 sps:$4 sm:$0xff]  }
 0x2b9   : > { %5053 = vst.msk [vmem:[#allocation2 + $0x30] sm:$0xff] %vm966_vm0, %v4987_v49  ;;  %v3970_v53 = vadd.f32 %v3904_v0, %v3667_v45 }
 0x2ba   : > { %v4922_v3 = vld [vmem:[#allocation2 + $0x38] sm:$0xff]  ;;  %v3669_v59 = vpop.f32.mrf.mxu1  ;;  %v4681_v61 = vpop.f32.mrf.mxu0 }
 0x2bb   : > { %4036 = vst.msk [vmem:[#allocation2 + $0x48] sm:$0xff] %vm966_vm0, %v3970_v53  ;;  %v4988_v5 = vadd.f32 %v4922_v3, %v4679_v52  ;;  %v3911_v52 = vld [vmem:[#allocation2 + $0x80] sm:$0xff] }
 0x2bc   : > { %v3672_v55 = vpop.f32.mrf.mxu1  ;;  %3863 = vmatmul.mubr.bf16.gmra.mxu1 %v11587_v48  ;;  %v4684_v4 = vpop.f32.mrf.mxu0  ;;  %4875 = vmatmul.mubr.bf16.gmra.mxu0 %v11591_v50 }
 0x2bd   : > { %5054 = vst.msk [vmem:[#allocation2 + $0x38] sm:$0xff] %vm966_vm0, %v4988_v5  ;;  %v3971_v57 = vadd.f32 %v3905_v7, %v3672_v55  ;;  %3870 = vmatprep.mubr.bf16.mxu1 %v11593_v51  ;;  %4882 = vmatprep.mubr.bf16.mxu0 %v11597_v2  ;;  %v3912_v55 = vld [vmem:[#allocation2 + $0x88] sm:$0xff] }
 0x2be   : > { %v4923_v6 = vld [vmem:[#allocation2 + $0x40] sm:$0xff]  ;;  %v3674_v8 = vpop.f32.mrf.mxu1  ;;  %v4686_v9 = vpop.f32.mrf.mxu0 }
 0x2bf   : > { %4037 = vst.msk [vmem:[#allocation2 + $0x50] sm:$0xff] %vm966_vm0, %v3971_v57  ;;  %v4989_v10 = vadd.f32 %v4923_v6, %v4684_v4  ;;  %v11607_v4 = vld [vmem:[%s11782_s24 + $0x280] ss:$8 sps:$4 sm:$0xff]   ;;  %v11615_v8 = vld [vmem:[%s11782_s24 + $0xb4] ss:$8 sps:$4 sm:$0xff]  }
 0x2c0   : > { %v3675_v11 = vpop.f32.mrf.mxu1  ;;  %v4687_v13 = vpop.f32.mrf.mxu0  ;;  %v11610_v57 = vld [vmem:[%s11782_s24 + $0xa0] ss:$8 sps:$4 sm:$0xff]   ;;  %v11618_v9 = vld [vmem:[%s11782_s24 + $0xc4] ss:$8 sps:$4 sm:$0xff]  }
 0x2c1   : > { %5055 = vst.msk [vmem:[#allocation2 + $0x40] sm:$0xff] %vm966_vm0, %v4989_v10  ;;  %v3972_v58 = vadd.f32 %v3906_v12, %v3675_v11 }
 0x2c2   : > { %v4924_v16 = vld [vmem:[#allocation2 + $0x48] sm:$0xff]  ;;  %v3677_v17 = vpop.f32.mrf.mxu1  ;;  %v4689_v18 = vpop.f32.mrf.mxu0 }
 0x2c3   : > { %4038 = vst.msk [vmem:[#allocation2 + $0x58] sm:$0xff] %vm966_vm0, %v3972_v58  ;;  %v4990_v19 = vadd.f32 %v4924_v16, %v4687_v13  ;;  %v3913_v58 = vld [vmem:[#allocation2 + $0x90] sm:$0xff] }
 0x2c4   : > { %v3680_v20 = vpop.f32.mrf.mxu1  ;;  %3871 = vmatmul.mubr.bf16.gmra.mxu1 %v11591_v50  ;;  %v4692_v1 = vpop.f32.mrf.mxu0  ;;  %4883 = vmatmul.mubr.bf16.gmra.mxu0 %v11595_v14 }
 0x2c5   : > { %5056 = vst.msk [vmem:[#allocation2 + $0x48] sm:$0xff] %vm966_vm0, %v4990_v19  ;;  %v3973_v22 = vadd.f32 %v3907_v21, %v3680_v20  ;;  %3878 = vmatprep.mubr.bf16.mxu1 %v11597_v2  ;;  %4890 = vmatprep.mubr.bf16.mxu0 %v11601_v15 }
 0x2c6   : > { %v4925_v23 = vld [vmem:[#allocation2 + $0x50] sm:$0xff]  ;;  %v3682_v24 = vpop.f32.mrf.mxu1  ;;  %v4694_v25 = vpop.f32.mrf.mxu0 }
 0x2c7   : > { %4039 = vst.msk [vmem:[#allocation2 + $0x60] sm:$0xff] %vm966_vm0, %v3973_v22  ;;  %v4991_v26 = vadd.f32 %v4925_v23, %v4692_v1  ;;  %v3914_v1 = vld [vmem:[#allocation2 + $0x98] sm:$0xff]  ;;  %v11616_v24 = vld [vmem:[%s11782_s24 + $0xc0] ss:$8 sps:$4 sm:$0xff]  }
 0x2c8   : > { %v3683_v27 = vpop.f32.mrf.mxu1  ;;  %v4695_v30 = vpop.f32.mrf.mxu0  ;;  %v11613_v23 = vld [vmem:[%s11782_s24 + $0xb0] ss:$8 sps:$4 sm:$0xff]  }
 0x2c9   : > { %5057 = vst.msk [vmem:[#allocation2 + $0x50] sm:$0xff] %vm966_vm0, %v4991_v26  ;;  %v3974_v32 = vadd.f32 %v3908_v28, %v3683_v27  ;;  %v11621_v26 = vld [vmem:[%s11782_s24 + $0xd4] ss:$8 sps:$4 sm:$0xff]  }
 0x2ca   : > { %v4926_v35 = vld [vmem:[#allocation2 + $0x58] sm:$0xff]  ;;  %v3685_v36 = vpop.f32.mrf.mxu1  ;;  %v4697_v38 = vpop.f32.mrf.mxu0 }
 0x2cb   : > { %4040 = vst.msk [vmem:[#allocation2 + $0x68] sm:$0xff] %vm966_vm0, %v3974_v32  ;;  %v4992_v39 = vadd.f32 %v4926_v35, %v4695_v30 }
 0x2cc   : > { %v3688_v40 = vpop.f32.mrf.mxu1  ;;  %3879 = vmatmul.mubr.bf16.gmra.mxu1 %v11595_v14  ;;  %v4700_v46 = vpop.f32.mrf.mxu0  ;;  %4891 = vmatmul.mubr.bf16.gmra.mxu0 %v11599_v31 }
 0x2cd   : > { %5058 = vst.msk [vmem:[#allocation2 + $0x58] sm:$0xff] %vm966_vm0, %v4992_v39  ;;  %v3975_v48 = vadd.f32 %v3909_v43, %v3688_v40  ;;  %3886 = vmatprep.mubr.bf16.mxu1 %v11601_v15  ;;  %4898 = vmatprep.mubr.bf16.mxu0 %v11605_v33  ;;  %v3915_v33 = vld [vmem:[#allocation2 + $0xa0] sm:$0xff] }
 0x2ce   : > { %v4927_v41 = vld [vmem:[#allocation2 + $0x60] sm:$0xff]  ;;  %v3690_v51 = vpop.f32.mrf.mxu1  ;;  %v4702_v54 = vpop.f32.mrf.mxu0 }
 0x2cf   : > { %4041 = vst.msk [vmem:[#allocation2 + $0x70] sm:$0xff] %vm966_vm0, %v3975_v48  ;;  %v4993_v56 = vadd.f32 %v4927_v41, %v4700_v46  ;;  %v3916_v48 = vld [vmem:[#allocation2 + $0xa8] sm:$0xff]  ;;  %v11619_v51 = vld [vmem:[%s11782_s24 + $0xd0] ss:$8 sps:$4 sm:$0xff]  }
 0x2d0   : > { %v3691_v44 = vpop.f32.mrf.mxu1  ;;  %v4703_v62 = vpop.f32.mrf.mxu0 }
 0x2d1   : > { %5059 = vst.msk [vmem:[#allocation2 + $0x60] sm:$0xff] %vm966_vm0, %v4993_v56  ;;  %v3976_v29 = vadd.f32 %v3910_v60, %v3691_v44  ;;  %v11624_v56 = vld [vmem:[%s11782_s24 + $0xe4] ss:$8 sps:$4 sm:$0xff]  }
 0x2d2   : > { %v4928_v37 = vld [vmem:[#allocation2 + $0x68] sm:$0xff]  ;;  %v3693_v42 = vpop.f32.mrf.mxu1  ;;  %v4705_v49 = vpop.f32.mrf.mxu0 }
 0x2d3   : > { %4042 = vst.msk [vmem:[#allocation2 + $0x78] sm:$0xff] %vm966_vm0, %v3976_v29  ;;  %v4994_v45 = vadd.f32 %v4928_v37, %v4703_v62 }
 0x2d4   : > { %v3696_v0 = vpop.f32.mrf.mxu1  ;;  %3887 = vmatmul.mubr.bf16.gmra.mxu1 %v11599_v31  ;;  %v4708_v50 = vpop.f32.mrf.mxu0  ;;  %4899 = vmatmul.mubr.bf16.gmra.mxu0 %v11603_v47 }
 0x2d5   : > { %5060 = vst.msk [vmem:[#allocation2 + $0x68] sm:$0xff] %vm966_vm0, %v4994_v45  ;;  %v3977_v53 = vadd.f32 %v3911_v52, %v3696_v0  ;;  %4906 = vmatprep.mubr.bf16.mxu0 %v11609_v63  ;;  %5670 = vmatprep.mubr.bf16.mxu1 %v11612_v34  ;;  %v3917_v63 = vld [vmem:[#allocation2 + $0xb0] sm:$0xff] }
 0x2d6   : > { %v4929_v2 = vld [vmem:[#allocation2 + $0x70] sm:$0xff]  ;;  %v3698_v3 = vpop.f32.mrf.mxu1  ;;  %v4710_v59 = vpop.f32.mrf.mxu0 }
 0x2d7   : > { %4043 = vst.msk [vmem:[#allocation2 + $0x80] sm:$0xff] %vm966_vm0, %v3977_v53  ;;  %v4995_v61 = vadd.f32 %v4929_v2, %v4708_v50  ;;  %v3918_v50 = vld [vmem:[#allocation2 + $0xb8] sm:$0xff]  ;;  %v11622_v2 = vld [vmem:[%s11782_s24 + $0xe0] ss:$8 sps:$4 sm:$0xff]  }
 0x2d8   : > { %v3699_v5 = vpop.f32.mrf.mxu1  ;;  %v4711_v7 = vpop.f32.mrf.mxu0  ;;  %v11627_v59 = vld [vmem:[%s11782_s24 + $0xf4] ss:$8 sps:$4 sm:$0xff]  }
 0x2d9   : > { %5061 = vst.msk [vmem:[#allocation2 + $0x70] sm:$0xff] %vm966_vm0, %v4995_v61  ;;  %v3978_v6 = vadd.f32 %v3912_v55, %v3699_v5 }
 0x2da   : > { %v4930_v10 = vld [vmem:[#allocation2 + $0x78] sm:$0xff]  ;;  %v3701_v11 = vpop.f32.mrf.mxu1  ;;  %v4713_v12 = vpop.f32.mrf.mxu0 }
 0x2db   : > { %4044 = vst.msk [vmem:[#allocation2 + $0x88] sm:$0xff] %vm966_vm0, %v3978_v6  ;;  %v4996_v13 = vadd.f32 %v4930_v10, %v4711_v7 }
 0x2dc   : > { %v3704_v14 = vpop.f32.mrf.mxu1  ;;  %v4716_v15 = vpop.f32.mrf.mxu0  ;;  %4907 = vmatmul.mubr.bf16.gmra.mxu0 %v11607_v4  ;;  %5671 = vmatmul.mubr.bf16.vlgmr.msra.gmra.mxu1 %v11610_v57  ;;  %v3919_v57 = vld [vmem:[#allocation2 + $0xc0] sm:$0xff] }
 0x2dd   : > { %5062 = vst.msk [vmem:[#allocation2 + $0x78] sm:$0xff] %vm966_vm0, %v4996_v13  ;;  %v3979_v16 = vadd.f32 %v3913_v58, %v3704_v14  ;;  %5678 = vmatprep.mubr.bf16.mxu1 %v11615_v8  ;;  %6690 = vmatprep.mubr.bf16.mxu0 %v11618_v9  ;;  %v3920_v14 = vld [vmem:[#allocation2 + $0xc8] sm:$0xff] }
 0x2de   : > { %v4931_v17 = vld [vmem:[#allocation2 + $0x80] sm:$0xff]  ;;  %v3706_v18 = vpop.f32.mrf.mxu1  ;;  %v4718_v19 = vpop.f32.mrf.mxu0 }
 0x2df   : > { %4045 = vst.msk [vmem:[#allocation2 + $0x90] sm:$0xff] %vm966_vm0, %v3979_v16  ;;  %v4997_v20 = vadd.f32 %v4931_v17, %v4716_v15  ;;  %v11625_v15 = vld [vmem:[%s11782_s24 + $0xf0] ss:$8 sps:$4 sm:$0xff]   ;;  %v11630_v17 = vld [vmem:[%s11782_s24 + $0x104] ss:$8 sps:$4 sm:$0xff]  }
 0x2e0   : > { %v3707_v21 = vpop.f32.mrf.mxu1  ;;  %v4719_v22 = vpop.f32.mrf.mxu0 }
 0x2e1   : > { %5063 = vst.msk [vmem:[#allocation2 + $0x80] sm:$0xff] %vm966_vm0, %v4997_v20  ;;  %v3980_v25 = vadd.f32 %v3914_v1, %v3707_v21 }
 0x2e2   : > { %v4932_v27 = vld [vmem:[#allocation2 + $0x88] sm:$0xff]  ;;  %v3709_v28 = vpop.f32.mrf.mxu1  ;;  %v4721_v30 = vpop.f32.mrf.mxu0 }
 0x2e3   : > { %4046 = vst.msk [vmem:[#allocation2 + $0x98] sm:$0xff] %vm966_vm0, %v3980_v25  ;;  %v4998_v31 = vadd.f32 %v4932_v27, %v4719_v22  ;;  %v3921_v22 = vld [vmem:[#allocation2 + $0xd0] sm:$0xff] }
 0x2e4   : > { %v3712_v32 = vpop.f32.mrf.mxu1  ;;  %v4724_v35 = vpop.f32.mrf.mxu0  ;;  %5679 = vmatmul.mubr.bf16.gmra.mxu1 %v11613_v23  ;;  %6691 = vmatmul.mubr.bf16.vlgmr.msra.gmra.mxu0 %v11616_v24 }
 0x2e5   : > { %5064 = vst.msk [vmem:[#allocation2 + $0x88] sm:$0xff] %vm966_vm0, %v4998_v31  ;;  %v3981_v36 = vadd.f32 %v3915_v33, %v3712_v32  ;;  %5686 = vmatprep.mubr.bf16.mxu1 %v11618_v9  ;;  %6698 = vmatprep.mubr.bf16.mxu0 %v11621_v26  ;;  %v3922_v31 = vld [vmem:[#allocation2 + $0xd8] sm:$0xff]  ;;  %v11628_v33 = vld [vmem:[%s11782_s24 + $0x100] ss:$8 sps:$4 sm:$0xff]  }
 0x2e6   : > { %v4933_v38 = vld [vmem:[#allocation2 + $0x90] sm:$0xff]  ;;  %v3714_v39 = vpop.f32.mrf.mxu1  ;;  %v4726_v40 = vpop.f32.mrf.mxu0 }
 0x2e7   : > { %4047 = vst.msk [vmem:[#allocation2 + $0xa0] sm:$0xff] %vm966_vm0, %v3981_v36  ;;  %v4999_v43 = vadd.f32 %v4933_v38, %v4724_v35  ;;  %v11633_v36 = vld [vmem:[%s11782_s24 + $0x114] ss:$8 sps:$4 sm:$0xff]  }
 0x2e8   : > { %v3715_v46 = vpop.f32.mrf.mxu1  ;;  %v4727_v41 = vpop.f32.mrf.mxu0 }
 0x2e9   : > { %5065 = vst.msk [vmem:[#allocation2 + $0x90] sm:$0xff] %vm966_vm0, %v4999_v43  ;;  %v3982_v54 = vadd.f32 %v3916_v48, %v3715_v46  ;;  %v3923_v48 = vld [vmem:[#allocation2 + $0xe0] sm:$0xff] }
 0x2ea   : > { %v4934_v44 = vld [vmem:[#allocation2 + $0x98] sm:$0xff]  ;;  %v3717_v60 = vpop.f32.mrf.mxu1  ;;  %v4729_v62 = vpop.f32.mrf.mxu0 }
 0x2eb   : > { %4048 = vst.msk [vmem:[#allocation2 + $0xa8] sm:$0xff] %vm966_vm0, %v3982_v54  ;;  %v5000_v47 = vadd.f32 %v4934_v44, %v4727_v41 }
 0x2ec   : > { %v3720_v29 = vpop.f32.mrf.mxu1  ;;  %v4732_v34 = vpop.f32.mrf.mxu0  ;;  %5687 = vmatmul.mubr.bf16.gmra.mxu1 %v11616_v24  ;;  %6699 = vmatmul.mubr.bf16.gmra.mxu0 %v11619_v51 }
 0x2ed   : > { %5066 = vst.msk [vmem:[#allocation2 + $0x98] sm:$0xff] %vm966_vm0, %v5000_v47  ;;  %v3983_v37 = vadd.f32 %v3917_v63, %v3720_v29  ;;  %5694 = vmatprep.mubr.bf16.mxu1 %v11621_v26  ;;  %6706 = vmatprep.mubr.bf16.mxu0 %v11624_v56  ;;  %v3924_v47 = vld [vmem:[#allocation2 + $0xe8] sm:$0xff]  ;;  %v11631_v63 = vld [vmem:[%s11782_s24 + $0x110] ss:$8 sps:$4 sm:$0xff]  }
 0x2ee   : > { %v4935_v42 = vld [vmem:[#allocation2 + $0xa0] sm:$0xff]  ;;  %v3722_v49 = vpop.f32.mrf.mxu1  ;;  %v4734_v45 = vpop.f32.mrf.mxu0 }
 0x2ef   : > { %4049 = vst.msk [vmem:[#allocation2 + $0xb0] sm:$0xff] %vm966_vm0, %v3983_v37  ;;  %v5001_v0 = vadd.f32 %v4935_v42, %v4732_v34  ;;  %v11636_v37 = vld [vmem:[%s11782_s24 + $0x124] ss:$8 sps:$4 sm:$0xff]  }
 0x2f0   : > { %v3723_v52 = vpop.f32.mrf.mxu1  ;;  %v4735_v53 = vpop.f32.mrf.mxu0 }
 0x2f1   : > { %5067 = vst.msk [vmem:[#allocation2 + $0xa0] sm:$0xff] %vm966_vm0, %v5001_v0  ;;  %v3984_v3 = vadd.f32 %v3918_v50, %v3723_v52  ;;  %v3925_v50 = vld [vmem:[#allocation2 + $0xf0] sm:$0xff] }
 0x2f2   : > { %v4936_v61 = vld [vmem:[#allocation2 + $0xa8] sm:$0xff]  ;;  %v3725_v5 = vpop.f32.mrf.mxu1  ;;  %v4737_v55 = vpop.f32.mrf.mxu0 }
 0x2f3   : > { %4050 = vst.msk [vmem:[#allocation2 + $0xb8] sm:$0xff] %vm966_vm0, %v3984_v3  ;;  %v5002_v7 = vadd.f32 %v4936_v61, %v4735_v53 }
 0x2f4   : > { %v3728_v4 = vpop.f32.mrf.mxu1  ;;  %v4740_v6 = vpop.f32.mrf.mxu0  ;;  %5695 = vmatmul.mubr.bf16.gmra.mxu1 %v11619_v51  ;;  %6707 = vmatmul.mubr.bf16.gmra.mxu0 %v11622_v2 }
 0x2f5   : > { %5068 = vst.msk [vmem:[#allocation2 + $0xa8] sm:$0xff] %vm966_vm0, %v5002_v7  ;;  %v3985_v8 = vadd.f32 %v3919_v57, %v3728_v4  ;;  %5702 = vmatprep.mubr.bf16.mxu1 %v11624_v56  ;;  %6714 = vmatprep.mubr.bf16.mxu0 %v11627_v59  ;;  %v3926_v7 = vld [vmem:[#allocation2 + $0xf8] sm:$0xff]  ;;  %v11634_v57 = vld [vmem:[%s11782_s24 + $0x120] ss:$8 sps:$4 sm:$0xff]  }
 0x2f6   : > { %v4937_v9 = vld [vmem:[#allocation2 + $0xb0] sm:$0xff]  ;;  %v3730_v10 = vpop.f32.mrf.mxu1  ;;  %v4742_v11 = vpop.f32.mrf.mxu0 }
 0x2f7   : > { %4051 = vst.msk [vmem:[#allocation2 + $0xc0] sm:$0xff] %vm966_vm0, %v3985_v8  ;;  %v5003_v12 = vadd.f32 %v4937_v9, %v4740_v6  ;;  %v11639_v8 = vld [vmem:[%s11782_s24 + $0x134] ss:$8 sps:$4 sm:$0xff]  }
 0x2f8   : > { %v3731_v13 = vpop.f32.mrf.mxu1  ;;  %v4743_v58 = vpop.f32.mrf.mxu0 }
 0x2f9   : > { %5069 = vst.msk [vmem:[#allocation2 + $0xb0] sm:$0xff] %vm966_vm0, %v5003_v12  ;;  %v3986_v16 = vadd.f32 %v3920_v14, %v3731_v13  ;;  %v3927_v14 = vld [vmem:[#allocation2 + $0x100] sm:$0xff] }
 0x2fa   : > { %v4938_v18 = vld [vmem:[#allocation2 + $0xb8] sm:$0xff]  ;;  %v3733_v19 = vpop.f32.mrf.mxu1  ;;  %v4745_v20 = vpop.f32.mrf.mxu0 }
 0x2fb   : > { %4052 = vst.msk [vmem:[#allocation2 + $0xc8] sm:$0xff] %vm966_vm0, %v3986_v16  ;;  %v5004_v21 = vadd.f32 %v4938_v18, %v4743_v58 }
 0x2fc   : > { %v3736_v1 = vpop.f32.mrf.mxu1  ;;  %v4748_v23 = vpop.f32.mrf.mxu0  ;;  %5703 = vmatmul.mubr.bf16.gmra.mxu1 %v11622_v2  ;;  %6715 = vmatmul.mubr.bf16.gmra.mxu0 %v11625_v15 }
 0x2fd   : > { %5070 = vst.msk [vmem:[#allocation2 + $0xb8] sm:$0xff] %vm966_vm0, %v5004_v21  ;;  %v3987_v24 = vadd.f32 %v3921_v22, %v3736_v1  ;;  %5710 = vmatprep.mubr.bf16.mxu1 %v11627_v59  ;;  %6722 = vmatprep.mubr.bf16.mxu0 %v11630_v17  ;;  %v3928_v21 = vld [vmem:[#allocation2 + $0x108] sm:$0xff]  ;;  %v11637_v22 = vld [vmem:[%s11782_s24 + $0x130] ss:$8 sps:$4 sm:$0xff]  }
 0x2fe   : > { %v4939_v25 = vld [vmem:[#allocation2 + $0xc0] sm:$0xff]  ;;  %v3738_v26 = vpop.f32.mrf.mxu1  ;;  %v4750_v27 = vpop.f32.mrf.mxu0 }
 0x2ff   : > { %4053 = vst.msk [vmem:[#allocation2 + $0xd0] sm:$0xff] %vm966_vm0, %v3987_v24  ;;  %v5005_v28 = vadd.f32 %v4939_v25, %v4748_v23  ;;  %v11642_v24 = vld [vmem:[%s11782_s24 + $0x144] ss:$8 sps:$4 sm:$0xff]  }
 0x300   : > { %v3739_v30 = vpop.f32.mrf.mxu1  ;;  %v4751_v32 = vpop.f32.mrf.mxu0 }
 0x301   : > { %5071 = vst.msk [vmem:[#allocation2 + $0xc0] sm:$0xff] %vm966_vm0, %v5005_v28  ;;  %v3988_v35 = vadd.f32 %v3922_v31, %v3739_v30  ;;  %v3929_v31 = vld [vmem:[#allocation2 + $0x110] sm:$0xff] }
 0x302   : > { %v4940_v38 = vld [vmem:[#allocation2 + $0xc8] sm:$0xff]  ;;  %v3741_v39 = vpop.f32.mrf.mxu1  ;;  %v4753_v40 = vpop.f32.mrf.mxu0 }
 0x303   : > { %4054 = vst.msk [vmem:[#allocation2 + $0xd8] sm:$0xff] %vm966_vm0, %v3988_v35  ;;  %v5006_v43 = vadd.f32 %v4940_v38, %v4751_v32 }
 0x304   : > { %v3744_v46 = vpop.f32.mrf.mxu1  ;;  %v4756_v41 = vpop.f32.mrf.mxu0  ;;  %5711 = vmatmul.mubr.bf16.gmra.mxu1 %v11625_v15  ;;  %6723 = vmatmul.mubr.bf16.gmra.mxu0 %v11628_v33 }
 0x305   : > { %5072 = vst.msk [vmem:[#allocation2 + $0xc8] sm:$0xff] %vm966_vm0, %v5006_v43  ;;  %v3989_v51 = vadd.f32 %v3923_v48, %v3744_v46  ;;  %5718 = vmatprep.mubr.bf16.mxu1 %v11630_v17  ;;  %6730 = vmatprep.mubr.bf16.mxu0 %v11633_v36  ;;  %v3930_v43 = vld [vmem:[#allocation2 + $0x118] sm:$0xff]  ;;  %v11640_v48 = vld [vmem:[%s11782_s24 + $0x140] ss:$8 sps:$4 sm:$0xff]  }
 0x306   : > { %v4941_v54 = vld [vmem:[#allocation2 + $0xd0] sm:$0xff]  ;;  %v3746_v56 = vpop.f32.mrf.mxu1  ;;  %v4758_v44 = vpop.f32.mrf.mxu0 }
 0x307   : > { %4055 = vst.msk [vmem:[#allocation2 + $0xe0] sm:$0xff] %vm966_vm0, %v3989_v51  ;;  %v5007_v60 = vadd.f32 %v4941_v54, %v4756_v41  ;;  %v11645_v51 = vld [vmem:[%s11782_s24 + $0x154] ss:$8 sps:$4 sm:$0xff]  }
 0x308   : > { %v3747_v62 = vpop.f32.mrf.mxu1  ;;  %v4759_v29 = vpop.f32.mrf.mxu0 }
 0x309   : > { %5073 = vst.msk [vmem:[#allocation2 + $0xd0] sm:$0xff] %vm966_vm0, %v5007_v60  ;;  %v3990_v34 = vadd.f32 %v3924_v47, %v3747_v62  ;;  %v3931_v47 = vld [vmem:[#allocation2 + $0x120] sm:$0xff] }
 0x30a   : > { %v4942_v42 = vld [vmem:[#allocation2 + $0xd8] sm:$0xff]  ;;  %v3749_v49 = vpop.f32.mrf.mxu1  ;;  %v4761_v45 = vpop.f32.mrf.mxu0 }
 0x30b   : > { %4056 = vst.msk [vmem:[#allocation2 + $0xe8] sm:$0xff] %vm966_vm0, %v3990_v34  ;;  %v5008_v0 = vadd.f32 %v4942_v42, %v4759_v29 }
 0x30c   : > { %v3752_v52 = vpop.f32.mrf.mxu1  ;;  %v4764_v53 = vpop.f32.mrf.mxu0  ;;  %5719 = vmatmul.mubr.bf16.gmra.mxu1 %v11628_v33  ;;  %6731 = vmatmul.mubr.bf16.gmra.mxu0 %v11631_v63 }
 0x30d   : > { %5074 = vst.msk [vmem:[#allocation2 + $0xd8] sm:$0xff] %vm966_vm0, %v5008_v0  ;;  %v3991_v2 = vadd.f32 %v3925_v50, %v3752_v52  ;;  %5726 = vmatprep.mubr.bf16.mxu1 %v11633_v36  ;;  %6738 = vmatprep.mubr.bf16.mxu0 %v11636_v37  ;;  %v3932_v0 = vld [vmem:[#allocation2 + $0x128] sm:$0xff]  ;;  %v11643_v50 = vld [vmem:[%s11782_s24 + $0x150] ss:$8 sps:$4 sm:$0xff]  }
 0x30e   : > { %v4943_v3 = vld [vmem:[#allocation2 + $0xe0] sm:$0xff]  ;;  %v3754_v59 = vpop.f32.mrf.mxu1  ;;  %v4766_v61 = vpop.f32.mrf.mxu0 }
 0x30f   : > { %4057 = vst.msk [vmem:[#allocation2 + $0xf0] sm:$0xff] %vm966_vm0, %v3991_v2  ;;  %v5009_v5 = vadd.f32 %v4943_v3, %v4764_v53  ;;  %v11648_v2 = vld [vmem:[%s11782_s24 + $0x164] ss:$8 sps:$4 sm:$0xff]  }
 0x310   : > { %v3755_v55 = vpop.f32.mrf.mxu1  ;;  %v4767_v4 = vpop.f32.mrf.mxu0 }
 0x311   : > { %5075 = vst.msk [vmem:[#allocation2 + $0xe0] sm:$0xff] %vm966_vm0, %v5009_v5  ;;  %v3992_v6 = vadd.f32 %v3926_v7, %v3755_v55  ;;  %v3933_v7 = vld [vmem:[#allocation2 + $0x130] sm:$0xff] }
 0x312   : > { %v4944_v9 = vld [vmem:[#allocation2 + $0xe8] sm:$0xff]  ;;  %v3757_v10 = vpop.f32.mrf.mxu1  ;;  %v4769_v11 = vpop.f32.mrf.mxu0 }
 0x313   : > { %4058 = vst.msk [vmem:[#allocation2 + $0xf8] sm:$0xff] %vm966_vm0, %v3992_v6  ;;  %v5010_v12 = vadd.f32 %v4944_v9, %v4767_v4 }
 0x314   : > { %v3760_v13 = vpop.f32.mrf.mxu1  ;;  %v4772_v58 = vpop.f32.mrf.mxu0  ;;  %5727 = vmatmul.mubr.bf16.gmra.mxu1 %v11631_v63  ;;  %6739 = vmatmul.mubr.bf16.gmra.mxu0 %v11634_v57 }
 0x315   : > { %5076 = vst.msk [vmem:[#allocation2 + $0xe8] sm:$0xff] %vm966_vm0, %v5010_v12  ;;  %v3993_v15 = vadd.f32 %v3927_v14, %v3760_v13  ;;  %5734 = vmatprep.mubr.bf16.mxu1 %v11636_v37  ;;  %6746 = vmatprep.mubr.bf16.mxu0 %v11639_v8  ;;  %v3934_v12 = vld [vmem:[#allocation2 + $0x138] sm:$0xff]  ;;  %v11646_v14 = vld [vmem:[%s11782_s24 + $0x160] ss:$8 sps:$4 sm:$0xff]  }
 0x316   : > { %v4945_v16 = vld [vmem:[#allocation2 + $0xf0] sm:$0xff]  ;;  %v3762_v17 = vpop.f32.mrf.mxu1  ;;  %v4774_v18 = vpop.f32.mrf.mxu0 }
 0x317   : > { %4059 = vst.msk [vmem:[#allocation2 + $0x100] sm:$0xff] %vm966_vm0, %v3993_v15  ;;  %v5011_v19 = vadd.f32 %v4945_v16, %v4772_v58  ;;  %v11651_v15 = vld [vmem:[%s11782_s24 + $0x174] ss:$8 sps:$4 sm:$0xff]  }
 0x318   : > { %v3763_v20 = vpop.f32.mrf.mxu1  ;;  %v4775_v1 = vpop.f32.mrf.mxu0 }
 0x319   : > { %5077 = vst.msk [vmem:[#allocation2 + $0xf0] sm:$0xff] %vm966_vm0, %v5011_v19  ;;  %v3994_v23 = vadd.f32 %v3928_v21, %v3763_v20  ;;  %v3935_v21 = vld [vmem:[#allocation2 + $0x140] sm:$0xff] }
 0x31a   : > { %v4946_v25 = vld [vmem:[#allocation2 + $0xf8] sm:$0xff]  ;;  %v3765_v26 = vpop.f32.mrf.mxu1  ;;  %v4777_v27 = vpop.f32.mrf.mxu0 }
 0x31b   : > { %4060 = vst.msk [vmem:[#allocation2 + $0x108] sm:$0xff] %vm966_vm0, %v3994_v23  ;;  %v5012_v28 = vadd.f32 %v4946_v25, %v4775_v1 }
 0x31c   : > { %v3768_v30 = vpop.f32.mrf.mxu1  ;;  %v4780_v32 = vpop.f32.mrf.mxu0  ;;  %5735 = vmatmul.mubr.bf16.gmra.mxu1 %v11634_v57  ;;  %6747 = vmatmul.mubr.bf16.gmra.mxu0 %v11637_v22 }
 0x31d   : > { %5078 = vst.msk [vmem:[#allocation2 + $0xf8] sm:$0xff] %vm966_vm0, %v5012_v28  ;;  %v3995_v33 = vadd.f32 %v3929_v31, %v3768_v30  ;;  %5742 = vmatprep.mubr.bf16.mxu1 %v11639_v8  ;;  %6754 = vmatprep.mubr.bf16.mxu0 %v11642_v24  ;;  %v3936_v28 = vld [vmem:[#allocation2 + $0x148] sm:$0xff]  ;;  %v11649_v31 = vld [vmem:[%s11782_s24 + $0x170] ss:$8 sps:$4 sm:$0xff]  }
 0x31e   : > { %v4947_v35 = vld [vmem:[#allocation2 + $0x100] sm:$0xff]  ;;  %v3770_v36 = vpop.f32.mrf.mxu1  ;;  %v4782_v38 = vpop.f32.mrf.mxu0 }
 0x31f   : > { %4061 = vst.msk [vmem:[#allocation2 + $0x110] sm:$0xff] %vm966_vm0, %v3995_v33  ;;  %v5013_v39 = vadd.f32 %v4947_v35, %v4780_v32  ;;  %v11654_v33 = vld [vmem:[%s11782_s24 + $0x184] ss:$8 sps:$4 sm:$0xff]  }
 0x320   : > { %v3771_v40 = vpop.f32.mrf.mxu1  ;;  %v4783_v46 = vpop.f32.mrf.mxu0 }
 0x321   : > { %5079 = vst.msk [vmem:[#allocation2 + $0x100] sm:$0xff] %vm966_vm0, %v5013_v39  ;;  %v3996_v41 = vadd.f32 %v3930_v43, %v3771_v40  ;;  %v3937_v43 = vld [vmem:[#allocation2 + $0x150] sm:$0xff] }
 0x322   : > { %v4948_v54 = vld [vmem:[#allocation2 + $0x108] sm:$0xff]  ;;  %v3773_v56 = vpop.f32.mrf.mxu1  ;;  %v4785_v44 = vpop.f32.mrf.mxu0 }
 0x323   : > { %4062 = vst.msk [vmem:[#allocation2 + $0x118] sm:$0xff] %vm966_vm0, %v3996_v41  ;;  %v5014_v60 = vadd.f32 %v4948_v54, %v4783_v46 }
 0x324   : > { %v3776_v62 = vpop.f32.mrf.mxu1  ;;  %v4788_v29 = vpop.f32.mrf.mxu0  ;;  %5743 = vmatmul.mubr.bf16.gmra.mxu1 %v11637_v22  ;;  %6755 = vmatmul.mubr.bf16.gmra.mxu0 %v11640_v48 }
 0x325   : > { %5080 = vst.msk [vmem:[#allocation2 + $0x108] sm:$0xff] %vm966_vm0, %v5014_v60  ;;  %v3997_v63 = vadd.f32 %v3931_v47, %v3776_v62  ;;  %5750 = vmatprep.mubr.bf16.mxu1 %v11642_v24  ;;  %6762 = vmatprep.mubr.bf16.mxu0 %v11645_v51  ;;  %v3938_v60 = vld [vmem:[#allocation2 + $0x158] sm:$0xff]  ;;  %v11652_v47 = vld [vmem:[%s11782_s24 + $0x180] ss:$8 sps:$4 sm:$0xff]  }
 0x326   : > { %v4949_v34 = vld [vmem:[#allocation2 + $0x110] sm:$0xff]  ;;  %v3778_v37 = vpop.f32.mrf.mxu1  ;;  %v4790_v42 = vpop.f32.mrf.mxu0 }
 0x327   : > { %4063 = vst.msk [vmem:[#allocation2 + $0x120] sm:$0xff] %vm966_vm0, %v3997_v63  ;;  %v5015_v49 = vadd.f32 %v4949_v34, %v4788_v29  ;;  %v11657_v63 = vld [vmem:[%s11782_s24 + $0x194] ss:$8 sps:$4 sm:$0xff]  }
 0x328   : > { %v3779_v45 = vpop.f32.mrf.mxu1  ;;  %v4791_v52 = vpop.f32.mrf.mxu0 }
 0x329   : > { %5081 = vst.msk [vmem:[#allocation2 + $0x110] sm:$0xff] %vm966_vm0, %v5015_v49  ;;  %v3998_v53 = vadd.f32 %v3932_v0, %v3779_v45  ;;  %v3939_v0 = vld [vmem:[#allocation2 + $0x160] sm:$0xff] }
 0x32a   : > { %v4950_v3 = vld [vmem:[#allocation2 + $0x118] sm:$0xff]  ;;  %v3781_v59 = vpop.f32.mrf.mxu1  ;;  %v4793_v61 = vpop.f32.mrf.mxu0 }
 0x32b   : > { %4064 = vst.msk [vmem:[#allocation2 + $0x128] sm:$0xff] %vm966_vm0, %v3998_v53  ;;  %v5016_v5 = vadd.f32 %v4950_v3, %v4791_v52 }
 0x32c   : > { %v3784_v55 = vpop.f32.mrf.mxu1  ;;  %v4796_v4 = vpop.f32.mrf.mxu0  ;;  %5751 = vmatmul.mubr.bf16.gmra.mxu1 %v11640_v48  ;;  %6763 = vmatmul.mubr.bf16.gmra.mxu0 %v11643_v50 }
 0x32d   : > { %5082 = vst.msk [vmem:[#allocation2 + $0x118] sm:$0xff] %vm966_vm0, %v5016_v5  ;;  %v3999_v57 = vadd.f32 %v3933_v7, %v3784_v55  ;;  %5758 = vmatprep.mubr.bf16.mxu1 %v11645_v51  ;;  %6770 = vmatprep.mubr.bf16.mxu0 %v11648_v2  ;;  %v3940_v5 = vld [vmem:[#allocation2 + $0x168] sm:$0xff]  ;;  %v11655_v7 = vld [vmem:[%s11782_s24 + $0x190] ss:$8 sps:$4 sm:$0xff]  }
 0x32e   : > { %v4951_v6 = vld [vmem:[#allocation2 + $0x120] sm:$0xff]  ;;  %v3786_v8 = vpop.f32.mrf.mxu1  ;;  %v4798_v9 = vpop.f32.mrf.mxu0 }
 0x32f   : > { %4065 = vst.msk [vmem:[#allocation2 + $0x130] sm:$0xff] %vm966_vm0, %v3999_v57  ;;  %v5017_v10 = vadd.f32 %v4951_v6, %v4796_v4  ;;  %v11660_v57 = vld [vmem:[%s11782_s24 + $0x1a4] ss:$8 sps:$4 sm:$0xff]  }
 0x330   : > { %v3787_v11 = vpop.f32.mrf.mxu1  ;;  %v4799_v13 = vpop.f32.mrf.mxu0 }
 0x331   : > { %5083 = vst.msk [vmem:[#allocation2 + $0x120] sm:$0xff] %vm966_vm0, %v5017_v10  ;;  %v4000_v58 = vadd.f32 %v3934_v12, %v3787_v11  ;;  %v3941_v12 = vld [vmem:[#allocation2 + $0x170] sm:$0xff] }
 0x332   : > { %v4952_v16 = vld [vmem:[#allocation2 + $0x128] sm:$0xff]  ;;  %v3789_v17 = vpop.f32.mrf.mxu1  ;;  %v4801_v18 = vpop.f32.mrf.mxu0 }
 0x333   : > { %4066 = vst.msk [vmem:[#allocation2 + $0x138] sm:$0xff] %vm966_vm0, %v4000_v58  ;;  %v5018_v19 = vadd.f32 %v4952_v16, %v4799_v13 }
 0x334   : > { %v3792_v20 = vpop.f32.mrf.mxu1  ;;  %v4804_v1 = vpop.f32.mrf.mxu0  ;;  %5759 = vmatmul.mubr.bf16.gmra.mxu1 %v11643_v50  ;;  %6771 = vmatmul.mubr.bf16.gmra.mxu0 %v11646_v14 }
 0x335   : > { %5084 = vst.msk [vmem:[#allocation2 + $0x128] sm:$0xff] %vm966_vm0, %v5018_v19  ;;  %v4001_v22 = vadd.f32 %v3935_v21, %v3792_v20  ;;  %5766 = vmatprep.mubr.bf16.mxu1 %v11648_v2  ;;  %6778 = vmatprep.mubr.bf16.mxu0 %v11651_v15  ;;  %v3942_v19 = vld [vmem:[#allocation2 + $0x178] sm:$0xff]  ;;  %v11658_v21 = vld [vmem:[%s11782_s24 + $0x1a0] ss:$8 sps:$4 sm:$0xff]  }
 0x336   : > { %v4953_v23 = vld [vmem:[#allocation2 + $0x130] sm:$0xff]  ;;  %v3794_v24 = vpop.f32.mrf.mxu1  ;;  %v4806_v25 = vpop.f32.mrf.mxu0 }
 0x337   : > { %4067 = vst.msk [vmem:[#allocation2 + $0x140] sm:$0xff] %vm966_vm0, %v4001_v22  ;;  %v5019_v26 = vadd.f32 %v4953_v23, %v4804_v1  ;;  %v11663_v22 = vld [vmem:[%s11782_s24 + $0x1b4] ss:$8 sps:$4 sm:$0xff]  }
 0x338   : > { %v3795_v27 = vpop.f32.mrf.mxu1  ;;  %v4807_v30 = vpop.f32.mrf.mxu0 }
 0x339   : > { %5085 = vst.msk [vmem:[#allocation2 + $0x130] sm:$0xff] %vm966_vm0, %v5019_v26  ;;  %v4002_v32 = vadd.f32 %v3936_v28, %v3795_v27  ;;  %v3943_v28 = vld [vmem:[#allocation2 + $0x180] sm:$0xff] }
 0x33a   : > { %v4954_v35 = vld [vmem:[#allocation2 + $0x138] sm:$0xff]  ;;  %v3797_v36 = vpop.f32.mrf.mxu1  ;;  %v4809_v38 = vpop.f32.mrf.mxu0 }
 0x33b   : > { %4068 = vst.msk [vmem:[#allocation2 + $0x148] sm:$0xff] %vm966_vm0, %v4002_v32  ;;  %v5020_v39 = vadd.f32 %v4954_v35, %v4807_v30 }
 0x33c   : > { %v3800_v40 = vpop.f32.mrf.mxu1  ;;  %v4812_v46 = vpop.f32.mrf.mxu0  ;;  %5767 = vmatmul.mubr.bf16.gmra.mxu1 %v11646_v14  ;;  %6779 = vmatmul.mubr.bf16.gmra.mxu0 %v11649_v31 }
 0x33d   : > { %5086 = vst.msk [vmem:[#allocation2 + $0x138] sm:$0xff] %vm966_vm0, %v5020_v39  ;;  %v4003_v48 = vadd.f32 %v3937_v43, %v3800_v40  ;;  %5774 = vmatprep.mubr.bf16.mxu1 %v11651_v15  ;;  %6786 = vmatprep.mubr.bf16.mxu0 %v11654_v33  ;;  %v3944_v39 = vld [vmem:[#allocation2 + $0x188] sm:$0xff]  ;;  %v11661_v43 = vld [vmem:[%s11782_s24 + $0x1b0] ss:$8 sps:$4 sm:$0xff]  }
 0x33e   : > { %v4955_v41 = vld [vmem:[#allocation2 + $0x140] sm:$0xff]  ;;  %v3802_v51 = vpop.f32.mrf.mxu1  ;;  %v4814_v54 = vpop.f32.mrf.mxu0 }
 0x33f   : > { %4069 = vst.msk [vmem:[#allocation2 + $0x150] sm:$0xff] %vm966_vm0, %v4003_v48  ;;  %v5021_v56 = vadd.f32 %v4955_v41, %v4812_v46  ;;  %v11666_v48 = vld [vmem:[%s11782_s24 + $0x1c4] ss:$8 sps:$4 sm:$0xff]  }
 0x340   : > { %v3803_v44 = vpop.f32.mrf.mxu1  ;;  %v4815_v62 = vpop.f32.mrf.mxu0 }
 0x341   : > { %5087 = vst.msk [vmem:[#allocation2 + $0x140] sm:$0xff] %vm966_vm0, %v5021_v56  ;;  %v4004_v29 = vadd.f32 %v3938_v60, %v3803_v44  ;;  %v3945_v60 = vld [vmem:[#allocation2 + $0x190] sm:$0xff] }
 0x342   : > { %v4956_v34 = vld [vmem:[#allocation2 + $0x148] sm:$0xff]  ;;  %v3805_v37 = vpop.f32.mrf.mxu1  ;;  %v4817_v42 = vpop.f32.mrf.mxu0 }
 0x343   : > { %4070 = vst.msk [vmem:[#allocation2 + $0x158] sm:$0xff] %vm966_vm0, %v4004_v29  ;;  %v5022_v49 = vadd.f32 %v4956_v34, %v4815_v62 }
 0x344   : > { %v3808_v45 = vpop.f32.mrf.mxu1  ;;  %v4820_v52 = vpop.f32.mrf.mxu0  ;;  %5775 = vmatmul.mubr.bf16.gmra.mxu1 %v11649_v31  ;;  %6787 = vmatmul.mubr.bf16.gmra.mxu0 %v11652_v47 }
 0x345   : > { %5088 = vst.msk [vmem:[#allocation2 + $0x148] sm:$0xff] %vm966_vm0, %v5022_v49  ;;  %v4005_v50 = vadd.f32 %v3939_v0, %v3808_v45  ;;  %5782 = vmatprep.mubr.bf16.mxu1 %v11654_v33  ;;  %6794 = vmatprep.mubr.bf16.mxu0 %v11657_v63  ;;  %v3946_v49 = vld [vmem:[#allocation2 + $0x198] sm:$0xff]  ;;  %v11664_v0 = vld [vmem:[%s11782_s24 + $0x1c0] ss:$8 sps:$4 sm:$0xff]  }
 0x346   : > { %v4957_v53 = vld [vmem:[#allocation2 + $0x150] sm:$0xff]  ;;  %v3810_v2 = vpop.f32.mrf.mxu1  ;;  %v4822_v3 = vpop.f32.mrf.mxu0 }
 0x347   : > { %4071 = vst.msk [vmem:[#allocation2 + $0x160] sm:$0xff] %vm966_vm0, %v4005_v50  ;;  %v5023_v59 = vadd.f32 %v4957_v53, %v4820_v52  ;;  %v11669_v50 = vld [vmem:[%s11782_s24 + $0x1d4] ss:$8 sps:$4 sm:$0xff]  }
 0x348   : > { %v3811_v61 = vpop.f32.mrf.mxu1  ;;  %v4823_v55 = vpop.f32.mrf.mxu0 }
 0x349   : > { %5089 = vst.msk [vmem:[#allocation2 + $0x150] sm:$0xff] %vm966_vm0, %v5023_v59  ;;  %v4006_v4 = vadd.f32 %v3940_v5, %v3811_v61  ;;  %v3947_v5 = vld [vmem:[#allocation2 + $0x1a0] sm:$0xff] }
 0x34a   : > { %v4958_v6 = vld [vmem:[#allocation2 + $0x158] sm:$0xff]  ;;  %v3813_v8 = vpop.f32.mrf.mxu1  ;;  %v4825_v9 = vpop.f32.mrf.mxu0 }
 0x34b   : > { %4072 = vst.msk [vmem:[#allocation2 + $0x168] sm:$0xff] %vm966_vm0, %v4006_v4  ;;  %v5024_v10 = vadd.f32 %v4958_v6, %v4823_v55 }
 0x34c   : > { %v3816_v11 = vpop.f32.mrf.mxu1  ;;  %v4828_v13 = vpop.f32.mrf.mxu0  ;;  %5783 = vmatmul.mubr.bf16.gmra.mxu1 %v11652_v47  ;;  %6795 = vmatmul.mubr.bf16.gmra.mxu0 %v11655_v7 }
 0x34d   : > { %5090 = vst.msk [vmem:[#allocation2 + $0x158] sm:$0xff] %vm966_vm0, %v5024_v10  ;;  %v4007_v14 = vadd.f32 %v3941_v12, %v3816_v11  ;;  %5790 = vmatprep.mubr.bf16.mxu1 %v11657_v63  ;;  %6802 = vmatprep.mubr.bf16.mxu0 %v11660_v57  ;;  %v3948_v10 = vld [vmem:[#allocation2 + $0x1a8] sm:$0xff]  ;;  %v11667_v12 = vld [vmem:[%s11782_s24 + $0x1d0] ss:$8 sps:$4 sm:$0xff]  }
 0x34e   : > { %v4959_v58 = vld [vmem:[#allocation2 + $0x160] sm:$0xff]  ;;  %v3818_v15 = vpop.f32.mrf.mxu1  ;;  %v4830_v16 = vpop.f32.mrf.mxu0 }
 0x34f   : > { %4073 = vst.msk [vmem:[#allocation2 + $0x170] sm:$0xff] %vm966_vm0, %v4007_v14  ;;  %v5025_v17 = vadd.f32 %v4959_v58, %v4828_v13  ;;  %v11672_v14 = vld [vmem:[%s11782_s24 + $0x1e4] ss:$8 sps:$4 sm:$0xff]  }
 0x350   : > { %v3819_v18 = vpop.f32.mrf.mxu1  ;;  %v4831_v20 = vpop.f32.mrf.mxu0 }
 0x351   : > { %5091 = vst.msk [vmem:[#allocation2 + $0x160] sm:$0xff] %vm966_vm0, %v5025_v17  ;;  %v4008_v1 = vadd.f32 %v3942_v19, %v3819_v18  ;;  %v3949_v19 = vld [vmem:[#allocation2 + $0x1b0] sm:$0xff] }
 0x352   : > { %v4960_v23 = vld [vmem:[#allocation2 + $0x168] sm:$0xff]  ;;  %v3821_v24 = vpop.f32.mrf.mxu1  ;;  %v4833_v25 = vpop.f32.mrf.mxu0 }
 0x353   : > { %4074 = vst.msk [vmem:[#allocation2 + $0x178] sm:$0xff] %vm966_vm0, %v4008_v1  ;;  %v5026_v26 = vadd.f32 %v4960_v23, %v4831_v20 }
 0x354   : > { %v3824_v27 = vpop.f32.mrf.mxu1  ;;  %v4836_v30 = vpop.f32.mrf.mxu0  ;;  %5791 = vmatmul.mubr.bf16.gmra.mxu1 %v11655_v7  ;;  %6803 = vmatmul.mubr.bf16.gmra.mxu0 %v11658_v21 }
 0x355   : > { %5092 = vst.msk [vmem:[#allocation2 + $0x168] sm:$0xff] %vm966_vm0, %v5026_v26  ;;  %v4009_v31 = vadd.f32 %v3943_v28, %v3824_v27  ;;  %5798 = vmatprep.mubr.bf16.mxu1 %v11660_v57  ;;  %6810 = vmatprep.mubr.bf16.mxu0 %v11663_v22  ;;  %v3950_v26 = vld [vmem:[#allocation2 + $0x1b8] sm:$0xff]  ;;  %v11670_v28 = vld [vmem:[%s11782_s24 + $0x1e0] ss:$8 sps:$4 sm:$0xff]  }
 0x356   : > { %v4961_v32 = vld [vmem:[#allocation2 + $0x170] sm:$0xff]  ;;  %v3826_v33 = vpop.f32.mrf.mxu1  ;;  %v4838_v35 = vpop.f32.mrf.mxu0 }
 0x357   : > { %4075 = vst.msk [vmem:[#allocation2 + $0x180] sm:$0xff] %vm966_vm0, %v4009_v31  ;;  %v5027_v36 = vadd.f32 %v4961_v32, %v4836_v30  ;;  %v11675_v31 = vld [vmem:[%s11782_s24 + $0x1f4] ss:$8 sps:$4 sm:$0xff]  }
 0x358   : > { %v3827_v38 = vpop.f32.mrf.mxu1  ;;  %v4839_v40 = vpop.f32.mrf.mxu0 }
 0x359   : > { %5093 = vst.msk [vmem:[#allocation2 + $0x170] sm:$0xff] %vm966_vm0, %v5027_v36  ;;  %v4010_v46 = vadd.f32 %v3944_v39, %v3827_v38  ;;  %v3951_v39 = vld [vmem:[#allocation2 + $0x1c0] sm:$0xff] }
 0x35a   : > { %v4962_v41 = vld [vmem:[#allocation2 + $0x178] sm:$0xff]  ;;  %v3829_v51 = vpop.f32.mrf.mxu1  ;;  %v4841_v54 = vpop.f32.mrf.mxu0 }
 0x35b   : > { %4076 = vst.msk [vmem:[#allocation2 + $0x188] sm:$0xff] %vm966_vm0, %v4010_v46  ;;  %v5028_v56 = vadd.f32 %v4962_v41, %v4839_v40 }
 0x35c   : > { %v3832_v44 = vpop.f32.mrf.mxu1  ;;  %v4844_v62 = vpop.f32.mrf.mxu0  ;;  %5799 = vmatmul.mubr.bf16.gmra.mxu1 %v11658_v21  ;;  %6811 = vmatmul.mubr.bf16.gmra.mxu0 %v11661_v43 }
 0x35d   : > { %5094 = vst.msk [vmem:[#allocation2 + $0x178] sm:$0xff] %vm966_vm0, %v5028_v56  ;;  %v4011_v47 = vadd.f32 %v3945_v60, %v3832_v44  ;;  %5806 = vmatprep.mubr.bf16.mxu1 %v11663_v22  ;;  %6818 = vmatprep.mubr.bf16.mxu0 %v11666_v48  ;;  %v3952_v56 = vld [vmem:[#allocation2 + $0x1c8] sm:$0xff]  ;;  %v11673_v60 = vld [vmem:[%s11782_s24 + $0x1f0] ss:$8 sps:$4 sm:$0xff]  }
 0x35e   : > { %v4963_v29 = vld [vmem:[#allocation2 + $0x180] sm:$0xff]  ;;  %v3834_v63 = vpop.f32.mrf.mxu1  ;;  %v4846_v34 = vpop.f32.mrf.mxu0 }
 0x35f   : > { %4077 = vst.msk [vmem:[#allocation2 + $0x190] sm:$0xff] %vm966_vm0, %v4011_v47  ;;  %v5029_v37 = vadd.f32 %v4963_v29, %v4844_v62  ;;  %v11678_v47 = vld [vmem:[%s11782_s24 + $0x204] ss:$8 sps:$4 sm:$0xff]  }
 0x360   : > { %v3835_v42 = vpop.f32.mrf.mxu1  ;;  %v4847_v45 = vpop.f32.mrf.mxu0 }
 0x361   : > { %5095 = vst.msk [vmem:[#allocation2 + $0x180] sm:$0xff] %vm966_vm0, %v5029_v37  ;;  %v4012_v52 = vadd.f32 %v3946_v49, %v3835_v42  ;;  %v3953_v49 = vld [vmem:[#allocation2 + $0x1d0] sm:$0xff] }
 0x362   : > { %v4964_v53 = vld [vmem:[#allocation2 + $0x188] sm:$0xff]  ;;  %v3837_v2 = vpop.f32.mrf.mxu1  ;;  %v4849_v3 = vpop.f32.mrf.mxu0 }
 0x363   : > { %4078 = vst.msk [vmem:[#allocation2 + $0x198] sm:$0xff] %vm966_vm0, %v4012_v52  ;;  %v5030_v59 = vadd.f32 %v4964_v53, %v4847_v45 }
 0x364   : > { %v3840_v61 = vpop.f32.mrf.mxu1  ;;  %v4852_v55 = vpop.f32.mrf.mxu0  ;;  %5807 = vmatmul.mubr.bf16.gmra.mxu1 %v11661_v43  ;;  %6819 = vmatmul.mubr.bf16.gmra.mxu0 %v11664_v0 }
 0x365   : > { %5096 = vst.msk [vmem:[#allocation2 + $0x188] sm:$0xff] %vm966_vm0, %v5030_v59  ;;  %v4013_v7 = vadd.f32 %v3947_v5, %v3840_v61  ;;  %5814 = vmatprep.mubr.bf16.mxu1 %v11666_v48  ;;  %6826 = vmatprep.mubr.bf16.mxu0 %v11669_v50  ;;  %v3954_v59 = vld [vmem:[#allocation2 + $0x1d8] sm:$0xff]  ;;  %v11676_v5 = vld [vmem:[%s11782_s24 + $0x200] ss:$8 sps:$4 sm:$0xff]  }
 0x366   : > { %v4965_v4 = vld [vmem:[#allocation2 + $0x190] sm:$0xff]  ;;  %v3842_v57 = vpop.f32.mrf.mxu1  ;;  %v4854_v6 = vpop.f32.mrf.mxu0 }
 0x367   : > { %4079 = vst.msk [vmem:[#allocation2 + $0x1a0] sm:$0xff] %vm966_vm0, %v4013_v7  ;;  %v5031_v8 = vadd.f32 %v4965_v4, %v4852_v55  ;;  %v11681_v7 = vld [vmem:[%s11782_s24 + $0x214] ss:$8 sps:$4 sm:$0xff]  }
 0x368   : > { %v3843_v9 = vpop.f32.mrf.mxu1  ;;  %v4855_v11 = vpop.f32.mrf.mxu0 }
 0x369   : > { %5097 = vst.msk [vmem:[#allocation2 + $0x190] sm:$0xff] %vm966_vm0, %v5031_v8  ;;  %v4014_v13 = vadd.f32 %v3948_v10, %v3843_v9  ;;  %v3955_v10 = vld [vmem:[#allocation2 + $0x1e0] sm:$0xff] }
 0x36a   : > { %v4966_v58 = vld [vmem:[#allocation2 + $0x198] sm:$0xff]  ;;  %v3845_v15 = vpop.f32.mrf.mxu1  ;;  %v4857_v16 = vpop.f32.mrf.mxu0 }
 0x36b   : > { %4080 = vst.msk [vmem:[#allocation2 + $0x1a8] sm:$0xff] %vm966_vm0, %v4014_v13  ;;  %v5032_v17 = vadd.f32 %v4966_v58, %v4855_v11 }
 0x36c   : > { %v3848_v18 = vpop.f32.mrf.mxu1  ;;  %v4860_v20 = vpop.f32.mrf.mxu0  ;;  %5815 = vmatmul.mubr.bf16.gmra.mxu1 %v11664_v0  ;;  %6827 = vmatmul.mubr.bf16.gmra.mxu0 %v11667_v12 }
 0x36d   : > { %5098 = vst.msk [vmem:[#allocation2 + $0x198] sm:$0xff] %vm966_vm0, %v5032_v17  ;;  %v4015_v21 = vadd.f32 %v3949_v19, %v3848_v18  ;;  %5822 = vmatprep.mubr.bf16.mxu1 %v11669_v50  ;;  %6834 = vmatprep.mubr.bf16.mxu0 %v11672_v14  ;;  %v3956_v17 = vld [vmem:[#allocation2 + $0x1e8] sm:$0xff]  ;;  %v11679_v19 = vld [vmem:[%s11782_s24 + $0x210] ss:$8 sps:$4 sm:$0xff]  }
 0x36e   : > { %v4967_v1 = vld [vmem:[#allocation2 + $0x1a0] sm:$0xff]  ;;  %v3850_v22 = vpop.f32.mrf.mxu1  ;;  %v4862_v23 = vpop.f32.mrf.mxu0 }
 0x36f   : > { %4081 = vst.msk [vmem:[#allocation2 + $0x1b0] sm:$0xff] %vm966_vm0, %v4015_v21  ;;  %v5033_v24 = vadd.f32 %v4967_v1, %v4860_v20  ;;  %v11684_v21 = vld [vmem:[%s11782_s24 + $0x224] ss:$8 sps:$4 sm:$0xff]  }
 0x370   : > { %v3851_v25 = vpop.f32.mrf.mxu1  ;;  %v4863_v27 = vpop.f32.mrf.mxu0 }
 0x371   : > { %5099 = vst.msk [vmem:[#allocation2 + $0x1a0] sm:$0xff] %vm966_vm0, %v5033_v24  ;;  %v4016_v30 = vadd.f32 %v3950_v26, %v3851_v25  ;;  %v3957_v26 = vld [vmem:[#allocation2 + $0x1f0] sm:$0xff] }
 0x372   : > { %v4968_v32 = vld [vmem:[#allocation2 + $0x1a8] sm:$0xff]  ;;  %v3853_v33 = vpop.f32.mrf.mxu1  ;;  %v4865_v35 = vpop.f32.mrf.mxu0 }
 0x373   : > { %4082 = vst.msk [vmem:[#allocation2 + $0x1b8] sm:$0xff] %vm966_vm0, %v4016_v30  ;;  %v5034_v36 = vadd.f32 %v4968_v32, %v4863_v27 }
 0x374   : > { %v3856_v38 = vpop.f32.mrf.mxu1  ;;  %v4868_v40 = vpop.f32.mrf.mxu0  ;;  %5823 = vmatmul.mubr.bf16.gmra.mxu1 %v11667_v12  ;;  %6835 = vmatmul.mubr.bf16.gmra.mxu0 %v11670_v28 }
 0x375   : > { %5100 = vst.msk [vmem:[#allocation2 + $0x1a8] sm:$0xff] %vm966_vm0, %v5034_v36  ;;  %v4017_v43 = vadd.f32 %v3951_v39, %v3856_v38  ;;  %5830 = vmatprep.mubr.bf16.mxu1 %v11672_v14  ;;  %6842 = vmatprep.mubr.bf16.mxu0 %v11675_v31  ;;  %v3958_v36 = vld [vmem:[#allocation2 + $0x1f8] sm:$0xff]  ;;  %v11682_v39 = vld [vmem:[%s11782_s24 + $0x220] ss:$8 sps:$4 sm:$0xff]  }
 0x376   : > { %v4969_v46 = vld [vmem:[#allocation2 + $0x1b0] sm:$0xff]  ;;  %v3858_v48 = vpop.f32.mrf.mxu1  ;;  %v4870_v41 = vpop.f32.mrf.mxu0 }
 0x377   : > { %4083 = vst.msk [vmem:[#allocation2 + $0x1c0] sm:$0xff] %vm966_vm0, %v4017_v43  ;;  %v5035_v51 = vadd.f32 %v4969_v46, %v4868_v40  ;;  %v11687_v43 = vld [vmem:[%s11782_s24 + $0x234] ss:$8 sps:$4 sm:$0xff]  }
 0x378   : > { %v3859_v54 = vpop.f32.mrf.mxu1  ;;  %v4871_v44 = vpop.f32.mrf.mxu0 }
 0x379   : > { %5101 = vst.msk [vmem:[#allocation2 + $0x1b0] sm:$0xff] %vm966_vm0, %v5035_v51  ;;  %v4018_v62 = vadd.f32 %v3952_v56, %v3859_v54  ;;  %v3959_v56 = vld [vmem:[#allocation2 + $0x200] sm:$0xff] }
 0x37a   : > { %v4970_v29 = vld [vmem:[#allocation2 + $0x1b8] sm:$0xff]  ;;  %v3861_v63 = vpop.f32.mrf.mxu1  ;;  %v4873_v34 = vpop.f32.mrf.mxu0 }
 0x37b   : > { %4084 = vst.msk [vmem:[#allocation2 + $0x1c8] sm:$0xff] %vm966_vm0, %v4018_v62  ;;  %v5036_v37 = vadd.f32 %v4970_v29, %v4871_v44 }
 0x37c   : > { %v3864_v42 = vpop.f32.mrf.mxu1  ;;  %v4876_v45 = vpop.f32.mrf.mxu0  ;;  %5831 = vmatmul.mubr.bf16.gmra.mxu1 %v11670_v28  ;;  %6843 = vmatmul.mubr.bf16.gmra.mxu0 %v11673_v60 }
 0x37d   : > { %5102 = vst.msk [vmem:[#allocation2 + $0x1b8] sm:$0xff] %vm966_vm0, %v5036_v37  ;;  %v4019_v0 = vadd.f32 %v3953_v49, %v3864_v42  ;;  %5838 = vmatprep.mubr.bf16.mxu1 %v11675_v31  ;;  %6850 = vmatprep.mubr.bf16.mxu0 %v11678_v47  ;;  %v3960_v37 = vld [vmem:[#allocation2 + $0x208] sm:$0xff]  ;;  %v11685_v49 = vld [vmem:[%s11782_s24 + $0x230] ss:$8 sps:$4 sm:$0xff]  }
 0x37e   : > { %v4971_v52 = vld [vmem:[#allocation2 + $0x1c0] sm:$0xff]  ;;  %v3866_v50 = vpop.f32.mrf.mxu1  ;;  %v4878_v53 = vpop.f32.mrf.mxu0 }
 0x37f   : > { %4085 = vst.msk [vmem:[#allocation2 + $0x1d0] sm:$0xff] %vm966_vm0, %v4019_v0  ;;  %v5037_v2 = vadd.f32 %v4971_v52, %v4876_v45  ;;  %v11690_v0 = vld [vmem:[%s11782_s24 + $0x244] ss:$8 sps:$4 sm:$0xff]  }
 0x380   : > { %v3867_v3 = vpop.f32.mrf.mxu1  ;;  %v4879_v61 = vpop.f32.mrf.mxu0 }
 0x381   : > { %5103 = vst.msk [vmem:[#allocation2 + $0x1c0] sm:$0xff] %vm966_vm0, %v5037_v2  ;;  %v4020_v55 = vadd.f32 %v3954_v59, %v3867_v3 }
 0x382   : > { %v4972_v4 = vld [vmem:[#allocation2 + $0x1c8] sm:$0xff]  ;;  %v3869_v57 = vpop.f32.mrf.mxu1  ;;  %v4881_v6 = vpop.f32.mrf.mxu0 }
 0x383   : > { %4086 = vst.msk [vmem:[#allocation2 + $0x1d8] sm:$0xff] %vm966_vm0, %v4020_v55  ;;  %v5038_v8 = vadd.f32 %v4972_v4, %v4879_v61  ;;  %v5935_v61 = vld [vmem:[#allocation2] sm:$0xff] }
 0x384   : > { %v3872_v9 = vpop.f32.mrf.mxu1  ;;  %v4884_v11 = vpop.f32.mrf.mxu0  ;;  %5839 = vmatmul.mubr.bf16.gmra.mxu1 %v11673_v60  ;;  %6851 = vmatmul.mubr.bf16.gmra.mxu0 %v11676_v5 }
 0x385   : > { %5104 = vst.msk [vmem:[#allocation2 + $0x1c8] sm:$0xff] %vm966_vm0, %v5038_v8  ;;  %v4021_v12 = vadd.f32 %v3955_v10, %v3872_v9  ;;  %5846 = vmatprep.mubr.bf16.mxu1 %v11678_v47  ;;  %6858 = vmatprep.mubr.bf16.mxu0 %v11681_v7  ;;  %v5936_v9 = vld [vmem:[#allocation2 + $0x8] sm:$0xff] }
 0x386   : > { %v4973_v13 = vld [vmem:[#allocation2 + $0x1d0] sm:$0xff]  ;;  %v3874_v14 = vpop.f32.mrf.mxu1  ;;  %v4886_v58 = vpop.f32.mrf.mxu0  ;;  %v11688_v10 = vld [vmem:[%s11782_s24 + $0x240] ss:$8 sps:$4 sm:$0xff]  }
 0x387   : > { %4087 = vst.msk [vmem:[#allocation2 + $0x1e0] sm:$0xff] %vm966_vm0, %v4021_v12  ;;  %v5039_v15 = vadd.f32 %v4973_v13, %v4884_v11  ;;  %v11693_v12 = vld [vmem:[%s11782_s24 + $0x254] ss:$8 sps:$4 sm:$0xff]  }
 0x388   : > { %v3875_v16 = vpop.f32.mrf.mxu1  ;;  %v4887_v18 = vpop.f32.mrf.mxu0 }
 0x389   : > { %5105 = vst.msk [vmem:[#allocation2 + $0x1d0] sm:$0xff] %vm966_vm0, %v5039_v15  ;;  %v4022_v20 = vadd.f32 %v3956_v17, %v3875_v16  ;;  %v5937_v17 = vld [vmem:[#allocation2 + $0x10] sm:$0xff] }
 0x38a   : > { %v4974_v1 = vld [vmem:[#allocation2 + $0x1d8] sm:$0xff]  ;;  %v3877_v22 = vpop.f32.mrf.mxu1  ;;  %v4889_v23 = vpop.f32.mrf.mxu0 }
 0x38b   : > { %4088 = vst.msk [vmem:[#allocation2 + $0x1e8] sm:$0xff] %vm966_vm0, %v4022_v20  ;;  %v5040_v24 = vadd.f32 %v4974_v1, %v4887_v18 }
 0x38c   : > { %v3880_v25 = vpop.f32.mrf.mxu1  ;;  %v4892_v27 = vpop.f32.mrf.mxu0  ;;  %5847 = vmatmul.mubr.bf16.gmra.mxu1 %v11676_v5  ;;  %6859 = vmatmul.mubr.bf16.gmra.mxu0 %v11679_v19 }
 0x38d   : > { %5106 = vst.msk [vmem:[#allocation2 + $0x1d8] sm:$0xff] %vm966_vm0, %v5040_v24  ;;  %v4023_v28 = vadd.f32 %v3957_v26, %v3880_v25  ;;  %5854 = vmatprep.mubr.bf16.mxu1 %v11681_v7  ;;  %6866 = vmatprep.mubr.bf16.mxu0 %v11684_v21  ;;  %v5938_v24 = vld [vmem:[#allocation2 + $0x18] sm:$0xff] }
 0x38e   : > { %v4975_v30 = vld [vmem:[#allocation2 + $0x1e0] sm:$0xff]  ;;  %v3882_v31 = vpop.f32.mrf.mxu1  ;;  %v4894_v32 = vpop.f32.mrf.mxu0  ;;  %v11691_v26 = vld [vmem:[%s11782_s24 + $0x250] ss:$8 sps:$4 sm:$0xff]  }
 0x38f   : > { %4089 = vst.msk [vmem:[#allocation2 + $0x1f0] sm:$0xff] %vm966_vm0, %v4023_v28  ;;  %v5041_v33 = vadd.f32 %v4975_v30, %v4892_v27  ;;  %v11696_v28 = vld [vmem:[%s11782_s24 + $0x264] ss:$8 sps:$4 sm:$0xff]  }
 0x390   : > { %v3883_v35 = vpop.f32.mrf.mxu1  ;;  %v4895_v38 = vpop.f32.mrf.mxu0 }
 0x391   : > { %5107 = vst.msk [vmem:[#allocation2 + $0x1e0] sm:$0xff] %vm966_vm0, %v5041_v33  ;;  %v4024_v40 = vadd.f32 %v3958_v36, %v3883_v35  ;;  %v5939_v36 = vld [vmem:[#allocation2 + $0x20] sm:$0xff] }
 0x392   : > { %v4976_v46 = vld [vmem:[#allocation2 + $0x1e8] sm:$0xff]  ;;  %v3885_v48 = vpop.f32.mrf.mxu1  ;;  %v4897_v41 = vpop.f32.mrf.mxu0 }
 0x393   : > { %4090 = vst.msk [vmem:[#allocation2 + $0x1f8] sm:$0xff] %vm966_vm0, %v4024_v40  ;;  %v5042_v51 = vadd.f32 %v4976_v46, %v4895_v38 }
 0x394   : > { %v3888_v54 = vpop.f32.mrf.mxu1  ;;  %v4900_v44 = vpop.f32.mrf.mxu0  ;;  %5855 = vmatmul.mubr.bf16.gmra.mxu1 %v11679_v19  ;;  %6867 = vmatmul.mubr.bf16.gmra.mxu0 %v11682_v39 }
 0x395   : > { %5108 = vst.msk [vmem:[#allocation2 + $0x1e8] sm:$0xff] %vm966_vm0, %v5042_v51  ;;  %v4025_v60 = vadd.f32 %v3959_v56, %v3888_v54  ;;  %5862 = vmatprep.mubr.bf16.mxu1 %v11684_v21  ;;  %6874 = vmatprep.mubr.bf16.mxu0 %v11687_v43  ;;  %v5940_v51 = vld [vmem:[#allocation2 + $0x28] sm:$0xff] }
 0x396   : > { %v4977_v62 = vld [vmem:[#allocation2 + $0x1f0] sm:$0xff]  ;;  %v3890_v47 = vpop.f32.mrf.mxu1  ;;  %v4902_v29 = vpop.f32.mrf.mxu0  ;;  %v11694_v56 = vld [vmem:[%s11782_s24 + $0x260] ss:$8 sps:$4 sm:$0xff]  }
 0x397   : > { %4091 = vst.msk [vmem:[#allocation2 + $0x200] sm:$0xff] %vm966_vm0, %v4025_v60  ;;  %v5043_v63 = vadd.f32 %v4977_v62, %v4900_v44  ;;  %v11699_v29 = vld [vmem:[%s11782_s24 + $0x274] ss:$8 sps:$4 sm:$0xff]  }
 0x398   : > { %v3891_v34 = vpop.f32.mrf.mxu1  ;;  %v4903_v42 = vpop.f32.mrf.mxu0 }
 0x399   : > { %5109 = vst.msk [vmem:[#allocation2 + $0x1f0] sm:$0xff] %vm966_vm0, %v5043_v63  ;;  %v4026_v45 = vadd.f32 %v3960_v37, %v3891_v34 }
 0x39a   : > { %v4978_v52 = vld [vmem:[#allocation2 + $0x1f8] sm:$0xff]  ;;  %v3893_v50 = vpop.f32.mrf.mxu1  ;;  %v4905_v53 = vpop.f32.mrf.mxu0 }
 0x39b   : > { %4092 = vst.msk [vmem:[#allocation2 + $0x208] sm:$0xff] %vm966_vm0, %v4026_v45  ;;  %v5044_v2 = vadd.f32 %v4978_v52, %v4903_v42  ;;  %v5941_v42 = vld [vmem:[#allocation2 + $0x30] sm:$0xff] }
 0x39c   : > { %v4908_v3 = vpop.f32.mrf.mxu0  ;;  %v5672_v59 = vpop.f32.mrf.mxu1  ;;  %5863 = vmatmul.mubr.bf16.gmra.mxu1 %v11682_v39  ;;  %6875 = vmatmul.mubr.bf16.gmra.mxu0 %v11685_v49 }
 0x39d   : > { %5110 = vst.msk [vmem:[#allocation2 + $0x1f8] sm:$0xff] %vm966_vm0, %v5044_v2  ;;  %v6001_v5 = vadd.f32 %v5935_v61, %v5672_v59  ;;  %5870 = vmatprep.mubr.bf16.mxu1 %v11687_v43  ;;  %6882 = vmatprep.mubr.bf16.mxu0 %v11690_v0  ;;  %v5942_v59 = vld [vmem:[#allocation2 + $0x38] sm:$0xff] }
 0x39e   : > { %v4979_v55 = vld [vmem:[#allocation2 + $0x200] sm:$0xff]  ;;  %v4910_v7 = vpop.f32.mrf.mxu0  ;;  %v5674_v4 = vpop.f32.mrf.mxu1 }
 0x39f   : > { %v5045_v57 = vadd.f32 %v4979_v55, %v4908_v3  ;;  %6067 = vst.msk [vmem:[#allocation2] sm:$0xff] %vm966_vm0, %v6001_v5  ;;  %v11697_v5 = vld [vmem:[%s11782_s24 + $0x270] ss:$8 sps:$4 sm:$0xff]  }
 0x3a0   : > { %v4911_v6 = vpop.f32.mrf.mxu0  ;;  %v5675_v8 = vpop.f32.mrf.mxu1 }
 0x3a1   : > { %5111 = vst.msk [vmem:[#allocation2 + $0x200] sm:$0xff] %vm966_vm0, %v5045_v57  ;;  %v6002_v11 = vadd.f32 %v5936_v9, %v5675_v8 }
 0x3a2   : > { %v4980_v13 = vld [vmem:[#allocation2 + $0x208] sm:$0xff]  ;;  %v4913_v14 = vpop.f32.mrf.mxu0  ;;  %v5677_v58 = vpop.f32.mrf.mxu1 }
 0x3a3   : > { %v5046_v15 = vadd.f32 %v4980_v13, %v4911_v6  ;;  %6068 = vst.msk [vmem:[#allocation2 + $0x8] sm:$0xff] %vm966_vm0, %v6002_v11  ;;  %v11702_v6 = vld [vmem:[%s11782_s24 + $0x284] ss:$8 sps:$4 sm:$0xff]  }
 0x3a4   : > { %v5680_v16 = vpop.f32.mrf.mxu1  ;;  %5871 = vmatmul.mubr.bf16.gmra.mxu1 %v11685_v49  ;;  %v6692_v18 = vpop.f32.mrf.mxu0  ;;  %6883 = vmatmul.mubr.bf16.gmra.mxu0 %v11688_v10  ;;  %v5943_v11 = vld [vmem:[#allocation2 + $0x40] sm:$0xff] }
 0x3a5   : > { %5112 = vst.msk [vmem:[#allocation2 + $0x208] sm:$0xff] %vm966_vm0, %v5046_v15  ;;  %v6003_v19 = vadd.f32 %v5937_v17, %v5680_v16  ;;  %5878 = vmatprep.mubr.bf16.mxu1 %v11690_v0  ;;  %6890 = vmatprep.mubr.bf16.mxu0 %v11693_v12 }
 0x3a6   : > { %v6955_v20 = vld [vmem:[#allocation2] sm:$0xff]  ;;  %v5682_v21 = vpop.f32.mrf.mxu1  ;;  %v6694_v1 = vpop.f32.mrf.mxu0 }
 0x3a7   : > { %6069 = vst.msk [vmem:[#allocation2 + $0x10] sm:$0xff] %vm966_vm0, %v6003_v19  ;;  %v7021_v22 = vadd.f32 %v6955_v20, %v6692_v18  ;;  %v5944_v19 = vld [vmem:[#allocation2 + $0x48] sm:$0xff] }
 0x3a8   : > { %v5683_v23 = vpop.f32.mrf.mxu1  ;;  %v6695_v25 = vpop.f32.mrf.mxu0  ;;  %v11700_v21 = vld [vmem:[%s11782_s24 + $0x280] ss:$8 sps:$4 sm:$0xff]  }
 0x3a9   : > { %7087 = vst.msk [vmem:[#allocation2] sm:$0xff] %vm966_vm0, %v7021_v22  ;;  %v6004_v27 = vadd.f32 %v5938_v24, %v5683_v23 }
 0x3aa   : > { %v6956_v30 = vld [vmem:[#allocation2 + $0x8] sm:$0xff]  ;;  %v5685_v31 = vpop.f32.mrf.mxu1  ;;  %v6697_v32 = vpop.f32.mrf.mxu0 }
 0x3ab   : > { %6070 = vst.msk [vmem:[#allocation2 + $0x18] sm:$0xff] %vm966_vm0, %v6004_v27  ;;  %v7022_v33 = vadd.f32 %v6956_v30, %v6695_v25  ;;  %v11705_v25 = vld [vmem:[%s11782_s24 + $0x294] ss:$8 sps:$4 sm:$0xff]  }
 0x3ac   : > { %v5688_v35 = vpop.f32.mrf.mxu1  ;;  %5879 = vmatmul.mubr.bf16.gmra.mxu1 %v11688_v10  ;;  %v6700_v38 = vpop.f32.mrf.mxu0  ;;  %6891 = vmatmul.mubr.bf16.gmra.mxu0 %v11691_v26  ;;  %v5945_v30 = vld [vmem:[#allocation2 + $0x50] sm:$0xff] }
 0x3ad   : > { %7088 = vst.msk [vmem:[#allocation2 + $0x8] sm:$0xff] %vm966_vm0, %v7022_v33  ;;  %v6005_v39 = vadd.f32 %v5939_v36, %v5688_v35  ;;  %5886 = vmatprep.mubr.bf16.mxu1 %v11693_v12  ;;  %6898 = vmatprep.mubr.bf16.mxu0 %v11696_v28 }
 0x3ae   : > { %v6957_v40 = vld [vmem:[#allocation2 + $0x10] sm:$0xff]  ;;  %v5690_v43 = vpop.f32.mrf.mxu1  ;;  %v6702_v46 = vpop.f32.mrf.mxu0 }
 0x3af   : > { %6071 = vst.msk [vmem:[#allocation2 + $0x20] sm:$0xff] %vm966_vm0, %v6005_v39  ;;  %v7023_v48 = vadd.f32 %v6957_v40, %v6700_v38  ;;  %v5946_v43 = vld [vmem:[#allocation2 + $0x58] sm:$0xff] }
 0x3b0   : > { %v5691_v41 = vpop.f32.mrf.mxu1  ;;  %v6703_v54 = vpop.f32.mrf.mxu0 }
 0x3b1   : > { %7089 = vst.msk [vmem:[#allocation2 + $0x10] sm:$0xff] %vm966_vm0, %v7023_v48  ;;  %v6006_v44 = vadd.f32 %v5940_v51, %v5691_v41  ;;  %v11703_v48 = vld [vmem:[%s11782_s24 + $0x290] ss:$8 sps:$4 sm:$0xff]  }
 0x3b2   : > { %v6958_v60 = vld [vmem:[#allocation2 + $0x18] sm:$0xff]  ;;  %v5693_v62 = vpop.f32.mrf.mxu1  ;;  %v6705_v47 = vpop.f32.mrf.mxu0 }
 0x3b3   : > { %6072 = vst.msk [vmem:[#allocation2 + $0x28] sm:$0xff] %vm966_vm0, %v6006_v44  ;;  %v7024_v63 = vadd.f32 %v6958_v60, %v6703_v54  ;;  %v11708_v44 = vld [vmem:[%s11782_s24 + $0x2a4] ss:$8 sps:$4 sm:$0xff]  }
 0x3b4   : > { %v7217_v34 = vld [vmem:[#allocation2 + $0x1] sm:$0xff]  ;;  %v5696_v37 = vpop.f32.mrf.mxu1  ;;  %5887 = vmatmul.mubr.bf16.gmra.mxu1 %v11691_v26  ;;  %v6708_v49 = vpop.f32.mrf.mxu0  ;;  %6899 = vmatmul.mubr.bf16.gmra.mxu0 %v11694_v56 }
 0x3b5   : > { %7090 = vst.msk [vmem:[#allocation2 + $0x18] sm:$0xff] %vm966_vm0, %v7024_v63  ;;  %v6007_v45 = vadd.f32 %v5941_v42, %v5696_v37  ;;  %7345 = vrot.lane.b32.xlu0 %v7217_v34, %s11724_s13  ;;  %5894 = vmatprep.mubr.bf16.mxu1 %v11696_v28 }
 0x3b6   : > { %v6959_v0 = vld [vmem:[#allocation2 + $0x20] sm:$0xff]  ;;  %v5698_v52 = vpop.f32.mrf.mxu1  ;;  %v6710_v50 = vpop.f32.mrf.mxu0  ;;  %6906 = vmatprep.mubr.bf16.mxu0 %v11699_v29 }
 0x3b7   : > { %6073 = vst.msk [vmem:[#allocation2 + $0x30] sm:$0xff] %vm966_vm0, %v6007_v45  ;;  %v7025_v53 = vadd.f32 %v6959_v0, %v6708_v49  ;;  %v5948_v50 = vld [vmem:[#allocation2 + $0x68] sm:$0xff] }
 0x3b8   : > { %v7218_v2 = vld [vmem:[#allocation2 + $0x9] sm:$0xff]  ;;  %v5699_v3 = vpop.f32.mrf.mxu1  ;;  %v6711_v61 = vpop.f32.mrf.mxu0 }
 0x3b9   : > { %7091 = vst.msk [vmem:[#allocation2 + $0x20] sm:$0xff] %vm966_vm0, %v7025_v53  ;;  %v6008_v55 = vadd.f32 %v5942_v59, %v5699_v3  ;;  %7347 = vrot.lane.b32.xlu0 %v7218_v2, %s11724_s13  ;;  %v11706_v2 = vld [vmem:[%s11782_s24 + $0x2a0] ss:$8 sps:$4 sm:$0xff]  }
 0x3ba   : > { %v6960_v7 = vld [vmem:[#allocation2 + $0x28] sm:$0xff]  ;;  %v5701_v4 = vpop.f32.mrf.mxu1  ;;  %v6713_v57 = vpop.f32.mrf.mxu0 }
 0x3bb   : > { %6074 = vst.msk [vmem:[#allocation2 + $0x38] sm:$0xff] %vm966_vm0, %v6008_v55  ;;  %v7026_v8 = vadd.f32 %v6960_v7, %v6711_v61  ;;  %v11711_v55 = vld [vmem:[%s11782_s24 + $0x2b4] ss:$8 sps:$4 sm:$0xff]  }
 0x3bc   : > { %v7219_v9 = vld [vmem:[#allocation2 + $0x11] sm:$0xff]  ;;  %v5704_v10 = vpop.f32.mrf.mxu1  ;;  %5895 = vmatmul.mubr.bf16.gmra.mxu1 %v11694_v56  ;;  %v6716_v12 = vpop.f32.mrf.mxu0  ;;  %6907 = vmatmul.mubr.bf16.gmra.mxu0 %v11697_v5 }
 0x3bd   : > { %7092 = vst.msk [vmem:[#allocation2 + $0x28] sm:$0xff] %vm966_vm0, %v7026_v8  ;;  %v6009_v13 = vadd.f32 %v5943_v11, %v5704_v10  ;;  %7349 = vrot.lane.b32.xlu1 %v7219_v9, %s11724_s13  ;;  %5902 = vmatprep.mubr.bf16.mxu1 %v11699_v29  ;;  %v5947_v29 = vld [vmem:[#allocation2 + $0x60] sm:$0xff] }
 0x3be   : > { %v6961_v14 = vld [vmem:[#allocation2 + $0x30] sm:$0xff]  ;;  %v5706_v58 = vpop.f32.mrf.mxu1  ;;  %v6718_v15 = vpop.f32.mrf.mxu0  ;;  %6914 = vmatprep.mubr.bf16.mxu0 %v11702_v6 }
 0x3bf   : > { %6075 = vst.msk [vmem:[#allocation2 + $0x40] sm:$0xff] %vm966_vm0, %v6009_v13  ;;  %v7027_v16 = vadd.f32 %v6961_v14, %v6716_v12  ;;  %v5950_v15 = vld [vmem:[#allocation2 + $0x78] sm:$0xff] }
 0x3c0   : > { %v7220_v17 = vld [vmem:[#allocation2 + $0x19] sm:$0xff]  ;;  %v5707_v18 = vpop.f32.mrf.mxu1  ;;  %v6719_v20 = vpop.f32.mrf.mxu0 }
 0x3c1   : > { %7093 = vst.msk [vmem:[#allocation2 + $0x30] sm:$0xff] %vm966_vm0, %v7027_v16  ;;  %v6010_v1 = vadd.f32 %v5944_v19, %v5707_v18  ;;  %7351 = vrot.lane.b32.xlu1 %v7220_v17, %s11724_s13  ;;  %v11709_v17 = vld [vmem:[%s11782_s24 + $0x2b0] ss:$8 sps:$4 sm:$0xff]   ;;  %v11714_v19 = vld [vmem:[%s11782_s24 + $0x2c4] ss:$8 sps:$4 sm:$0xff]  }
 0x3c2   : > { %v6962_v22 = vld [vmem:[#allocation2 + $0x38] sm:$0xff]  ;;  %v5709_v23 = vpop.f32.mrf.mxu1  ;;  %v6721_v24 = vpop.f32.mrf.mxu0 }
 0x3c3   : > { %6076 = vst.msk [vmem:[#allocation2 + $0x48] sm:$0xff] %vm966_vm0, %v6010_v1  ;;  %v7028_v26 = vadd.f32 %v6962_v22, %v6719_v20 }
 0x3c4   : > { %v7221_v27 = vld [vmem:[#allocation2 + $0x21] sm:$0xff]  ;;  %v5712_v28 = vpop.f32.mrf.mxu1  ;;  %5903 = vmatmul.mubr.bf16.gmra.mxu1 %v11697_v5  ;;  %v6724_v31 = vpop.f32.mrf.mxu0  ;;  %6915 = vmatmul.mubr.bf16.gmra.mxu0 %v11700_v21 }
 0x3c5   : > { %7094 = vst.msk [vmem:[#allocation2 + $0x38] sm:$0xff] %vm966_vm0, %v7028_v26  ;;  %v6011_v32 = vadd.f32 %v5945_v30, %v5712_v28  ;;  %7353 = vrot.lane.b32.xlu0 %v7221_v27, %s11724_s13  ;;  %5910 = vmatprep.mubr.bf16.mxu1 %v11702_v6  ;;  %v5949_v6 = vld [vmem:[#allocation2 + $0x70] sm:$0xff] }
 0x3c6   : > { %v6963_v33 = vld [vmem:[#allocation2 + $0x40] sm:$0xff]  ;;  %v5714_v35 = vpop.f32.mrf.mxu1  ;;  %v6726_v36 = vpop.f32.mrf.mxu0  ;;  %6922 = vmatprep.mubr.bf16.mxu0 %v11705_v25 }
 0x3c7   : > { %6077 = vst.msk [vmem:[#allocation2 + $0x50] sm:$0xff] %vm966_vm0, %v6011_v32  ;;  %v7029_v38 = vadd.f32 %v6963_v33, %v6724_v31  ;;  %v5952_v36 = vld [vmem:[#allocation2 + $0x88] sm:$0xff] }
 0x3c8   : > { %v7222_v39 = vld [vmem:[#allocation2 + $0x29] sm:$0xff]  ;;  %v5715_v40 = vpop.f32.mrf.mxu1  ;;  %v6727_v46 = vpop.f32.mrf.mxu0 }
 0x3c9   : > { %7095 = vst.msk [vmem:[#allocation2 + $0x40] sm:$0xff] %vm966_vm0, %v7029_v38  ;;  %v6012_v41 = vadd.f32 %v5946_v43, %v5715_v40  ;;  %7355 = vrot.lane.b32.xlu1 %v7222_v39, %s11724_s13  ;;  %v11712_v39 = vld [vmem:[%s11782_s24 + $0x2c0] ss:$8 sps:$4 sm:$0xff]   ;;  %s11725_s24 = smov 112  }
 0x3ca   : > { %v6964_v51 = vld [vmem:[#allocation2 + $0x48] sm:$0xff]  ;;  %v5717_v54 = vpop.f32.mrf.mxu1  ;;  %v6729_v56 = vpop.f32.mrf.mxu0 }
 0x3cb   : > { %6078 = vst.msk [vmem:[#allocation2 + $0x58] sm:$0xff] %vm966_vm0, %v6012_v41  ;;  %v7030_v60 = vadd.f32 %v6964_v51, %v6727_v46  ;;  %v5953_v56 = vld [vmem:[#allocation2 + $0x90] sm:$0xff] }
 0x3cc   : > { %v7223_v62 = vld [vmem:[#allocation2 + $0x31] sm:$0xff]  ;;  %v5720_v47 = vpop.f32.mrf.mxu1  ;;  %5911 = vmatmul.mubr.bf16.gmra.mxu1 %v11700_v21  ;;  %v6732_v63 = vpop.f32.mrf.mxu0  ;;  %6923 = vmatmul.mubr.bf16.gmra.mxu0 %v11703_v48 }
 0x3cd   : > { %7096 = vst.msk [vmem:[#allocation2 + $0x48] sm:$0xff] %vm966_vm0, %v7030_v60  ;;  %v6013_v34 = vadd.f32 %v5947_v29, %v5720_v47  ;;  %7357 = vrot.lane.b32.xlu0 %v7223_v62, %s11724_s13  ;;  %5918 = vmatprep.mubr.bf16.mxu1 %v11705_v25  ;;  %v5951_v25 = vld [vmem:[#allocation2 + $0x80] sm:$0xff] }
 0x3ce   : > { %v6965_v37 = vld [vmem:[#allocation2 + $0x50] sm:$0xff]  ;;  %v5722_v42 = vpop.f32.mrf.mxu1  ;;  %v6734_v49 = vpop.f32.mrf.mxu0  ;;  %6930 = vmatprep.mubr.bf16.mxu0 %v11708_v44 }
 0x3cf   : > { %6079 = vst.msk [vmem:[#allocation2 + $0x60] sm:$0xff] %vm966_vm0, %v6013_v34  ;;  %v7031_v45 = vadd.f32 %v6965_v37, %v6732_v63  ;;  %v5954_v42 = vld [vmem:[#allocation2 + $0x98] sm:$0xff] }
 0x3d0   : > { %v7224_v0 = vld [vmem:[#allocation2 + $0x39] sm:$0xff]  ;;  %v5723_v52 = vpop.f32.mrf.mxu1  ;;  %v6735_v53 = vpop.f32.mrf.mxu0 }
 0x3d1   : > { %7097 = vst.msk [vmem:[#allocation2 + $0x50] sm:$0xff] %vm966_vm0, %v7031_v45  ;;  %v6014_v3 = vadd.f32 %v5948_v50, %v5723_v52  ;;  %7359 = vrot.lane.b32.xlu1 %v7224_v0, %s11724_s13 }
 0x3d2   : > { %v6966_v59 = vld [vmem:[#allocation2 + $0x58] sm:$0xff]  ;;  %v5725_v61 = vpop.f32.mrf.mxu1  ;;  %v6737_v5 = vpop.f32.mrf.mxu0 }
 0x3d3   : > { %6080 = vst.msk [vmem:[#allocation2 + $0x68] sm:$0xff] %vm966_vm0, %v6014_v3  ;;  %v7032_v7 = vadd.f32 %v6966_v59, %v6735_v53  ;;  %v5955_v59 = vld [vmem:[#allocation2 + $0xa0] sm:$0xff] }
 0x3d4   : > { %v7225_v4 = vld [vmem:[#allocation2 + $0x41] sm:$0xff]  ;;  %v5728_v57 = vpop.f32.mrf.mxu1  ;;  %5919 = vmatmul.mubr.bf16.gmra.mxu1 %v11703_v48  ;;  %v6740_v8 = vpop.f32.mrf.mxu0  ;;  %6931 = vmatmul.mubr.bf16.gmra.mxu0 %v11706_v2 }
 0x3d5   : > { %7098 = vst.msk [vmem:[#allocation2 + $0x58] sm:$0xff] %vm966_vm0, %v7032_v7  ;;  %v6015_v9 = vadd.f32 %v5949_v6, %v5728_v57  ;;  %7361 = vrot.lane.b32.xlu0 %v7225_v4, %s11724_s13  ;;  %5926 = vmatprep.mubr.bf16.mxu1 %v11708_v44 }
 0x3d6   : > { %v6967_v10 = vld [vmem:[#allocation2 + $0x60] sm:$0xff]  ;;  %v5730_v11 = vpop.f32.mrf.mxu1  ;;  %v6742_v12 = vpop.f32.mrf.mxu0  ;;  %6938 = vmatprep.mubr.bf16.mxu0 %v11711_v55 }
 0x3d7   : > { %6081 = vst.msk [vmem:[#allocation2 + $0x70] sm:$0xff] %vm966_vm0, %v6015_v9  ;;  %v7033_v13 = vadd.f32 %v6967_v10, %v6740_v8  ;;  %v5956_v9 = vld [vmem:[#allocation2 + $0xa8] sm:$0xff] }
 0x3d8   : > { %v7226_v14 = vld [vmem:[#allocation2 + $0x49] sm:$0xff]  ;;  %v5731_v58 = vpop.f32.mrf.mxu1  ;;  %v6743_v16 = vpop.f32.mrf.mxu0 }
 0x3d9   : > { %7099 = vst.msk [vmem:[#allocation2 + $0x60] sm:$0xff] %vm966_vm0, %v7033_v13  ;;  %v6016_v18 = vadd.f32 %v5950_v15, %v5731_v58  ;;  %7363 = vrot.lane.b32.xlu1 %v7226_v14, %s11724_s13 }
 0x3da   : > { %v6968_v20 = vld [vmem:[#allocation2 + $0x68] sm:$0xff]  ;;  %v5733_v21 = vpop.f32.mrf.mxu1  ;;  %v6745_v1 = vpop.f32.mrf.mxu0 }
 0x3db   : > { %6082 = vst.msk [vmem:[#allocation2 + $0x78] sm:$0xff] %vm966_vm0, %v6016_v18  ;;  %v7034_v22 = vadd.f32 %v6968_v20, %v6743_v16 }
 0x3dc   : > { %v7227_v23 = vld [vmem:[#allocation2 + $0x51] sm:$0xff]  ;;  %v5736_v24 = vpop.f32.mrf.mxu1  ;;  %5927 = vmatmul.mubr.bf16.gmra.mxu1 %v11706_v2  ;;  %v6748_v26 = vpop.f32.mrf.mxu0  ;;  %6939 = vmatmul.mubr.bf16.gmra.mxu0 %v11709_v17 }
 0x3dd   : > { %7100 = vst.msk [vmem:[#allocation2 + $0x68] sm:$0xff] %vm966_vm0, %v7034_v22  ;;  %v6017_v27 = vadd.f32 %v5951_v25, %v5736_v24  ;;  %7365 = vrot.lane.b32.xlu0 %v7227_v23, %s11724_s13  ;;  %6946 = vmatprep.mubr.bf16.mxu0 %v11714_v19  ;;  %v5957_v17 = vld [vmem:[#allocation2 + $0xb0] sm:$0xff]  ;;  %v5958_v25 = vld [vmem:[#allocation2 + $0xb8] sm:$0xff] }
 0x3de   : > { %v6969_v28 = vld [vmem:[#allocation2 + $0x70] sm:$0xff]  ;;  %v5738_v30 = vpop.f32.mrf.mxu1  ;;  %v6750_v31 = vpop.f32.mrf.mxu0 }
 0x3df   : > { %6083 = vst.msk [vmem:[#allocation2 + $0x80] sm:$0xff] %vm966_vm0, %v6017_v27  ;;  %v7035_v32 = vadd.f32 %v6969_v28, %v6748_v26 }
 0x3e0   : > { %v7228_v33 = vld [vmem:[#allocation2 + $0x59] sm:$0xff]  ;;  %v5739_v35 = vpop.f32.mrf.mxu1  ;;  %v6751_v38 = vpop.f32.mrf.mxu0 }
 0x3e1   : > { %7101 = vst.msk [vmem:[#allocation2 + $0x70] sm:$0xff] %vm966_vm0, %v7035_v32  ;;  %v6018_v40 = vadd.f32 %v5952_v36, %v5739_v35  ;;  %7367 = vrot.lane.b32.xlu1 %v7228_v33, %s11724_s13  ;;  %v5959_v36 = vld [vmem:[#allocation2 + $0xc0] sm:$0xff] }
 0x3e2   : > { %v6970_v43 = vld [vmem:[#allocation2 + $0x78] sm:$0xff]  ;;  %v5741_v46 = vpop.f32.mrf.mxu1  ;;  %v6753_v48 = vpop.f32.mrf.mxu0 }
 0x3e3   : > { %6084 = vst.msk [vmem:[#allocation2 + $0x88] sm:$0xff] %vm966_vm0, %v6018_v40  ;;  %v7036_v41 = vadd.f32 %v6970_v43, %v6751_v38 }
 0x3e4   : > { %v7229_v51 = vld [vmem:[#allocation2 + $0x61] sm:$0xff]  ;;  %v5744_v54 = vpop.f32.mrf.mxu1  ;;  %v6756_v44 = vpop.f32.mrf.mxu0  ;;  %6947 = vmatmul.mubr.bf16.gmra.mxu0 %v11712_v39 }
 0x3e5   : > { %7102 = vst.msk [vmem:[#allocation2 + $0x78] sm:$0xff] %vm966_vm0, %v7036_v41  ;;  %v6019_v60 = vadd.f32 %v5953_v56, %v5744_v54  ;;  %7369 = vrot.lane.b32.xlu0 %v7229_v51, %s11724_s13  ;;  %v5960_v54 = vld [vmem:[#allocation2 + $0xc8] sm:$0xff] }
 0x3e6   : > { %v6971_v62 = vld [vmem:[#allocation2 + $0x80] sm:$0xff]  ;;  %v5746_v47 = vpop.f32.mrf.mxu1  ;;  %v6758_v29 = vpop.f32.mrf.mxu0 }
 0x3e7   : > { %6085 = vst.msk [vmem:[#allocation2 + $0x90] sm:$0xff] %vm966_vm0, %v6019_v60  ;;  %v7037_v63 = vadd.f32 %v6971_v62, %v6756_v44 }
 0x3e8   : > { %v7230_v34 = vld [vmem:[#allocation2 + $0x69] sm:$0xff]  ;;  %v5747_v37 = vpop.f32.mrf.mxu1  ;;  %v6759_v49 = vpop.f32.mrf.mxu0 }
 0x3e9   : > { %7103 = vst.msk [vmem:[#allocation2 + $0x80] sm:$0xff] %vm966_vm0, %v7037_v63  ;;  %v6020_v45 = vadd.f32 %v5954_v42, %v5747_v37  ;;  %7371 = vrot.lane.b32.xlu1 %v7230_v34, %s11724_s13  ;;  %v5961_v37 = vld [vmem:[#allocation2 + $0xd0] sm:$0xff] }
 0x3ea   : > { %v6972_v0 = vld [vmem:[#allocation2 + $0x88] sm:$0xff]  ;;  %v5749_v52 = vpop.f32.mrf.mxu1  ;;  %v6761_v50 = vpop.f32.mrf.mxu0 }
 0x3eb   : > { %6086 = vst.msk [vmem:[#allocation2 + $0x98] sm:$0xff] %vm966_vm0, %v6020_v45  ;;  %v7038_v53 = vadd.f32 %v6972_v0, %v6759_v49 }
 0x3ec   : > { %v7231_v2 = vld [vmem:[#allocation2 + $0x71] sm:$0xff]  ;;  %v5752_v3 = vpop.f32.mrf.mxu1  ;;  %v6764_v61 = vpop.f32.mrf.mxu0 }
 0x3ed   : > { %7104 = vst.msk [vmem:[#allocation2 + $0x88] sm:$0xff] %vm966_vm0, %v7038_v53  ;;  %v6021_v5 = vadd.f32 %v5955_v59, %v5752_v3  ;;  %7373 = vrot.lane.b32.xlu0 %v7231_v2, %s11724_s13  ;;  %v5962_v3 = vld [vmem:[#allocation2 + $0xd8] sm:$0xff] }
 0x3ee   : > { %v6973_v55 = vld [vmem:[#allocation2 + $0x90] sm:$0xff]  ;;  %v5754_v7 = vpop.f32.mrf.mxu1  ;;  %v6766_v4 = vpop.f32.mrf.mxu0 }
 0x3ef   : > { %6087 = vst.msk [vmem:[#allocation2 + $0xa0] sm:$0xff] %vm966_vm0, %v6021_v5  ;;  %v7039_v57 = vadd.f32 %v6973_v55, %v6764_v61 }
 0x3f0   : > { %v7232_v6 = vld [vmem:[#allocation2 + $0x79] sm:$0xff]  ;;  %v5755_v8 = vpop.f32.mrf.mxu1  ;;  %v6767_v10 = vpop.f32.mrf.mxu0 }
 0x3f1   : > { %7105 = vst.msk [vmem:[#allocation2 + $0x90] sm:$0xff] %vm966_vm0, %v7039_v57  ;;  %v6022_v11 = vadd.f32 %v5956_v9, %v5755_v8  ;;  %7375 = vrot.lane.b32.xlu1 %v7232_v6, %s11724_s13  ;;  %v5963_v8 = vld [vmem:[#allocation2 + $0xe0] sm:$0xff] }
 0x3f2   : > { %v6974_v12 = vld [vmem:[#allocation2 + $0x98] sm:$0xff]  ;;  %v5757_v13 = vpop.f32.mrf.mxu1  ;;  %v6769_v14 = vpop.f32.mrf.mxu0 }
 0x3f3   : > { %6088 = vst.msk [vmem:[#allocation2 + $0xa8] sm:$0xff] %vm966_vm0, %v6022_v11  ;;  %v7040_v58 = vadd.f32 %v6974_v12, %v6767_v10 }
 0x3f4   : > { %v7233_v15 = vld [vmem:[#allocation2 + $0x81] sm:$0xff]  ;;  %v5760_v16 = vpop.f32.mrf.mxu1  ;;  %v6772_v18 = vpop.f32.mrf.mxu0 }
 0x3f5   : > { %7106 = vst.msk [vmem:[#allocation2 + $0x98] sm:$0xff] %vm966_vm0, %v7040_v58  ;;  %v6023_v19 = vadd.f32 %v5957_v17, %v5760_v16  ;;  %7377 = vrot.lane.b32.xlu0 %v7233_v15, %s11724_s13  ;;  %v5964_v16 = vld [vmem:[#allocation2 + $0xe8] sm:$0xff] }
 0x3f6   : > { %v6975_v20 = vld [vmem:[#allocation2 + $0xa0] sm:$0xff]  ;;  %v5762_v21 = vpop.f32.mrf.mxu1  ;;  %v6774_v1 = vpop.f32.mrf.mxu0 }
 0x3f7   : > { %6089 = vst.msk [vmem:[#allocation2 + $0xb0] sm:$0xff] %vm966_vm0, %v6023_v19  ;;  %v7041_v22 = vadd.f32 %v6975_v20, %v6772_v18 }
 0x3f8   : > { %v7234_v23 = vld [vmem:[#allocation2 + $0x89] sm:$0xff]  ;;  %v5763_v24 = vpop.f32.mrf.mxu1  ;;  %v6775_v26 = vpop.f32.mrf.mxu0 }
 0x3f9   : > { %7107 = vst.msk [vmem:[#allocation2 + $0xa0] sm:$0xff] %vm966_vm0, %v7041_v22  ;;  %v6024_v27 = vadd.f32 %v5958_v25, %v5763_v24  ;;  %7379 = vrot.lane.b32.xlu1 %v7234_v23, %s11724_s13  ;;  %v5965_v24 = vld [vmem:[#allocation2 + $0xf0] sm:$0xff] }
 0x3fa   : > { %v6976_v28 = vld [vmem:[#allocation2 + $0xa8] sm:$0xff]  ;;  %v5765_v30 = vpop.f32.mrf.mxu1  ;;  %v6777_v31 = vpop.f32.mrf.mxu0 }
 0x3fb   : > { %6090 = vst.msk [vmem:[#allocation2 + $0xb8] sm:$0xff] %vm966_vm0, %v6024_v27  ;;  %v7042_v32 = vadd.f32 %v6976_v28, %v6775_v26 }
 0x3fc   : > { %v7235_v33 = vld [vmem:[#allocation2 + $0x91] sm:$0xff]  ;;  %v5768_v35 = vpop.f32.mrf.mxu1  ;;  %v6780_v38 = vpop.f32.mrf.mxu0 }
 0x3fd   : > { %7108 = vst.msk [vmem:[#allocation2 + $0xa8] sm:$0xff] %vm966_vm0, %v7042_v32  ;;  %v6025_v39 = vadd.f32 %v5959_v36, %v5768_v35  ;;  %7381 = vrot.lane.b32.xlu0 %v7235_v33, %s11724_s13  ;;  %v5966_v35 = vld [vmem:[#allocation2 + $0xf8] sm:$0xff] }
 0x3fe   : > { %v6977_v40 = vld [vmem:[#allocation2 + $0xb0] sm:$0xff]  ;;  %v5770_v43 = vpop.f32.mrf.mxu1  ;;  %v6782_v46 = vpop.f32.mrf.mxu0 }
 0x3ff   : > { %6091 = vst.msk [vmem:[#allocation2 + $0xc0] sm:$0xff] %vm966_vm0, %v6025_v39  ;;  %v7043_v48 = vadd.f32 %v6977_v40, %v6780_v38 }
 0x400   : > { %v7236_v41 = vld [vmem:[#allocation2 + $0x99] sm:$0xff]  ;;  %v5771_v51 = vpop.f32.mrf.mxu1  ;;  %v6783_v56 = vpop.f32.mrf.mxu0 }
 0x401   : > { %7109 = vst.msk [vmem:[#allocation2 + $0xb0] sm:$0xff] %vm966_vm0, %v7043_v48  ;;  %v6026_v44 = vadd.f32 %v5960_v54, %v5771_v51  ;;  %7383 = vrot.lane.b32.xlu1 %v7236_v41, %s11724_s13  ;;  %v5967_v51 = vld [vmem:[#allocation2 + $0x100] sm:$0xff] }
 0x402   : > { %v6978_v60 = vld [vmem:[#allocation2 + $0xb8] sm:$0xff]  ;;  %v5773_v62 = vpop.f32.mrf.mxu1  ;;  %v6785_v47 = vpop.f32.mrf.mxu0 }
 0x403   : > { %6092 = vst.msk [vmem:[#allocation2 + $0xc8] sm:$0xff] %vm966_vm0, %v6026_v44  ;;  %v7044_v29 = vadd.f32 %v6978_v60, %v6783_v56 }
 0x404   : > { %v7237_v63 = vld [vmem:[#allocation2 + $0xa1] sm:$0xff]  ;;  %v5776_v34 = vpop.f32.mrf.mxu1  ;;  %v6788_v42 = vpop.f32.mrf.mxu0 }
 0x405   : > { %7110 = vst.msk [vmem:[#allocation2 + $0xb8] sm:$0xff] %vm966_vm0, %v7044_v29  ;;  %v6027_v49 = vadd.f32 %v5961_v37, %v5776_v34  ;;  %7385 = vrot.lane.b32.xlu0 %v7237_v63, %s11724_s13  ;;  %v5968_v34 = vld [vmem:[#allocation2 + $0x108] sm:$0xff] }
 0x406   : > { %v6979_v45 = vld [vmem:[#allocation2 + $0xc0] sm:$0xff]  ;;  %v5778_v0 = vpop.f32.mrf.mxu1  ;;  %v6790_v52 = vpop.f32.mrf.mxu0 }
 0x407   : > { %6093 = vst.msk [vmem:[#allocation2 + $0xd0] sm:$0xff] %vm966_vm0, %v6027_v49  ;;  %v7045_v50 = vadd.f32 %v6979_v45, %v6788_v42 }
 0x408   : > { %v7238_v53 = vld [vmem:[#allocation2 + $0xa9] sm:$0xff]  ;;  %v5779_v2 = vpop.f32.mrf.mxu1  ;;  %v6791_v59 = vpop.f32.mrf.mxu0 }
 0x409   : > { %7111 = vst.msk [vmem:[#allocation2 + $0xc0] sm:$0xff] %vm966_vm0, %v7045_v50  ;;  %v6028_v61 = vadd.f32 %v5962_v3, %v5779_v2  ;;  %7387 = vrot.lane.b32.xlu1 %v7238_v53, %s11724_s13  ;;  %v5969_v2 = vld [vmem:[#allocation2 + $0x110] sm:$0xff] }
 0x40a   : > { %v6980_v5 = vld [vmem:[#allocation2 + $0xc8] sm:$0xff]  ;;  %v5781_v55 = vpop.f32.mrf.mxu1  ;;  %v6793_v7 = vpop.f32.mrf.mxu0 }
 0x40b   : > { %6094 = vst.msk [vmem:[#allocation2 + $0xd8] sm:$0xff] %vm966_vm0, %v6028_v61  ;;  %v7046_v4 = vadd.f32 %v6980_v5, %v6791_v59 }
 0x40c   : > { %v7239_v57 = vld [vmem:[#allocation2 + $0xb1] sm:$0xff]  ;;  %v5784_v6 = vpop.f32.mrf.mxu1  ;;  %v6796_v9 = vpop.f32.mrf.mxu0 }
 0x40d   : > { %7112 = vst.msk [vmem:[#allocation2 + $0xc8] sm:$0xff] %vm966_vm0, %v7046_v4  ;;  %v6029_v10 = vadd.f32 %v5963_v8, %v5784_v6  ;;  %7389 = vrot.lane.b32.xlu0 %v7239_v57, %s11724_s13  ;;  %v7153_v4 = vld [vmem:[#allocation2] sm:$0xff] }
 0x40e   : > { %v6981_v11 = vld [vmem:[#allocation2 + $0xd0] sm:$0xff]  ;;  %v5786_v12 = vpop.f32.mrf.mxu1  ;;  %v6798_v13 = vpop.f32.mrf.mxu0 }
 0x40f   : > { %6095 = vst.msk [vmem:[#allocation2 + $0xe0] sm:$0xff] %vm966_vm0, %v6029_v10  ;;  %v7047_v14 = vadd.f32 %v6981_v11, %v6796_v9  ;;  %v5970_v10 = vld [vmem:[#allocation2 + $0x118] sm:$0xff] }
 0x410   : > { %v7240_v58 = vld [vmem:[#allocation2 + $0xb9] sm:$0xff]  ;;  %v5787_v15 = vpop.f32.mrf.mxu1  ;;  %v6799_v17 = vpop.f32.mrf.mxu0 }
 0x411   : > { %7113 = vst.msk [vmem:[#allocation2 + $0xd0] sm:$0xff] %vm966_vm0, %v7047_v14  ;;  %v6030_v18 = vadd.f32 %v5964_v16, %v5787_v15  ;;  %7391 = vrot.lane.b32.xlu1 %v7240_v58, %s11724_s13  ;;  %v7154_v16 = vld [vmem:[#allocation2 + $0x8] sm:$0xff] }
 0x412   : > { %v6982_v19 = vld [vmem:[#allocation2 + $0xd8] sm:$0xff]  ;;  %v5789_v20 = vpop.f32.mrf.mxu1  ;;  %v6801_v21 = vpop.f32.mrf.mxu0 }
 0x413   : > { %6096 = vst.msk [vmem:[#allocation2 + $0xe8] sm:$0xff] %vm966_vm0, %v6030_v18  ;;  %v7048_v1 = vadd.f32 %v6982_v19, %v6799_v17  ;;  %v5971_v21 = vld [vmem:[#allocation2 + $0x120] sm:$0xff] }
 0x414   : > { %v7241_v22 = vld [vmem:[#allocation2 + $0xc1] sm:$0xff]  ;;  %v5792_v23 = vpop.f32.mrf.mxu1  ;;  %v6804_v25 = vpop.f32.mrf.mxu0 }
 0x415   : > { %7114 = vst.msk [vmem:[#allocation2 + $0xd8] sm:$0xff] %vm966_vm0, %v7048_v1  ;;  %v6031_v26 = vadd.f32 %v5965_v24, %v5792_v23  ;;  %7393 = vrot.lane.b32.xlu0 %v7241_v22, %s11724_s13 }
 0x416   : > { %v6983_v27 = vld [vmem:[#allocation2 + $0xe0] sm:$0xff]  ;;  %v5794_v28 = vpop.f32.mrf.mxu1  ;;  %v6806_v30 = vpop.f32.mrf.mxu0 }
 0x417   : > { %6097 = vst.msk [vmem:[#allocation2 + $0xf0] sm:$0xff] %vm966_vm0, %v6031_v26  ;;  %v7049_v31 = vadd.f32 %v6983_v27, %v6804_v25  ;;  %v7155_v27 = vld [vmem:[#allocation2 + $0x10] sm:$0xff] }
 0x418   : > { %v7242_v32 = vld [vmem:[#allocation2 + $0xc9] sm:$0xff]  ;;  %v5795_v33 = vpop.f32.mrf.mxu1  ;;  %v6807_v36 = vpop.f32.mrf.mxu0 }
 0x419   : > { %7115 = vst.msk [vmem:[#allocation2 + $0xe0] sm:$0xff] %vm966_vm0, %v7049_v31  ;;  %v6032_v38 = vadd.f32 %v5966_v35, %v5795_v33  ;;  %7395 = vrot.lane.b32.xlu1 %v7242_v32, %s11724_s13  ;;  %v5972_v33 = vld [vmem:[#allocation2 + $0x128] sm:$0xff] }
 0x41a   : > { %v6984_v39 = vld [vmem:[#allocation2 + $0xe8] sm:$0xff]  ;;  %v5797_v40 = vpop.f32.mrf.mxu1  ;;  %v6809_v43 = vpop.f32.mrf.mxu0 }
 0x41b   : > { %6098 = vst.msk [vmem:[#allocation2 + $0xf8] sm:$0xff] %vm966_vm0, %v6032_v38  ;;  %v7050_v46 = vadd.f32 %v6984_v39, %v6807_v36 }
 0x41c   : > { %v7243_v48 = vld [vmem:[#allocation2 + $0xd1] sm:$0xff]  ;;  %v5800_v41 = vpop.f32.mrf.mxu1  ;;  %v6812_v54 = vpop.f32.mrf.mxu0 }
 0x41d   : > { %7116 = vst.msk [vmem:[#allocation2 + $0xe8] sm:$0xff] %vm966_vm0, %v7050_v46  ;;  %v6033_v56 = vadd.f32 %v5967_v51, %v5800_v41  ;;  %7397 = vrot.lane.b32.xlu0 %v7243_v48, %s11724_s13  ;;  %v7156_v46 = vld [vmem:[#allocation2 + $0x18] sm:$0xff] }
 0x41e   : > { %v6985_v44 = vld [vmem:[#allocation2 + $0xf0] sm:$0xff]  ;;  %v5802_v60 = vpop.f32.mrf.mxu1  ;;  %v6814_v62 = vpop.f32.mrf.mxu0 }
 0x41f   : > { %6099 = vst.msk [vmem:[#allocation2 + $0x100] sm:$0xff] %vm966_vm0, %v6033_v56  ;;  %v7051_v47 = vadd.f32 %v6985_v44, %v6812_v54  ;;  %v5973_v56 = vld [vmem:[#allocation2 + $0x130] sm:$0xff] }
 0x420   : > { %v7244_v29 = vld [vmem:[#allocation2 + $0xd9] sm:$0xff]  ;;  %v5803_v63 = vpop.f32.mrf.mxu1  ;;  %v6815_v37 = vpop.f32.mrf.mxu0 }
 0x421   : > { %7117 = vst.msk [vmem:[#allocation2 + $0xf0] sm:$0xff] %vm966_vm0, %v7051_v47  ;;  %v6034_v42 = vadd.f32 %v5968_v34, %v5803_v63  ;;  %7399 = vrot.lane.b32.xlu1 %v7244_v29, %s11724_s13  ;;  %v7157_v34 = vld [vmem:[#allocation2 + $0x20] sm:$0xff] }
 0x422   : > { %v6986_v49 = vld [vmem:[#allocation2 + $0xf8] sm:$0xff]  ;;  %v5805_v45 = vpop.f32.mrf.mxu1  ;;  %v6817_v0 = vpop.f32.mrf.mxu0 }
 0x423   : > { %6100 = vst.msk [vmem:[#allocation2 + $0x108] sm:$0xff] %vm966_vm0, %v6034_v42  ;;  %v7052_v52 = vadd.f32 %v6986_v49, %v6815_v37  ;;  %v5974_v0 = vld [vmem:[#allocation2 + $0x138] sm:$0xff] }
 0x424   : > { %v7245_v50 = vld [vmem:[#allocation2 + $0xe1] sm:$0xff]  ;;  %v5808_v53 = vpop.f32.mrf.mxu1  ;;  %v6820_v3 = vpop.f32.mrf.mxu0 }
 0x425   : > { %7118 = vst.msk [vmem:[#allocation2 + $0xf8] sm:$0xff] %vm966_vm0, %v7052_v52  ;;  %v6035_v59 = vadd.f32 %v5969_v2, %v5808_v53  ;;  %7401 = vrot.lane.b32.xlu0 %v7245_v50, %s11724_s13 }
 0x426   : > { %v6987_v61 = vld [vmem:[#allocation2 + $0x100] sm:$0xff]  ;;  %v5810_v5 = vpop.f32.mrf.mxu1  ;;  %v6822_v55 = vpop.f32.mrf.mxu0 }
 0x427   : > { %6101 = vst.msk [vmem:[#allocation2 + $0x110] sm:$0xff] %vm966_vm0, %v6035_v59  ;;  %v7053_v7 = vadd.f32 %v6987_v61, %v6820_v3  ;;  %v7346_v57 = vpop.permute.xlu0 %7345  ;;  %v7158_v5 = vld [vmem:[#allocation2 + $0x28] sm:$0xff] }
 0x428   : > { %v7246_v6 = vld [vmem:[#allocation2 + $0xe9] sm:$0xff]  ;;  %v7537_v8 = vadd.f32 %v7346_v57, %v7153_v4  ;;  %v5811_v9 = vpop.f32.mrf.mxu1  ;;  %v6823_v11 = vpop.f32.mrf.mxu0 }
 0x429   : > { %7119 = vst.msk [vmem:[#allocation2 + $0x100] sm:$0xff] %vm966_vm0, %v7053_v7  ;;  %v6036_v12 = vadd.f32 %v5970_v10, %v5811_v9  ;;  %7403 = vrot.lane.b32.xlu1 %v7246_v6, %s11724_s13  ;;  %v5975_v6 = vld [vmem:[#allocation2 + $0x140] sm:$0xff] }
 0x42a   : > { %7602 = vst.msk [vmem:[#allocation2] sm:$0xff] %vm7601_vm1, %v7537_v8  ;;  %v6988_v13 = vld [vmem:[#allocation2 + $0x108] sm:$0xff]  ;;  %v5813_v14 = vpop.f32.mrf.mxu1  ;;  %v6825_v58 = vpop.f32.mrf.mxu0 }
 0x42b   : > { %6102 = vst.msk [vmem:[#allocation2 + $0x118] sm:$0xff] %vm966_vm0, %v6036_v12  ;;  %v7054_v15 = vadd.f32 %v6988_v13, %v6823_v11  ;;  %v7348_v17 = vpop.permute.xlu0 %7347  ;;  %v7159_v58 = vld [vmem:[#allocation2 + $0x30] sm:$0xff] }
 0x42c   : > { %v7247_v18 = vld [vmem:[#allocation2 + $0xf1] sm:$0xff]  ;;  %v7538_v19 = vadd.f32 %v7348_v17, %v7154_v16  ;;  %v5816_v20 = vpop.f32.mrf.mxu1  ;;  %v6828_v1 = vpop.f32.mrf.mxu0 }
 0x42d   : > { %7120 = vst.msk [vmem:[#allocation2 + $0x108] sm:$0xff] %vm966_vm0, %v7054_v15  ;;  %v6037_v22 = vadd.f32 %v5971_v21, %v5816_v20  ;;  %7405 = vrot.lane.b32.xlu0 %v7247_v18, %s11724_s13 }
 0x42e   : > { %7603 = vst.msk [vmem:[#allocation2 + $0x8] sm:$0xff] %vm7601_vm1, %v7538_v19  ;;  %v6989_v23 = vld [vmem:[#allocation2 + $0x110] sm:$0xff]  ;;  %v5818_v24 = vpop.f32.mrf.mxu1  ;;  %v6830_v25 = vpop.f32.mrf.mxu0  ;;  %v5976_v19 = vld [vmem:[#allocation2 + $0x148] sm:$0xff] }
 0x42f   : > { %6103 = vst.msk [vmem:[#allocation2 + $0x120] sm:$0xff] %vm966_vm0, %v6037_v22  ;;  %v7055_v26 = vadd.f32 %v6989_v23, %v6828_v1  ;;  %v7350_v28 = vpop.permute.xlu1 %7349 }
 0x430   : > { %v7248_v30 = vld [vmem:[#allocation2 + $0xf9] sm:$0xff]  ;;  %v7539_v31 = vadd.f32 %v7350_v28, %v7155_v27  ;;  %v5819_v32 = vpop.f32.mrf.mxu1  ;;  %v6831_v35 = vpop.f32.mrf.mxu0 }
 0x431   : > { %7121 = vst.msk [vmem:[#allocation2 + $0x110] sm:$0xff] %vm966_vm0, %v7055_v26  ;;  %v6038_v36 = vadd.f32 %v5972_v33, %v5819_v32  ;;  %7407 = vrot.lane.b32.xlu1 %v7248_v30, %s11724_s13  ;;  %v7160_v26 = vld [vmem:[#allocation2 + $0x38] sm:$0xff]  ;;  %v5977_v32 = vld [vmem:[#allocation2 + $0x150] sm:$0xff] }
 0x432   : > { %7604 = vst.msk [vmem:[#allocation2 + $0x10] sm:$0xff] %vm7601_vm1, %v7539_v31  ;;  %v6990_v38 = vld [vmem:[#allocation2 + $0x118] sm:$0xff]  ;;  %v5821_v39 = vpop.f32.mrf.mxu1  ;;  %v6833_v40 = vpop.f32.mrf.mxu0 }
 0x433   : > { %6104 = vst.msk [vmem:[#allocation2 + $0x128] sm:$0xff] %vm966_vm0, %v6038_v36  ;;  %v7056_v43 = vadd.f32 %v6990_v38, %v6831_v35  ;;  %v7352_v48 = vpop.permute.xlu1 %7351 }
 0x434   : > { %v7249_v41 = vld [vmem:[#allocation2 + $0x101] sm:$0xff]  ;;  %v7540_v51 = vadd.f32 %v7352_v48, %v7156_v46  ;;  %v5824_v54 = vpop.f32.mrf.mxu1  ;;  %v6836_v44 = vpop.f32.mrf.mxu0 }
 0x435   : > { %7122 = vst.msk [vmem:[#allocation2 + $0x118] sm:$0xff] %vm966_vm0, %v7056_v43  ;;  %v6039_v60 = vadd.f32 %v5973_v56, %v5824_v54  ;;  %7409 = vrot.lane.b32.xlu0 %v7249_v41, %s11724_s13  ;;  %v7730_v50 = vld [vmem:[#allocation2 + $0x2] sm:$0xff]  ;;  %v5978_v56 = vld [vmem:[#allocation2 + $0x158] sm:$0xff] }
 0x436   : > { %7605 = vst.msk [vmem:[#allocation2 + $0x18] sm:$0xff] %vm7601_vm1, %v7540_v51  ;;  %v6991_v62 = vld [vmem:[#allocation2 + $0x120] sm:$0xff]  ;;  %v5826_v47 = vpop.f32.mrf.mxu1  ;;  %v6838_v29 = vpop.f32.mrf.mxu0 }
 0x437   : > { %6105 = vst.msk [vmem:[#allocation2 + $0x130] sm:$0xff] %vm966_vm0, %v6039_v60  ;;  %v7057_v63 = vadd.f32 %v6991_v62, %v6836_v44  ;;  %v7354_v37 = vpop.permute.xlu0 %7353  ;;  %v7161_v46 = vld [vmem:[#allocation2 + $0x40] sm:$0xff] }
 0x438   : > { %v7250_v42 = vld [vmem:[#allocation2 + $0x109] sm:$0xff]  ;;  %v7541_v49 = vadd.f32 %v7354_v37, %v7157_v34  ;;  %v5827_v45 = vpop.f32.mrf.mxu1  ;;  %v6839_v52 = vpop.f32.mrf.mxu0 }
 0x439   : > { %7123 = vst.msk [vmem:[#allocation2 + $0x120] sm:$0xff] %vm966_vm0, %v7057_v63  ;;  %v6040_v53 = vadd.f32 %v5974_v0, %v5827_v45  ;;  %7858 = vrot.lane.b32.xlu0 %v7730_v50, %s11725_s24  ;;  %7411 = vrot.lane.b32.xlu1 %v7250_v42, %s11724_s13  ;;  %v7731_v9 = vld [vmem:[#allocation2 + $0xa] sm:$0xff] }
 0x43a   : > { %7606 = vst.msk [vmem:[#allocation2 + $0x20] sm:$0xff] %vm7601_vm1, %v7541_v49  ;;  %v6992_v2 = vld [vmem:[#allocation2 + $0x128] sm:$0xff]  ;;  %v5829_v3 = vpop.f32.mrf.mxu1  ;;  %v6841_v59 = vpop.f32.mrf.mxu0 }
 0x43b   : > { %6106 = vst.msk [vmem:[#allocation2 + $0x138] sm:$0xff] %vm966_vm0, %v6040_v53  ;;  %v7058_v61 = vadd.f32 %v6992_v2, %v6839_v52  ;;  %v7356_v55 = vpop.permute.xlu1 %7355  ;;  %v7162_v37 = vld [vmem:[#allocation2 + $0x48] sm:$0xff]  ;;  %v5979_v52 = vld [vmem:[#allocation2 + $0x160] sm:$0xff] }
 0x43c   : > { %v7251_v7 = vld [vmem:[#allocation2 + $0x111] sm:$0xff]  ;;  %v7542_v4 = vadd.f32 %v7356_v55, %v7158_v5  ;;  %v5832_v57 = vpop.f32.mrf.mxu1  ;;  %v6844_v8 = vpop.f32.mrf.mxu0 }
 0x43d   : > { %7124 = vst.msk [vmem:[#allocation2 + $0x128] sm:$0xff] %vm966_vm0, %v7058_v61  ;;  %v6041_v10 = vadd.f32 %v5975_v6, %v5832_v57  ;;  %7860 = vrot.lane.b32.xlu1 %v7731_v9, %s11725_s24  ;;  %7413 = vrot.lane.b32.xlu0 %v7251_v7, %s11724_s13  ;;  %v7732_v21 = vld [vmem:[#allocation2 + $0x12] sm:$0xff] }
 0x43e   : > { %7607 = vst.msk [vmem:[#allocation2 + $0x28] sm:$0xff] %vm7601_vm1, %v7542_v4  ;;  %v6993_v11 = vld [vmem:[#allocation2 + $0x130] sm:$0xff]  ;;  %v5834_v12 = vpop.f32.mrf.mxu1  ;;  %v6846_v13 = vpop.f32.mrf.mxu0 }
 0x43f   : > { %6107 = vst.msk [vmem:[#allocation2 + $0x140] sm:$0xff] %vm966_vm0, %v6041_v10  ;;  %v7059_v14 = vadd.f32 %v6993_v11, %v6844_v8  ;;  %v7358_v15 = vpop.permute.xlu0 %7357  ;;  %v7163_v55 = vld [vmem:[#allocation2 + $0x50] sm:$0xff]  ;;  %v5980_v8 = vld [vmem:[#allocation2 + $0x168] sm:$0xff] }
 0x440   : > { %v7252_v16 = vld [vmem:[#allocation2 + $0x119] sm:$0xff]  ;;  %v7543_v17 = vadd.f32 %v7358_v15, %v7159_v58  ;;  %v5835_v18 = vpop.f32.mrf.mxu1  ;;  %v6847_v20 = vpop.f32.mrf.mxu0 }
 0x441   : > { %7125 = vst.msk [vmem:[#allocation2 + $0x130] sm:$0xff] %vm966_vm0, %v7059_v14  ;;  %v6042_v1 = vadd.f32 %v5976_v19, %v5835_v18  ;;  %7862 = vrot.lane.b32.xlu0 %v7732_v21, %s11725_s24  ;;  %7415 = vrot.lane.b32.xlu1 %v7252_v16, %s11724_s13  ;;  %v7733_v35 = vld [vmem:[#allocation2 + $0x1a] sm:$0xff] }
 0x442   : > { %7608 = vst.msk [vmem:[#allocation2 + $0x30] sm:$0xff] %vm7601_vm1, %v7543_v17  ;;  %v6994_v22 = vld [vmem:[#allocation2 + $0x138] sm:$0xff]  ;;  %v5837_v23 = vpop.f32.mrf.mxu1  ;;  %v6849_v24 = vpop.f32.mrf.mxu0 }
 0x443   : > { %6108 = vst.msk [vmem:[#allocation2 + $0x148] sm:$0xff] %vm966_vm0, %v6042_v1  ;;  %v7060_v25 = vadd.f32 %v6994_v22, %v6847_v20  ;;  %v7360_v27 = vpop.permute.xlu1 %7359  ;;  %v7164_v15 = vld [vmem:[#allocation2 + $0x58] sm:$0xff]  ;;  %v5981_v20 = vld [vmem:[#allocation2 + $0x170] sm:$0xff] }
 0x444   : > { %v7253_v28 = vld [vmem:[#allocation2 + $0x121] sm:$0xff]  ;;  %v7544_v30 = vadd.f32 %v7360_v27, %v7160_v26  ;;  %v5840_v31 = vpop.f32.mrf.mxu1  ;;  %v6852_v33 = vpop.f32.mrf.mxu0 }
 0x445   : > { %7126 = vst.msk [vmem:[#allocation2 + $0x138] sm:$0xff] %vm966_vm0, %v7060_v25  ;;  %v6043_v36 = vadd.f32 %v5977_v32, %v5840_v31  ;;  %7864 = vrot.lane.b32.xlu1 %v7733_v35, %s11725_s24  ;;  %7417 = vrot.lane.b32.xlu0 %v7253_v28, %s11724_s13  ;;  %v7734_v60 = vld [vmem:[#allocation2 + $0x22] sm:$0xff] }
 0x446   : > { %7609 = vst.msk [vmem:[#allocation2 + $0x38] sm:$0xff] %vm7601_vm1, %v7544_v30  ;;  %v6995_v38 = vld [vmem:[#allocation2 + $0x140] sm:$0xff]  ;;  %v5842_v39 = vpop.f32.mrf.mxu1  ;;  %v6854_v40 = vpop.f32.mrf.mxu0 }
 0x447   : > { %6109 = vst.msk [vmem:[#allocation2 + $0x150] sm:$0xff] %vm966_vm0, %v6043_v36  ;;  %v7061_v43 = vadd.f32 %v6995_v38, %v6852_v33  ;;  %v7362_v48 = vpop.permute.xlu0 %7361  ;;  %v7165_v27 = vld [vmem:[#allocation2 + $0x60] sm:$0xff]  ;;  %v5982_v33 = vld [vmem:[#allocation2 + $0x178] sm:$0xff] }
 0x448   : > { %v7254_v41 = vld [vmem:[#allocation2 + $0x129] sm:$0xff]  ;;  %v7545_v51 = vadd.f32 %v7362_v48, %v7161_v46  ;;  %v5843_v54 = vpop.f32.mrf.mxu1  ;;  %v6855_v44 = vpop.f32.mrf.mxu0 }
 0x449   : > { %7127 = vst.msk [vmem:[#allocation2 + $0x140] sm:$0xff] %vm966_vm0, %v7061_v43  ;;  %v6044_v62 = vadd.f32 %v5978_v56, %v5843_v54  ;;  %7866 = vrot.lane.b32.xlu0 %v7734_v60, %s11725_s24  ;;  %7419 = vrot.lane.b32.xlu1 %v7254_v41, %s11724_s13  ;;  %v7735_v53 = vld [vmem:[#allocation2 + $0x2a] sm:$0xff] }
 0x44a   : > { %7610 = vst.msk [vmem:[#allocation2 + $0x40] sm:$0xff] %vm7601_vm1, %v7545_v51  ;;  %v6996_v47 = vld [vmem:[#allocation2 + $0x148] sm:$0xff]  ;;  %v5845_v29 = vpop.f32.mrf.mxu1  ;;  %v6857_v63 = vpop.f32.mrf.mxu0 }
 0x44b   : > { %6110 = vst.msk [vmem:[#allocation2 + $0x158] sm:$0xff] %vm966_vm0, %v6044_v62  ;;  %v7062_v34 = vadd.f32 %v6996_v47, %v6855_v44  ;;  %v7364_v42 = vpop.permute.xlu1 %7363  ;;  %v7166_v48 = vld [vmem:[#allocation2 + $0x68] sm:$0xff]  ;;  %v5983_v44 = vld [vmem:[#allocation2 + $0x180] sm:$0xff] }
 0x44c   : > { %v7255_v49 = vld [vmem:[#allocation2 + $0x131] sm:$0xff]  ;;  %v7546_v45 = vadd.f32 %v7364_v42, %v7162_v37  ;;  %v5848_v0 = vpop.f32.mrf.mxu1  ;;  %v6860_v50 = vpop.f32.mrf.mxu0 }
 0x44d   : > { %7128 = vst.msk [vmem:[#allocation2 + $0x148] sm:$0xff] %vm966_vm0, %v7062_v34  ;;  %v6045_v2 = vadd.f32 %v5979_v52, %v5848_v0  ;;  %7868 = vrot.lane.b32.xlu1 %v7735_v53, %s11725_s24  ;;  %7421 = vrot.lane.b32.xlu0 %v7255_v49, %s11724_s13  ;;  %v7736_v10 = vld [vmem:[#allocation2 + $0x32] sm:$0xff] }
 0x44e   : > { %7611 = vst.msk [vmem:[#allocation2 + $0x48] sm:$0xff] %vm7601_vm1, %v7546_v45  ;;  %v6997_v3 = vld [vmem:[#allocation2 + $0x150] sm:$0xff]  ;;  %v5850_v59 = vpop.f32.mrf.mxu1  ;;  %v6862_v61 = vpop.f32.mrf.mxu0 }
 0x44f   : > { %6111 = vst.msk [vmem:[#allocation2 + $0x160] sm:$0xff] %vm966_vm0, %v6045_v2  ;;  %v7063_v5 = vadd.f32 %v6997_v3, %v6860_v50  ;;  %v7366_v7 = vpop.permute.xlu0 %7365  ;;  %v7167_v42 = vld [vmem:[#allocation2 + $0x70] sm:$0xff]  ;;  %v5984_v50 = vld [vmem:[#allocation2 + $0x188] sm:$0xff] }
 0x450   : > { %v7256_v4 = vld [vmem:[#allocation2 + $0x139] sm:$0xff]  ;;  %v7547_v57 = vadd.f32 %v7366_v7, %v7163_v55  ;;  %v5851_v6 = vpop.f32.mrf.mxu1  ;;  %v6863_v9 = vpop.f32.mrf.mxu0 }
 0x451   : > { %7129 = vst.msk [vmem:[#allocation2 + $0x150] sm:$0xff] %vm966_vm0, %v7063_v5  ;;  %v6046_v11 = vadd.f32 %v5980_v8, %v5851_v6  ;;  %7870 = vrot.lane.b32.xlu0 %v7736_v10, %s11725_s24  ;;  %7423 = vrot.lane.b32.xlu1 %v7256_v4, %s11724_s13  ;;  %v7737_v1 = vld [vmem:[#allocation2 + $0x3a] sm:$0xff] }
 0x452   : > { %7612 = vst.msk [vmem:[#allocation2 + $0x50] sm:$0xff] %vm7601_vm1, %v7547_v57  ;;  %v6998_v12 = vld [vmem:[#allocation2 + $0x158] sm:$0xff]  ;;  %v5853_v13 = vpop.f32.mrf.mxu1  ;;  %v6865_v14 = vpop.f32.mrf.mxu0 }
 0x453   : > { %6112 = vst.msk [vmem:[#allocation2 + $0x168] sm:$0xff] %vm966_vm0, %v6046_v11  ;;  %v7064_v58 = vadd.f32 %v6998_v12, %v6863_v9  ;;  %v7368_v16 = vpop.permute.xlu1 %7367  ;;  %v7168_v7 = vld [vmem:[#allocation2 + $0x78] sm:$0xff]  ;;  %v5985_v9 = vld [vmem:[#allocation2 + $0x190] sm:$0xff] }
 0x454   : > { %v7257_v17 = vld [vmem:[#allocation2 + $0x141] sm:$0xff]  ;;  %v7548_v18 = vadd.f32 %v7368_v16, %v7164_v15  ;;  %v5856_v19 = vpop.f32.mrf.mxu1  ;;  %v6868_v21 = vpop.f32.mrf.mxu0 }
 0x455   : > { %7130 = vst.msk [vmem:[#allocation2 + $0x158] sm:$0xff] %vm966_vm0, %v7064_v58  ;;  %v6047_v22 = vadd.f32 %v5981_v20, %v5856_v19  ;;  %7872 = vrot.lane.b32.xlu1 %v7737_v1, %s11725_s24  ;;  %7425 = vrot.lane.b32.xlu0 %v7257_v17, %s11724_s13  ;;  %v7738_v36 = vld [vmem:[#allocation2 + $0x42] sm:$0xff] }
 0x456   : > { %7613 = vst.msk [vmem:[#allocation2 + $0x58] sm:$0xff] %vm7601_vm1, %v7548_v18  ;;  %v6999_v23 = vld [vmem:[#allocation2 + $0x160] sm:$0xff]  ;;  %v5858_v24 = vpop.f32.mrf.mxu1  ;;  %v6870_v25 = vpop.f32.mrf.mxu0 }
 0x457   : > { %6113 = vst.msk [vmem:[#allocation2 + $0x170] sm:$0xff] %vm966_vm0, %v6047_v22  ;;  %v7065_v26 = vadd.f32 %v6999_v23, %v6868_v21  ;;  %v7370_v28 = vpop.permute.xlu0 %7369  ;;  %v7169_v16 = vld [vmem:[#allocation2 + $0x80] sm:$0xff]  ;;  %v5986_v21 = vld [vmem:[#allocation2 + $0x198] sm:$0xff] }
 0x458   : > { %v7258_v30 = vld [vmem:[#allocation2 + $0x149] sm:$0xff]  ;;  %v7549_v31 = vadd.f32 %v7370_v28, %v7165_v27  ;;  %v5859_v32 = vpop.f32.mrf.mxu1  ;;  %v6871_v35 = vpop.f32.mrf.mxu0 }
 0x459   : > { %7131 = vst.msk [vmem:[#allocation2 + $0x160] sm:$0xff] %vm966_vm0, %v7065_v26  ;;  %v6048_v38 = vadd.f32 %v5982_v33, %v5859_v32  ;;  %7874 = vrot.lane.b32.xlu0 %v7738_v36, %s11725_s24  ;;  %7427 = vrot.lane.b32.xlu1 %v7258_v30, %s11724_s13  ;;  %v7739_v62 = vld [vmem:[#allocation2 + $0x4a] sm:$0xff] }
 0x45a   : > { %7614 = vst.msk [vmem:[#allocation2 + $0x60] sm:$0xff] %vm7601_vm1, %v7549_v31  ;;  %v7000_v39 = vld [vmem:[#allocation2 + $0x168] sm:$0xff]  ;;  %v5861_v40 = vpop.f32.mrf.mxu1  ;;  %v6873_v43 = vpop.f32.mrf.mxu0 }
 0x45b   : > { %6114 = vst.msk [vmem:[#allocation2 + $0x178] sm:$0xff] %vm966_vm0, %v6048_v38  ;;  %v7066_v46 = vadd.f32 %v7000_v39, %v6871_v35  ;;  %v7372_v41 = vpop.permute.xlu1 %7371  ;;  %v7170_v28 = vld [vmem:[#allocation2 + $0x88] sm:$0xff]  ;;  %v5987_v35 = vld [vmem:[#allocation2 + $0x1a0] sm:$0xff] }
 0x45c   : > { %v7259_v51 = vld [vmem:[#allocation2 + $0x151] sm:$0xff]  ;;  %v7550_v54 = vadd.f32 %v7372_v41, %v7166_v48  ;;  %v5864_v56 = vpop.f32.mrf.mxu1  ;;  %v6876_v60 = vpop.f32.mrf.mxu0 }
 0x45d   : > { %7132 = vst.msk [vmem:[#allocation2 + $0x168] sm:$0xff] %vm966_vm0, %v7066_v46  ;;  %v6049_v47 = vadd.f32 %v5983_v44, %v5864_v56  ;;  %7876 = vrot.lane.b32.xlu1 %v7739_v62, %s11725_s24  ;;  %7429 = vrot.lane.b32.xlu0 %v7259_v51, %s11724_s13  ;;  %v7740_v2 = vld [vmem:[#allocation2 + $0x52] sm:$0xff] }
 0x45e   : > { %7615 = vst.msk [vmem:[#allocation2 + $0x68] sm:$0xff] %vm7601_vm1, %v7550_v54  ;;  %v7001_v29 = vld [vmem:[#allocation2 + $0x170] sm:$0xff]  ;;  %v5866_v63 = vpop.f32.mrf.mxu1  ;;  %v6878_v34 = vpop.f32.mrf.mxu0 }
 0x45f   : > { %6115 = vst.msk [vmem:[#allocation2 + $0x180] sm:$0xff] %vm966_vm0, %v6049_v47  ;;  %v7067_v37 = vadd.f32 %v7001_v29, %v6876_v60  ;;  %v7374_v49 = vpop.permute.xlu0 %7373  ;;  %v7171_v41 = vld [vmem:[#allocation2 + $0x90] sm:$0xff]  ;;  %v5988_v60 = vld [vmem:[#allocation2 + $0x1a8] sm:$0xff] }
 0x460   : > { %v7260_v45 = vld [vmem:[#allocation2 + $0x159] sm:$0xff]  ;;  %v7551_v0 = vadd.f32 %v7374_v49, %v7167_v42  ;;  %v5867_v52 = vpop.f32.mrf.mxu1  ;;  %v6879_v53 = vpop.f32.mrf.mxu0 }
 0x461   : > { %7133 = vst.msk [vmem:[#allocation2 + $0x170] sm:$0xff] %vm966_vm0, %v7067_v37  ;;  %v6050_v3 = vadd.f32 %v5984_v50, %v5867_v52  ;;  %7878 = vrot.lane.b32.xlu0 %v7740_v2, %s11725_s24  ;;  %7431 = vrot.lane.b32.xlu1 %v7260_v45, %s11724_s13  ;;  %v7741_v11 = vld [vmem:[#allocation2 + $0x5a] sm:$0xff] }
 0x462   : > { %7616 = vst.msk [vmem:[#allocation2 + $0x70] sm:$0xff] %vm7601_vm1, %v7551_v0  ;;  %v7002_v59 = vld [vmem:[#allocation2 + $0x178] sm:$0xff]  ;;  %v5869_v61 = vpop.f32.mrf.mxu1  ;;  %v6881_v5 = vpop.f32.mrf.mxu0 }
 0x463   : > { %6116 = vst.msk [vmem:[#allocation2 + $0x188] sm:$0xff] %vm966_vm0, %v6050_v3  ;;  %v7068_v55 = vadd.f32 %v7002_v59, %v6879_v53  ;;  %v7376_v4 = vpop.permute.xlu1 %7375  ;;  %v7172_v49 = vld [vmem:[#allocation2 + $0x98] sm:$0xff]  ;;  %v5989_v53 = vld [vmem:[#allocation2 + $0x1b0] sm:$0xff] }
 0x464   : > { %v7261_v57 = vld [vmem:[#allocation2 + $0x161] sm:$0xff]  ;;  %v7552_v6 = vadd.f32 %v7376_v4, %v7168_v7  ;;  %v5872_v8 = vpop.f32.mrf.mxu1  ;;  %v6884_v10 = vpop.f32.mrf.mxu0 }
 0x465   : > { %7134 = vst.msk [vmem:[#allocation2 + $0x178] sm:$0xff] %vm966_vm0, %v7068_v55  ;;  %v6051_v12 = vadd.f32 %v5985_v9, %v5872_v8  ;;  %7880 = vrot.lane.b32.xlu1 %v7741_v11, %s11725_s24  ;;  %7433 = vrot.lane.b32.xlu0 %v7261_v57, %s11724_s13  ;;  %v7742_v22 = vld [vmem:[#allocation2 + $0x62] sm:$0xff] }
 0x466   : > { %7617 = vst.msk [vmem:[#allocation2 + $0x78] sm:$0xff] %vm7601_vm1, %v7552_v6  ;;  %v7003_v13 = vld [vmem:[#allocation2 + $0x180] sm:$0xff]  ;;  %v5874_v14 = vpop.f32.mrf.mxu1  ;;  %v6886_v58 = vpop.f32.mrf.mxu0 }
 0x467   : > { %6117 = vst.msk [vmem:[#allocation2 + $0x190] sm:$0xff] %vm966_vm0, %v6051_v12  ;;  %v7069_v15 = vadd.f32 %v7003_v13, %v6884_v10  ;;  %v7378_v17 = vpop.permute.xlu0 %7377  ;;  %v7173_v4 = vld [vmem:[#allocation2 + $0xa0] sm:$0xff]  ;;  %v5990_v10 = vld [vmem:[#allocation2 + $0x1b8] sm:$0xff] }
 0x468   : > { %v7262_v18 = vld [vmem:[#allocation2 + $0x169] sm:$0xff]  ;;  %v7553_v19 = vadd.f32 %v7378_v17, %v7169_v16  ;;  %v5875_v20 = vpop.f32.mrf.mxu1  ;;  %v6887_v1 = vpop.f32.mrf.mxu0 }
 0x469   : > { %7135 = vst.msk [vmem:[#allocation2 + $0x180] sm:$0xff] %vm966_vm0, %v7069_v15  ;;  %v6052_v23 = vadd.f32 %v5986_v21, %v5875_v20  ;;  %7882 = vrot.lane.b32.xlu0 %v7742_v22, %s11725_s24  ;;  %7435 = vrot.lane.b32.xlu1 %v7262_v18, %s11724_s13  ;;  %v7743_v38 = vld [vmem:[#allocation2 + $0x6a] sm:$0xff] }
 0x46a   : > { %7618 = vst.msk [vmem:[#allocation2 + $0x80] sm:$0xff] %vm7601_vm1, %v7553_v19  ;;  %v7004_v24 = vld [vmem:[#allocation2 + $0x188] sm:$0xff]  ;;  %v5877_v25 = vpop.f32.mrf.mxu1  ;;  %v6889_v26 = vpop.f32.mrf.mxu0 }
 0x46b   : > { %6118 = vst.msk [vmem:[#allocation2 + $0x198] sm:$0xff] %vm966_vm0, %v6052_v23  ;;  %v7070_v27 = vadd.f32 %v7004_v24, %v6887_v1  ;;  %v7380_v30 = vpop.permute.xlu1 %7379  ;;  %v7174_v17 = vld [vmem:[#allocation2 + $0xa8] sm:$0xff]  ;;  %v5991_v1 = vld [vmem:[#allocation2 + $0x1c0] sm:$0xff] }
 0x46c   : > { %v7263_v31 = vld [vmem:[#allocation2 + $0x171] sm:$0xff]  ;;  %v7554_v32 = vadd.f32 %v7380_v30, %v7170_v28  ;;  %v5880_v33 = vpop.f32.mrf.mxu1  ;;  %v6892_v36 = vpop.f32.mrf.mxu0 }
 0x46d   : > { %7136 = vst.msk [vmem:[#allocation2 + $0x188] sm:$0xff] %vm966_vm0, %v7070_v27  ;;  %v6053_v39 = vadd.f32 %v5987_v35, %v5880_v33  ;;  %7884 = vrot.lane.b32.xlu1 %v7743_v38, %s11725_s24  ;;  %7437 = vrot.lane.b32.xlu0 %v7263_v31, %s11724_s13  ;;  %v7744_v47 = vld [vmem:[#allocation2 + $0x72] sm:$0xff] }
 0x46e   : > { %7619 = vst.msk [vmem:[#allocation2 + $0x88] sm:$0xff] %vm7601_vm1, %v7554_v32  ;;  %v7005_v40 = vld [vmem:[#allocation2 + $0x190] sm:$0xff]  ;;  %v5882_v43 = vpop.f32.mrf.mxu1  ;;  %v6894_v46 = vpop.f32.mrf.mxu0 }
 0x46f   : > { %6119 = vst.msk [vmem:[#allocation2 + $0x1a0] sm:$0xff] %vm966_vm0, %v6053_v39  ;;  %v7071_v48 = vadd.f32 %v7005_v40, %v6892_v36  ;;  %v7382_v51 = vpop.permute.xlu0 %7381  ;;  %v7175_v30 = vld [vmem:[#allocation2 + $0xb0] sm:$0xff]  ;;  %v5992_v36 = vld [vmem:[#allocation2 + $0x1c8] sm:$0xff] }
 0x470   : > { %v7264_v54 = vld [vmem:[#allocation2 + $0x179] sm:$0xff]  ;;  %v7555_v56 = vadd.f32 %v7382_v51, %v7171_v41  ;;  %v5883_v44 = vpop.f32.mrf.mxu1  ;;  %v6895_v62 = vpop.f32.mrf.mxu0 }
 0x471   : > { %7137 = vst.msk [vmem:[#allocation2 + $0x190] sm:$0xff] %vm966_vm0, %v7071_v48  ;;  %v6054_v29 = vadd.f32 %v5988_v60, %v5883_v44  ;;  %7886 = vrot.lane.b32.xlu0 %v7744_v47, %s11725_s24  ;;  %7439 = vrot.lane.b32.xlu1 %v7264_v54, %s11724_s13  ;;  %v7745_v3 = vld [vmem:[#allocation2 + $0x7a] sm:$0xff] }
 0x472   : > { %7620 = vst.msk [vmem:[#allocation2 + $0x90] sm:$0xff] %vm7601_vm1, %v7555_v56  ;;  %v7006_v63 = vld [vmem:[#allocation2 + $0x198] sm:$0xff]  ;;  %v5885_v34 = vpop.f32.mrf.mxu1  ;;  %v6897_v37 = vpop.f32.mrf.mxu0 }
 0x473   : > { %6120 = vst.msk [vmem:[#allocation2 + $0x1a8] sm:$0xff] %vm966_vm0, %v6054_v29  ;;  %v7072_v42 = vadd.f32 %v7006_v63, %v6895_v62  ;;  %v7384_v45 = vpop.permute.xlu1 %7383  ;;  %v7176_v51 = vld [vmem:[#allocation2 + $0xb8] sm:$0xff]  ;;  %v5993_v62 = vld [vmem:[#allocation2 + $0x1d0] sm:$0xff] }
 0x474   : > { %v7265_v0 = vld [vmem:[#allocation2 + $0x181] sm:$0xff]  ;;  %v7556_v52 = vadd.f32 %v7384_v45, %v7172_v49  ;;  %v5888_v50 = vpop.f32.mrf.mxu1  ;;  %v6900_v2 = vpop.f32.mrf.mxu0 }
 0x475   : > { %7138 = vst.msk [vmem:[#allocation2 + $0x198] sm:$0xff] %vm966_vm0, %v7072_v42  ;;  %v6055_v59 = vadd.f32 %v5989_v53, %v5888_v50  ;;  %7888 = vrot.lane.b32.xlu1 %v7745_v3, %s11725_s24  ;;  %7441 = vrot.lane.b32.xlu0 %v7265_v0, %s11724_s13  ;;  %v7746_v12 = vld [vmem:[#allocation2 + $0x82] sm:$0xff] }
 0x476   : > { %7621 = vst.msk [vmem:[#allocation2 + $0x98] sm:$0xff] %vm7601_vm1, %v7556_v52  ;;  %v7007_v61 = vld [vmem:[#allocation2 + $0x1a0] sm:$0xff]  ;;  %v5890_v5 = vpop.f32.mrf.mxu1  ;;  %v6902_v55 = vpop.f32.mrf.mxu0 }
 0x477   : > { %6121 = vst.msk [vmem:[#allocation2 + $0x1b0] sm:$0xff] %vm966_vm0, %v6055_v59  ;;  %v7073_v7 = vadd.f32 %v7007_v61, %v6900_v2  ;;  %v7386_v57 = vpop.permute.xlu0 %7385  ;;  %v7177_v45 = vld [vmem:[#allocation2 + $0xc0] sm:$0xff]  ;;  %v5994_v2 = vld [vmem:[#allocation2 + $0x1d8] sm:$0xff] }
 0x478   : > { %v7266_v6 = vld [vmem:[#allocation2 + $0x189] sm:$0xff]  ;;  %v7557_v8 = vadd.f32 %v7386_v57, %v7173_v4  ;;  %v5891_v9 = vpop.f32.mrf.mxu1  ;;  %v6903_v11 = vpop.f32.mrf.mxu0 }
 0x479   : > { %7139 = vst.msk [vmem:[#allocation2 + $0x1a0] sm:$0xff] %vm966_vm0, %v7073_v7  ;;  %v6056_v13 = vadd.f32 %v5990_v10, %v5891_v9  ;;  %7890 = vrot.lane.b32.xlu0 %v7746_v12, %s11725_s24  ;;  %7443 = vrot.lane.b32.xlu1 %v7266_v6, %s11724_s13  ;;  %v7747_v23 = vld [vmem:[#allocation2 + $0x8a] sm:$0xff] }
 0x47a   : > { %7622 = vst.msk [vmem:[#allocation2 + $0xa0] sm:$0xff] %vm7601_vm1, %v7557_v8  ;;  %v7008_v14 = vld [vmem:[#allocation2 + $0x1a8] sm:$0xff]  ;;  %v5893_v58 = vpop.f32.mrf.mxu1  ;;  %v6905_v15 = vpop.f32.mrf.mxu0 }
 0x47b   : > { %6122 = vst.msk [vmem:[#allocation2 + $0x1b8] sm:$0xff] %vm966_vm0, %v6056_v13  ;;  %v7074_v16 = vadd.f32 %v7008_v14, %v6903_v11  ;;  %v7388_v18 = vpop.permute.xlu1 %7387  ;;  %v7178_v57 = vld [vmem:[#allocation2 + $0xc8] sm:$0xff]  ;;  %v5995_v11 = vld [vmem:[#allocation2 + $0x1e0] sm:$0xff] }
 0x47c   : > { %v7267_v19 = vld [vmem:[#allocation2 + $0x191] sm:$0xff]  ;;  %v7558_v20 = vadd.f32 %v7388_v18, %v7174_v17  ;;  %v5896_v21 = vpop.f32.mrf.mxu1  ;;  %v6908_v22 = vpop.f32.mrf.mxu0 }
 0x47d   : > { %7140 = vst.msk [vmem:[#allocation2 + $0x1a8] sm:$0xff] %vm966_vm0, %v7074_v16  ;;  %v6057_v24 = vadd.f32 %v5991_v1, %v5896_v21  ;;  %7892 = vrot.lane.b32.xlu1 %v7747_v23, %s11725_s24  ;;  %7445 = vrot.lane.b32.xlu0 %v7267_v19, %s11724_s13  ;;  %v7748_v39 = vld [vmem:[#allocation2 + $0x92] sm:$0xff] }
 0x47e   : > { %7623 = vst.msk [vmem:[#allocation2 + $0xa8] sm:$0xff] %vm7601_vm1, %v7558_v20  ;;  %v7009_v25 = vld [vmem:[#allocation2 + $0x1b0] sm:$0xff]  ;;  %v5898_v26 = vpop.f32.mrf.mxu1  ;;  %v6910_v27 = vpop.f32.mrf.mxu0 }
 0x47f   : > { %6123 = vst.msk [vmem:[#allocation2 + $0x1c0] sm:$0xff] %vm966_vm0, %v6057_v24  ;;  %v7075_v28 = vadd.f32 %v7009_v25, %v6908_v22  ;;  %v7390_v31 = vpop.permute.xlu0 %7389  ;;  %v7179_v18 = vld [vmem:[#allocation2 + $0xd0] sm:$0xff]  ;;  %v5996_v22 = vld [vmem:[#allocation2 + $0x1e8] sm:$0xff] }
 0x480   : > { %v7268_v32 = vld [vmem:[#allocation2 + $0x199] sm:$0xff]  ;;  %v7559_v33 = vadd.f32 %v7390_v31, %v7175_v30  ;;  %v5899_v35 = vpop.f32.mrf.mxu1  ;;  %v6911_v38 = vpop.f32.mrf.mxu0 }
 0x481   : > { %7141 = vst.msk [vmem:[#allocation2 + $0x1b0] sm:$0xff] %vm966_vm0, %v7075_v28  ;;  %v6058_v40 = vadd.f32 %v5992_v36, %v5899_v35  ;;  %7894 = vrot.lane.b32.xlu0 %v7748_v39, %s11725_s24  ;;  %7447 = vrot.lane.b32.xlu1 %v7268_v32, %s11724_s13  ;;  %v7749_v29 = vld [vmem:[#allocation2 + $0x9a] sm:$0xff] }
 0x482   : > { %7624 = vst.msk [vmem:[#allocation2 + $0xb0] sm:$0xff] %vm7601_vm1, %v7559_v33  ;;  %v7010_v43 = vld [vmem:[#allocation2 + $0x1b8] sm:$0xff]  ;;  %v5901_v46 = vpop.f32.mrf.mxu1  ;;  %v6913_v48 = vpop.f32.mrf.mxu0 }
 0x483   : > { %6124 = vst.msk [vmem:[#allocation2 + $0x1c8] sm:$0xff] %vm966_vm0, %v6058_v40  ;;  %v7076_v41 = vadd.f32 %v7010_v43, %v6911_v38  ;;  %v7392_v54 = vpop.permute.xlu1 %7391  ;;  %v7180_v31 = vld [vmem:[#allocation2 + $0xd8] sm:$0xff]  ;;  %v5997_v38 = vld [vmem:[#allocation2 + $0x1f0] sm:$0xff] }
 0x484   : > { %v7269_v56 = vld [vmem:[#allocation2 + $0x1a1] sm:$0xff]  ;;  %v7560_v44 = vadd.f32 %v7392_v54, %v7176_v51  ;;  %v5904_v60 = vpop.f32.mrf.mxu1  ;;  %v6916_v47 = vpop.f32.mrf.mxu0 }
 0x485   : > { %7142 = vst.msk [vmem:[#allocation2 + $0x1b8] sm:$0xff] %vm966_vm0, %v7076_v41  ;;  %v6059_v63 = vadd.f32 %v5993_v62, %v5904_v60  ;;  %7896 = vrot.lane.b32.xlu1 %v7749_v29, %s11725_s24  ;;  %7449 = vrot.lane.b32.xlu0 %v7269_v56, %s11724_s13  ;;  %v7750_v59 = vld [vmem:[#allocation2 + $0xa2] sm:$0xff] }
 0x486   : > { %7625 = vst.msk [vmem:[#allocation2 + $0xb8] sm:$0xff] %vm7601_vm1, %v7560_v44  ;;  %v7011_v34 = vld [vmem:[#allocation2 + $0x1c0] sm:$0xff]  ;;  %v5906_v37 = vpop.f32.mrf.mxu1  ;;  %v6918_v42 = vpop.f32.mrf.mxu0 }
 0x487   : > { %6125 = vst.msk [vmem:[#allocation2 + $0x1d0] sm:$0xff] %vm966_vm0, %v6059_v63  ;;  %v7077_v49 = vadd.f32 %v7011_v34, %v6916_v47  ;;  %v7394_v0 = vpop.permute.xlu0 %7393  ;;  %v7181_v54 = vld [vmem:[#allocation2 + $0xe0] sm:$0xff]  ;;  %v5998_v47 = vld [vmem:[#allocation2 + $0x1f8] sm:$0xff] }
 0x488   : > { %v7270_v52 = vld [vmem:[#allocation2 + $0x1a9] sm:$0xff]  ;;  %v7561_v50 = vadd.f32 %v7394_v0, %v7177_v45  ;;  %v5907_v53 = vpop.f32.mrf.mxu1  ;;  %v6919_v3 = vpop.f32.mrf.mxu0 }
 0x489   : > { %7143 = vst.msk [vmem:[#allocation2 + $0x1c0] sm:$0xff] %vm966_vm0, %v7077_v49  ;;  %v6060_v61 = vadd.f32 %v5994_v2, %v5907_v53  ;;  %7898 = vrot.lane.b32.xlu0 %v7750_v59, %s11725_s24  ;;  %7451 = vrot.lane.b32.xlu1 %v7270_v52, %s11724_s13  ;;  %v7751_v13 = vld [vmem:[#allocation2 + $0xaa] sm:$0xff] }
 0x48a   : > { %7626 = vst.msk [vmem:[#allocation2 + $0xc0] sm:$0xff] %vm7601_vm1, %v7561_v50  ;;  %v7012_v5 = vld [vmem:[#allocation2 + $0x1c8] sm:$0xff]  ;;  %v5909_v55 = vpop.f32.mrf.mxu1  ;;  %v6921_v7 = vpop.f32.mrf.mxu0 }
 0x48b   : > { %6126 = vst.msk [vmem:[#allocation2 + $0x1d8] sm:$0xff] %vm966_vm0, %v6060_v61  ;;  %v7078_v4 = vadd.f32 %v7012_v5, %v6919_v3  ;;  %v7396_v6 = vpop.permute.xlu1 %7395  ;;  %v7182_v0 = vld [vmem:[#allocation2 + $0xe8] sm:$0xff]  ;;  %v5999_v3 = vld [vmem:[#allocation2 + $0x200] sm:$0xff] }
 0x48c   : > { %v7271_v8 = vld [vmem:[#allocation2 + $0x1b1] sm:$0xff]  ;;  %v7562_v9 = vadd.f32 %v7396_v6, %v7178_v57  ;;  %v5912_v10 = vpop.f32.mrf.mxu1  ;;  %v6924_v12 = vpop.f32.mrf.mxu0 }
 0x48d   : > { %7144 = vst.msk [vmem:[#allocation2 + $0x1c8] sm:$0xff] %vm966_vm0, %v7078_v4  ;;  %v6061_v14 = vadd.f32 %v5995_v11, %v5912_v10  ;;  %7900 = vrot.lane.b32.xlu1 %v7751_v13, %s11725_s24  ;;  %7453 = vrot.lane.b32.xlu0 %v7271_v8, %s11724_s13  ;;  %v7752_v24 = vld [vmem:[#allocation2 + $0xb2] sm:$0xff] }
 0x48e   : > { %7627 = vst.msk [vmem:[#allocation2 + $0xc8] sm:$0xff] %vm7601_vm1, %v7562_v9  ;;  %v7013_v58 = vld [vmem:[#allocation2 + $0x1d0] sm:$0xff]  ;;  %v5914_v15 = vpop.f32.mrf.mxu1  ;;  %v6926_v16 = vpop.f32.mrf.mxu0 }
 0x48f   : > { %6127 = vst.msk [vmem:[#allocation2 + $0x1e0] sm:$0xff] %vm966_vm0, %v6061_v14  ;;  %v7079_v17 = vadd.f32 %v7013_v58, %v6924_v12  ;;  %v7398_v19 = vpop.permute.xlu0 %7397  ;;  %v7183_v6 = vld [vmem:[#allocation2 + $0xf0] sm:$0xff]  ;;  %v6000_v12 = vld [vmem:[#allocation2 + $0x208] sm:$0xff] }
 0x490   : > { %v7272_v20 = vld [vmem:[#allocation2 + $0x1b9] sm:$0xff]  ;;  %v7563_v21 = vadd.f32 %v7398_v19, %v7179_v18  ;;  %v5915_v1 = vpop.f32.mrf.mxu1  ;;  %v6927_v23 = vpop.f32.mrf.mxu0 }
 0x491   : > { %7145 = vst.msk [vmem:[#allocation2 + $0x1d0] sm:$0xff] %vm966_vm0, %v7079_v17  ;;  %v6062_v25 = vadd.f32 %v5996_v22, %v5915_v1  ;;  %7902 = vrot.lane.b32.xlu0 %v7752_v24, %s11725_s24  ;;  %7455 = vrot.lane.b32.xlu1 %v7272_v20, %s11724_s13  ;;  %v7753_v40 = vld [vmem:[#allocation2 + $0xba] sm:$0xff] }
 0x492   : > { %7628 = vst.msk [vmem:[#allocation2 + $0xd0] sm:$0xff] %vm7601_vm1, %v7563_v21  ;;  %v7014_v26 = vld [vmem:[#allocation2 + $0x1d8] sm:$0xff]  ;;  %v5917_v27 = vpop.f32.mrf.mxu1  ;;  %v6929_v28 = vpop.f32.mrf.mxu0 }
 0x493   : > { %6128 = vst.msk [vmem:[#allocation2 + $0x1e8] sm:$0xff] %vm966_vm0, %v6062_v25  ;;  %v7080_v30 = vadd.f32 %v7014_v26, %v6927_v23  ;;  %v7400_v32 = vpop.permute.xlu1 %7399  ;;  %v7184_v19 = vld [vmem:[#allocation2 + $0xf8] sm:$0xff]  ;;  %v7185_v27 = vld [vmem:[#allocation2 + $0x100] sm:$0xff] }
 0x494   : > { %v7273_v33 = vld [vmem:[#allocation2 + $0x1c1] sm:$0xff]  ;;  %v7564_v35 = vadd.f32 %v7400_v32, %v7180_v31  ;;  %v5920_v36 = vpop.f32.mrf.mxu1  ;;  %v6932_v39 = vpop.f32.mrf.mxu0 }
 0x495   : > { %7146 = vst.msk [vmem:[#allocation2 + $0x1d8] sm:$0xff] %vm966_vm0, %v7080_v30  ;;  %v6063_v43 = vadd.f32 %v5997_v38, %v5920_v36  ;;  %7904 = vrot.lane.b32.xlu1 %v7753_v40, %s11725_s24  ;;  %7457 = vrot.lane.b32.xlu0 %v7273_v33, %s11724_s13  ;;  %v7754_v63 = vld [vmem:[#allocation2 + $0xc2] sm:$0xff] }
 0x496   : > { %7629 = vst.msk [vmem:[#allocation2 + $0xd8] sm:$0xff] %vm7601_vm1, %v7564_v35  ;;  %v7015_v46 = vld [vmem:[#allocation2 + $0x1e0] sm:$0xff]  ;;  %v5922_v48 = vpop.f32.mrf.mxu1  ;;  %v6934_v41 = vpop.f32.mrf.mxu0 }
 0x497   : > { %6129 = vst.msk [vmem:[#allocation2 + $0x1f0] sm:$0xff] %vm966_vm0, %v6063_v43  ;;  %v7081_v51 = vadd.f32 %v7015_v46, %v6932_v39  ;;  %v7402_v56 = vpop.permute.xlu0 %7401  ;;  %v7666_v39 = vld [vmem:[#allocation2] sm:$0xff]  ;;  %v7186_v43 = vld [vmem:[#allocation2 + $0x108] sm:$0xff] }
 0x498   : > { %v7274_v44 = vld [vmem:[#allocation2 + $0x1c9] sm:$0xff]  ;;  %v7565_v60 = vadd.f32 %v7402_v56, %v7181_v54  ;;  %v5923_v62 = vpop.f32.mrf.mxu1  ;;  %v6935_v29 = vpop.f32.mrf.mxu0 }
 0x499   : > { %7147 = vst.msk [vmem:[#allocation2 + $0x1e0] sm:$0xff] %vm966_vm0, %v7081_v51  ;;  %v6064_v34 = vadd.f32 %v5998_v47, %v5923_v62  ;;  %7906 = vrot.lane.b32.xlu0 %v7754_v63, %s11725_s24  ;;  %7459 = vrot.lane.b32.xlu1 %v7274_v44, %s11724_s13  ;;  %v7755_v61 = vld [vmem:[#allocation2 + $0xca] sm:$0xff] }
 0x49a   : > { %7630 = vst.msk [vmem:[#allocation2 + $0xe0] sm:$0xff] %vm7601_vm1, %v7565_v60  ;;  %v7016_v37 = vld [vmem:[#allocation2 + $0x1e8] sm:$0xff]  ;;  %v5925_v42 = vpop.f32.mrf.mxu1  ;;  %v6937_v49 = vpop.f32.mrf.mxu0  ;;  %v7187_v60 = vld [vmem:[#allocation2 + $0x110] sm:$0xff] }
 0x49b   : > { %6130 = vst.msk [vmem:[#allocation2 + $0x1f8] sm:$0xff] %vm966_vm0, %v6064_v34  ;;  %v7082_v45 = vadd.f32 %v7016_v37, %v6935_v29  ;;  %v7404_v52 = vpop.permute.xlu1 %7403  ;;  %v7667_v56 = vld [vmem:[#allocation2 + $0x8] sm:$0xff]  ;;  %v7668_v37 = vld [vmem:[#allocation2 + $0x10] sm:$0xff]  ;;  %v7188_v49 = vld [vmem:[#allocation2 + $0x118] sm:$0xff] }
 0x49c   : > { %v7275_v50 = vld [vmem:[#allocation2 + $0x1d1] sm:$0xff]  ;;  %v7566_v53 = vadd.f32 %v7404_v52, %v7182_v0  ;;  %v5928_v2 = vpop.f32.mrf.mxu1  ;;  %v6940_v59 = vpop.f32.mrf.mxu0 }
 0x49d   : > { %7148 = vst.msk [vmem:[#allocation2 + $0x1e8] sm:$0xff] %vm966_vm0, %v7082_v45  ;;  %v6065_v5 = vadd.f32 %v5999_v3, %v5928_v2  ;;  %7908 = vrot.lane.b32.xlu1 %v7755_v61, %s11725_s24  ;;  %7461 = vrot.lane.b32.xlu0 %v7275_v50, %s11724_s13  ;;  %v7756_v14 = vld [vmem:[#allocation2 + $0xd2] sm:$0xff] }
 0x49e   : > { %7631 = vst.msk [vmem:[#allocation2 + $0xe8] sm:$0xff] %vm7601_vm1, %v7566_v53  ;;  %v7017_v55 = vld [vmem:[#allocation2 + $0x1f0] sm:$0xff]  ;;  %v5930_v7 = vpop.f32.mrf.mxu1  ;;  %v6942_v4 = vpop.f32.mrf.mxu0  ;;  %v7669_v2 = vld [vmem:[#allocation2 + $0x18] sm:$0xff] }
 0x49f   : > { %6131 = vst.msk [vmem:[#allocation2 + $0x200] sm:$0xff] %vm966_vm0, %v6065_v5  ;;  %v7083_v57 = vadd.f32 %v7017_v55, %v6940_v59  ;;  %v7406_v8 = vpop.permute.xlu0 %7405  ;;  %v7189_v59 = vld [vmem:[#allocation2 + $0x120] sm:$0xff] }
 0x4a0   : > { %v7276_v9 = vld [vmem:[#allocation2 + $0x1d9] sm:$0xff]  ;;  %v7567_v10 = vadd.f32 %v7406_v8, %v7183_v6  ;;  %v5931_v11 = vpop.f32.mrf.mxu1  ;;  %v6943_v13 = vpop.f32.mrf.mxu0  ;;  %v7190_v8 = vld [vmem:[#allocation2 + $0x128] sm:$0xff] }
 0x4a1   : > { %7149 = vst.msk [vmem:[#allocation2 + $0x1f0] sm:$0xff] %vm966_vm0, %v7083_v57  ;;  %v6066_v58 = vadd.f32 %v6000_v12, %v5931_v11  ;;  %7910 = vrot.lane.b32.xlu0 %v7756_v14, %s11725_s24  ;;  %7463 = vrot.lane.b32.xlu1 %v7276_v9, %s11724_s13  ;;  %v7757_v23 = vld [vmem:[#allocation2 + $0xda] sm:$0xff]  ;;  %v7671_v14 = vld [vmem:[#allocation2 + $0x28] sm:$0xff] }
 0x4a2   : > { %7632 = vst.msk [vmem:[#allocation2 + $0xf0] sm:$0xff] %vm7601_vm1, %v7567_v10  ;;  %v7018_v15 = vld [vmem:[#allocation2 + $0x1f8] sm:$0xff]  ;;  %v5933_v16 = vpop.f32.mrf.mxu1  ;;  %v6945_v17 = vpop.f32.mrf.mxu0  ;;  %v7670_v57 = vld [vmem:[#allocation2 + $0x20] sm:$0xff] }
 0x4a3   : > { %6132 = vst.msk [vmem:[#allocation2 + $0x208] sm:$0xff] %vm966_vm0, %v6066_v58  ;;  %v7084_v18 = vadd.f32 %v7018_v15, %v6943_v13  ;;  %v7408_v20 = vpop.permute.xlu1 %7407  ;;  %v7191_v15 = vld [vmem:[#allocation2 + $0x130] sm:$0xff] }
 0x4a4   : > { %v7277_v21 = vld [vmem:[#allocation2 + $0x1e1] sm:$0xff]  ;;  %v7568_v1 = vadd.f32 %v7408_v20, %v7184_v19  ;;  %v6948_v22 = vpop.f32.mrf.mxu0 }
 0x4a5   : > { %7150 = vst.msk [vmem:[#allocation2 + $0x1f8] sm:$0xff] %vm966_vm0, %v7084_v18  ;;  %7912 = vrot.lane.b32.xlu1 %v7757_v23, %s11725_s24  ;;  %7465 = vrot.lane.b32.xlu0 %v7277_v21, %s11724_s13  ;;  %v7758_v33 = vld [vmem:[#allocation2 + $0xe2] sm:$0xff]  ;;  %v7672_v21 = vld [vmem:[#allocation2 + $0x30] sm:$0xff] }
 0x4a6   : > { %7633 = vst.msk [vmem:[#allocation2 + $0xf8] sm:$0xff] %vm7601_vm1, %v7568_v1  ;;  %v7019_v24 = vld [vmem:[#allocation2 + $0x200] sm:$0xff]  ;;  %v6950_v25 = vpop.f32.mrf.mxu0 }
 0x4a7   : > { %v7085_v26 = vadd.f32 %v7019_v24, %v6948_v22  ;;  %v7410_v28 = vpop.permute.xlu0 %7409  ;;  %v7192_v22 = vld [vmem:[#allocation2 + $0x138] sm:$0xff] }
 0x4a8   : > { %v7278_v30 = vld [vmem:[#allocation2 + $0x1e9] sm:$0xff]  ;;  %v7569_v31 = vadd.f32 %v7410_v28, %v7185_v27  ;;  %v6951_v32 = vpop.f32.mrf.mxu0  ;;  %v7673_v28 = vld [vmem:[#allocation2 + $0x38] sm:$0xff] }
 0x4a9   : > { %7151 = vst.msk [vmem:[#allocation2 + $0x200] sm:$0xff] %vm966_vm0, %v7085_v26  ;;  %7914 = vrot.lane.b32.xlu0 %v7758_v33, %s11725_s24  ;;  %7467 = vrot.lane.b32.xlu1 %v7278_v30, %s11724_s13  ;;  %v7759_v54 = vld [vmem:[#allocation2 + $0xea] sm:$0xff] }
 0x4aa   : > { %7634 = vst.msk [vmem:[#allocation2 + $0x100] sm:$0xff] %vm7601_vm1, %v7569_v31  ;;  %v7020_v35 = vld [vmem:[#allocation2 + $0x208] sm:$0xff]  ;;  %v6953_v36 = vpop.f32.mrf.mxu0  ;;  %v7193_v31 = vld [vmem:[#allocation2 + $0x140] sm:$0xff] }
 0x4ab   : > { %v7086_v38 = vadd.f32 %v7020_v35, %v6951_v32  ;;  %v7859_v40 = vpop.permute.xlu0 %7858  ;;  %v7412_v46 = vpop.permute.xlu1 %7411 }
 0x4ac   : > { %v7279_v48 = vld [vmem:[#allocation2 + $0x1f1] sm:$0xff]  ;;  %v8050_v41 = vadd.f32 %v7859_v40, %v7666_v39  ;;  %v7570_v51 = vadd.f32 %v7412_v46, %v7186_v43  ;;  %v7674_v39 = vld [vmem:[#allocation2 + $0x40] sm:$0xff]  ;;  %v7194_v43 = vld [vmem:[#allocation2 + $0x148] sm:$0xff] }
 0x4ad   : > { %7152 = vst.msk [vmem:[#allocation2 + $0x208] sm:$0xff] %vm966_vm0, %v7086_v38  ;;  %7916 = vrot.lane.b32.xlu1 %v7759_v54, %s11725_s24  ;;  %7469 = vrot.lane.b32.xlu0 %v7279_v48, %s11724_s13  ;;  %v7760_v63 = vld [vmem:[#allocation2 + $0xf2] sm:$0xff] }
 0x4ae   : > { %8114 = vst.msk [vmem:[#allocation2] sm:$0xff] %vm7601_vm1, %v8050_v41  ;;  %7635 = vst.msk [vmem:[#allocation2 + $0x108] sm:$0xff] %vm7601_vm1, %v7570_v51 }
 0x4af   : > { %v7861_v44 = vpop.permute.xlu1 %7860  ;;  %v7414_v62 = vpop.permute.xlu0 %7413 }
 0x4b0   : > { %v8051_v47 = vadd.f32 %v7861_v44, %v7667_v56  ;;  %v7571_v29 = vadd.f32 %v7414_v62, %v7187_v60  ;;  %v7280_v34 = vld [vmem:[#allocation2 + $0x1f9] sm:$0xff]  ;;  %v7675_v56 = vld [vmem:[#allocation2 + $0x48] sm:$0xff]  ;;  %v7195_v60 = vld [vmem:[#allocation2 + $0x150] sm:$0xff] }
 0x4b1   : > { %7918 = vrot.lane.b32.xlu0 %v7760_v63, %s11725_s24  ;;  %7471 = vrot.lane.b32.xlu1 %v7280_v34, %s11724_s13  ;;  %v7761_v50 = vld [vmem:[#allocation2 + $0xfa] sm:$0xff] }
 0x4b2   : > { %8115 = vst.msk [vmem:[#allocation2 + $0x8] sm:$0xff] %vm7601_vm1, %v8051_v47  ;;  %7636 = vst.msk [vmem:[#allocation2 + $0x110] sm:$0xff] %vm7601_vm1, %v7571_v29 }
 0x4b3   : > { %v7863_v42 = vpop.permute.xlu0 %7862  ;;  %v7416_v45 = vpop.permute.xlu1 %7415 }
 0x4b4   : > { %v8052_v0 = vadd.f32 %v7863_v42, %v7668_v37  ;;  %v7572_v52 = vadd.f32 %v7416_v45, %v7188_v49  ;;  %v7676_v37 = vld [vmem:[#allocation2 + $0x50] sm:$0xff]  ;;  %v7196_v49 = vld [vmem:[#allocation2 + $0x158] sm:$0xff] }
 0x4b5   : > { %7920 = vrot.lane.b32.xlu1 %v7761_v50, %s11725_s24  ;;  %v7762_v53 = vld [vmem:[#allocation2 + $0x102] sm:$0xff] }
 0x4b6   : > { %8116 = vst.msk [vmem:[#allocation2 + $0x10] sm:$0xff] %vm7601_vm1, %v8052_v0  ;;  %7637 = vst.msk [vmem:[#allocation2 + $0x118] sm:$0xff] %vm7601_vm1, %v7572_v52  ;;  %7922 = vrot.lane.b32.xlu0 %v7762_v53, %s11725_s24 }
 0x4b7   : > { %v7865_v3 = vpop.permute.xlu1 %7864  ;;  %v7418_v61 = vpop.permute.xlu0 %7417 }
 0x4b8   : > { %v8053_v5 = vadd.f32 %v7865_v3, %v7669_v2  ;;  %v7573_v55 = vadd.f32 %v7418_v61, %v7189_v59  ;;  %v7677_v2 = vld [vmem:[#allocation2 + $0x58] sm:$0xff]  ;;  %v7197_v59 = vld [vmem:[#allocation2 + $0x160] sm:$0xff] }
 0x4b9   : > { %v8242_v7 = vld [vmem:[#allocation2 + $0x3] sm:$0xff] }
 0x4ba   : > { %v7763_v4 = vld [vmem:[#allocation2 + $0x10a] sm:$0xff]  ;;  %8117 = vst.msk [vmem:[#allocation2 + $0x18] sm:$0xff] %vm7601_vm1, %v8053_v5  ;;  %7638 = vst.msk [vmem:[#allocation2 + $0x120] sm:$0xff] %vm7601_vm1, %v7573_v55  ;;  %8370 = vrot.lane.b32.xlu0 %v8242_v7, %s11726_s14 }
 0x4bb   : > { %7924 = vrot.lane.b32.xlu1 %v7763_v4, %s11725_s24  ;;  %v7867_v6 = vpop.permute.xlu0 %7866  ;;  %v7420_v9 = vpop.permute.xlu1 %7419 }
 0x4bc   : > { %v8054_v10 = vadd.f32 %v7867_v6, %v7670_v57  ;;  %v7574_v11 = vadd.f32 %v7420_v9, %v7190_v8  ;;  %v7678_v57 = vld [vmem:[#allocation2 + $0x60] sm:$0xff]  ;;  %v7198_v8 = vld [vmem:[#allocation2 + $0x168] sm:$0xff] }
 0x4bd   : > { %v7764_v12 = vld [vmem:[#allocation2 + $0x112] sm:$0xff] }
 0x4be   : > { %v8243_v13 = vld [vmem:[#allocation2 + $0xb] sm:$0xff]  ;;  %8118 = vst.msk [vmem:[#allocation2 + $0x20] sm:$0xff] %vm7601_vm1, %v8054_v10  ;;  %7639 = vst.msk [vmem:[#allocation2 + $0x128] sm:$0xff] %vm7601_vm1, %v7574_v11  ;;  %7926 = vrot.lane.b32.xlu0 %v7764_v12, %s11725_s24 }
 0x4bf   : > { %8372 = vrot.lane.b32.xlu1 %v8243_v13, %s11726_s14  ;;  %v7869_v58 = vpop.permute.xlu1 %7868  ;;  %v7422_v16 = vpop.permute.xlu0 %7421 }
 0x4c0   : > { %v8055_v17 = vadd.f32 %v7869_v58, %v7671_v14  ;;  %v7575_v18 = vadd.f32 %v7422_v16, %v7191_v15  ;;  %v7679_v14 = vld [vmem:[#allocation2 + $0x68] sm:$0xff]  ;;  %v7199_v15 = vld [vmem:[#allocation2 + $0x170] sm:$0xff] }
 0x4c1   : > { %v8244_v19 = vld [vmem:[#allocation2 + $0x13] sm:$0xff] }
 0x4c2   : > { %v7765_v20 = vld [vmem:[#allocation2 + $0x11a] sm:$0xff]  ;;  %8119 = vst.msk [vmem:[#allocation2 + $0x28] sm:$0xff] %vm7601_vm1, %v8055_v17  ;;  %7640 = vst.msk [vmem:[#allocation2 + $0x130] sm:$0xff] %vm7601_vm1, %v7575_v18  ;;  %8374 = vrot.lane.b32.xlu0 %v8244_v19, %s11726_s14 }
 0x4c3   : > { %7928 = vrot.lane.b32.xlu1 %v7765_v20, %s11725_s24  ;;  %v7871_v1 = vpop.permute.xlu0 %7870  ;;  %v7424_v23 = vpop.permute.xlu1 %7423 }
 0x4c4   : > { %v8056_v24 = vadd.f32 %v7871_v1, %v7672_v21  ;;  %v7576_v25 = vadd.f32 %v7424_v23, %v7192_v22  ;;  %v7680_v21 = vld [vmem:[#allocation2 + $0x70] sm:$0xff]  ;;  %v7200_v22 = vld [vmem:[#allocation2 + $0x178] sm:$0xff] }
 0x4c5   : > { %v7766_v26 = vld [vmem:[#allocation2 + $0x122] sm:$0xff] }
 0x4c6   : > { %v8245_v27 = vld [vmem:[#allocation2 + $0x1b] sm:$0xff]  ;;  %8120 = vst.msk [vmem:[#allocation2 + $0x30] sm:$0xff] %vm7601_vm1, %v8056_v24  ;;  %7641 = vst.msk [vmem:[#allocation2 + $0x138] sm:$0xff] %vm7601_vm1, %v7576_v25  ;;  %7930 = vrot.lane.b32.xlu0 %v7766_v26, %s11725_s24 }
 0x4c7   : > { %8376 = vrot.lane.b32.xlu1 %v8245_v27, %s11726_s14  ;;  %v7873_v30 = vpop.permute.xlu1 %7872  ;;  %v7426_v32 = vpop.permute.xlu0 %7425 }
 0x4c8   : > { %v8057_v33 = vadd.f32 %v7873_v30, %v7673_v28  ;;  %v7577_v35 = vadd.f32 %v7426_v32, %v7193_v31  ;;  %v7681_v28 = vld [vmem:[#allocation2 + $0x78] sm:$0xff]  ;;  %v7201_v31 = vld [vmem:[#allocation2 + $0x180] sm:$0xff] }
 0x4c9   : > { %v8246_v36 = vld [vmem:[#allocation2 + $0x23] sm:$0xff] }
 0x4ca   : > { %v7767_v38 = vld [vmem:[#allocation2 + $0x12a] sm:$0xff]  ;;  %8121 = vst.msk [vmem:[#allocation2 + $0x38] sm:$0xff] %vm7601_vm1, %v8057_v33  ;;  %7642 = vst.msk [vmem:[#allocation2 + $0x140] sm:$0xff] %vm7601_vm1, %v7577_v35  ;;  %8378 = vrot.lane.b32.xlu0 %v8246_v36, %s11726_s14 }
 0x4cb   : > { %7932 = vrot.lane.b32.xlu1 %v7767_v38, %s11725_s24  ;;  %v7875_v40 = vpop.permute.xlu0 %7874  ;;  %v7428_v46 = vpop.permute.xlu1 %7427 }
 0x4cc   : > { %v8058_v48 = vadd.f32 %v7875_v40, %v7674_v39  ;;  %v7578_v41 = vadd.f32 %v7428_v46, %v7194_v43  ;;  %v7682_v39 = vld [vmem:[#allocation2 + $0x80] sm:$0xff]  ;;  %v7202_v43 = vld [vmem:[#allocation2 + $0x188] sm:$0xff] }
 0x4cd   : > { %v7768_v51 = vld [vmem:[#allocation2 + $0x132] sm:$0xff] }
 0x4ce   : > { %v8247_v54 = vld [vmem:[#allocation2 + $0x2b] sm:$0xff]  ;;  %8122 = vst.msk [vmem:[#allocation2 + $0x40] sm:$0xff] %vm7601_vm1, %v8058_v48  ;;  %7643 = vst.msk [vmem:[#allocation2 + $0x148] sm:$0xff] %vm7601_vm1, %v7578_v41  ;;  %7934 = vrot.lane.b32.xlu0 %v7768_v51, %s11725_s24 }
 0x4cf   : > { %8380 = vrot.lane.b32.xlu1 %v8247_v54, %s11726_s14  ;;  %v7877_v44 = vpop.permute.xlu1 %7876  ;;  %v7430_v62 = vpop.permute.xlu0 %7429 }
 0x4d0   : > { %v8059_v47 = vadd.f32 %v7877_v44, %v7675_v56  ;;  %v7579_v29 = vadd.f32 %v7430_v62, %v7195_v60  ;;  %v7683_v56 = vld [vmem:[#allocation2 + $0x88] sm:$0xff]  ;;  %v7203_v60 = vld [vmem:[#allocation2 + $0x190] sm:$0xff] }
 0x4d1   : > { %v8248_v63 = vld [vmem:[#allocation2 + $0x33] sm:$0xff] }
 0x4d2   : > { %v7769_v34 = vld [vmem:[#allocation2 + $0x13a] sm:$0xff]  ;;  %8123 = vst.msk [vmem:[#allocation2 + $0x48] sm:$0xff] %vm7601_vm1, %v8059_v47  ;;  %7644 = vst.msk [vmem:[#allocation2 + $0x150] sm:$0xff] %vm7601_vm1, %v7579_v29  ;;  %8382 = vrot.lane.b32.xlu0 %v8248_v63, %s11726_s14 }
 0x4d3   : > { %7936 = vrot.lane.b32.xlu1 %v7769_v34, %s11725_s24  ;;  %v7879_v42 = vpop.permute.xlu0 %7878  ;;  %v7432_v45 = vpop.permute.xlu1 %7431 }
 0x4d4   : > { %v8060_v0 = vadd.f32 %v7879_v42, %v7676_v37  ;;  %v7580_v52 = vadd.f32 %v7432_v45, %v7196_v49  ;;  %v7684_v37 = vld [vmem:[#allocation2 + $0x90] sm:$0xff]  ;;  %v7204_v49 = vld [vmem:[#allocation2 + $0x198] sm:$0xff] }
 0x4d5   : > { %v7770_v50 = vld [vmem:[#allocation2 + $0x142] sm:$0xff] }
 0x4d6   : > { %v8249_v53 = vld [vmem:[#allocation2 + $0x3b] sm:$0xff]  ;;  %8124 = vst.msk [vmem:[#allocation2 + $0x50] sm:$0xff] %vm7601_vm1, %v8060_v0  ;;  %7645 = vst.msk [vmem:[#allocation2 + $0x158] sm:$0xff] %vm7601_vm1, %v7580_v52  ;;  %7938 = vrot.lane.b32.xlu0 %v7770_v50, %s11725_s24 }
 0x4d7   : > { %8384 = vrot.lane.b32.xlu1 %v8249_v53, %s11726_s14  ;;  %v7881_v3 = vpop.permute.xlu1 %7880  ;;  %v7434_v61 = vpop.permute.xlu0 %7433 }
 0x4d8   : > { %v8061_v5 = vadd.f32 %v7881_v3, %v7677_v2  ;;  %v7581_v55 = vadd.f32 %v7434_v61, %v7197_v59  ;;  %v7685_v2 = vld [vmem:[#allocation2 + $0x98] sm:$0xff]  ;;  %v7205_v59 = vld [vmem:[#allocation2 + $0x1a0] sm:$0xff] }
 0x4d9   : > { %v8250_v7 = vld [vmem:[#allocation2 + $0x43] sm:$0xff] }
 0x4da   : > { %v7771_v4 = vld [vmem:[#allocation2 + $0x14a] sm:$0xff]  ;;  %8125 = vst.msk [vmem:[#allocation2 + $0x58] sm:$0xff] %vm7601_vm1, %v8061_v5  ;;  %7646 = vst.msk [vmem:[#allocation2 + $0x160] sm:$0xff] %vm7601_vm1, %v7581_v55  ;;  %8386 = vrot.lane.b32.xlu0 %v8250_v7, %s11726_s14 }
 0x4db   : > { %7940 = vrot.lane.b32.xlu1 %v7771_v4, %s11725_s24  ;;  %v7883_v6 = vpop.permute.xlu0 %7882  ;;  %v7436_v9 = vpop.permute.xlu1 %7435 }
 0x4dc   : > { %v8062_v10 = vadd.f32 %v7883_v6, %v7678_v57  ;;  %v7582_v11 = vadd.f32 %v7436_v9, %v7198_v8  ;;  %v7686_v57 = vld [vmem:[#allocation2 + $0xa0] sm:$0xff]  ;;  %v7206_v8 = vld [vmem:[#allocation2 + $0x1a8] sm:$0xff] }
 0x4dd   : > { %v7772_v12 = vld [vmem:[#allocation2 + $0x152] sm:$0xff] }
 0x4de   : > { %v8251_v13 = vld [vmem:[#allocation2 + $0x4b] sm:$0xff]  ;;  %8126 = vst.msk [vmem:[#allocation2 + $0x60] sm:$0xff] %vm7601_vm1, %v8062_v10  ;;  %7647 = vst.msk [vmem:[#allocation2 + $0x168] sm:$0xff] %vm7601_vm1, %v7582_v11  ;;  %7942 = vrot.lane.b32.xlu0 %v7772_v12, %s11725_s24 }
 0x4df   : > { %8388 = vrot.lane.b32.xlu1 %v8251_v13, %s11726_s14  ;;  %v7885_v58 = vpop.permute.xlu1 %7884  ;;  %v7438_v16 = vpop.permute.xlu0 %7437 }
 0x4e0   : > { %v8063_v17 = vadd.f32 %v7885_v58, %v7679_v14  ;;  %v7583_v18 = vadd.f32 %v7438_v16, %v7199_v15  ;;  %v7687_v14 = vld [vmem:[#allocation2 + $0xa8] sm:$0xff]  ;;  %v7207_v15 = vld [vmem:[#allocation2 + $0x1b0] sm:$0xff] }
 0x4e1   : > { %v8252_v19 = vld [vmem:[#allocation2 + $0x53] sm:$0xff] }
 0x4e2   : > { %v7773_v20 = vld [vmem:[#allocation2 + $0x15a] sm:$0xff]  ;;  %8127 = vst.msk [vmem:[#allocation2 + $0x68] sm:$0xff] %vm7601_vm1, %v8063_v17  ;;  %7648 = vst.msk [vmem:[#allocation2 + $0x170] sm:$0xff] %vm7601_vm1, %v7583_v18  ;;  %8390 = vrot.lane.b32.xlu0 %v8252_v19, %s11726_s14 }
 0x4e3   : > { %7944 = vrot.lane.b32.xlu1 %v7773_v20, %s11725_s24  ;;  %v7887_v1 = vpop.permute.xlu0 %7886  ;;  %v7440_v23 = vpop.permute.xlu1 %7439 }
 0x4e4   : > { %v8064_v24 = vadd.f32 %v7887_v1, %v7680_v21  ;;  %v7584_v25 = vadd.f32 %v7440_v23, %v7200_v22  ;;  %v7688_v21 = vld [vmem:[#allocation2 + $0xb0] sm:$0xff]  ;;  %v7208_v22 = vld [vmem:[#allocation2 + $0x1b8] sm:$0xff] }
 0x4e5   : > { %v7774_v26 = vld [vmem:[#allocation2 + $0x162] sm:$0xff] }
 0x4e6   : > { %v8253_v27 = vld [vmem:[#allocation2 + $0x5b] sm:$0xff]  ;;  %8128 = vst.msk [vmem:[#allocation2 + $0x70] sm:$0xff] %vm7601_vm1, %v8064_v24  ;;  %7649 = vst.msk [vmem:[#allocation2 + $0x178] sm:$0xff] %vm7601_vm1, %v7584_v25  ;;  %7946 = vrot.lane.b32.xlu0 %v7774_v26, %s11725_s24 }
 0x4e7   : > { %8392 = vrot.lane.b32.xlu1 %v8253_v27, %s11726_s14  ;;  %v7889_v30 = vpop.permute.xlu1 %7888  ;;  %v7442_v32 = vpop.permute.xlu0 %7441 }
 0x4e8   : > { %v8065_v33 = vadd.f32 %v7889_v30, %v7681_v28  ;;  %v7585_v35 = vadd.f32 %v7442_v32, %v7201_v31  ;;  %v7689_v28 = vld [vmem:[#allocation2 + $0xb8] sm:$0xff]  ;;  %v7209_v31 = vld [vmem:[#allocation2 + $0x1c0] sm:$0xff] }
 0x4e9   : > { %v8254_v36 = vld [vmem:[#allocation2 + $0x63] sm:$0xff] }
 0x4ea   : > { %v7775_v38 = vld [vmem:[#allocation2 + $0x16a] sm:$0xff]  ;;  %8129 = vst.msk [vmem:[#allocation2 + $0x78] sm:$0xff] %vm7601_vm1, %v8065_v33  ;;  %7650 = vst.msk [vmem:[#allocation2 + $0x180] sm:$0xff] %vm7601_vm1, %v7585_v35  ;;  %8394 = vrot.lane.b32.xlu0 %v8254_v36, %s11726_s14 }
 0x4eb   : > { %7948 = vrot.lane.b32.xlu1 %v7775_v38, %s11725_s24  ;;  %v7891_v40 = vpop.permute.xlu0 %7890  ;;  %v7444_v46 = vpop.permute.xlu1 %7443 }
 0x4ec   : > { %v8066_v48 = vadd.f32 %v7891_v40, %v7682_v39  ;;  %v7586_v41 = vadd.f32 %v7444_v46, %v7202_v43  ;;  %v7690_v39 = vld [vmem:[#allocation2 + $0xc0] sm:$0xff]  ;;  %v7210_v43 = vld [vmem:[#allocation2 + $0x1c8] sm:$0xff] }
 0x4ed   : > { %v7776_v51 = vld [vmem:[#allocation2 + $0x172] sm:$0xff] }
 0x4ee   : > { %v8255_v54 = vld [vmem:[#allocation2 + $0x6b] sm:$0xff]  ;;  %8130 = vst.msk [vmem:[#allocation2 + $0x80] sm:$0xff] %vm7601_vm1, %v8066_v48  ;;  %7651 = vst.msk [vmem:[#allocation2 + $0x188] sm:$0xff] %vm7601_vm1, %v7586_v41  ;;  %7950 = vrot.lane.b32.xlu0 %v7776_v51, %s11725_s24 }
 0x4ef   : > { %8396 = vrot.lane.b32.xlu1 %v8255_v54, %s11726_s14  ;;  %v7893_v44 = vpop.permute.xlu1 %7892  ;;  %v7446_v62 = vpop.permute.xlu0 %7445 }
 0x4f0   : > { %v8067_v47 = vadd.f32 %v7893_v44, %v7683_v56  ;;  %v7587_v29 = vadd.f32 %v7446_v62, %v7203_v60  ;;  %v7691_v56 = vld [vmem:[#allocation2 + $0xc8] sm:$0xff]  ;;  %v7211_v60 = vld [vmem:[#allocation2 + $0x1d0] sm:$0xff] }
 0x4f1   : > { %v8256_v63 = vld [vmem:[#allocation2 + $0x73] sm:$0xff] }
 0x4f2   : > { %v7777_v34 = vld [vmem:[#allocation2 + $0x17a] sm:$0xff]  ;;  %8131 = vst.msk [vmem:[#allocation2 + $0x88] sm:$0xff] %vm7601_vm1, %v8067_v47  ;;  %7652 = vst.msk [vmem:[#allocation2 + $0x190] sm:$0xff] %vm7601_vm1, %v7587_v29  ;;  %8398 = vrot.lane.b32.xlu0 %v8256_v63, %s11726_s14 }
 0x4f3   : > { %7952 = vrot.lane.b32.xlu1 %v7777_v34, %s11725_s24  ;;  %v7895_v42 = vpop.permute.xlu0 %7894  ;;  %v7448_v45 = vpop.permute.xlu1 %7447 }
 0x4f4   : > { %v8068_v0 = vadd.f32 %v7895_v42, %v7684_v37  ;;  %v7588_v52 = vadd.f32 %v7448_v45, %v7204_v49  ;;  %v7692_v37 = vld [vmem:[#allocation2 + $0xd0] sm:$0xff]  ;;  %v7212_v49 = vld [vmem:[#allocation2 + $0x1d8] sm:$0xff] }
 0x4f5   : > { %v7778_v50 = vld [vmem:[#allocation2 + $0x182] sm:$0xff] }
 0x4f6   : > { %v8257_v53 = vld [vmem:[#allocation2 + $0x7b] sm:$0xff]  ;;  %8132 = vst.msk [vmem:[#allocation2 + $0x90] sm:$0xff] %vm7601_vm1, %v8068_v0  ;;  %7653 = vst.msk [vmem:[#allocation2 + $0x198] sm:$0xff] %vm7601_vm1, %v7588_v52  ;;  %7954 = vrot.lane.b32.xlu0 %v7778_v50, %s11725_s24 }
 0x4f7   : > { %8400 = vrot.lane.b32.xlu1 %v8257_v53, %s11726_s14  ;;  %v7897_v3 = vpop.permute.xlu1 %7896  ;;  %v7450_v61 = vpop.permute.xlu0 %7449 }
 0x4f8   : > { %v8069_v5 = vadd.f32 %v7897_v3, %v7685_v2  ;;  %v7589_v55 = vadd.f32 %v7450_v61, %v7205_v59  ;;  %v7693_v2 = vld [vmem:[#allocation2 + $0xd8] sm:$0xff]  ;;  %v7213_v59 = vld [vmem:[#allocation2 + $0x1e0] sm:$0xff] }
 0x4f9   : > { %v8258_v7 = vld [vmem:[#allocation2 + $0x83] sm:$0xff] }
 0x4fa   : > { %v7779_v4 = vld [vmem:[#allocation2 + $0x18a] sm:$0xff]  ;;  %8133 = vst.msk [vmem:[#allocation2 + $0x98] sm:$0xff] %vm7601_vm1, %v8069_v5  ;;  %7654 = vst.msk [vmem:[#allocation2 + $0x1a0] sm:$0xff] %vm7601_vm1, %v7589_v55  ;;  %8402 = vrot.lane.b32.xlu0 %v8258_v7, %s11726_s14 }
 0x4fb   : > { %7956 = vrot.lane.b32.xlu1 %v7779_v4, %s11725_s24  ;;  %v7899_v6 = vpop.permute.xlu0 %7898  ;;  %v7452_v9 = vpop.permute.xlu1 %7451 }
 0x4fc   : > { %v8070_v10 = vadd.f32 %v7899_v6, %v7686_v57  ;;  %v7590_v11 = vadd.f32 %v7452_v9, %v7206_v8  ;;  %v7694_v57 = vld [vmem:[#allocation2 + $0xe0] sm:$0xff]  ;;  %v7214_v8 = vld [vmem:[#allocation2 + $0x1e8] sm:$0xff] }
 0x4fd   : > { %v7780_v12 = vld [vmem:[#allocation2 + $0x192] sm:$0xff] }
 0x4fe   : > { %v8259_v13 = vld [vmem:[#allocation2 + $0x8b] sm:$0xff]  ;;  %8134 = vst.msk [vmem:[#allocation2 + $0xa0] sm:$0xff] %vm7601_vm1, %v8070_v10  ;;  %7655 = vst.msk [vmem:[#allocation2 + $0x1a8] sm:$0xff] %vm7601_vm1, %v7590_v11  ;;  %7958 = vrot.lane.b32.xlu0 %v7780_v12, %s11725_s24 }
 0x4ff   : > { %8404 = vrot.lane.b32.xlu1 %v8259_v13, %s11726_s14  ;;  %v7901_v58 = vpop.permute.xlu1 %7900  ;;  %v7454_v16 = vpop.permute.xlu0 %7453 }
 0x500   : > { %v8071_v17 = vadd.f32 %v7901_v58, %v7687_v14  ;;  %v7591_v18 = vadd.f32 %v7454_v16, %v7207_v15  ;;  %v7695_v14 = vld [vmem:[#allocation2 + $0xe8] sm:$0xff]  ;;  %v7215_v15 = vld [vmem:[#allocation2 + $0x1f0] sm:$0xff] }
 0x501   : > { %v8260_v19 = vld [vmem:[#allocation2 + $0x93] sm:$0xff] }
 0x502   : > { %v7781_v20 = vld [vmem:[#allocation2 + $0x19a] sm:$0xff]  ;;  %8135 = vst.msk [vmem:[#allocation2 + $0xa8] sm:$0xff] %vm7601_vm1, %v8071_v17  ;;  %7656 = vst.msk [vmem:[#allocation2 + $0x1b0] sm:$0xff] %vm7601_vm1, %v7591_v18  ;;  %8406 = vrot.lane.b32.xlu0 %v8260_v19, %s11726_s14 }
 0x503   : > { %7960 = vrot.lane.b32.xlu1 %v7781_v20, %s11725_s24  ;;  %v7903_v1 = vpop.permute.xlu0 %7902  ;;  %v7456_v23 = vpop.permute.xlu1 %7455 }
 0x504   : > { %v8072_v24 = vadd.f32 %v7903_v1, %v7688_v21  ;;  %v7592_v25 = vadd.f32 %v7456_v23, %v7208_v22  ;;  %v7696_v21 = vld [vmem:[#allocation2 + $0xf0] sm:$0xff]  ;;  %v7216_v22 = vld [vmem:[#allocation2 + $0x1f8] sm:$0xff] }
 0x505   : > { %v7782_v26 = vld [vmem:[#allocation2 + $0x1a2] sm:$0xff] }
 0x506   : > { %v8261_v27 = vld [vmem:[#allocation2 + $0x9b] sm:$0xff]  ;;  %8136 = vst.msk [vmem:[#allocation2 + $0xb0] sm:$0xff] %vm7601_vm1, %v8072_v24  ;;  %7657 = vst.msk [vmem:[#allocation2 + $0x1b8] sm:$0xff] %vm7601_vm1, %v7592_v25  ;;  %7962 = vrot.lane.b32.xlu0 %v7782_v26, %s11725_s24 }
 0x507   : > { %8408 = vrot.lane.b32.xlu1 %v8261_v27, %s11726_s14  ;;  %v7905_v30 = vpop.permute.xlu1 %7904  ;;  %v7458_v32 = vpop.permute.xlu0 %7457 }
 0x508   : > { %v8073_v33 = vadd.f32 %v7905_v30, %v7689_v28  ;;  %v7593_v35 = vadd.f32 %v7458_v32, %v7209_v31  ;;  %v7697_v28 = vld [vmem:[#allocation2 + $0xf8] sm:$0xff]  ;;  %v7698_v32 = vld [vmem:[#allocation2 + $0x100] sm:$0xff] }
 0x509   : > { %v8262_v36 = vld [vmem:[#allocation2 + $0xa3] sm:$0xff] }
 0x50a   : > { %v7783_v38 = vld [vmem:[#allocation2 + $0x1aa] sm:$0xff]  ;;  %8137 = vst.msk [vmem:[#allocation2 + $0xb8] sm:$0xff] %vm7601_vm1, %v8073_v33  ;;  %7658 = vst.msk [vmem:[#allocation2 + $0x1c0] sm:$0xff] %vm7601_vm1, %v7593_v35  ;;  %8410 = vrot.lane.b32.xlu0 %v8262_v36, %s11726_s14 }
 0x50b   : > { %7964 = vrot.lane.b32.xlu1 %v7783_v38, %s11725_s24  ;;  %v7907_v40 = vpop.permute.xlu0 %7906  ;;  %v7460_v46 = vpop.permute.xlu1 %7459 }
 0x50c   : > { %v8074_v48 = vadd.f32 %v7907_v40, %v7690_v39  ;;  %v7594_v41 = vadd.f32 %v7460_v46, %v7210_v43  ;;  %v8178_v39 = vld [vmem:[#allocation2] sm:$0xff]  ;;  %v7699_v43 = vld [vmem:[#allocation2 + $0x108] sm:$0xff] }
 0x50d   : > { %v7784_v51 = vld [vmem:[#allocation2 + $0x1b2] sm:$0xff] }
 0x50e   : > { %v8263_v54 = vld [vmem:[#allocation2 + $0xab] sm:$0xff]  ;;  %8138 = vst.msk [vmem:[#allocation2 + $0xc0] sm:$0xff] %vm7601_vm1, %v8074_v48  ;;  %7659 = vst.msk [vmem:[#allocation2 + $0x1c8] sm:$0xff] %vm7601_vm1, %v7594_v41  ;;  %7966 = vrot.lane.b32.xlu0 %v7784_v51, %s11725_s24 }
 0x50f   : > { %8412 = vrot.lane.b32.xlu1 %v8263_v54, %s11726_s14  ;;  %v7909_v44 = vpop.permute.xlu1 %7908  ;;  %v7462_v62 = vpop.permute.xlu0 %7461 }
 0x510   : > { %v8075_v47 = vadd.f32 %v7909_v44, %v7691_v56  ;;  %v7595_v29 = vadd.f32 %v7462_v62, %v7211_v60  ;;  %v7700_v56 = vld [vmem:[#allocation2 + $0x110] sm:$0xff]  ;;  %v8179_v60 = vld [vmem:[#allocation2 + $0x8] sm:$0xff] }
 0x511   : > { %v8264_v63 = vld [vmem:[#allocation2 + $0xb3] sm:$0xff] }
 0x512   : > { %v7785_v34 = vld [vmem:[#allocation2 + $0x1ba] sm:$0xff]  ;;  %8139 = vst.msk [vmem:[#allocation2 + $0xc8] sm:$0xff] %vm7601_vm1, %v8075_v47  ;;  %7660 = vst.msk [vmem:[#allocation2 + $0x1d0] sm:$0xff] %vm7601_vm1, %v7595_v29  ;;  %8414 = vrot.lane.b32.xlu0 %v8264_v63, %s11726_s14 }
 0x513   : > { %7968 = vrot.lane.b32.xlu1 %v7785_v34, %s11725_s24  ;;  %v7911_v42 = vpop.permute.xlu0 %7910  ;;  %v7464_v45 = vpop.permute.xlu1 %7463 }
 0x514   : > { %v8076_v0 = vadd.f32 %v7911_v42, %v7692_v37  ;;  %v7596_v52 = vadd.f32 %v7464_v45, %v7212_v49  ;;  %v8180_v37 = vld [vmem:[#allocation2 + $0x10] sm:$0xff]  ;;  %v7701_v49 = vld [vmem:[#allocation2 + $0x118] sm:$0xff] }
 0x515   : > { %v7786_v50 = vld [vmem:[#allocation2 + $0x1c2] sm:$0xff] }
 0x516   : > { %v8265_v53 = vld [vmem:[#allocation2 + $0xbb] sm:$0xff]  ;;  %8140 = vst.msk [vmem:[#allocation2 + $0xd0] sm:$0xff] %vm7601_vm1, %v8076_v0  ;;  %7661 = vst.msk [vmem:[#allocation2 + $0x1d8] sm:$0xff] %vm7601_vm1, %v7596_v52  ;;  %7970 = vrot.lane.b32.xlu0 %v7786_v50, %s11725_s24 }
 0x517   : > { %8416 = vrot.lane.b32.xlu1 %v8265_v53, %s11726_s14  ;;  %v7913_v3 = vpop.permute.xlu1 %7912  ;;  %v7466_v61 = vpop.permute.xlu0 %7465 }
 0x518   : > { %v8077_v5 = vadd.f32 %v7913_v3, %v7693_v2  ;;  %v7597_v55 = vadd.f32 %v7466_v61, %v7213_v59  ;;  %v7702_v2 = vld [vmem:[#allocation2 + $0x120] sm:$0xff]  ;;  %v8181_v59 = vld [vmem:[#allocation2 + $0x18] sm:$0xff] }
 0x519   : > { %v8266_v7 = vld [vmem:[#allocation2 + $0xc3] sm:$0xff] }
 0x51a   : > { %v7787_v4 = vld [vmem:[#allocation2 + $0x1ca] sm:$0xff]  ;;  %8141 = vst.msk [vmem:[#allocation2 + $0xd8] sm:$0xff] %vm7601_vm1, %v8077_v5  ;;  %7662 = vst.msk [vmem:[#allocation2 + $0x1e0] sm:$0xff] %vm7601_vm1, %v7597_v55  ;;  %8418 = vrot.lane.b32.xlu0 %v8266_v7, %s11726_s14 }
 0x51b   : > { %7972 = vrot.lane.b32.xlu1 %v7787_v4, %s11725_s24  ;;  %v7915_v6 = vpop.permute.xlu0 %7914  ;;  %v7468_v9 = vpop.permute.xlu1 %7467 }
 0x51c   : > { %v8078_v10 = vadd.f32 %v7915_v6, %v7694_v57  ;;  %v7598_v11 = vadd.f32 %v7468_v9, %v7214_v8  ;;  %v8182_v57 = vld [vmem:[#allocation2 + $0x20] sm:$0xff]  ;;  %v7703_v8 = vld [vmem:[#allocation2 + $0x128] sm:$0xff] }
 0x51d   : > { %v7788_v12 = vld [vmem:[#allocation2 + $0x1d2] sm:$0xff] }
 0x51e   : > { %v8267_v13 = vld [vmem:[#allocation2 + $0xcb] sm:$0xff]  ;;  %8142 = vst.msk [vmem:[#allocation2 + $0xe0] sm:$0xff] %vm7601_vm1, %v8078_v10  ;;  %7663 = vst.msk [vmem:[#allocation2 + $0x1e8] sm:$0xff] %vm7601_vm1, %v7598_v11  ;;  %7974 = vrot.lane.b32.xlu0 %v7788_v12, %s11725_s24 }
 0x51f   : > { %8420 = vrot.lane.b32.xlu1 %v8267_v13, %s11726_s14  ;;  %v7917_v58 = vpop.permute.xlu1 %7916  ;;  %v7470_v16 = vpop.permute.xlu0 %7469 }
 0x520   : > { %v8079_v17 = vadd.f32 %v7917_v58, %v7695_v14  ;;  %v7599_v18 = vadd.f32 %v7470_v16, %v7215_v15  ;;  %v7704_v14 = vld [vmem:[#allocation2 + $0x130] sm:$0xff]  ;;  %v8183_v15 = vld [vmem:[#allocation2 + $0x28] sm:$0xff] }
 0x521   : > { %v8268_v19 = vld [vmem:[#allocation2 + $0xd3] sm:$0xff] }
 0x522   : > { %v7789_v20 = vld [vmem:[#allocation2 + $0x1da] sm:$0xff]  ;;  %8143 = vst.msk [vmem:[#allocation2 + $0xe8] sm:$0xff] %vm7601_vm1, %v8079_v17  ;;  %7664 = vst.msk [vmem:[#allocation2 + $0x1f0] sm:$0xff] %vm7601_vm1, %v7599_v18  ;;  %8422 = vrot.lane.b32.xlu0 %v8268_v19, %s11726_s14 }
 0x523   : > { %7976 = vrot.lane.b32.xlu1 %v7789_v20, %s11725_s24  ;;  %v7919_v1 = vpop.permute.xlu0 %7918  ;;  %v7472_v23 = vpop.permute.xlu1 %7471 }
 0x524   : > { %v8080_v24 = vadd.f32 %v7919_v1, %v7696_v21  ;;  %v7600_v25 = vadd.f32 %v7472_v23, %v7216_v22  ;;  %v8184_v21 = vld [vmem:[#allocation2 + $0x30] sm:$0xff]  ;;  %v7705_v22 = vld [vmem:[#allocation2 + $0x138] sm:$0xff] }
 0x525   : > { %v7790_v26 = vld [vmem:[#allocation2 + $0x1e2] sm:$0xff] }
 0x526   : > { %v8269_v27 = vld [vmem:[#allocation2 + $0xdb] sm:$0xff]  ;;  %8144 = vst.msk [vmem:[#allocation2 + $0xf0] sm:$0xff] %vm7601_vm1, %v8080_v24  ;;  %7665 = vst.msk [vmem:[#allocation2 + $0x1f8] sm:$0xff] %vm7601_vm1, %v7600_v25  ;;  %7978 = vrot.lane.b32.xlu0 %v7790_v26, %s11725_s24 }
 0x527   : > { %8424 = vrot.lane.b32.xlu1 %v8269_v27, %s11726_s14  ;;  %v7921_v30 = vpop.permute.xlu1 %7920 }
 0x528   : > { %v8081_v31 = vadd.f32 %v7921_v30, %v7697_v28  ;;  %v7923_v33 = vpop.permute.xlu0 %7922  ;;  %v7706_v28 = vld [vmem:[#allocation2 + $0x140] sm:$0xff] }
 0x529   : > { %v8082_v35 = vadd.f32 %v7923_v33, %v7698_v32  ;;  %v8270_v36 = vld [vmem:[#allocation2 + $0xe3] sm:$0xff] }
 0x52a   : > { %v7791_v38 = vld [vmem:[#allocation2 + $0x1ea] sm:$0xff]  ;;  %8145 = vst.msk [vmem:[#allocation2 + $0xf8] sm:$0xff] %vm7601_vm1, %v8081_v31  ;;  %8426 = vrot.lane.b32.xlu0 %v8270_v36, %s11726_s14  ;;  %v8185_v31 = vld [vmem:[#allocation2 + $0x38] sm:$0xff] }
 0x52b   : > { %7980 = vrot.lane.b32.xlu1 %v7791_v38, %s11725_s24  ;;  %8146 = vst.msk [vmem:[#allocation2 + $0x100] sm:$0xff] %vm7601_vm1, %v8082_v35 }
 0x52c   : > { %v8371_v40 = vpop.permute.xlu0 %8370 }
 0x52d   : > { %v7925_v46 = vpop.permute.xlu1 %7924  ;;  %v8562_v48 = vadd.f32 %v8371_v40, %v8178_v39  ;;  %v8271_v51 = vld [vmem:[#allocation2 + $0xeb] sm:$0xff]  ;;  %v7793_v63 = vld [vmem:[#allocation2 + $0x1fa] sm:$0xff] }
 0x52e   : > { %v8083_v41 = vadd.f32 %v7925_v46, %v7699_v43  ;;  %v7792_v54 = vld [vmem:[#allocation2 + $0x1f2] sm:$0xff]  ;;  %v8186_v39 = vld [vmem:[#allocation2 + $0x40] sm:$0xff]  ;;  %v7707_v43 = vld [vmem:[#allocation2 + $0x148] sm:$0xff] }
 0x52f   : > { %8428 = vrot.lane.b32.xlu1 %v8271_v51, %s11726_s14  ;;  %7982 = vrot.lane.b32.xlu0 %v7792_v54, %s11725_s24  ;;  %8626 = vst.msk [vmem:[#allocation2] sm:$0xff] %vm7601_vm1, %v8562_v48 }
 0x530   : > { %8147 = vst.msk [vmem:[#allocation2 + $0x108] sm:$0xff] %vm7601_vm1, %v8083_v41  ;;  %v7927_v44 = vpop.permute.xlu0 %7926 }
 0x531   : > { %v8373_v62 = vpop.permute.xlu1 %8372  ;;  %v8084_v47 = vadd.f32 %v7927_v44, %v7700_v56  ;;  %v8272_v34 = vld [vmem:[#allocation2 + $0xf3] sm:$0xff] }
 0x532   : > { %v8563_v29 = vadd.f32 %v8373_v62, %v8179_v60  ;;  %v8273_v50 = vld [vmem:[#allocation2 + $0xfb] sm:$0xff]  ;;  %v7708_v56 = vld [vmem:[#allocation2 + $0x150] sm:$0xff]  ;;  %v8187_v60 = vld [vmem:[#allocation2 + $0x48] sm:$0xff] }
 0x533   : > { %7984 = vrot.lane.b32.xlu1 %v7793_v63, %s11725_s24  ;;  %8430 = vrot.lane.b32.xlu0 %v8272_v34, %s11726_s14  ;;  %8148 = vst.msk [vmem:[#allocation2 + $0x110] sm:$0xff] %vm7601_vm1, %v8084_v47 }
 0x534   : > { %8627 = vst.msk [vmem:[#allocation2 + $0x8] sm:$0xff] %vm7601_vm1, %v8563_v29  ;;  %v8375_v42 = vpop.permute.xlu0 %8374 }
 0x535   : > { %v7929_v45 = vpop.permute.xlu1 %7928  ;;  %v8564_v0 = vadd.f32 %v8375_v42, %v8180_v37  ;;  %v8188_v37 = vld [vmem:[#allocation2 + $0x50] sm:$0xff] }
 0x536   : > { %v8085_v52 = vadd.f32 %v7929_v45, %v7701_v49  ;;  %v7709_v49 = vld [vmem:[#allocation2 + $0x158] sm:$0xff] }
 0x537   : > { %8432 = vrot.lane.b32.xlu1 %v8273_v50, %s11726_s14  ;;  %v8274_v53 = vld [vmem:[#allocation2 + $0x103] sm:$0xff]  ;;  %8628 = vst.msk [vmem:[#allocation2 + $0x10] sm:$0xff] %vm7601_vm1, %v8564_v0 }
 0x538   : > { %8149 = vst.msk [vmem:[#allocation2 + $0x118] sm:$0xff] %vm7601_vm1, %v8085_v52  ;;  %8434 = vrot.lane.b32.xlu0 %v8274_v53, %s11726_s14  ;;  %v7931_v3 = vpop.permute.xlu0 %7930 }
 0x539   : > { %v8377_v61 = vpop.permute.xlu1 %8376  ;;  %v8086_v5 = vadd.f32 %v7931_v3, %v7702_v2  ;;  %v7710_v2 = vld [vmem:[#allocation2 + $0x160] sm:$0xff] }
 0x53a   : > { %v8565_v55 = vadd.f32 %v8377_v61, %v8181_v59  ;;  %v8275_v7 = vld [vmem:[#allocation2 + $0x10b] sm:$0xff]  ;;  %v8189_v59 = vld [vmem:[#allocation2 + $0x58] sm:$0xff] }
 0x53b   : > { %v8754_v4 = vld [vmem:[#allocation2 + $0x4] sm:$0xff]  ;;  %8150 = vst.msk [vmem:[#allocation2 + $0x120] sm:$0xff] %vm7601_vm1, %v8086_v5  ;;  %8436 = vrot.lane.b32.xlu1 %v8275_v7, %s11726_s14 }
 0x53c   : > { %8629 = vst.msk [vmem:[#allocation2 + $0x18] sm:$0xff] %vm7601_vm1, %v8565_v55  ;;  %8882 = vrot.lane.b32.xlu0 %v8754_v4, %s11727_s15  ;;  %v8379_v6 = vpop.permute.xlu0 %8378 }
 0x53d   : > { %v7933_v9 = vpop.permute.xlu1 %7932  ;;  %v8566_v10 = vadd.f32 %v8379_v6, %v8182_v57  ;;  %v8190_v57 = vld [vmem:[#allocation2 + $0x60] sm:$0xff] }
 0x53e   : > { %v8087_v11 = vadd.f32 %v7933_v9, %v7703_v8  ;;  %v8755_v12 = vld [vmem:[#allocation2 + $0xc] sm:$0xff] }
 0x53f   : > { %v8276_v13 = vld [vmem:[#allocation2 + $0x113] sm:$0xff]  ;;  %8630 = vst.msk [vmem:[#allocation2 + $0x20] sm:$0xff] %vm7601_vm1, %v8566_v10  ;;  %8884 = vrot.lane.b32.xlu1 %v8755_v12, %s11727_s15  ;;  %v7711_v8 = vld [vmem:[#allocation2 + $0x168] sm:$0xff] }
 0x540   : > { %8151 = vst.msk [vmem:[#allocation2 + $0x128] sm:$0xff] %vm7601_vm1, %v8087_v11  ;;  %8438 = vrot.lane.b32.xlu0 %v8276_v13, %s11726_s14  ;;  %v7935_v58 = vpop.permute.xlu0 %7934 }
 0x541   : > { %v8381_v16 = vpop.permute.xlu1 %8380  ;;  %v8088_v17 = vadd.f32 %v7935_v58, %v7704_v14  ;;  %v7712_v14 = vld [vmem:[#allocation2 + $0x170] sm:$0xff] }
 0x542   : > { %v8567_v18 = vadd.f32 %v8381_v16, %v8183_v15  ;;  %v8277_v19 = vld [vmem:[#allocation2 + $0x11b] sm:$0xff]  ;;  %v8191_v15 = vld [vmem:[#allocation2 + $0x68] sm:$0xff] }
 0x543   : > { %v8756_v20 = vld [vmem:[#allocation2 + $0x14] sm:$0xff]  ;;  %8152 = vst.msk [vmem:[#allocation2 + $0x130] sm:$0xff] %vm7601_vm1, %v8088_v17  ;;  %8440 = vrot.lane.b32.xlu1 %v8277_v19, %s11726_s14 }
 0x544   : > { %8631 = vst.msk [vmem:[#allocation2 + $0x28] sm:$0xff] %vm7601_vm1, %v8567_v18  ;;  %8886 = vrot.lane.b32.xlu0 %v8756_v20, %s11727_s15  ;;  %v8383_v1 = vpop.permute.xlu0 %8382 }
 0x545   : > { %v7937_v23 = vpop.permute.xlu1 %7936  ;;  %v8568_v24 = vadd.f32 %v8383_v1, %v8184_v21  ;;  %v8192_v21 = vld [vmem:[#allocation2 + $0x70] sm:$0xff] }
 0x546   : > { %v8089_v25 = vadd.f32 %v7937_v23, %v7705_v22  ;;  %v8757_v26 = vld [vmem:[#allocation2 + $0x1c] sm:$0xff] }
 0x547   : > { %v8278_v27 = vld [vmem:[#allocation2 + $0x123] sm:$0xff]  ;;  %8632 = vst.msk [vmem:[#allocation2 + $0x30] sm:$0xff] %vm7601_vm1, %v8568_v24  ;;  %8888 = vrot.lane.b32.xlu1 %v8757_v26, %s11727_s15  ;;  %v7713_v22 = vld [vmem:[#allocation2 + $0x178] sm:$0xff] }
 0x548   : > { %8153 = vst.msk [vmem:[#allocation2 + $0x138] sm:$0xff] %vm7601_vm1, %v8089_v25  ;;  %8442 = vrot.lane.b32.xlu0 %v8278_v27, %s11726_s14  ;;  %v7939_v30 = vpop.permute.xlu0 %7938 }
 0x549   : > { %v8385_v32 = vpop.permute.xlu1 %8384  ;;  %v8090_v33 = vadd.f32 %v7939_v30, %v7706_v28  ;;  %v7714_v28 = vld [vmem:[#allocation2 + $0x180] sm:$0xff] }
 0x54a   : > { %v8569_v35 = vadd.f32 %v8385_v32, %v8185_v31  ;;  %v8279_v36 = vld [vmem:[#allocation2 + $0x12b] sm:$0xff]  ;;  %v8193_v31 = vld [vmem:[#allocation2 + $0x78] sm:$0xff] }
 0x54b   : > { %v8758_v38 = vld [vmem:[#allocation2 + $0x24] sm:$0xff]  ;;  %8154 = vst.msk [vmem:[#allocation2 + $0x140] sm:$0xff] %vm7601_vm1, %v8090_v33  ;;  %8444 = vrot.lane.b32.xlu1 %v8279_v36, %s11726_s14 }
 0x54c   : > { %8633 = vst.msk [vmem:[#allocation2 + $0x38] sm:$0xff] %vm7601_vm1, %v8569_v35  ;;  %8890 = vrot.lane.b32.xlu0 %v8758_v38, %s11727_s15  ;;  %v8387_v40 = vpop.permute.xlu0 %8386 }
 0x54d   : > { %v7941_v46 = vpop.permute.xlu1 %7940  ;;  %v8570_v48 = vadd.f32 %v8387_v40, %v8186_v39  ;;  %v8194_v39 = vld [vmem:[#allocation2 + $0x80] sm:$0xff] }
 0x54e   : > { %v8091_v41 = vadd.f32 %v7941_v46, %v7707_v43  ;;  %v8759_v51 = vld [vmem:[#allocation2 + $0x2c] sm:$0xff] }
 0x54f   : > { %v8280_v54 = vld [vmem:[#allocation2 + $0x133] sm:$0xff]  ;;  %8634 = vst.msk [vmem:[#allocation2 + $0x40] sm:$0xff] %vm7601_vm1, %v8570_v48  ;;  %8892 = vrot.lane.b32.xlu1 %v8759_v51, %s11727_s15  ;;  %v7715_v43 = vld [vmem:[#allocation2 + $0x188] sm:$0xff] }
 0x550   : > { %8155 = vst.msk [vmem:[#allocation2 + $0x148] sm:$0xff] %vm7601_vm1, %v8091_v41  ;;  %8446 = vrot.lane.b32.xlu0 %v8280_v54, %s11726_s14  ;;  %v7943_v44 = vpop.permute.xlu0 %7942 }
 0x551   : > { %v8389_v62 = vpop.permute.xlu1 %8388  ;;  %v8092_v47 = vadd.f32 %v7943_v44, %v7708_v56  ;;  %v7716_v56 = vld [vmem:[#allocation2 + $0x190] sm:$0xff] }
 0x552   : > { %v8571_v29 = vadd.f32 %v8389_v62, %v8187_v60  ;;  %v8281_v63 = vld [vmem:[#allocation2 + $0x13b] sm:$0xff]  ;;  %v8195_v60 = vld [vmem:[#allocation2 + $0x88] sm:$0xff] }
 0x553   : > { %v8760_v34 = vld [vmem:[#allocation2 + $0x34] sm:$0xff]  ;;  %8156 = vst.msk [vmem:[#allocation2 + $0x150] sm:$0xff] %vm7601_vm1, %v8092_v47  ;;  %8448 = vrot.lane.b32.xlu1 %v8281_v63, %s11726_s14 }
 0x554   : > { %8635 = vst.msk [vmem:[#allocation2 + $0x48] sm:$0xff] %vm7601_vm1, %v8571_v29  ;;  %8894 = vrot.lane.b32.xlu0 %v8760_v34, %s11727_s15  ;;  %v8391_v42 = vpop.permute.xlu0 %8390 }
 0x555   : > { %v7945_v45 = vpop.permute.xlu1 %7944  ;;  %v8572_v0 = vadd.f32 %v8391_v42, %v8188_v37  ;;  %v8196_v37 = vld [vmem:[#allocation2 + $0x90] sm:$0xff] }
 0x556   : > { %v8093_v52 = vadd.f32 %v7945_v45, %v7709_v49  ;;  %v8761_v50 = vld [vmem:[#allocation2 + $0x3c] sm:$0xff] }
 0x557   : > { %v8282_v53 = vld [vmem:[#allocation2 + $0x143] sm:$0xff]  ;;  %8636 = vst.msk [vmem:[#allocation2 + $0x50] sm:$0xff] %vm7601_vm1, %v8572_v0  ;;  %8896 = vrot.lane.b32.xlu1 %v8761_v50, %s11727_s15  ;;  %v7717_v49 = vld [vmem:[#allocation2 + $0x198] sm:$0xff] }
 0x558   : > { %8157 = vst.msk [vmem:[#allocation2 + $0x158] sm:$0xff] %vm7601_vm1, %v8093_v52  ;;  %8450 = vrot.lane.b32.xlu0 %v8282_v53, %s11726_s14  ;;  %v7947_v3 = vpop.permute.xlu0 %7946 }
 0x559   : > { %v8393_v61 = vpop.permute.xlu1 %8392  ;;  %v8094_v5 = vadd.f32 %v7947_v3, %v7710_v2  ;;  %v7718_v2 = vld [vmem:[#allocation2 + $0x1a0] sm:$0xff] }
 0x55a   : > { %v8573_v55 = vadd.f32 %v8393_v61, %v8189_v59  ;;  %v8283_v7 = vld [vmem:[#allocation2 + $0x14b] sm:$0xff]  ;;  %v8197_v59 = vld [vmem:[#allocation2 + $0x98] sm:$0xff] }
 0x55b   : > { %v8762_v4 = vld [vmem:[#allocation2 + $0x44] sm:$0xff]  ;;  %8158 = vst.msk [vmem:[#allocation2 + $0x160] sm:$0xff] %vm7601_vm1, %v8094_v5  ;;  %8452 = vrot.lane.b32.xlu1 %v8283_v7, %s11726_s14 }
 0x55c   : > { %8637 = vst.msk [vmem:[#allocation2 + $0x58] sm:$0xff] %vm7601_vm1, %v8573_v55  ;;  %8898 = vrot.lane.b32.xlu0 %v8762_v4, %s11727_s15  ;;  %v8395_v6 = vpop.permute.xlu0 %8394 }
 0x55d   : > { %v7949_v9 = vpop.permute.xlu1 %7948  ;;  %v8574_v10 = vadd.f32 %v8395_v6, %v8190_v57  ;;  %v8198_v57 = vld [vmem:[#allocation2 + $0xa0] sm:$0xff] }
 0x55e   : > { %v8095_v11 = vadd.f32 %v7949_v9, %v7711_v8  ;;  %v8763_v12 = vld [vmem:[#allocation2 + $0x4c] sm:$0xff] }
 0x55f   : > { %v8284_v13 = vld [vmem:[#allocation2 + $0x153] sm:$0xff]  ;;  %8638 = vst.msk [vmem:[#allocation2 + $0x60] sm:$0xff] %vm7601_vm1, %v8574_v10  ;;  %8900 = vrot.lane.b32.xlu1 %v8763_v12, %s11727_s15  ;;  %v7719_v8 = vld [vmem:[#allocation2 + $0x1a8] sm:$0xff] }
 0x560   : > { %8159 = vst.msk [vmem:[#allocation2 + $0x168] sm:$0xff] %vm7601_vm1, %v8095_v11  ;;  %8454 = vrot.lane.b32.xlu0 %v8284_v13, %s11726_s14  ;;  %v7951_v58 = vpop.permute.xlu0 %7950 }
 0x561   : > { %v8397_v16 = vpop.permute.xlu1 %8396  ;;  %v8096_v17 = vadd.f32 %v7951_v58, %v7712_v14  ;;  %v7720_v14 = vld [vmem:[#allocation2 + $0x1b0] sm:$0xff] }
 0x562   : > { %v8575_v18 = vadd.f32 %v8397_v16, %v8191_v15  ;;  %v8285_v19 = vld [vmem:[#allocation2 + $0x15b] sm:$0xff]  ;;  %v8199_v15 = vld [vmem:[#allocation2 + $0xa8] sm:$0xff] }
 0x563   : > { %v8764_v20 = vld [vmem:[#allocation2 + $0x54] sm:$0xff]  ;;  %8160 = vst.msk [vmem:[#allocation2 + $0x170] sm:$0xff] %vm7601_vm1, %v8096_v17  ;;  %8456 = vrot.lane.b32.xlu1 %v8285_v19, %s11726_s14 }
 0x564   : > { %8639 = vst.msk [vmem:[#allocation2 + $0x68] sm:$0xff] %vm7601_vm1, %v8575_v18  ;;  %8902 = vrot.lane.b32.xlu0 %v8764_v20, %s11727_s15  ;;  %v8399_v1 = vpop.permute.xlu0 %8398 }
 0x565   : > { %v7953_v23 = vpop.permute.xlu1 %7952  ;;  %v8576_v24 = vadd.f32 %v8399_v1, %v8192_v21  ;;  %v8200_v21 = vld [vmem:[#allocation2 + $0xb0] sm:$0xff] }
 0x566   : > { %v8097_v25 = vadd.f32 %v7953_v23, %v7713_v22  ;;  %v8765_v26 = vld [vmem:[#allocation2 + $0x5c] sm:$0xff] }
 0x567   : > { %v8286_v27 = vld [vmem:[#allocation2 + $0x163] sm:$0xff]  ;;  %8640 = vst.msk [vmem:[#allocation2 + $0x70] sm:$0xff] %vm7601_vm1, %v8576_v24  ;;  %8904 = vrot.lane.b32.xlu1 %v8765_v26, %s11727_s15  ;;  %v7721_v22 = vld [vmem:[#allocation2 + $0x1b8] sm:$0xff] }
 0x568   : > { %8161 = vst.msk [vmem:[#allocation2 + $0x178] sm:$0xff] %vm7601_vm1, %v8097_v25  ;;  %8458 = vrot.lane.b32.xlu0 %v8286_v27, %s11726_s14  ;;  %v7955_v30 = vpop.permute.xlu0 %7954 }
 0x569   : > { %v8401_v32 = vpop.permute.xlu1 %8400  ;;  %v8098_v33 = vadd.f32 %v7955_v30, %v7714_v28  ;;  %v7722_v28 = vld [vmem:[#allocation2 + $0x1c0] sm:$0xff] }
 0x56a   : > { %v8577_v35 = vadd.f32 %v8401_v32, %v8193_v31  ;;  %v8287_v36 = vld [vmem:[#allocation2 + $0x16b] sm:$0xff]  ;;  %v8201_v31 = vld [vmem:[#allocation2 + $0xb8] sm:$0xff] }
 0x56b   : > { %v8766_v38 = vld [vmem:[#allocation2 + $0x64] sm:$0xff]  ;;  %8162 = vst.msk [vmem:[#allocation2 + $0x180] sm:$0xff] %vm7601_vm1, %v8098_v33  ;;  %8460 = vrot.lane.b32.xlu1 %v8287_v36, %s11726_s14 }
 0x56c   : > { %8641 = vst.msk [vmem:[#allocation2 + $0x78] sm:$0xff] %vm7601_vm1, %v8577_v35  ;;  %8906 = vrot.lane.b32.xlu0 %v8766_v38, %s11727_s15  ;;  %v8403_v40 = vpop.permute.xlu0 %8402 }
 0x56d   : > { %v7957_v46 = vpop.permute.xlu1 %7956  ;;  %v8578_v48 = vadd.f32 %v8403_v40, %v8194_v39  ;;  %v8202_v39 = vld [vmem:[#allocation2 + $0xc0] sm:$0xff] }
 0x56e   : > { %v8099_v41 = vadd.f32 %v7957_v46, %v7715_v43  ;;  %v8767_v51 = vld [vmem:[#allocation2 + $0x6c] sm:$0xff] }
 0x56f   : > { %v8288_v54 = vld [vmem:[#allocation2 + $0x173] sm:$0xff]  ;;  %8642 = vst.msk [vmem:[#allocation2 + $0x80] sm:$0xff] %vm7601_vm1, %v8578_v48  ;;  %8908 = vrot.lane.b32.xlu1 %v8767_v51, %s11727_s15  ;;  %v7723_v43 = vld [vmem:[#allocation2 + $0x1c8] sm:$0xff] }
 0x570   : > { %8163 = vst.msk [vmem:[#allocation2 + $0x188] sm:$0xff] %vm7601_vm1, %v8099_v41  ;;  %8462 = vrot.lane.b32.xlu0 %v8288_v54, %s11726_s14  ;;  %v7959_v44 = vpop.permute.xlu0 %7958 }
 0x571   : > { %v8405_v62 = vpop.permute.xlu1 %8404  ;;  %v8100_v47 = vadd.f32 %v7959_v44, %v7716_v56  ;;  %v7724_v56 = vld [vmem:[#allocation2 + $0x1d0] sm:$0xff] }
 0x572   : > { %v8579_v29 = vadd.f32 %v8405_v62, %v8195_v60  ;;  %v8289_v63 = vld [vmem:[#allocation2 + $0x17b] sm:$0xff]  ;;  %v8203_v60 = vld [vmem:[#allocation2 + $0xc8] sm:$0xff] }
 0x573   : > { %v8768_v34 = vld [vmem:[#allocation2 + $0x74] sm:$0xff]  ;;  %8164 = vst.msk [vmem:[#allocation2 + $0x190] sm:$0xff] %vm7601_vm1, %v8100_v47  ;;  %8464 = vrot.lane.b32.xlu1 %v8289_v63, %s11726_s14 }
 0x574   : > { %8643 = vst.msk [vmem:[#allocation2 + $0x88] sm:$0xff] %vm7601_vm1, %v8579_v29  ;;  %8910 = vrot.lane.b32.xlu0 %v8768_v34, %s11727_s15  ;;  %v8407_v42 = vpop.permute.xlu0 %8406 }
 0x575   : > { %v7961_v45 = vpop.permute.xlu1 %7960  ;;  %v8580_v0 = vadd.f32 %v8407_v42, %v8196_v37  ;;  %v8204_v37 = vld [vmem:[#allocation2 + $0xd0] sm:$0xff] }
 0x576   : > { %v8101_v52 = vadd.f32 %v7961_v45, %v7717_v49  ;;  %v8769_v50 = vld [vmem:[#allocation2 + $0x7c] sm:$0xff] }
 0x577   : > { %v8290_v53 = vld [vmem:[#allocation2 + $0x183] sm:$0xff]  ;;  %8644 = vst.msk [vmem:[#allocation2 + $0x90] sm:$0xff] %vm7601_vm1, %v8580_v0  ;;  %8912 = vrot.lane.b32.xlu1 %v8769_v50, %s11727_s15  ;;  %v7725_v49 = vld [vmem:[#allocation2 + $0x1d8] sm:$0xff] }
 0x578   : > { %8165 = vst.msk [vmem:[#allocation2 + $0x198] sm:$0xff] %vm7601_vm1, %v8101_v52  ;;  %8466 = vrot.lane.b32.xlu0 %v8290_v53, %s11726_s14  ;;  %v7963_v3 = vpop.permute.xlu0 %7962 }
 0x579   : > { %v8409_v61 = vpop.permute.xlu1 %8408  ;;  %v8102_v5 = vadd.f32 %v7963_v3, %v7718_v2  ;;  %v7726_v2 = vld [vmem:[#allocation2 + $0x1e0] sm:$0xff] }
 0x57a   : > { %v8581_v55 = vadd.f32 %v8409_v61, %v8197_v59  ;;  %v8291_v7 = vld [vmem:[#allocation2 + $0x18b] sm:$0xff]  ;;  %v8205_v59 = vld [vmem:[#allocation2 + $0xd8] sm:$0xff] }
 0x57b   : > { %v8770_v4 = vld [vmem:[#allocation2 + $0x84] sm:$0xff]  ;;  %8166 = vst.msk [vmem:[#allocation2 + $0x1a0] sm:$0xff] %vm7601_vm1, %v8102_v5  ;;  %8468 = vrot.lane.b32.xlu1 %v8291_v7, %s11726_s14 }
 0x57c   : > { %8645 = vst.msk [vmem:[#allocation2 + $0x98] sm:$0xff] %vm7601_vm1, %v8581_v55  ;;  %8914 = vrot.lane.b32.xlu0 %v8770_v4, %s11727_s15  ;;  %v8411_v6 = vpop.permute.xlu0 %8410 }
 0x57d   : > { %v7965_v9 = vpop.permute.xlu1 %7964  ;;  %v8582_v10 = vadd.f32 %v8411_v6, %v8198_v57  ;;  %v8206_v57 = vld [vmem:[#allocation2 + $0xe0] sm:$0xff] }
 0x57e   : > { %v8103_v11 = vadd.f32 %v7965_v9, %v7719_v8  ;;  %v8771_v12 = vld [vmem:[#allocation2 + $0x8c] sm:$0xff] }
 0x57f   : > { %v8292_v13 = vld [vmem:[#allocation2 + $0x193] sm:$0xff]  ;;  %8646 = vst.msk [vmem:[#allocation2 + $0xa0] sm:$0xff] %vm7601_vm1, %v8582_v10  ;;  %8916 = vrot.lane.b32.xlu1 %v8771_v12, %s11727_s15  ;;  %v7727_v8 = vld [vmem:[#allocation2 + $0x1e8] sm:$0xff] }
 0x580   : > { %8167 = vst.msk [vmem:[#allocation2 + $0x1a8] sm:$0xff] %vm7601_vm1, %v8103_v11  ;;  %8470 = vrot.lane.b32.xlu0 %v8292_v13, %s11726_s14  ;;  %v7967_v58 = vpop.permute.xlu0 %7966 }
 0x581   : > { %v8413_v16 = vpop.permute.xlu1 %8412  ;;  %v8104_v17 = vadd.f32 %v7967_v58, %v7720_v14  ;;  %v7728_v14 = vld [vmem:[#allocation2 + $0x1f0] sm:$0xff] }
 0x582   : > { %v8583_v18 = vadd.f32 %v8413_v16, %v8199_v15  ;;  %v8293_v19 = vld [vmem:[#allocation2 + $0x19b] sm:$0xff]  ;;  %v8207_v15 = vld [vmem:[#allocation2 + $0xe8] sm:$0xff] }
 0x583   : > { %v8772_v20 = vld [vmem:[#allocation2 + $0x94] sm:$0xff]  ;;  %8168 = vst.msk [vmem:[#allocation2 + $0x1b0] sm:$0xff] %vm7601_vm1, %v8104_v17  ;;  %8472 = vrot.lane.b32.xlu1 %v8293_v19, %s11726_s14 }
 0x584   : > { %8647 = vst.msk [vmem:[#allocation2 + $0xa8] sm:$0xff] %vm7601_vm1, %v8583_v18  ;;  %8918 = vrot.lane.b32.xlu0 %v8772_v20, %s11727_s15  ;;  %v8415_v1 = vpop.permute.xlu0 %8414 }
 0x585   : > { %v7969_v23 = vpop.permute.xlu1 %7968  ;;  %v8584_v24 = vadd.f32 %v8415_v1, %v8200_v21  ;;  %v8208_v21 = vld [vmem:[#allocation2 + $0xf0] sm:$0xff] }
 0x586   : > { %v8105_v25 = vadd.f32 %v7969_v23, %v7721_v22  ;;  %v8773_v26 = vld [vmem:[#allocation2 + $0x9c] sm:$0xff] }
 0x587   : > { %v8294_v27 = vld [vmem:[#allocation2 + $0x1a3] sm:$0xff]  ;;  %8648 = vst.msk [vmem:[#allocation2 + $0xb0] sm:$0xff] %vm7601_vm1, %v8584_v24  ;;  %8920 = vrot.lane.b32.xlu1 %v8773_v26, %s11727_s15  ;;  %v7729_v22 = vld [vmem:[#allocation2 + $0x1f8] sm:$0xff] }
 0x588   : > { %8169 = vst.msk [vmem:[#allocation2 + $0x1b8] sm:$0xff] %vm7601_vm1, %v8105_v25  ;;  %8474 = vrot.lane.b32.xlu0 %v8294_v27, %s11726_s14  ;;  %v7971_v30 = vpop.permute.xlu0 %7970 }
 0x589   : > { %v8417_v32 = vpop.permute.xlu1 %8416  ;;  %v8106_v33 = vadd.f32 %v7971_v30, %v7722_v28  ;;  %v8209_v28 = vld [vmem:[#allocation2 + $0xf8] sm:$0xff] }
 0x58a   : > { %v8585_v35 = vadd.f32 %v8417_v32, %v8201_v31  ;;  %v8295_v36 = vld [vmem:[#allocation2 + $0x1ab] sm:$0xff]  ;;  %v8210_v32 = vld [vmem:[#allocation2 + $0x100] sm:$0xff] }
 0x58b   : > { %v8774_v38 = vld [vmem:[#allocation2 + $0xa4] sm:$0xff]  ;;  %8170 = vst.msk [vmem:[#allocation2 + $0x1c0] sm:$0xff] %vm7601_vm1, %v8106_v33  ;;  %8476 = vrot.lane.b32.xlu1 %v8295_v36, %s11726_s14 }
 0x58c   : > { %8649 = vst.msk [vmem:[#allocation2 + $0xb8] sm:$0xff] %vm7601_vm1, %v8585_v35  ;;  %8922 = vrot.lane.b32.xlu0 %v8774_v38, %s11727_s15  ;;  %v8419_v40 = vpop.permute.xlu0 %8418 }
 0x58d   : > { %v7973_v46 = vpop.permute.xlu1 %7972  ;;  %v8586_v48 = vadd.f32 %v8419_v40, %v8202_v39  ;;  %v8690_v39 = vld [vmem:[#allocation2] sm:$0xff] }
 0x58e   : > { %v8107_v41 = vadd.f32 %v7973_v46, %v7723_v43  ;;  %v8775_v51 = vld [vmem:[#allocation2 + $0xac] sm:$0xff] }
 0x58f   : > { %v8296_v54 = vld [vmem:[#allocation2 + $0x1b3] sm:$0xff]  ;;  %8650 = vst.msk [vmem:[#allocation2 + $0xc0] sm:$0xff] %vm7601_vm1, %v8586_v48  ;;  %8924 = vrot.lane.b32.xlu1 %v8775_v51, %s11727_s15  ;;  %v8211_v43 = vld [vmem:[#allocation2 + $0x108] sm:$0xff] }
 0x590   : > { %8171 = vst.msk [vmem:[#allocation2 + $0x1c8] sm:$0xff] %vm7601_vm1, %v8107_v41  ;;  %8478 = vrot.lane.b32.xlu0 %v8296_v54, %s11726_s14  ;;  %v7975_v44 = vpop.permute.xlu0 %7974 }
 0x591   : > { %v8421_v62 = vpop.permute.xlu1 %8420  ;;  %v8108_v47 = vadd.f32 %v7975_v44, %v7724_v56  ;;  %v8212_v56 = vld [vmem:[#allocation2 + $0x110] sm:$0xff] }
 0x592   : > { %v8587_v29 = vadd.f32 %v8421_v62, %v8203_v60  ;;  %v8297_v63 = vld [vmem:[#allocation2 + $0x1bb] sm:$0xff]  ;;  %v8691_v60 = vld [vmem:[#allocation2 + $0x8] sm:$0xff] }
 0x593   : > { %v8776_v34 = vld [vmem:[#allocation2 + $0xb4] sm:$0xff]  ;;  %8172 = vst.msk [vmem:[#allocation2 + $0x1d0] sm:$0xff] %vm7601_vm1, %v8108_v47  ;;  %8480 = vrot.lane.b32.xlu1 %v8297_v63, %s11726_s14 }
 0x594   : > { %8651 = vst.msk [vmem:[#allocation2 + $0xc8] sm:$0xff] %vm7601_vm1, %v8587_v29  ;;  %8926 = vrot.lane.b32.xlu0 %v8776_v34, %s11727_s15  ;;  %v8423_v42 = vpop.permute.xlu0 %8422 }
 0x595   : > { %v7977_v45 = vpop.permute.xlu1 %7976  ;;  %v8588_v0 = vadd.f32 %v8423_v42, %v8204_v37  ;;  %v8692_v37 = vld [vmem:[#allocation2 + $0x10] sm:$0xff] }
 0x596   : > { %v8109_v52 = vadd.f32 %v7977_v45, %v7725_v49  ;;  %v8777_v50 = vld [vmem:[#allocation2 + $0xbc] sm:$0xff] }
 0x597   : > { %v8298_v53 = vld [vmem:[#allocation2 + $0x1c3] sm:$0xff]  ;;  %8652 = vst.msk [vmem:[#allocation2 + $0xd0] sm:$0xff] %vm7601_vm1, %v8588_v0  ;;  %8928 = vrot.lane.b32.xlu1 %v8777_v50, %s11727_s15  ;;  %v8213_v49 = vld [vmem:[#allocation2 + $0x118] sm:$0xff] }
 0x598   : > { %8173 = vst.msk [vmem:[#allocation2 + $0x1d8] sm:$0xff] %vm7601_vm1, %v8109_v52  ;;  %8482 = vrot.lane.b32.xlu0 %v8298_v53, %s11726_s14  ;;  %v7979_v3 = vpop.permute.xlu0 %7978 }
 0x599   : > { %v8425_v61 = vpop.permute.xlu1 %8424  ;;  %v8110_v5 = vadd.f32 %v7979_v3, %v7726_v2  ;;  %v8214_v2 = vld [vmem:[#allocation2 + $0x120] sm:$0xff] }
 0x59a   : > { %v8589_v55 = vadd.f32 %v8425_v61, %v8205_v59  ;;  %v8299_v7 = vld [vmem:[#allocation2 + $0x1cb] sm:$0xff]  ;;  %v8693_v59 = vld [vmem:[#allocation2 + $0x18] sm:$0xff] }
 0x59b   : > { %v8778_v4 = vld [vmem:[#allocation2 + $0xc4] sm:$0xff]  ;;  %8174 = vst.msk [vmem:[#allocation2 + $0x1e0] sm:$0xff] %vm7601_vm1, %v8110_v5  ;;  %8484 = vrot.lane.b32.xlu1 %v8299_v7, %s11726_s14 }
 0x59c   : > { %8653 = vst.msk [vmem:[#allocation2 + $0xd8] sm:$0xff] %vm7601_vm1, %v8589_v55  ;;  %8930 = vrot.lane.b32.xlu0 %v8778_v4, %s11727_s15  ;;  %v8427_v6 = vpop.permute.xlu0 %8426 }
 0x59d   : > { %v7981_v9 = vpop.permute.xlu1 %7980  ;;  %v8590_v10 = vadd.f32 %v8427_v6, %v8206_v57  ;;  %v8694_v57 = vld [vmem:[#allocation2 + $0x20] sm:$0xff] }
 0x59e   : > { %v8111_v11 = vadd.f32 %v7981_v9, %v7727_v8  ;;  %v8779_v12 = vld [vmem:[#allocation2 + $0xcc] sm:$0xff] }
 0x59f   : > { %v8300_v13 = vld [vmem:[#allocation2 + $0x1d3] sm:$0xff]  ;;  %8654 = vst.msk [vmem:[#allocation2 + $0xe0] sm:$0xff] %vm7601_vm1, %v8590_v10  ;;  %8932 = vrot.lane.b32.xlu1 %v8779_v12, %s11727_s15  ;;  %v8215_v8 = vld [vmem:[#allocation2 + $0x128] sm:$0xff] }
 0x5a0   : > { %8175 = vst.msk [vmem:[#allocation2 + $0x1e8] sm:$0xff] %vm7601_vm1, %v8111_v11  ;;  %8486 = vrot.lane.b32.xlu0 %v8300_v13, %s11726_s14 }
 0x5a1   : > { %v7983_v58 = vpop.permute.xlu0 %7982  ;;  %v8429_v16 = vpop.permute.xlu1 %8428 }
 0x5a2   : > { %v8112_v17 = vadd.f32 %v7983_v58, %v7728_v14  ;;  %v8591_v18 = vadd.f32 %v8429_v16, %v8207_v15  ;;  %v8301_v19 = vld [vmem:[#allocation2 + $0x1db] sm:$0xff]  ;;  %v8216_v14 = vld [vmem:[#allocation2 + $0x130] sm:$0xff]  ;;  %v8695_v15 = vld [vmem:[#allocation2 + $0x28] sm:$0xff] }
 0x5a3   : > { %v8780_v20 = vld [vmem:[#allocation2 + $0xd4] sm:$0xff]  ;;  %8488 = vrot.lane.b32.xlu1 %v8301_v19, %s11726_s14 }
 0x5a4   : > { %8176 = vst.msk [vmem:[#allocation2 + $0x1f0] sm:$0xff] %vm7601_vm1, %v8112_v17  ;;  %8655 = vst.msk [vmem:[#allocation2 + $0xe8] sm:$0xff] %vm7601_vm1, %v8591_v18  ;;  %8934 = vrot.lane.b32.xlu0 %v8780_v20, %s11727_s15 }
 0x5a5   : > { %v8431_v1 = vpop.permute.xlu0 %8430  ;;  %v7985_v23 = vpop.permute.xlu1 %7984 }
 0x5a6   : > { %v8592_v24 = vadd.f32 %v8431_v1, %v8208_v21  ;;  %v8113_v25 = vadd.f32 %v7985_v23, %v7729_v22  ;;  %v8781_v26 = vld [vmem:[#allocation2 + $0xdc] sm:$0xff]  ;;  %v8696_v21 = vld [vmem:[#allocation2 + $0x30] sm:$0xff] }
 0x5a7   : > { %v8302_v27 = vld [vmem:[#allocation2 + $0x1e3] sm:$0xff]  ;;  %8936 = vrot.lane.b32.xlu1 %v8781_v26, %s11727_s15  ;;  %v8217_v22 = vld [vmem:[#allocation2 + $0x138] sm:$0xff] }
 0x5a8   : > { %8656 = vst.msk [vmem:[#allocation2 + $0xf0] sm:$0xff] %vm7601_vm1, %v8592_v24  ;;  %8177 = vst.msk [vmem:[#allocation2 + $0x1f8] sm:$0xff] %vm7601_vm1, %v8113_v25  ;;  %8490 = vrot.lane.b32.xlu0 %v8302_v27, %s11726_s14 }
 0x5a9   : > { %v8433_v30 = vpop.permute.xlu1 %8432 }
 0x5aa   : > { %v8593_v31 = vadd.f32 %v8433_v30, %v8209_v28  ;;  %v8435_v33 = vpop.permute.xlu0 %8434  ;;  %v8218_v28 = vld [vmem:[#allocation2 + $0x140] sm:$0xff] }
 0x5ab   : > { %v8594_v35 = vadd.f32 %v8435_v33, %v8210_v32  ;;  %v8303_v36 = vld [vmem:[#allocation2 + $0x1eb] sm:$0xff] }
 0x5ac   : > { %v8782_v38 = vld [vmem:[#allocation2 + $0xe4] sm:$0xff]  ;;  %8657 = vst.msk [vmem:[#allocation2 + $0xf8] sm:$0xff] %vm7601_vm1, %v8593_v31  ;;  %8492 = vrot.lane.b32.xlu1 %v8303_v36, %s11726_s14  ;;  %v8697_v31 = vld [vmem:[#allocation2 + $0x38] sm:$0xff] }
 0x5ad   : > { %8938 = vrot.lane.b32.xlu0 %v8782_v38, %s11727_s15  ;;  %8658 = vst.msk [vmem:[#allocation2 + $0x100] sm:$0xff] %vm7601_vm1, %v8594_v35  ;;  %v8437_v46 = vpop.permute.xlu1 %8436 }
 0x5ae   : > { %v8883_v40 = vpop.permute.xlu0 %8882  ;;  %v8595_v41 = vadd.f32 %v8437_v46, %v8211_v43  ;;  %v8219_v43 = vld [vmem:[#allocation2 + $0x148] sm:$0xff] }
 0x5af   : > { %v9074_v48 = vadd.f32 %v8883_v40, %v8690_v39  ;;  %v8305_v51 = vld [vmem:[#allocation2 + $0x1fb] sm:$0xff]  ;;  %v8304_v54 = vld [vmem:[#allocation2 + $0x1f3] sm:$0xff] }
 0x5b0   : > { %8496 = vrot.lane.b32.xlu1 %v8305_v51, %s11726_s14  ;;  %8659 = vst.msk [vmem:[#allocation2 + $0x108] sm:$0xff] %vm7601_vm1, %v8595_v41  ;;  %v8783_v63 = vld [vmem:[#allocation2 + $0xec] sm:$0xff]  ;;  %v8698_v39 = vld [vmem:[#allocation2 + $0x40] sm:$0xff] }
 0x5b1   : > { %8494 = vrot.lane.b32.xlu0 %v8304_v54, %s11726_s14  ;;  %9138 = vst.msk [vmem:[#allocation2] sm:$0xff] %vm7601_vm1, %v9074_v48  ;;  %v8885_v62 = vpop.permute.xlu1 %8884 }
 0x5b2   : > { %v8439_v44 = vpop.permute.xlu0 %8438  ;;  %v9075_v29 = vadd.f32 %v8885_v62, %v8691_v60  ;;  %v8699_v60 = vld [vmem:[#allocation2 + $0x48] sm:$0xff] }
 0x5b3   : > { %v8596_v47 = vadd.f32 %v8439_v44, %v8212_v56  ;;  %v8784_v34 = vld [vmem:[#allocation2 + $0xf4] sm:$0xff] }
 0x5b4   : > { %8940 = vrot.lane.b32.xlu1 %v8783_v63, %s11727_s15  ;;  %9139 = vst.msk [vmem:[#allocation2 + $0x8] sm:$0xff] %vm7601_vm1, %v9075_v29  ;;  %v8785_v50 = vld [vmem:[#allocation2 + $0xfc] sm:$0xff]  ;;  %v8220_v56 = vld [vmem:[#allocation2 + $0x150] sm:$0xff] }
 0x5b5   : > { %8942 = vrot.lane.b32.xlu0 %v8784_v34, %s11727_s15  ;;  %8660 = vst.msk [vmem:[#allocation2 + $0x110] sm:$0xff] %vm7601_vm1, %v8596_v47  ;;  %v8441_v45 = vpop.permute.xlu1 %8440 }
 0x5b6   : > { %v8887_v42 = vpop.permute.xlu0 %8886  ;;  %v8597_v52 = vadd.f32 %v8441_v45, %v8213_v49  ;;  %v8221_v49 = vld [vmem:[#allocation2 + $0x158] sm:$0xff] }
 0x5b7   : > { %v9076_v0 = vadd.f32 %v8887_v42, %v8692_v37  ;;  %v8786_v53 = vld [vmem:[#allocation2 + $0x104] sm:$0xff]  ;;  %v8700_v37 = vld [vmem:[#allocation2 + $0x50] sm:$0xff] }
 0x5b8   : > { %8944 = vrot.lane.b32.xlu1 %v8785_v50, %s11727_s15  ;;  %8661 = vst.msk [vmem:[#allocation2 + $0x118] sm:$0xff] %vm7601_vm1, %v8597_v52 }
 0x5b9   : > { %9140 = vst.msk [vmem:[#allocation2 + $0x10] sm:$0xff] %vm7601_vm1, %v9076_v0  ;;  %8946 = vrot.lane.b32.xlu0 %v8786_v53, %s11727_s15  ;;  %v8889_v61 = vpop.permute.xlu1 %8888 }
 0x5ba   : > { %v8443_v3 = vpop.permute.xlu0 %8442  ;;  %v9077_v55 = vadd.f32 %v8889_v61, %v8693_v59  ;;  %v8701_v59 = vld [vmem:[#allocation2 + $0x58] sm:$0xff] }
 0x5bb   : > { %v8598_v5 = vadd.f32 %v8443_v3, %v8214_v2  ;;  %v9266_v4 = vld [vmem:[#allocation2 + $0x5] sm:$0xff] }
 0x5bc   : > { %v8787_v7 = vld [vmem:[#allocation2 + $0x10c] sm:$0xff]  ;;  %9141 = vst.msk [vmem:[#allocation2 + $0x18] sm:$0xff] %vm7601_vm1, %v9077_v55  ;;  %v8222_v2 = vld [vmem:[#allocation2 + $0x160] sm:$0xff] }
 0x5bd   : > { %8662 = vst.msk [vmem:[#allocation2 + $0x120] sm:$0xff] %vm7601_vm1, %v8598_v5  ;;  %8948 = vrot.lane.b32.xlu1 %v8787_v7, %s11727_s15  ;;  %9394 = vrot.lane.b32.xlu0 %v9266_v4, %s11728_s16  ;;  %v8445_v9 = vpop.permute.xlu1 %8444 }
 0x5be   : > { %v8891_v6 = vpop.permute.xlu0 %8890  ;;  %v8599_v11 = vadd.f32 %v8445_v9, %v8215_v8  ;;  %v8223_v8 = vld [vmem:[#allocation2 + $0x168] sm:$0xff] }
 0x5bf   : > { %v9078_v10 = vadd.f32 %v8891_v6, %v8694_v57  ;;  %v8788_v13 = vld [vmem:[#allocation2 + $0x114] sm:$0xff]  ;;  %v8702_v57 = vld [vmem:[#allocation2 + $0x60] sm:$0xff] }
 0x5c0   : > { %v9267_v12 = vld [vmem:[#allocation2 + $0xd] sm:$0xff]  ;;  %8663 = vst.msk [vmem:[#allocation2 + $0x128] sm:$0xff] %vm7601_vm1, %v8599_v11 }
 0x5c1   : > { %9142 = vst.msk [vmem:[#allocation2 + $0x20] sm:$0xff] %vm7601_vm1, %v9078_v10  ;;  %9396 = vrot.lane.b32.xlu1 %v9267_v12, %s11728_s16  ;;  %8950 = vrot.lane.b32.xlu0 %v8788_v13, %s11727_s15  ;;  %v8893_v16 = vpop.permute.xlu1 %8892 }
 0x5c2   : > { %v8447_v58 = vpop.permute.xlu0 %8446  ;;  %v9079_v18 = vadd.f32 %v8893_v16, %v8695_v15  ;;  %v8703_v15 = vld [vmem:[#allocation2 + $0x68] sm:$0xff] }
 0x5c3   : > { %v8600_v17 = vadd.f32 %v8447_v58, %v8216_v14  ;;  %v9268_v20 = vld [vmem:[#allocation2 + $0x15] sm:$0xff] }
 0x5c4   : > { %v8789_v19 = vld [vmem:[#allocation2 + $0x11c] sm:$0xff]  ;;  %9143 = vst.msk [vmem:[#allocation2 + $0x28] sm:$0xff] %vm7601_vm1, %v9079_v18  ;;  %v8224_v14 = vld [vmem:[#allocation2 + $0x170] sm:$0xff] }
 0x5c5   : > { %8664 = vst.msk [vmem:[#allocation2 + $0x130] sm:$0xff] %vm7601_vm1, %v8600_v17  ;;  %8952 = vrot.lane.b32.xlu1 %v8789_v19, %s11727_s15  ;;  %9398 = vrot.lane.b32.xlu0 %v9268_v20, %s11728_s16  ;;  %v8449_v23 = vpop.permute.xlu1 %8448 }
 0x5c6   : > { %v8895_v1 = vpop.permute.xlu0 %8894  ;;  %v8601_v25 = vadd.f32 %v8449_v23, %v8217_v22  ;;  %v8225_v22 = vld [vmem:[#allocation2 + $0x178] sm:$0xff] }
 0x5c7   : > { %v9080_v24 = vadd.f32 %v8895_v1, %v8696_v21  ;;  %v8790_v27 = vld [vmem:[#allocation2 + $0x124] sm:$0xff]  ;;  %v8704_v21 = vld [vmem:[#allocation2 + $0x70] sm:$0xff] }
 0x5c8   : > { %v9269_v26 = vld [vmem:[#allocation2 + $0x1d] sm:$0xff]  ;;  %8665 = vst.msk [vmem:[#allocation2 + $0x138] sm:$0xff] %vm7601_vm1, %v8601_v25 }
 0x5c9   : > { %9144 = vst.msk [vmem:[#allocation2 + $0x30] sm:$0xff] %vm7601_vm1, %v9080_v24  ;;  %9400 = vrot.lane.b32.xlu1 %v9269_v26, %s11728_s16  ;;  %8954 = vrot.lane.b32.xlu0 %v8790_v27, %s11727_s15  ;;  %v8897_v32 = vpop.permute.xlu1 %8896 }
 0x5ca   : > { %v8451_v30 = vpop.permute.xlu0 %8450  ;;  %v9081_v35 = vadd.f32 %v8897_v32, %v8697_v31  ;;  %v8705_v31 = vld [vmem:[#allocation2 + $0x78] sm:$0xff] }
 0x5cb   : > { %v8602_v33 = vadd.f32 %v8451_v30, %v8218_v28  ;;  %v9270_v38 = vld [vmem:[#allocation2 + $0x25] sm:$0xff] }
 0x5cc   : > { %v8791_v36 = vld [vmem:[#allocation2 + $0x12c] sm:$0xff]  ;;  %9145 = vst.msk [vmem:[#allocation2 + $0x38] sm:$0xff] %vm7601_vm1, %v9081_v35  ;;  %v8226_v28 = vld [vmem:[#allocation2 + $0x180] sm:$0xff] }
 0x5cd   : > { %8666 = vst.msk [vmem:[#allocation2 + $0x140] sm:$0xff] %vm7601_vm1, %v8602_v33  ;;  %8956 = vrot.lane.b32.xlu1 %v8791_v36, %s11727_s15  ;;  %9402 = vrot.lane.b32.xlu0 %v9270_v38, %s11728_s16  ;;  %v8453_v46 = vpop.permute.xlu1 %8452 }
 0x5ce   : > { %v8899_v40 = vpop.permute.xlu0 %8898  ;;  %v8603_v41 = vadd.f32 %v8453_v46, %v8219_v43  ;;  %v8227_v43 = vld [vmem:[#allocation2 + $0x188] sm:$0xff] }
 0x5cf   : > { %v9082_v48 = vadd.f32 %v8899_v40, %v8698_v39  ;;  %v8792_v54 = vld [vmem:[#allocation2 + $0x134] sm:$0xff]  ;;  %v8706_v39 = vld [vmem:[#allocation2 + $0x80] sm:$0xff] }
 0x5d0   : > { %v9271_v51 = vld [vmem:[#allocation2 + $0x2d] sm:$0xff]  ;;  %8667 = vst.msk [vmem:[#allocation2 + $0x148] sm:$0xff] %vm7601_vm1, %v8603_v41 }
 0x5d1   : > { %9146 = vst.msk [vmem:[#allocation2 + $0x40] sm:$0xff] %vm7601_vm1, %v9082_v48  ;;  %9404 = vrot.lane.b32.xlu1 %v9271_v51, %s11728_s16  ;;  %8958 = vrot.lane.b32.xlu0 %v8792_v54, %s11727_s15  ;;  %v8901_v62 = vpop.permute.xlu1 %8900 }
 0x5d2   : > { %v8455_v44 = vpop.permute.xlu0 %8454  ;;  %v9083_v29 = vadd.f32 %v8901_v62, %v8699_v60  ;;  %v8707_v60 = vld [vmem:[#allocation2 + $0x88] sm:$0xff] }
 0x5d3   : > { %v8604_v47 = vadd.f32 %v8455_v44, %v8220_v56  ;;  %v9272_v34 = vld [vmem:[#allocation2 + $0x35] sm:$0xff] }
 0x5d4   : > { %v8793_v63 = vld [vmem:[#allocation2 + $0x13c] sm:$0xff]  ;;  %9147 = vst.msk [vmem:[#allocation2 + $0x48] sm:$0xff] %vm7601_vm1, %v9083_v29  ;;  %v8228_v56 = vld [vmem:[#allocation2 + $0x190] sm:$0xff] }
 0x5d5   : > { %8668 = vst.msk [vmem:[#allocation2 + $0x150] sm:$0xff] %vm7601_vm1, %v8604_v47  ;;  %8960 = vrot.lane.b32.xlu1 %v8793_v63, %s11727_s15  ;;  %9406 = vrot.lane.b32.xlu0 %v9272_v34, %s11728_s16  ;;  %v8457_v45 = vpop.permute.xlu1 %8456 }
 0x5d6   : > { %v8903_v42 = vpop.permute.xlu0 %8902  ;;  %v8605_v52 = vadd.f32 %v8457_v45, %v8221_v49  ;;  %v8229_v49 = vld [vmem:[#allocation2 + $0x198] sm:$0xff] }
 0x5d7   : > { %v9084_v0 = vadd.f32 %v8903_v42, %v8700_v37  ;;  %v8794_v53 = vld [vmem:[#allocation2 + $0x144] sm:$0xff]  ;;  %v8708_v37 = vld [vmem:[#allocation2 + $0x90] sm:$0xff] }
 0x5d8   : > { %v9273_v50 = vld [vmem:[#allocation2 + $0x3d] sm:$0xff]  ;;  %8669 = vst.msk [vmem:[#allocation2 + $0x158] sm:$0xff] %vm7601_vm1, %v8605_v52 }
 0x5d9   : > { %9148 = vst.msk [vmem:[#allocation2 + $0x50] sm:$0xff] %vm7601_vm1, %v9084_v0  ;;  %9408 = vrot.lane.b32.xlu1 %v9273_v50, %s11728_s16  ;;  %8962 = vrot.lane.b32.xlu0 %v8794_v53, %s11727_s15  ;;  %v8905_v61 = vpop.permute.xlu1 %8904 }
 0x5da   : > { %v8459_v3 = vpop.permute.xlu0 %8458  ;;  %v9085_v55 = vadd.f32 %v8905_v61, %v8701_v59  ;;  %v8709_v59 = vld [vmem:[#allocation2 + $0x98] sm:$0xff] }
 0x5db   : > { %v8606_v5 = vadd.f32 %v8459_v3, %v8222_v2  ;;  %v9274_v4 = vld [vmem:[#allocation2 + $0x45] sm:$0xff] }
 0x5dc   : > { %v8795_v7 = vld [vmem:[#allocation2 + $0x14c] sm:$0xff]  ;;  %9149 = vst.msk [vmem:[#allocation2 + $0x58] sm:$0xff] %vm7601_vm1, %v9085_v55  ;;  %v8230_v2 = vld [vmem:[#allocation2 + $0x1a0] sm:$0xff] }
 0x5dd   : > { %8670 = vst.msk [vmem:[#allocation2 + $0x160] sm:$0xff] %vm7601_vm1, %v8606_v5  ;;  %8964 = vrot.lane.b32.xlu1 %v8795_v7, %s11727_s15  ;;  %9410 = vrot.lane.b32.xlu0 %v9274_v4, %s11728_s16  ;;  %v8461_v9 = vpop.permute.xlu1 %8460 }
 0x5de   : > { %v8907_v6 = vpop.permute.xlu0 %8906  ;;  %v8607_v11 = vadd.f32 %v8461_v9, %v8223_v8  ;;  %v8231_v8 = vld [vmem:[#allocation2 + $0x1a8] sm:$0xff] }
 0x5df   : > { %v9086_v10 = vadd.f32 %v8907_v6, %v8702_v57  ;;  %v8796_v13 = vld [vmem:[#allocation2 + $0x154] sm:$0xff]  ;;  %v8710_v57 = vld [vmem:[#allocation2 + $0xa0] sm:$0xff] }
 0x5e0   : > { %v9275_v12 = vld [vmem:[#allocation2 + $0x4d] sm:$0xff]  ;;  %8671 = vst.msk [vmem:[#allocation2 + $0x168] sm:$0xff] %vm7601_vm1, %v8607_v11 }
 0x5e1   : > { %9150 = vst.msk [vmem:[#allocation2 + $0x60] sm:$0xff] %vm7601_vm1, %v9086_v10  ;;  %9412 = vrot.lane.b32.xlu1 %v9275_v12, %s11728_s16  ;;  %8966 = vrot.lane.b32.xlu0 %v8796_v13, %s11727_s15  ;;  %v8909_v16 = vpop.permute.xlu1 %8908 }
 0x5e2   : > { %v8463_v58 = vpop.permute.xlu0 %8462  ;;  %v9087_v18 = vadd.f32 %v8909_v16, %v8703_v15  ;;  %v8711_v15 = vld [vmem:[#allocation2 + $0xa8] sm:$0xff] }
 0x5e3   : > { %v8608_v17 = vadd.f32 %v8463_v58, %v8224_v14  ;;  %v9276_v20 = vld [vmem:[#allocation2 + $0x55] sm:$0xff] }
 0x5e4   : > { %v8797_v19 = vld [vmem:[#allocation2 + $0x15c] sm:$0xff]  ;;  %9151 = vst.msk [vmem:[#allocation2 + $0x68] sm:$0xff] %vm7601_vm1, %v9087_v18  ;;  %v8232_v14 = vld [vmem:[#allocation2 + $0x1b0] sm:$0xff] }
 0x5e5   : > { %8672 = vst.msk [vmem:[#allocation2 + $0x170] sm:$0xff] %vm7601_vm1, %v8608_v17  ;;  %8968 = vrot.lane.b32.xlu1 %v8797_v19, %s11727_s15  ;;  %9414 = vrot.lane.b32.xlu0 %v9276_v20, %s11728_s16  ;;  %v8465_v23 = vpop.permute.xlu1 %8464 }
 0x5e6   : > { %v8911_v1 = vpop.permute.xlu0 %8910  ;;  %v8609_v25 = vadd.f32 %v8465_v23, %v8225_v22  ;;  %v8233_v22 = vld [vmem:[#allocation2 + $0x1b8] sm:$0xff] }
 0x5e7   : > { %v9088_v24 = vadd.f32 %v8911_v1, %v8704_v21  ;;  %v8798_v27 = vld [vmem:[#allocation2 + $0x164] sm:$0xff]  ;;  %v8712_v21 = vld [vmem:[#allocation2 + $0xb0] sm:$0xff] }
 0x5e8   : > { %v9277_v26 = vld [vmem:[#allocation2 + $0x5d] sm:$0xff]  ;;  %8673 = vst.msk [vmem:[#allocation2 + $0x178] sm:$0xff] %vm7601_vm1, %v8609_v25 }
 0x5e9   : > { %9152 = vst.msk [vmem:[#allocation2 + $0x70] sm:$0xff] %vm7601_vm1, %v9088_v24  ;;  %9416 = vrot.lane.b32.xlu1 %v9277_v26, %s11728_s16  ;;  %8970 = vrot.lane.b32.xlu0 %v8798_v27, %s11727_s15  ;;  %v8913_v32 = vpop.permute.xlu1 %8912 }
 0x5ea   : > { %v8467_v30 = vpop.permute.xlu0 %8466  ;;  %v9089_v35 = vadd.f32 %v8913_v32, %v8705_v31  ;;  %v8713_v31 = vld [vmem:[#allocation2 + $0xb8] sm:$0xff] }
 0x5eb   : > { %v8610_v33 = vadd.f32 %v8467_v30, %v8226_v28  ;;  %v9278_v38 = vld [vmem:[#allocation2 + $0x65] sm:$0xff] }
 0x5ec   : > { %v8799_v36 = vld [vmem:[#allocation2 + $0x16c] sm:$0xff]  ;;  %9153 = vst.msk [vmem:[#allocation2 + $0x78] sm:$0xff] %vm7601_vm1, %v9089_v35  ;;  %v8234_v28 = vld [vmem:[#allocation2 + $0x1c0] sm:$0xff] }
 0x5ed   : > { %8674 = vst.msk [vmem:[#allocation2 + $0x180] sm:$0xff] %vm7601_vm1, %v8610_v33  ;;  %8972 = vrot.lane.b32.xlu1 %v8799_v36, %s11727_s15  ;;  %9418 = vrot.lane.b32.xlu0 %v9278_v38, %s11728_s16  ;;  %v8469_v46 = vpop.permute.xlu1 %8468 }
 0x5ee   : > { %v8915_v40 = vpop.permute.xlu0 %8914  ;;  %v8611_v41 = vadd.f32 %v8469_v46, %v8227_v43  ;;  %v8235_v43 = vld [vmem:[#allocation2 + $0x1c8] sm:$0xff] }
 0x5ef   : > { %v9090_v48 = vadd.f32 %v8915_v40, %v8706_v39  ;;  %v8800_v54 = vld [vmem:[#allocation2 + $0x174] sm:$0xff]  ;;  %v8714_v39 = vld [vmem:[#allocation2 + $0xc0] sm:$0xff] }
 0x5f0   : > { %v9279_v51 = vld [vmem:[#allocation2 + $0x6d] sm:$0xff]  ;;  %8675 = vst.msk [vmem:[#allocation2 + $0x188] sm:$0xff] %vm7601_vm1, %v8611_v41 }
 0x5f1   : > { %9154 = vst.msk [vmem:[#allocation2 + $0x80] sm:$0xff] %vm7601_vm1, %v9090_v48  ;;  %9420 = vrot.lane.b32.xlu1 %v9279_v51, %s11728_s16  ;;  %8974 = vrot.lane.b32.xlu0 %v8800_v54, %s11727_s15  ;;  %v8917_v62 = vpop.permute.xlu1 %8916 }
 0x5f2   : > { %v8471_v44 = vpop.permute.xlu0 %8470  ;;  %v9091_v29 = vadd.f32 %v8917_v62, %v8707_v60  ;;  %v8715_v60 = vld [vmem:[#allocation2 + $0xc8] sm:$0xff] }
 0x5f3   : > { %v8612_v47 = vadd.f32 %v8471_v44, %v8228_v56  ;;  %v9280_v34 = vld [vmem:[#allocation2 + $0x75] sm:$0xff] }
 0x5f4   : > { %v8801_v63 = vld [vmem:[#allocation2 + $0x17c] sm:$0xff]  ;;  %9155 = vst.msk [vmem:[#allocation2 + $0x88] sm:$0xff] %vm7601_vm1, %v9091_v29  ;;  %v8236_v56 = vld [vmem:[#allocation2 + $0x1d0] sm:$0xff] }
 0x5f5   : > { %8676 = vst.msk [vmem:[#allocation2 + $0x190] sm:$0xff] %vm7601_vm1, %v8612_v47  ;;  %8976 = vrot.lane.b32.xlu1 %v8801_v63, %s11727_s15  ;;  %9422 = vrot.lane.b32.xlu0 %v9280_v34, %s11728_s16  ;;  %v8473_v45 = vpop.permute.xlu1 %8472 }
 0x5f6   : > { %v8919_v42 = vpop.permute.xlu0 %8918  ;;  %v8613_v52 = vadd.f32 %v8473_v45, %v8229_v49  ;;  %v8237_v49 = vld [vmem:[#allocation2 + $0x1d8] sm:$0xff] }
 0x5f7   : > { %v9092_v0 = vadd.f32 %v8919_v42, %v8708_v37  ;;  %v8802_v53 = vld [vmem:[#allocation2 + $0x184] sm:$0xff]  ;;  %v8716_v37 = vld [vmem:[#allocation2 + $0xd0] sm:$0xff] }
 0x5f8   : > { %v9281_v50 = vld [vmem:[#allocation2 + $0x7d] sm:$0xff]  ;;  %8677 = vst.msk [vmem:[#allocation2 + $0x198] sm:$0xff] %vm7601_vm1, %v8613_v52 }
 0x5f9   : > { %9156 = vst.msk [vmem:[#allocation2 + $0x90] sm:$0xff] %vm7601_vm1, %v9092_v0  ;;  %9424 = vrot.lane.b32.xlu1 %v9281_v50, %s11728_s16  ;;  %8978 = vrot.lane.b32.xlu0 %v8802_v53, %s11727_s15  ;;  %v8921_v61 = vpop.permute.xlu1 %8920 }
 0x5fa   : > { %v8475_v3 = vpop.permute.xlu0 %8474  ;;  %v9093_v55 = vadd.f32 %v8921_v61, %v8709_v59  ;;  %v8717_v59 = vld [vmem:[#allocation2 + $0xd8] sm:$0xff] }
 0x5fb   : > { %v8614_v5 = vadd.f32 %v8475_v3, %v8230_v2  ;;  %v9282_v4 = vld [vmem:[#allocation2 + $0x85] sm:$0xff] }
 0x5fc   : > { %v8803_v7 = vld [vmem:[#allocation2 + $0x18c] sm:$0xff]  ;;  %9157 = vst.msk [vmem:[#allocation2 + $0x98] sm:$0xff] %vm7601_vm1, %v9093_v55  ;;  %v8238_v2 = vld [vmem:[#allocation2 + $0x1e0] sm:$0xff] }
 0x5fd   : > { %8678 = vst.msk [vmem:[#allocation2 + $0x1a0] sm:$0xff] %vm7601_vm1, %v8614_v5  ;;  %8980 = vrot.lane.b32.xlu1 %v8803_v7, %s11727_s15  ;;  %9426 = vrot.lane.b32.xlu0 %v9282_v4, %s11728_s16  ;;  %v8477_v9 = vpop.permute.xlu1 %8476 }
 0x5fe   : > { %v8923_v6 = vpop.permute.xlu0 %8922  ;;  %v8615_v11 = vadd.f32 %v8477_v9, %v8231_v8  ;;  %v8239_v8 = vld [vmem:[#allocation2 + $0x1e8] sm:$0xff] }
 0x5ff   : > { %v9094_v10 = vadd.f32 %v8923_v6, %v8710_v57  ;;  %v8804_v13 = vld [vmem:[#allocation2 + $0x194] sm:$0xff]  ;;  %v8718_v57 = vld [vmem:[#allocation2 + $0xe0] sm:$0xff] }
 0x600   : > { %v9283_v12 = vld [vmem:[#allocation2 + $0x8d] sm:$0xff]  ;;  %8679 = vst.msk [vmem:[#allocation2 + $0x1a8] sm:$0xff] %vm7601_vm1, %v8615_v11 }
 0x601   : > { %9158 = vst.msk [vmem:[#allocation2 + $0xa0] sm:$0xff] %vm7601_vm1, %v9094_v10  ;;  %9428 = vrot.lane.b32.xlu1 %v9283_v12, %s11728_s16  ;;  %8982 = vrot.lane.b32.xlu0 %v8804_v13, %s11727_s15  ;;  %v8925_v16 = vpop.permute.xlu1 %8924 }
 0x602   : > { %v8479_v58 = vpop.permute.xlu0 %8478  ;;  %v9095_v18 = vadd.f32 %v8925_v16, %v8711_v15  ;;  %v8241_v15 = vld [vmem:[#allocation2 + $0x1f8] sm:$0xff] }
 0x603   : > { %v8616_v17 = vadd.f32 %v8479_v58, %v8232_v14  ;;  %v9284_v20 = vld [vmem:[#allocation2 + $0x95] sm:$0xff] }
 0x604   : > { %v8805_v19 = vld [vmem:[#allocation2 + $0x19c] sm:$0xff]  ;;  %9159 = vst.msk [vmem:[#allocation2 + $0xa8] sm:$0xff] %vm7601_vm1, %v9095_v18  ;;  %v8240_v14 = vld [vmem:[#allocation2 + $0x1f0] sm:$0xff] }
 0x605   : > { %8680 = vst.msk [vmem:[#allocation2 + $0x1b0] sm:$0xff] %vm7601_vm1, %v8616_v17  ;;  %8984 = vrot.lane.b32.xlu1 %v8805_v19, %s11727_s15  ;;  %9430 = vrot.lane.b32.xlu0 %v9284_v20, %s11728_s16  ;;  %v8481_v23 = vpop.permute.xlu1 %8480 }
 0x606   : > { %v8927_v1 = vpop.permute.xlu0 %8926  ;;  %v8617_v25 = vadd.f32 %v8481_v23, %v8233_v22  ;;  %v8719_v22 = vld [vmem:[#allocation2 + $0xe8] sm:$0xff] }
 0x607   : > { %v9096_v24 = vadd.f32 %v8927_v1, %v8712_v21  ;;  %v8806_v27 = vld [vmem:[#allocation2 + $0x1a4] sm:$0xff]  ;;  %v8720_v21 = vld [vmem:[#allocation2 + $0xf0] sm:$0xff] }
 0x608   : > { %v9285_v26 = vld [vmem:[#allocation2 + $0x9d] sm:$0xff]  ;;  %8681 = vst.msk [vmem:[#allocation2 + $0x1b8] sm:$0xff] %vm7601_vm1, %v8617_v25 }
 0x609   : > { %9160 = vst.msk [vmem:[#allocation2 + $0xb0] sm:$0xff] %vm7601_vm1, %v9096_v24  ;;  %9432 = vrot.lane.b32.xlu1 %v9285_v26, %s11728_s16  ;;  %8986 = vrot.lane.b32.xlu0 %v8806_v27, %s11727_s15  ;;  %v8929_v32 = vpop.permute.xlu1 %8928 }
 0x60a   : > { %v8483_v30 = vpop.permute.xlu0 %8482  ;;  %v9097_v35 = vadd.f32 %v8929_v32, %v8713_v31  ;;  %v8722_v32 = vld [vmem:[#allocation2 + $0x100] sm:$0xff] }
 0x60b   : > { %v8618_v33 = vadd.f32 %v8483_v30, %v8234_v28  ;;  %v9286_v38 = vld [vmem:[#allocation2 + $0xa5] sm:$0xff]  ;;  %v8721_v28 = vld [vmem:[#allocation2 + $0xf8] sm:$0xff] }
 0x60c   : > { %v8807_v36 = vld [vmem:[#allocation2 + $0x1ac] sm:$0xff]  ;;  %9161 = vst.msk [vmem:[#allocation2 + $0xb8] sm:$0xff] %vm7601_vm1, %v9097_v35 }
 0x60d   : > { %8682 = vst.msk [vmem:[#allocation2 + $0x1c0] sm:$0xff] %vm7601_vm1, %v8618_v33  ;;  %8988 = vrot.lane.b32.xlu1 %v8807_v36, %s11727_s15  ;;  %9434 = vrot.lane.b32.xlu0 %v9286_v38, %s11728_s16  ;;  %v8485_v46 = vpop.permute.xlu1 %8484 }
 0x60e   : > { %v8931_v40 = vpop.permute.xlu0 %8930  ;;  %v8619_v41 = vadd.f32 %v8485_v46, %v8235_v43  ;;  %v8723_v43 = vld [vmem:[#allocation2 + $0x108] sm:$0xff] }
 0x60f   : > { %v9098_v48 = vadd.f32 %v8931_v40, %v8714_v39  ;;  %v8808_v54 = vld [vmem:[#allocation2 + $0x1b4] sm:$0xff]  ;;  %v9202_v39 = vld [vmem:[#allocation2] sm:$0xff] }
 0x610   : > { %v9287_v51 = vld [vmem:[#allocation2 + $0xad] sm:$0xff]  ;;  %8683 = vst.msk [vmem:[#allocation2 + $0x1c8] sm:$0xff] %vm7601_vm1, %v8619_v41 }
 0x611   : > { %9162 = vst.msk [vmem:[#allocation2 + $0xc0] sm:$0xff] %vm7601_vm1, %v9098_v48  ;;  %9436 = vrot.lane.b32.xlu1 %v9287_v51, %s11728_s16  ;;  %8990 = vrot.lane.b32.xlu0 %v8808_v54, %s11727_s15  ;;  %v8933_v62 = vpop.permute.xlu1 %8932 }
 0x612   : > { %v8487_v44 = vpop.permute.xlu0 %8486  ;;  %v9099_v29 = vadd.f32 %v8933_v62, %v8715_v60  ;;  %v9203_v60 = vld [vmem:[#allocation2 + $0x8] sm:$0xff] }
 0x613   : > { %v8620_v47 = vadd.f32 %v8487_v44, %v8236_v56  ;;  %v9288_v34 = vld [vmem:[#allocation2 + $0xb5] sm:$0xff] }
 0x614   : > { %v8809_v63 = vld [vmem:[#allocation2 + $0x1bc] sm:$0xff]  ;;  %9163 = vst.msk [vmem:[#allocation2 + $0xc8] sm:$0xff] %vm7601_vm1, %v9099_v29  ;;  %v8724_v56 = vld [vmem:[#allocation2 + $0x110] sm:$0xff] }
 0x615   : > { %8684 = vst.msk [vmem:[#allocation2 + $0x1d0] sm:$0xff] %vm7601_vm1, %v8620_v47  ;;  %8992 = vrot.lane.b32.xlu1 %v8809_v63, %s11727_s15  ;;  %9438 = vrot.lane.b32.xlu0 %v9288_v34, %s11728_s16  ;;  %v8489_v45 = vpop.permute.xlu1 %8488 }
 0x616   : > { %v8935_v42 = vpop.permute.xlu0 %8934  ;;  %v8621_v52 = vadd.f32 %v8489_v45, %v8237_v49  ;;  %v8725_v49 = vld [vmem:[#allocation2 + $0x118] sm:$0xff] }
 0x617   : > { %v9100_v0 = vadd.f32 %v8935_v42, %v8716_v37  ;;  %v8810_v53 = vld [vmem:[#allocation2 + $0x1c4] sm:$0xff]  ;;  %v9204_v37 = vld [vmem:[#allocation2 + $0x10] sm:$0xff] }
 0x618   : > { %v9289_v50 = vld [vmem:[#allocation2 + $0xbd] sm:$0xff]  ;;  %8685 = vst.msk [vmem:[#allocation2 + $0x1d8] sm:$0xff] %vm7601_vm1, %v8621_v52 }
 0x619   : > { %9164 = vst.msk [vmem:[#allocation2 + $0xd0] sm:$0xff] %vm7601_vm1, %v9100_v0  ;;  %9440 = vrot.lane.b32.xlu1 %v9289_v50, %s11728_s16  ;;  %8994 = vrot.lane.b32.xlu0 %v8810_v53, %s11727_s15  ;;  %v8937_v61 = vpop.permute.xlu1 %8936 }
 0x61a   : > { %v8491_v3 = vpop.permute.xlu0 %8490  ;;  %v9101_v55 = vadd.f32 %v8937_v61, %v8717_v59  ;;  %v9205_v59 = vld [vmem:[#allocation2 + $0x18] sm:$0xff] }
 0x61b   : > { %v8622_v5 = vadd.f32 %v8491_v3, %v8238_v2  ;;  %v9290_v4 = vld [vmem:[#allocation2 + $0xc5] sm:$0xff] }
 0x61c   : > { %v8811_v7 = vld [vmem:[#allocation2 + $0x1cc] sm:$0xff]  ;;  %9165 = vst.msk [vmem:[#allocation2 + $0xd8] sm:$0xff] %vm7601_vm1, %v9101_v55  ;;  %v8726_v2 = vld [vmem:[#allocation2 + $0x120] sm:$0xff] }
 0x61d   : > { %8686 = vst.msk [vmem:[#allocation2 + $0x1e0] sm:$0xff] %vm7601_vm1, %v8622_v5  ;;  %8996 = vrot.lane.b32.xlu1 %v8811_v7, %s11727_s15  ;;  %9442 = vrot.lane.b32.xlu0 %v9290_v4, %s11728_s16 }
 0x61e   : > { %v8493_v9 = vpop.permute.xlu1 %8492 }
 0x61f   : > { %v8939_v6 = vpop.permute.xlu0 %8938  ;;  %v8623_v11 = vadd.f32 %v8493_v9, %v8239_v8  ;;  %v8812_v13 = vld [vmem:[#allocation2 + $0x1d4] sm:$0xff]  ;;  %v8727_v8 = vld [vmem:[#allocation2 + $0x128] sm:$0xff] }
 0x620   : > { %v9102_v10 = vadd.f32 %v8939_v6, %v8718_v57  ;;  %v9291_v12 = vld [vmem:[#allocation2 + $0xcd] sm:$0xff]  ;;  %v9206_v57 = vld [vmem:[#allocation2 + $0x20] sm:$0xff] }
 0x621   : > { %8687 = vst.msk [vmem:[#allocation2 + $0x1e8] sm:$0xff] %vm7601_vm1, %v8623_v11  ;;  %9444 = vrot.lane.b32.xlu1 %v9291_v12, %s11728_s16  ;;  %8998 = vrot.lane.b32.xlu0 %v8812_v13, %s11727_s15 }
 0x622   : > { %9166 = vst.msk [vmem:[#allocation2 + $0xe0] sm:$0xff] %vm7601_vm1, %v9102_v10  ;;  %v8497_v16 = vpop.permute.xlu1 %8496 }
 0x623   : > { %v8495_v58 = vpop.permute.xlu0 %8494  ;;  %v8625_v18 = vadd.f32 %v8497_v16, %v8241_v15  ;;  %v9292_v20 = vld [vmem:[#allocation2 + $0xd5] sm:$0xff]  ;;  %v9207_v15 = vld [vmem:[#allocation2 + $0x28] sm:$0xff] }
 0x624   : > { %v8624_v17 = vadd.f32 %v8495_v58, %v8240_v14  ;;  %v8813_v19 = vld [vmem:[#allocation2 + $0x1dc] sm:$0xff]  ;;  %v8728_v14 = vld [vmem:[#allocation2 + $0x130] sm:$0xff] }
 0x625   : > { %8689 = vst.msk [vmem:[#allocation2 + $0x1f8] sm:$0xff] %vm7601_vm1, %v8625_v18  ;;  %9000 = vrot.lane.b32.xlu1 %v8813_v19, %s11727_s15  ;;  %9446 = vrot.lane.b32.xlu0 %v9292_v20, %s11728_s16 }
 0x626   : > { %8688 = vst.msk [vmem:[#allocation2 + $0x1f0] sm:$0xff] %vm7601_vm1, %v8624_v17  ;;  %v8941_v23 = vpop.permute.xlu1 %8940 }
 0x627   : > { %v8943_v1 = vpop.permute.xlu0 %8942  ;;  %v9103_v25 = vadd.f32 %v8941_v23, %v8719_v22  ;;  %v8729_v22 = vld [vmem:[#allocation2 + $0x138] sm:$0xff] }
 0x628   : > { %v9104_v24 = vadd.f32 %v8943_v1, %v8720_v21  ;;  %v8814_v27 = vld [vmem:[#allocation2 + $0x1e4] sm:$0xff]  ;;  %v9208_v21 = vld [vmem:[#allocation2 + $0x30] sm:$0xff] }
 0x629   : > { %v9293_v26 = vld [vmem:[#allocation2 + $0xdd] sm:$0xff]  ;;  %9167 = vst.msk [vmem:[#allocation2 + $0xe8] sm:$0xff] %vm7601_vm1, %v9103_v25  ;;  %9002 = vrot.lane.b32.xlu0 %v8814_v27, %s11727_s15 }
 0x62a   : > { %9168 = vst.msk [vmem:[#allocation2 + $0xf0] sm:$0xff] %vm7601_vm1, %v9104_v24  ;;  %9448 = vrot.lane.b32.xlu1 %v9293_v26, %s11728_s16  ;;  %v8945_v30 = vpop.permute.xlu1 %8944 }
 0x62b   : > { %v9105_v31 = vadd.f32 %v8945_v30, %v8721_v28  ;;  %v8947_v33 = vpop.permute.xlu0 %8946  ;;  %v8730_v28 = vld [vmem:[#allocation2 + $0x140] sm:$0xff] }
 0x62c   : > { %v9106_v35 = vadd.f32 %v8947_v33, %v8722_v32  ;;  %v8817_v51 = vld [vmem:[#allocation2 + $0x1fc] sm:$0xff] }
 0x62d   : > { %v8815_v36 = vld [vmem:[#allocation2 + $0x1ec] sm:$0xff]  ;;  %v8816_v38 = vld [vmem:[#allocation2 + $0x1f4] sm:$0xff]  ;;  %9169 = vst.msk [vmem:[#allocation2 + $0xf8] sm:$0xff] %vm7601_vm1, %v9105_v31 }
 0x62e   : > { %9004 = vrot.lane.b32.xlu1 %v8815_v36, %s11727_s15  ;;  %9006 = vrot.lane.b32.xlu0 %v8816_v38, %s11727_s15  ;;  %9170 = vst.msk [vmem:[#allocation2 + $0x100] sm:$0xff] %vm7601_vm1, %v9106_v35  ;;  %v9209_v31 = vld [vmem:[#allocation2 + $0x38] sm:$0xff] }
 0x62f   : > { %v9395_v40 = vpop.permute.xlu0 %9394  ;;  %v8949_v46 = vpop.permute.xlu1 %8948 }
 0x630   : > { %v9586_v48 = vadd.f32 %v9395_v40, %v9202_v39  ;;  %v9107_v41 = vadd.f32 %v8949_v46, %v8723_v43  ;;  %v9294_v54 = vld [vmem:[#allocation2 + $0xe5] sm:$0xff] }
 0x631   : > { %v9295_v63 = vld [vmem:[#allocation2 + $0xed] sm:$0xff]  ;;  %v9210_v39 = vld [vmem:[#allocation2 + $0x40] sm:$0xff] }
 0x632   : > { %9008 = vrot.lane.b32.xlu1 %v8817_v51, %s11727_s15  ;;  %9450 = vrot.lane.b32.xlu0 %v9294_v54, %s11728_s16  ;;  %9650 = vst.msk [vmem:[#allocation2] sm:$0xff] %vm7601_vm1, %v9586_v48  ;;  %9171 = vst.msk [vmem:[#allocation2 + $0x108] sm:$0xff] %vm7601_vm1, %v9107_v41  ;;  %v8731_v43 = vld [vmem:[#allocation2 + $0x148] sm:$0xff] }
 0x633   : > { %v8951_v44 = vpop.permute.xlu0 %8950  ;;  %v9397_v62 = vpop.permute.xlu1 %9396 }
 0x634   : > { %v9108_v47 = vadd.f32 %v8951_v44, %v8724_v56  ;;  %v9587_v29 = vadd.f32 %v9397_v62, %v9203_v60  ;;  %v9296_v34 = vld [vmem:[#allocation2 + $0xf5] sm:$0xff]  ;;  %v9211_v60 = vld [vmem:[#allocation2 + $0x48] sm:$0xff] }
 0x635   : > { %v9297_v50 = vld [vmem:[#allocation2 + $0xfd] sm:$0xff]  ;;  %v8732_v56 = vld [vmem:[#allocation2 + $0x150] sm:$0xff] }
 0x636   : > { %9452 = vrot.lane.b32.xlu1 %v9295_v63, %s11728_s16  ;;  %9454 = vrot.lane.b32.xlu0 %v9296_v34, %s11728_s16  ;;  %9172 = vst.msk [vmem:[#allocation2 + $0x110] sm:$0xff] %vm7601_vm1, %v9108_v47  ;;  %9651 = vst.msk [vmem:[#allocation2 + $0x8] sm:$0xff] %vm7601_vm1, %v9587_v29 }
 0x637   : > { %v9399_v42 = vpop.permute.xlu0 %9398  ;;  %v8953_v45 = vpop.permute.xlu1 %8952 }
 0x638   : > { %v9588_v0 = vadd.f32 %v9399_v42, %v9204_v37  ;;  %v9109_v52 = vadd.f32 %v8953_v45, %v8725_v49  ;;  %v9212_v37 = vld [vmem:[#allocation2 + $0x50] sm:$0xff]  ;;  %v8733_v49 = vld [vmem:[#allocation2 + $0x158] sm:$0xff] }
 0x639   : > { %v9298_v53 = vld [vmem:[#allocation2 + $0x105] sm:$0xff] }
 0x63a   : > { %9456 = vrot.lane.b32.xlu1 %v9297_v50, %s11728_s16  ;;  %9652 = vst.msk [vmem:[#allocation2 + $0x10] sm:$0xff] %vm7601_vm1, %v9588_v0  ;;  %9173 = vst.msk [vmem:[#allocation2 + $0x118] sm:$0xff] %vm7601_vm1, %v9109_v52  ;;  %9458 = vrot.lane.b32.xlu0 %v9298_v53, %s11728_s16 }
 0x63b   : > { %v8955_v3 = vpop.permute.xlu0 %8954  ;;  %v9401_v61 = vpop.permute.xlu1 %9400 }
 0x63c   : > { %v9110_v5 = vadd.f32 %v8955_v3, %v8726_v2  ;;  %v9589_v55 = vadd.f32 %v9401_v61, %v9205_v59  ;;  %v8734_v2 = vld [vmem:[#allocation2 + $0x160] sm:$0xff]  ;;  %v9213_v59 = vld [vmem:[#allocation2 + $0x58] sm:$0xff] }
 0x63d   : > { %v9299_v7 = vld [vmem:[#allocation2 + $0x10d] sm:$0xff] }
 0x63e   : > { %v9778_v4 = vld [vmem:[#allocation2 + $0x6] sm:$0xff]  ;;  %9174 = vst.msk [vmem:[#allocation2 + $0x120] sm:$0xff] %vm7601_vm1, %v9110_v5  ;;  %9653 = vst.msk [vmem:[#allocation2 + $0x18] sm:$0xff] %vm7601_vm1, %v9589_v55  ;;  %9460 = vrot.lane.b32.xlu1 %v9299_v7, %s11728_s16 }
 0x63f   : > { %9906 = vrot.lane.b32.xlu0 %v9778_v4, %s11729_s17  ;;  %v9403_v6 = vpop.permute.xlu0 %9402  ;;  %v8957_v9 = vpop.permute.xlu1 %8956 }
 0x640   : > { %v9590_v10 = vadd.f32 %v9403_v6, %v9206_v57  ;;  %v9111_v11 = vadd.f32 %v8957_v9, %v8727_v8  ;;  %v9214_v57 = vld [vmem:[#allocation2 + $0x60] sm:$0xff]  ;;  %v8735_v8 = vld [vmem:[#allocation2 + $0x168] sm:$0xff] }
 0x641   : > { %v9779_v12 = vld [vmem:[#allocation2 + $0xe] sm:$0xff] }
 0x642   : > { %v9300_v13 = vld [vmem:[#allocation2 + $0x115] sm:$0xff]  ;;  %9654 = vst.msk [vmem:[#allocation2 + $0x20] sm:$0xff] %vm7601_vm1, %v9590_v10  ;;  %9175 = vst.msk [vmem:[#allocation2 + $0x128] sm:$0xff] %vm7601_vm1, %v9111_v11  ;;  %9908 = vrot.lane.b32.xlu1 %v9779_v12, %s11729_s17 }
 0x643   : > { %9462 = vrot.lane.b32.xlu0 %v9300_v13, %s11728_s16  ;;  %v8959_v58 = vpop.permute.xlu0 %8958  ;;  %v9405_v16 = vpop.permute.xlu1 %9404 }
 0x644   : > { %v9112_v17 = vadd.f32 %v8959_v58, %v8728_v14  ;;  %v9591_v18 = vadd.f32 %v9405_v16, %v9207_v15  ;;  %v8736_v14 = vld [vmem:[#allocation2 + $0x170] sm:$0xff]  ;;  %v9215_v15 = vld [vmem:[#allocation2 + $0x68] sm:$0xff] }
 0x645   : > { %v9301_v19 = vld [vmem:[#allocation2 + $0x11d] sm:$0xff] }
 0x646   : > { %v9780_v20 = vld [vmem:[#allocation2 + $0x16] sm:$0xff]  ;;  %9176 = vst.msk [vmem:[#allocation2 + $0x130] sm:$0xff] %vm7601_vm1, %v9112_v17  ;;  %9655 = vst.msk [vmem:[#allocation2 + $0x28] sm:$0xff] %vm7601_vm1, %v9591_v18  ;;  %9464 = vrot.lane.b32.xlu1 %v9301_v19, %s11728_s16 }
 0x647   : > { %9910 = vrot.lane.b32.xlu0 %v9780_v20, %s11729_s17  ;;  %v9407_v1 = vpop.permute.xlu0 %9406  ;;  %v8961_v23 = vpop.permute.xlu1 %8960 }
 0x648   : > { %v9592_v24 = vadd.f32 %v9407_v1, %v9208_v21  ;;  %v9113_v25 = vadd.f32 %v8961_v23, %v8729_v22  ;;  %v9216_v21 = vld [vmem:[#allocation2 + $0x70] sm:$0xff]  ;;  %v8737_v22 = vld [vmem:[#allocation2 + $0x178] sm:$0xff] }
 0x649   : > { %v9781_v26 = vld [vmem:[#allocation2 + $0x1e] sm:$0xff] }
 0x64a   : > { %v9302_v27 = vld [vmem:[#allocation2 + $0x125] sm:$0xff]  ;;  %9656 = vst.msk [vmem:[#allocation2 + $0x30] sm:$0xff] %vm7601_vm1, %v9592_v24  ;;  %9177 = vst.msk [vmem:[#allocation2 + $0x138] sm:$0xff] %vm7601_vm1, %v9113_v25  ;;  %9912 = vrot.lane.b32.xlu1 %v9781_v26, %s11729_s17 }
 0x64b   : > { %9466 = vrot.lane.b32.xlu0 %v9302_v27, %s11728_s16  ;;  %v8963_v30 = vpop.permute.xlu0 %8962  ;;  %v9409_v32 = vpop.permute.xlu1 %9408 }
 0x64c   : > { %v9114_v33 = vadd.f32 %v8963_v30, %v8730_v28  ;;  %v9593_v35 = vadd.f32 %v9409_v32, %v9209_v31  ;;  %v8738_v28 = vld [vmem:[#allocation2 + $0x180] sm:$0xff]  ;;  %v9217_v31 = vld [vmem:[#allocation2 + $0x78] sm:$0xff] }
 0x64d   : > { %v9303_v36 = vld [vmem:[#allocation2 + $0x12d] sm:$0xff] }
 0x64e   : > { %v9782_v38 = vld [vmem:[#allocation2 + $0x26] sm:$0xff]  ;;  %9178 = vst.msk [vmem:[#allocation2 + $0x140] sm:$0xff] %vm7601_vm1, %v9114_v33  ;;  %9657 = vst.msk [vmem:[#allocation2 + $0x38] sm:$0xff] %vm7601_vm1, %v9593_v35  ;;  %9468 = vrot.lane.b32.xlu1 %v9303_v36, %s11728_s16 }
 0x64f   : > { %9914 = vrot.lane.b32.xlu0 %v9782_v38, %s11729_s17  ;;  %v9411_v40 = vpop.permute.xlu0 %9410  ;;  %v8965_v46 = vpop.permute.xlu1 %8964 }
 0x650   : > { %v9594_v48 = vadd.f32 %v9411_v40, %v9210_v39  ;;  %v9115_v41 = vadd.f32 %v8965_v46, %v8731_v43  ;;  %v9218_v39 = vld [vmem:[#allocation2 + $0x80] sm:$0xff]  ;;  %v8739_v43 = vld [vmem:[#allocation2 + $0x188] sm:$0xff] }
 0x651   : > { %v9783_v51 = vld [vmem:[#allocation2 + $0x2e] sm:$0xff] }
 0x652   : > { %v9304_v54 = vld [vmem:[#allocation2 + $0x135] sm:$0xff]  ;;  %9658 = vst.msk [vmem:[#allocation2 + $0x40] sm:$0xff] %vm7601_vm1, %v9594_v48  ;;  %9179 = vst.msk [vmem:[#allocation2 + $0x148] sm:$0xff] %vm7601_vm1, %v9115_v41  ;;  %9916 = vrot.lane.b32.xlu1 %v9783_v51, %s11729_s17 }
 0x653   : > { %9470 = vrot.lane.b32.xlu0 %v9304_v54, %s11728_s16  ;;  %v8967_v44 = vpop.permute.xlu0 %8966  ;;  %v9413_v62 = vpop.permute.xlu1 %9412 }
 0x654   : > { %v9116_v47 = vadd.f32 %v8967_v44, %v8732_v56  ;;  %v9595_v29 = vadd.f32 %v9413_v62, %v9211_v60  ;;  %v8740_v56 = vld [vmem:[#allocation2 + $0x190] sm:$0xff]  ;;  %v9219_v60 = vld [vmem:[#allocation2 + $0x88] sm:$0xff] }
 0x655   : > { %v9305_v63 = vld [vmem:[#allocation2 + $0x13d] sm:$0xff] }
 0x656   : > { %v9784_v34 = vld [vmem:[#allocation2 + $0x36] sm:$0xff]  ;;  %9180 = vst.msk [vmem:[#allocation2 + $0x150] sm:$0xff] %vm7601_vm1, %v9116_v47  ;;  %9659 = vst.msk [vmem:[#allocation2 + $0x48] sm:$0xff] %vm7601_vm1, %v9595_v29  ;;  %9472 = vrot.lane.b32.xlu1 %v9305_v63, %s11728_s16 }
 0x657   : > { %9918 = vrot.lane.b32.xlu0 %v9784_v34, %s11729_s17  ;;  %v9415_v42 = vpop.permute.xlu0 %9414  ;;  %v8969_v45 = vpop.permute.xlu1 %8968 }
 0x658   : > { %v9596_v0 = vadd.f32 %v9415_v42, %v9212_v37  ;;  %v9117_v52 = vadd.f32 %v8969_v45, %v8733_v49  ;;  %v9220_v37 = vld [vmem:[#allocation2 + $0x90] sm:$0xff]  ;;  %v8741_v49 = vld [vmem:[#allocation2 + $0x198] sm:$0xff] }
 0x659   : > { %v9785_v50 = vld [vmem:[#allocation2 + $0x3e] sm:$0xff] }
 0x65a   : > { %v9306_v53 = vld [vmem:[#allocation2 + $0x145] sm:$0xff]  ;;  %9660 = vst.msk [vmem:[#allocation2 + $0x50] sm:$0xff] %vm7601_vm1, %v9596_v0  ;;  %9181 = vst.msk [vmem:[#allocation2 + $0x158] sm:$0xff] %vm7601_vm1, %v9117_v52  ;;  %9920 = vrot.lane.b32.xlu1 %v9785_v50, %s11729_s17 }
 0x65b   : > { %9474 = vrot.lane.b32.xlu0 %v9306_v53, %s11728_s16  ;;  %v8971_v3 = vpop.permute.xlu0 %8970  ;;  %v9417_v61 = vpop.permute.xlu1 %9416 }
 0x65c   : > { %v9118_v5 = vadd.f32 %v8971_v3, %v8734_v2  ;;  %v9597_v55 = vadd.f32 %v9417_v61, %v9213_v59  ;;  %v8742_v2 = vld [vmem:[#allocation2 + $0x1a0] sm:$0xff]  ;;  %v9221_v59 = vld [vmem:[#allocation2 + $0x98] sm:$0xff] }
 0x65d   : > { %v9307_v7 = vld [vmem:[#allocation2 + $0x14d] sm:$0xff] }
 0x65e   : > { %v9786_v4 = vld [vmem:[#allocation2 + $0x46] sm:$0xff]  ;;  %9182 = vst.msk [vmem:[#allocation2 + $0x160] sm:$0xff] %vm7601_vm1, %v9118_v5  ;;  %9661 = vst.msk [vmem:[#allocation2 + $0x58] sm:$0xff] %vm7601_vm1, %v9597_v55  ;;  %9476 = vrot.lane.b32.xlu1 %v9307_v7, %s11728_s16 }
 0x65f   : > { %9922 = vrot.lane.b32.xlu0 %v9786_v4, %s11729_s17  ;;  %v9419_v6 = vpop.permute.xlu0 %9418  ;;  %v8973_v9 = vpop.permute.xlu1 %8972 }
 0x660   : > { %v9598_v10 = vadd.f32 %v9419_v6, %v9214_v57  ;;  %v9119_v11 = vadd.f32 %v8973_v9, %v8735_v8  ;;  %v9222_v57 = vld [vmem:[#allocation2 + $0xa0] sm:$0xff]  ;;  %v8743_v8 = vld [vmem:[#allocation2 + $0x1a8] sm:$0xff] }
 0x661   : > { %v9787_v12 = vld [vmem:[#allocation2 + $0x4e] sm:$0xff] }
 0x662   : > { %v9308_v13 = vld [vmem:[#allocation2 + $0x155] sm:$0xff]  ;;  %9662 = vst.msk [vmem:[#allocation2 + $0x60] sm:$0xff] %vm7601_vm1, %v9598_v10  ;;  %9183 = vst.msk [vmem:[#allocation2 + $0x168] sm:$0xff] %vm7601_vm1, %v9119_v11  ;;  %9924 = vrot.lane.b32.xlu1 %v9787_v12, %s11729_s17 }
 0x663   : > { %9478 = vrot.lane.b32.xlu0 %v9308_v13, %s11728_s16  ;;  %v8975_v58 = vpop.permute.xlu0 %8974  ;;  %v9421_v16 = vpop.permute.xlu1 %9420 }
 0x664   : > { %v9120_v17 = vadd.f32 %v8975_v58, %v8736_v14  ;;  %v9599_v18 = vadd.f32 %v9421_v16, %v9215_v15  ;;  %v8744_v14 = vld [vmem:[#allocation2 + $0x1b0] sm:$0xff]  ;;  %v9223_v15 = vld [vmem:[#allocation2 + $0xa8] sm:$0xff] }
 0x665   : > { %v9309_v19 = vld [vmem:[#allocation2 + $0x15d] sm:$0xff] }
 0x666   : > { %v9788_v20 = vld [vmem:[#allocation2 + $0x56] sm:$0xff]  ;;  %9184 = vst.msk [vmem:[#allocation2 + $0x170] sm:$0xff] %vm7601_vm1, %v9120_v17  ;;  %9663 = vst.msk [vmem:[#allocation2 + $0x68] sm:$0xff] %vm7601_vm1, %v9599_v18  ;;  %9480 = vrot.lane.b32.xlu1 %v9309_v19, %s11728_s16 }
 0x667   : > { %9926 = vrot.lane.b32.xlu0 %v9788_v20, %s11729_s17  ;;  %v9423_v1 = vpop.permute.xlu0 %9422  ;;  %v8977_v23 = vpop.permute.xlu1 %8976 }
 0x668   : > { %v9600_v24 = vadd.f32 %v9423_v1, %v9216_v21  ;;  %v9121_v25 = vadd.f32 %v8977_v23, %v8737_v22  ;;  %v9224_v21 = vld [vmem:[#allocation2 + $0xb0] sm:$0xff]  ;;  %v8745_v22 = vld [vmem:[#allocation2 + $0x1b8] sm:$0xff] }
 0x669   : > { %v9789_v26 = vld [vmem:[#allocation2 + $0x5e] sm:$0xff] }
 0x66a   : > { %v9310_v27 = vld [vmem:[#allocation2 + $0x165] sm:$0xff]  ;;  %9664 = vst.msk [vmem:[#allocation2 + $0x70] sm:$0xff] %vm7601_vm1, %v9600_v24  ;;  %9185 = vst.msk [vmem:[#allocation2 + $0x178] sm:$0xff] %vm7601_vm1, %v9121_v25  ;;  %9928 = vrot.lane.b32.xlu1 %v9789_v26, %s11729_s17 }
 0x66b   : > { %9482 = vrot.lane.b32.xlu0 %v9310_v27, %s11728_s16  ;;  %v8979_v30 = vpop.permute.xlu0 %8978  ;;  %v9425_v32 = vpop.permute.xlu1 %9424 }
 0x66c   : > { %v9122_v33 = vadd.f32 %v8979_v30, %v8738_v28  ;;  %v9601_v35 = vadd.f32 %v9425_v32, %v9217_v31  ;;  %v8746_v28 = vld [vmem:[#allocation2 + $0x1c0] sm:$0xff]  ;;  %v9225_v31 = vld [vmem:[#allocation2 + $0xb8] sm:$0xff] }
 0x66d   : > { %v9311_v36 = vld [vmem:[#allocation2 + $0x16d] sm:$0xff] }
 0x66e   : > { %v9790_v38 = vld [vmem:[#allocation2 + $0x66] sm:$0xff]  ;;  %9186 = vst.msk [vmem:[#allocation2 + $0x180] sm:$0xff] %vm7601_vm1, %v9122_v33  ;;  %9665 = vst.msk [vmem:[#allocation2 + $0x78] sm:$0xff] %vm7601_vm1, %v9601_v35  ;;  %9484 = vrot.lane.b32.xlu1 %v9311_v36, %s11728_s16 }
 0x66f   : > { %9930 = vrot.lane.b32.xlu0 %v9790_v38, %s11729_s17  ;;  %v9427_v40 = vpop.permute.xlu0 %9426  ;;  %v8981_v46 = vpop.permute.xlu1 %8980 }
 0x670   : > { %v9602_v48 = vadd.f32 %v9427_v40, %v9218_v39  ;;  %v9123_v41 = vadd.f32 %v8981_v46, %v8739_v43  ;;  %v9226_v39 = vld [vmem:[#allocation2 + $0xc0] sm:$0xff]  ;;  %v8747_v43 = vld [vmem:[#allocation2 + $0x1c8] sm:$0xff] }
 0x671   : > { %v9791_v51 = vld [vmem:[#allocation2 + $0x6e] sm:$0xff] }
 0x672   : > { %v9312_v54 = vld [vmem:[#allocation2 + $0x175] sm:$0xff]  ;;  %9666 = vst.msk [vmem:[#allocation2 + $0x80] sm:$0xff] %vm7601_vm1, %v9602_v48  ;;  %9187 = vst.msk [vmem:[#allocation2 + $0x188] sm:$0xff] %vm7601_vm1, %v9123_v41  ;;  %9932 = vrot.lane.b32.xlu1 %v9791_v51, %s11729_s17 }
 0x673   : > { %9486 = vrot.lane.b32.xlu0 %v9312_v54, %s11728_s16  ;;  %v8983_v44 = vpop.permute.xlu0 %8982  ;;  %v9429_v62 = vpop.permute.xlu1 %9428 }
 0x674   : > { %v9124_v47 = vadd.f32 %v8983_v44, %v8740_v56  ;;  %v9603_v29 = vadd.f32 %v9429_v62, %v9219_v60  ;;  %v8748_v56 = vld [vmem:[#allocation2 + $0x1d0] sm:$0xff]  ;;  %v9227_v60 = vld [vmem:[#allocation2 + $0xc8] sm:$0xff] }
 0x675   : > { %v9313_v63 = vld [vmem:[#allocation2 + $0x17d] sm:$0xff] }
 0x676   : > { %v9792_v34 = vld [vmem:[#allocation2 + $0x76] sm:$0xff]  ;;  %9188 = vst.msk [vmem:[#allocation2 + $0x190] sm:$0xff] %vm7601_vm1, %v9124_v47  ;;  %9667 = vst.msk [vmem:[#allocation2 + $0x88] sm:$0xff] %vm7601_vm1, %v9603_v29  ;;  %9488 = vrot.lane.b32.xlu1 %v9313_v63, %s11728_s16 }
 0x677   : > { %9934 = vrot.lane.b32.xlu0 %v9792_v34, %s11729_s17  ;;  %v9431_v42 = vpop.permute.xlu0 %9430  ;;  %v8985_v45 = vpop.permute.xlu1 %8984 }
 0x678   : > { %v9604_v0 = vadd.f32 %v9431_v42, %v9220_v37  ;;  %v9125_v52 = vadd.f32 %v8985_v45, %v8741_v49  ;;  %v9228_v37 = vld [vmem:[#allocation2 + $0xd0] sm:$0xff]  ;;  %v8749_v49 = vld [vmem:[#allocation2 + $0x1d8] sm:$0xff] }
 0x679   : > { %v9793_v50 = vld [vmem:[#allocation2 + $0x7e] sm:$0xff] }
 0x67a   : > { %v9314_v53 = vld [vmem:[#allocation2 + $0x185] sm:$0xff]  ;;  %9668 = vst.msk [vmem:[#allocation2 + $0x90] sm:$0xff] %vm7601_vm1, %v9604_v0  ;;  %9189 = vst.msk [vmem:[#allocation2 + $0x198] sm:$0xff] %vm7601_vm1, %v9125_v52  ;;  %9936 = vrot.lane.b32.xlu1 %v9793_v50, %s11729_s17 }
 0x67b   : > { %9490 = vrot.lane.b32.xlu0 %v9314_v53, %s11728_s16  ;;  %v8987_v3 = vpop.permute.xlu0 %8986  ;;  %v9433_v61 = vpop.permute.xlu1 %9432 }
 0x67c   : > { %v9126_v5 = vadd.f32 %v8987_v3, %v8742_v2  ;;  %v9605_v55 = vadd.f32 %v9433_v61, %v9221_v59  ;;  %v8750_v2 = vld [vmem:[#allocation2 + $0x1e0] sm:$0xff]  ;;  %v9229_v59 = vld [vmem:[#allocation2 + $0xd8] sm:$0xff] }
 0x67d   : > { %v9315_v7 = vld [vmem:[#allocation2 + $0x18d] sm:$0xff] }
 0x67e   : > { %v9794_v4 = vld [vmem:[#allocation2 + $0x86] sm:$0xff]  ;;  %9190 = vst.msk [vmem:[#allocation2 + $0x1a0] sm:$0xff] %vm7601_vm1, %v9126_v5  ;;  %9669 = vst.msk [vmem:[#allocation2 + $0x98] sm:$0xff] %vm7601_vm1, %v9605_v55  ;;  %9492 = vrot.lane.b32.xlu1 %v9315_v7, %s11728_s16 }
 0x67f   : > { %9938 = vrot.lane.b32.xlu0 %v9794_v4, %s11729_s17  ;;  %v9435_v6 = vpop.permute.xlu0 %9434  ;;  %v8989_v9 = vpop.permute.xlu1 %8988 }
 0x680   : > { %v9606_v10 = vadd.f32 %v9435_v6, %v9222_v57  ;;  %v9127_v11 = vadd.f32 %v8989_v9, %v8743_v8  ;;  %v8752_v57 = vld [vmem:[#allocation2 + $0x1f0] sm:$0xff]  ;;  %v8751_v8 = vld [vmem:[#allocation2 + $0x1e8] sm:$0xff] }
 0x681   : > { %v9795_v12 = vld [vmem:[#allocation2 + $0x8e] sm:$0xff] }
 0x682   : > { %v9316_v13 = vld [vmem:[#allocation2 + $0x195] sm:$0xff]  ;;  %9670 = vst.msk [vmem:[#allocation2 + $0xa0] sm:$0xff] %vm7601_vm1, %v9606_v10  ;;  %9191 = vst.msk [vmem:[#allocation2 + $0x1a8] sm:$0xff] %vm7601_vm1, %v9127_v11  ;;  %9940 = vrot.lane.b32.xlu1 %v9795_v12, %s11729_s17 }
 0x683   : > { %9494 = vrot.lane.b32.xlu0 %v9316_v13, %s11728_s16  ;;  %v8991_v58 = vpop.permute.xlu0 %8990  ;;  %v9437_v16 = vpop.permute.xlu1 %9436 }
 0x684   : > { %v9128_v17 = vadd.f32 %v8991_v58, %v8744_v14  ;;  %v9607_v18 = vadd.f32 %v9437_v16, %v9223_v15  ;;  %v9230_v14 = vld [vmem:[#allocation2 + $0xe0] sm:$0xff]  ;;  %v8753_v15 = vld [vmem:[#allocation2 + $0x1f8] sm:$0xff] }
 0x685   : > { %v9317_v19 = vld [vmem:[#allocation2 + $0x19d] sm:$0xff] }
 0x686   : > { %v9796_v20 = vld [vmem:[#allocation2 + $0x96] sm:$0xff]  ;;  %9192 = vst.msk [vmem:[#allocation2 + $0x1b0] sm:$0xff] %vm7601_vm1, %v9128_v17  ;;  %9671 = vst.msk [vmem:[#allocation2 + $0xa8] sm:$0xff] %vm7601_vm1, %v9607_v18  ;;  %9496 = vrot.lane.b32.xlu1 %v9317_v19, %s11728_s16 }
 0x687   : > { %9942 = vrot.lane.b32.xlu0 %v9796_v20, %s11729_s17  ;;  %v9439_v1 = vpop.permute.xlu0 %9438  ;;  %v8993_v23 = vpop.permute.xlu1 %8992 }
 0x688   : > { %v9608_v24 = vadd.f32 %v9439_v1, %v9224_v21  ;;  %v9129_v25 = vadd.f32 %v8993_v23, %v8745_v22  ;;  %v9232_v21 = vld [vmem:[#allocation2 + $0xf0] sm:$0xff]  ;;  %v9231_v22 = vld [vmem:[#allocation2 + $0xe8] sm:$0xff] }
 0x689   : > { %v9797_v26 = vld [vmem:[#allocation2 + $0x9e] sm:$0xff] }
 0x68a   : > { %v9318_v27 = vld [vmem:[#allocation2 + $0x1a5] sm:$0xff]  ;;  %9672 = vst.msk [vmem:[#allocation2 + $0xb0] sm:$0xff] %vm7601_vm1, %v9608_v24  ;;  %9193 = vst.msk [vmem:[#allocation2 + $0x1b8] sm:$0xff] %vm7601_vm1, %v9129_v25  ;;  %9944 = vrot.lane.b32.xlu1 %v9797_v26, %s11729_s17 }
 0x68b   : > { %9498 = vrot.lane.b32.xlu0 %v9318_v27, %s11728_s16  ;;  %v8995_v30 = vpop.permute.xlu0 %8994  ;;  %v9441_v32 = vpop.permute.xlu1 %9440 }
 0x68c   : > { %v9130_v33 = vadd.f32 %v8995_v30, %v8746_v28  ;;  %v9609_v35 = vadd.f32 %v9441_v32, %v9225_v31  ;;  %v9233_v28 = vld [vmem:[#allocation2 + $0xf8] sm:$0xff]  ;;  %v9234_v32 = vld [vmem:[#allocation2 + $0x100] sm:$0xff] }
 0x68d   : > { %v9319_v36 = vld [vmem:[#allocation2 + $0x1ad] sm:$0xff] }
 0x68e   : > { %v9798_v38 = vld [vmem:[#allocation2 + $0xa6] sm:$0xff]  ;;  %9194 = vst.msk [vmem:[#allocation2 + $0x1c0] sm:$0xff] %vm7601_vm1, %v9130_v33  ;;  %9673 = vst.msk [vmem:[#allocation2 + $0xb8] sm:$0xff] %vm7601_vm1, %v9609_v35  ;;  %9500 = vrot.lane.b32.xlu1 %v9319_v36, %s11728_s16 }
 0x68f   : > { %9946 = vrot.lane.b32.xlu0 %v9798_v38, %s11729_s17  ;;  %v9443_v40 = vpop.permute.xlu0 %9442  ;;  %v8997_v46 = vpop.permute.xlu1 %8996 }
 0x690   : > { %v9610_v48 = vadd.f32 %v9443_v40, %v9226_v39  ;;  %v9131_v41 = vadd.f32 %v8997_v46, %v8747_v43  ;;  %v9714_v39 = vld [vmem:[#allocation2] sm:$0xff]  ;;  %v9235_v43 = vld [vmem:[#allocation2 + $0x108] sm:$0xff] }
 0x691   : > { %v9799_v51 = vld [vmem:[#allocation2 + $0xae] sm:$0xff] }
 0x692   : > { %v9320_v54 = vld [vmem:[#allocation2 + $0x1b5] sm:$0xff]  ;;  %9674 = vst.msk [vmem:[#allocation2 + $0xc0] sm:$0xff] %vm7601_vm1, %v9610_v48  ;;  %9195 = vst.msk [vmem:[#allocation2 + $0x1c8] sm:$0xff] %vm7601_vm1, %v9131_v41  ;;  %9948 = vrot.lane.b32.xlu1 %v9799_v51, %s11729_s17 }
 0x693   : > { %9502 = vrot.lane.b32.xlu0 %v9320_v54, %s11728_s16  ;;  %v8999_v44 = vpop.permute.xlu0 %8998  ;;  %v9445_v62 = vpop.permute.xlu1 %9444 }
 0x694   : > { %v9132_v47 = vadd.f32 %v8999_v44, %v8748_v56  ;;  %v9611_v29 = vadd.f32 %v9445_v62, %v9227_v60  ;;  %v9236_v56 = vld [vmem:[#allocation2 + $0x110] sm:$0xff]  ;;  %v9715_v60 = vld [vmem:[#allocation2 + $0x8] sm:$0xff] }
 0x695   : > { %v9321_v63 = vld [vmem:[#allocation2 + $0x1bd] sm:$0xff] }
 0x696   : > { %v9800_v34 = vld [vmem:[#allocation2 + $0xb6] sm:$0xff]  ;;  %9196 = vst.msk [vmem:[#allocation2 + $0x1d0] sm:$0xff] %vm7601_vm1, %v9132_v47  ;;  %9675 = vst.msk [vmem:[#allocation2 + $0xc8] sm:$0xff] %vm7601_vm1, %v9611_v29  ;;  %9504 = vrot.lane.b32.xlu1 %v9321_v63, %s11728_s16 }
 0x697   : > { %9950 = vrot.lane.b32.xlu0 %v9800_v34, %s11729_s17  ;;  %v9447_v42 = vpop.permute.xlu0 %9446  ;;  %v9001_v45 = vpop.permute.xlu1 %9000 }
 0x698   : > { %v9612_v0 = vadd.f32 %v9447_v42, %v9228_v37  ;;  %v9133_v52 = vadd.f32 %v9001_v45, %v8749_v49  ;;  %v9716_v37 = vld [vmem:[#allocation2 + $0x10] sm:$0xff]  ;;  %v9237_v49 = vld [vmem:[#allocation2 + $0x118] sm:$0xff] }
 0x699   : > { %v9801_v50 = vld [vmem:[#allocation2 + $0xbe] sm:$0xff] }
 0x69a   : > { %v9322_v53 = vld [vmem:[#allocation2 + $0x1c5] sm:$0xff]  ;;  %9676 = vst.msk [vmem:[#allocation2 + $0xd0] sm:$0xff] %vm7601_vm1, %v9612_v0  ;;  %9197 = vst.msk [vmem:[#allocation2 + $0x1d8] sm:$0xff] %vm7601_vm1, %v9133_v52  ;;  %9952 = vrot.lane.b32.xlu1 %v9801_v50, %s11729_s17 }
 0x69b   : > { %9506 = vrot.lane.b32.xlu0 %v9322_v53, %s11728_s16  ;;  %v9003_v3 = vpop.permute.xlu0 %9002 }
 0x69c   : > { %v9449_v61 = vpop.permute.xlu1 %9448  ;;  %v9134_v5 = vadd.f32 %v9003_v3, %v8750_v2  ;;  %v9238_v3 = vld [vmem:[#allocation2 + $0x120] sm:$0xff] }
 0x69d   : > { %v9613_v55 = vadd.f32 %v9449_v61, %v9229_v59  ;;  %v9323_v7 = vld [vmem:[#allocation2 + $0x1cd] sm:$0xff]  ;;  %v9717_v61 = vld [vmem:[#allocation2 + $0x18] sm:$0xff] }
 0x69e   : > { %v9802_v4 = vld [vmem:[#allocation2 + $0xc6] sm:$0xff]  ;;  %9198 = vst.msk [vmem:[#allocation2 + $0x1e0] sm:$0xff] %vm7601_vm1, %v9134_v5  ;;  %9508 = vrot.lane.b32.xlu1 %v9323_v7, %s11728_s16 }
 0x69f   : > { %9677 = vst.msk [vmem:[#allocation2 + $0xd8] sm:$0xff] %vm7601_vm1, %v9613_v55  ;;  %9954 = vrot.lane.b32.xlu0 %v9802_v4, %s11729_s17 }
 0x6a0   : > { %v9007_v6 = vpop.permute.xlu0 %9006  ;;  %v9005_v9 = vpop.permute.xlu1 %9004 }
 0x6a1   : > { %v9136_v10 = vadd.f32 %v9007_v6, %v8752_v57  ;;  %v9135_v11 = vadd.f32 %v9005_v9, %v8751_v8  ;;  %v9803_v12 = vld [vmem:[#allocation2 + $0xce] sm:$0xff]  ;;  %v9718_v6 = vld [vmem:[#allocation2 + $0x20] sm:$0xff] }
 0x6a2   : > { %v9324_v13 = vld [vmem:[#allocation2 + $0x1d5] sm:$0xff]  ;;  %9956 = vrot.lane.b32.xlu1 %v9803_v12, %s11729_s17  ;;  %v9239_v9 = vld [vmem:[#allocation2 + $0x128] sm:$0xff] }
 0x6a3   : > { %9200 = vst.msk [vmem:[#allocation2 + $0x1f0] sm:$0xff] %vm7601_vm1, %v9136_v10  ;;  %9199 = vst.msk [vmem:[#allocation2 + $0x1e8] sm:$0xff] %vm7601_vm1, %v9135_v11  ;;  %9510 = vrot.lane.b32.xlu0 %v9324_v13, %s11728_s16 }
 0x6a4   : > { %v9451_v58 = vpop.permute.xlu0 %9450  ;;  %v9009_v16 = vpop.permute.xlu1 %9008 }
 0x6a5   : > { %v9614_v17 = vadd.f32 %v9451_v58, %v9230_v14  ;;  %v9137_v18 = vadd.f32 %v9009_v16, %v8753_v15  ;;  %v9325_v19 = vld [vmem:[#allocation2 + $0x1dd] sm:$0xff]  ;;  %v9240_v58 = vld [vmem:[#allocation2 + $0x130] sm:$0xff]  ;;  %v9719_v16 = vld [vmem:[#allocation2 + $0x28] sm:$0xff] }
 0x6a6   : > { %v9804_v20 = vld [vmem:[#allocation2 + $0xd6] sm:$0xff]  ;;  %9512 = vrot.lane.b32.xlu1 %v9325_v19, %s11728_s16 }
 0x6a7   : > { %9678 = vst.msk [vmem:[#allocation2 + $0xe0] sm:$0xff] %vm7601_vm1, %v9614_v17  ;;  %9201 = vst.msk [vmem:[#allocation2 + $0x1f8] sm:$0xff] %vm7601_vm1, %v9137_v18  ;;  %9958 = vrot.lane.b32.xlu0 %v9804_v20, %s11729_s17 }
 0x6a8   : > { %v9455_v1 = vpop.permute.xlu0 %9454  ;;  %v9453_v23 = vpop.permute.xlu1 %9452 }
 0x6a9   : > { %v9616_v24 = vadd.f32 %v9455_v1, %v9232_v21  ;;  %v9615_v25 = vadd.f32 %v9453_v23, %v9231_v22  ;;  %v9720_v1 = vld [vmem:[#allocation2 + $0x30] sm:$0xff]  ;;  %v9241_v23 = vld [vmem:[#allocation2 + $0x138] sm:$0xff] }
 0x6aa   : > { %v9327_v26 = vld [vmem:[#allocation2 + $0x1ed] sm:$0xff]  ;;  %v9326_v27 = vld [vmem:[#allocation2 + $0x1e5] sm:$0xff] }
 0x6ab   : > { %9680 = vst.msk [vmem:[#allocation2 + $0xf0] sm:$0xff] %vm7601_vm1, %v9616_v24  ;;  %9679 = vst.msk [vmem:[#allocation2 + $0xe8] sm:$0xff] %vm7601_vm1, %v9615_v25  ;;  %9516 = vrot.lane.b32.xlu1 %v9327_v26, %s11728_s16  ;;  %9514 = vrot.lane.b32.xlu0 %v9326_v27, %s11728_s16 }
 0x6ac   : > { %v9457_v30 = vpop.permute.xlu1 %9456  ;;  %v9459_v33 = vpop.permute.xlu0 %9458 }
 0x6ad   : > { %v9617_v31 = vadd.f32 %v9457_v30, %v9233_v28  ;;  %v9618_v35 = vadd.f32 %v9459_v33, %v9234_v32  ;;  %v9242_v30 = vld [vmem:[#allocation2 + $0x140] sm:$0xff]  ;;  %v9721_v32 = vld [vmem:[#allocation2 + $0x38] sm:$0xff] }
 0x6ae   : > { %v9329_v36 = vld [vmem:[#allocation2 + $0x1fd] sm:$0xff]  ;;  %v9328_v38 = vld [vmem:[#allocation2 + $0x1f5] sm:$0xff] }
 0x6af   : > { %9681 = vst.msk [vmem:[#allocation2 + $0xf8] sm:$0xff] %vm7601_vm1, %v9617_v31  ;;  %9520 = vrot.lane.b32.xlu1 %v9329_v36, %s11728_s16  ;;  %9518 = vrot.lane.b32.xlu0 %v9328_v38, %s11728_s16  ;;  %9682 = vst.msk [vmem:[#allocation2 + $0x100] sm:$0xff] %vm7601_vm1, %v9618_v35  ;;  %v9805_v51 = vld [vmem:[#allocation2 + $0xde] sm:$0xff] }
 0x6b0   : > { %v9461_v46 = vpop.permute.xlu1 %9460 }
 0x6b1   : > { %v9907_v40 = vpop.permute.xlu0 %9906  ;;  %v9619_v41 = vadd.f32 %v9461_v46, %v9235_v43  ;;  %v9243_v46 = vld [vmem:[#allocation2 + $0x148] sm:$0xff] }
 0x6b2   : > { %v10098_v48 = vadd.f32 %v9907_v40, %v9714_v39  ;;  %v9806_v54 = vld [vmem:[#allocation2 + $0xe6] sm:$0xff]  ;;  %v9807_v63 = vld [vmem:[#allocation2 + $0xee] sm:$0xff] }
 0x6b3   : > { %9960 = vrot.lane.b32.xlu1 %v9805_v51, %s11729_s17  ;;  %9962 = vrot.lane.b32.xlu0 %v9806_v54, %s11729_s17  ;;  %9683 = vst.msk [vmem:[#allocation2 + $0x108] sm:$0xff] %vm7601_vm1, %v9619_v41  ;;  %v9722_v40 = vld [vmem:[#allocation2 + $0x40] sm:$0xff] }
 0x6b4   : > { %10162 = vst.msk [vmem:[#allocation2] sm:$0xff] %vm7601_vm1, %v10098_v48  ;;  %v9909_v62 = vpop.permute.xlu1 %9908 }
 0x6b5   : > { %v9463_v44 = vpop.permute.xlu0 %9462  ;;  %v10099_v29 = vadd.f32 %v9909_v62, %v9715_v60  ;;  %v9723_v62 = vld [vmem:[#allocation2 + $0x48] sm:$0xff] }
 0x6b6   : > { %v9620_v47 = vadd.f32 %v9463_v44, %v9236_v56  ;;  %v9808_v34 = vld [vmem:[#allocation2 + $0xf6] sm:$0xff]  ;;  %v9809_v50 = vld [vmem:[#allocation2 + $0xfe] sm:$0xff] }
 0x6b7   : > { %9964 = vrot.lane.b32.xlu1 %v9807_v63, %s11729_s17  ;;  %9966 = vrot.lane.b32.xlu0 %v9808_v34, %s11729_s17  ;;  %10163 = vst.msk [vmem:[#allocation2 + $0x8] sm:$0xff] %vm7601_vm1, %v10099_v29  ;;  %v9244_v44 = vld [vmem:[#allocation2 + $0x150] sm:$0xff] }
 0x6b8   : > { %9684 = vst.msk [vmem:[#allocation2 + $0x110] sm:$0xff] %vm7601_vm1, %v9620_v47  ;;  %v9465_v45 = vpop.permute.xlu1 %9464 }
 0x6b9   : > { %v9911_v42 = vpop.permute.xlu0 %9910  ;;  %v9621_v52 = vadd.f32 %v9465_v45, %v9237_v49  ;;  %v9245_v45 = vld [vmem:[#allocation2 + $0x158] sm:$0xff] }
 0x6ba   : > { %v10100_v0 = vadd.f32 %v9911_v42, %v9716_v37  ;;  %v9810_v2 = vld [vmem:[#allocation2 + $0x106] sm:$0xff]  ;;  %v9724_v42 = vld [vmem:[#allocation2 + $0x50] sm:$0xff] }
 0x6bb   : > { %v10226_v53 = vld [vmem:[#allocation2] sm:$0xff]  ;;  %9968 = vrot.lane.b32.xlu1 %v9809_v50, %s11729_s17  ;;  %9685 = vst.msk [vmem:[#allocation2 + $0x118] sm:$0xff] %vm7601_vm1, %v9621_v52  ;;  %9970 = vrot.lane.b32.xlu0 %v9810_v2, %s11729_s17 }
 0x6bc   : > { %10290 = vst.msk [vmem:[%s13727_s21] sm:$0xff] %vm7601_vm1, %v10226_v53  ;;  %10164 = vst.msk [vmem:[#allocation2 + $0x10] sm:$0xff] %vm7601_vm1, %v10100_v0  ;;  %v9913_v5 = vpop.permute.xlu1 %9912 }
 0x6bd   : > { %v9467_v59 = vpop.permute.xlu0 %9466  ;;  %v10101_v7 = vadd.f32 %v9913_v5, %v9717_v61  ;;  %v9725_v61 = vld [vmem:[#allocation2 + $0x58] sm:$0xff] }
 0x6be   : > { %v9622_v55 = vadd.f32 %v9467_v59, %v9238_v3  ;;  %v10227_v4 = vld [vmem:[#allocation2 + $0x8] sm:$0xff]  ;;  %v9246_v3 = vld [vmem:[#allocation2 + $0x160] sm:$0xff] }
 0x6bf   : > { %v9811_v57 = vld [vmem:[#allocation2 + $0x10e] sm:$0xff]  ;;  %10291 = vst.msk [vmem:[%s13727_s21 + $0x8] sm:$0xff] %vm7601_vm1, %v10227_v4  ;;  %10165 = vst.msk [vmem:[#allocation2 + $0x18] sm:$0xff] %vm7601_vm1, %v10101_v7 }
 0x6c0   : > { %9686 = vst.msk [vmem:[#allocation2 + $0x120] sm:$0xff] %vm7601_vm1, %v9622_v55  ;;  %9972 = vrot.lane.b32.xlu1 %v9811_v57, %s11729_s17  ;;  %v9469_v10 = vpop.permute.xlu1 %9468 }
 0x6c1   : > { %v9915_v8 = vpop.permute.xlu0 %9914  ;;  %v9623_v12 = vadd.f32 %v9469_v10, %v9239_v9  ;;  %v9247_v9 = vld [vmem:[#allocation2 + $0x168] sm:$0xff] }
 0x6c2   : > { %v10102_v11 = vadd.f32 %v9915_v8, %v9718_v6  ;;  %v9812_v14 = vld [vmem:[#allocation2 + $0x116] sm:$0xff]  ;;  %v9726_v6 = vld [vmem:[#allocation2 + $0x60] sm:$0xff] }
 0x6c3   : > { %v10228_v13 = vld [vmem:[#allocation2 + $0x10] sm:$0xff]  ;;  %9687 = vst.msk [vmem:[#allocation2 + $0x128] sm:$0xff] %vm7601_vm1, %v9623_v12  ;;  %9974 = vrot.lane.b32.xlu0 %v9812_v14, %s11729_s17 }
 0x6c4   : > { %10292 = vst.msk [vmem:[%s13727_s21 + $0x10] sm:$0xff] %vm7601_vm1, %v10228_v13  ;;  %10166 = vst.msk [vmem:[#allocation2 + $0x20] sm:$0xff] %vm7601_vm1, %v10102_v11  ;;  %v9917_v17 = vpop.permute.xlu1 %9916 }
 0x6c5   : > { %v9471_v15 = vpop.permute.xlu0 %9470  ;;  %v10103_v19 = vadd.f32 %v9917_v17, %v9719_v16  ;;  %v9727_v16 = vld [vmem:[#allocation2 + $0x68] sm:$0xff] }
 0x6c6   : > { %v9624_v18 = vadd.f32 %v9471_v15, %v9240_v58  ;;  %v10229_v20 = vld [vmem:[#allocation2 + $0x18] sm:$0xff]  ;;  %v9248_v58 = vld [vmem:[#allocation2 + $0x170] sm:$0xff] }
 0x6c7   : > { %v9813_v21 = vld [vmem:[#allocation2 + $0x11e] sm:$0xff]  ;;  %10293 = vst.msk [vmem:[%s13727_s21 + $0x18] sm:$0xff] %vm7601_vm1, %v10229_v20  ;;  %10167 = vst.msk [vmem:[#allocation2 + $0x28] sm:$0xff] %vm7601_vm1, %v10103_v19 }
 0x6c8   : > { %9688 = vst.msk [vmem:[#allocation2 + $0x130] sm:$0xff] %vm7601_vm1, %v9624_v18  ;;  %9976 = vrot.lane.b32.xlu1 %v9813_v21, %s11729_s17  ;;  %v9473_v24 = vpop.permute.xlu1 %9472 }
 0x6c9   : > { %v9919_v22 = vpop.permute.xlu0 %9918  ;;  %v9625_v26 = vadd.f32 %v9473_v24, %v9241_v23  ;;  %v9249_v23 = vld [vmem:[#allocation2 + $0x178] sm:$0xff] }
 0x6ca   : > { %v10104_v25 = vadd.f32 %v9919_v22, %v9720_v1  ;;  %v9814_v28 = vld [vmem:[#allocation2 + $0x126] sm:$0xff]  ;;  %v9728_v1 = vld [vmem:[#allocation2 + $0x70] sm:$0xff] }
 0x6cb   : > { %v10230_v27 = vld [vmem:[#allocation2 + $0x20] sm:$0xff]  ;;  %9689 = vst.msk [vmem:[#allocation2 + $0x138] sm:$0xff] %vm7601_vm1, %v9625_v26  ;;  %9978 = vrot.lane.b32.xlu0 %v9814_v28, %s11729_s17 }
 0x6cc   : > { %10294 = vst.msk [vmem:[%s13727_s21 + $0x20] sm:$0xff] %vm7601_vm1, %v10230_v27  ;;  %10168 = vst.msk [vmem:[#allocation2 + $0x30] sm:$0xff] %vm7601_vm1, %v10104_v25  ;;  %v9921_v33 = vpop.permute.xlu1 %9920 }
 0x6cd   : > { %v9475_v31 = vpop.permute.xlu0 %9474  ;;  %v10105_v36 = vadd.f32 %v9921_v33, %v9721_v32  ;;  %v9729_v32 = vld [vmem:[#allocation2 + $0x78] sm:$0xff] }
 0x6ce   : > { %v9626_v35 = vadd.f32 %v9475_v31, %v9242_v30  ;;  %v10231_v38 = vld [vmem:[#allocation2 + $0x28] sm:$0xff]  ;;  %v9250_v30 = vld [vmem:[#allocation2 + $0x180] sm:$0xff] }
 0x6cf   : > { %v9815_v39 = vld [vmem:[#allocation2 + $0x12e] sm:$0xff]  ;;  %10295 = vst.msk [vmem:[%s13727_s21 + $0x28] sm:$0xff] %vm7601_vm1, %v10231_v38  ;;  %10169 = vst.msk [vmem:[#allocation2 + $0x38] sm:$0xff] %vm7601_vm1, %v10105_v36 }
 0x6d0   : > { %9690 = vst.msk [vmem:[#allocation2 + $0x140] sm:$0xff] %vm7601_vm1, %v9626_v35  ;;  %9980 = vrot.lane.b32.xlu1 %v9815_v39, %s11729_s17  ;;  %v9477_v48 = vpop.permute.xlu1 %9476 }
 0x6d1   : > { %v9923_v43 = vpop.permute.xlu0 %9922  ;;  %v9627_v51 = vadd.f32 %v9477_v48, %v9243_v46  ;;  %v9251_v46 = vld [vmem:[#allocation2 + $0x188] sm:$0xff] }
 0x6d2   : > { %v10106_v41 = vadd.f32 %v9923_v43, %v9722_v40  ;;  %v9816_v56 = vld [vmem:[#allocation2 + $0x136] sm:$0xff]  ;;  %v9730_v40 = vld [vmem:[#allocation2 + $0x80] sm:$0xff] }
 0x6d3   : > { %v10232_v54 = vld [vmem:[#allocation2 + $0x30] sm:$0xff]  ;;  %9691 = vst.msk [vmem:[#allocation2 + $0x148] sm:$0xff] %vm7601_vm1, %v9627_v51  ;;  %9982 = vrot.lane.b32.xlu0 %v9816_v56, %s11729_s17 }
 0x6d4   : > { %10296 = vst.msk [vmem:[%s13727_s21 + $0x30] sm:$0xff] %vm7601_vm1, %v10232_v54  ;;  %10170 = vst.msk [vmem:[#allocation2 + $0x40] sm:$0xff] %vm7601_vm1, %v10106_v41  ;;  %v9925_v47 = vpop.permute.xlu1 %9924 }
 0x6d5   : > { %v9479_v60 = vpop.permute.xlu0 %9478  ;;  %v10107_v63 = vadd.f32 %v9925_v47, %v9723_v62  ;;  %v9731_v62 = vld [vmem:[#allocation2 + $0x88] sm:$0xff] }
 0x6d6   : > { %v9628_v29 = vadd.f32 %v9479_v60, %v9244_v44  ;;  %v10233_v34 = vld [vmem:[#allocation2 + $0x38] sm:$0xff]  ;;  %v9252_v44 = vld [vmem:[#allocation2 + $0x190] sm:$0xff] }
 0x6d7   : > { %v9817_v37 = vld [vmem:[#allocation2 + $0x13e] sm:$0xff]  ;;  %10297 = vst.msk [vmem:[%s13727_s21 + $0x38] sm:$0xff] %vm7601_vm1, %v10233_v34  ;;  %10171 = vst.msk [vmem:[#allocation2 + $0x48] sm:$0xff] %vm7601_vm1, %v10107_v63 }
 0x6d8   : > { %9692 = vst.msk [vmem:[#allocation2 + $0x150] sm:$0xff] %vm7601_vm1, %v9628_v29  ;;  %9984 = vrot.lane.b32.xlu1 %v9817_v37, %s11729_s17  ;;  %v9481_v0 = vpop.permute.xlu1 %9480 }
 0x6d9   : > { %v9927_v49 = vpop.permute.xlu0 %9926  ;;  %v9629_v50 = vadd.f32 %v9481_v0, %v9245_v45  ;;  %v9253_v45 = vld [vmem:[#allocation2 + $0x198] sm:$0xff] }
 0x6da   : > { %v10108_v52 = vadd.f32 %v9927_v49, %v9724_v42  ;;  %v9818_v2 = vld [vmem:[#allocation2 + $0x146] sm:$0xff]  ;;  %v9732_v42 = vld [vmem:[#allocation2 + $0x90] sm:$0xff] }
 0x6db   : > { %v10234_v53 = vld [vmem:[#allocation2 + $0x40] sm:$0xff]  ;;  %9693 = vst.msk [vmem:[#allocation2 + $0x158] sm:$0xff] %vm7601_vm1, %v9629_v50  ;;  %9986 = vrot.lane.b32.xlu0 %v9818_v2, %s11729_s17 }
 0x6dc   : > { %10298 = vst.msk [vmem:[%s13727_s21 + $0x40] sm:$0xff] %vm7601_vm1, %v10234_v53  ;;  %10172 = vst.msk [vmem:[#allocation2 + $0x50] sm:$0xff] %vm7601_vm1, %v10108_v52  ;;  %v9929_v5 = vpop.permute.xlu1 %9928 }
 0x6dd   : > { %v9483_v59 = vpop.permute.xlu0 %9482  ;;  %v10109_v7 = vadd.f32 %v9929_v5, %v9725_v61  ;;  %v9733_v61 = vld [vmem:[#allocation2 + $0x98] sm:$0xff] }
 0x6de   : > { %v9630_v55 = vadd.f32 %v9483_v59, %v9246_v3  ;;  %v10235_v4 = vld [vmem:[#allocation2 + $0x48] sm:$0xff]  ;;  %v9254_v3 = vld [vmem:[#allocation2 + $0x1a0] sm:$0xff] }
 0x6df   : > { %v9819_v57 = vld [vmem:[#allocation2 + $0x14e] sm:$0xff]  ;;  %10299 = vst.msk [vmem:[%s13727_s21 + $0x48] sm:$0xff] %vm7601_vm1, %v10235_v4  ;;  %10173 = vst.msk [vmem:[#allocation2 + $0x58] sm:$0xff] %vm7601_vm1, %v10109_v7 }
 0x6e0   : > { %9694 = vst.msk [vmem:[#allocation2 + $0x160] sm:$0xff] %vm7601_vm1, %v9630_v55  ;;  %9988 = vrot.lane.b32.xlu1 %v9819_v57, %s11729_s17  ;;  %v9485_v10 = vpop.permute.xlu1 %9484 }
 0x6e1   : > { %v9931_v8 = vpop.permute.xlu0 %9930  ;;  %v9631_v12 = vadd.f32 %v9485_v10, %v9247_v9  ;;  %v9255_v9 = vld [vmem:[#allocation2 + $0x1a8] sm:$0xff] }
 0x6e2   : > { %v10110_v11 = vadd.f32 %v9931_v8, %v9726_v6  ;;  %v9820_v14 = vld [vmem:[#allocation2 + $0x156] sm:$0xff]  ;;  %v9734_v6 = vld [vmem:[#allocation2 + $0xa0] sm:$0xff] }
 0x6e3   : > { %v10236_v13 = vld [vmem:[#allocation2 + $0x50] sm:$0xff]  ;;  %9695 = vst.msk [vmem:[#allocation2 + $0x168] sm:$0xff] %vm7601_vm1, %v9631_v12  ;;  %9990 = vrot.lane.b32.xlu0 %v9820_v14, %s11729_s17 }
 0x6e4   : > { %10300 = vst.msk [vmem:[%s13727_s21 + $0x50] sm:$0xff] %vm7601_vm1, %v10236_v13  ;;  %10174 = vst.msk [vmem:[#allocation2 + $0x60] sm:$0xff] %vm7601_vm1, %v10110_v11  ;;  %v9933_v17 = vpop.permute.xlu1 %9932 }
 0x6e5   : > { %v9487_v15 = vpop.permute.xlu0 %9486  ;;  %v10111_v19 = vadd.f32 %v9933_v17, %v9727_v16  ;;  %v9735_v16 = vld [vmem:[#allocation2 + $0xa8] sm:$0xff] }
 0x6e6   : > { %v9632_v18 = vadd.f32 %v9487_v15, %v9248_v58  ;;  %v10237_v20 = vld [vmem:[#allocation2 + $0x58] sm:$0xff]  ;;  %v9256_v58 = vld [vmem:[#allocation2 + $0x1b0] sm:$0xff] }
 0x6e7   : > { %v9821_v21 = vld [vmem:[#allocation2 + $0x15e] sm:$0xff]  ;;  %10301 = vst.msk [vmem:[%s13727_s21 + $0x58] sm:$0xff] %vm7601_vm1, %v10237_v20  ;;  %10175 = vst.msk [vmem:[#allocation2 + $0x68] sm:$0xff] %vm7601_vm1, %v10111_v19 }
 0x6e8   : > { %9696 = vst.msk [vmem:[#allocation2 + $0x170] sm:$0xff] %vm7601_vm1, %v9632_v18  ;;  %9992 = vrot.lane.b32.xlu1 %v9821_v21, %s11729_s17  ;;  %v9489_v24 = vpop.permute.xlu1 %9488 }
 0x6e9   : > { %v9935_v22 = vpop.permute.xlu0 %9934  ;;  %v9633_v26 = vadd.f32 %v9489_v24, %v9249_v23  ;;  %v9257_v23 = vld [vmem:[#allocation2 + $0x1b8] sm:$0xff] }
 0x6ea   : > { %v10112_v25 = vadd.f32 %v9935_v22, %v9728_v1  ;;  %v9822_v28 = vld [vmem:[#allocation2 + $0x166] sm:$0xff]  ;;  %v9736_v1 = vld [vmem:[#allocation2 + $0xb0] sm:$0xff] }
 0x6eb   : > { %v10238_v27 = vld [vmem:[#allocation2 + $0x60] sm:$0xff]  ;;  %9697 = vst.msk [vmem:[#allocation2 + $0x178] sm:$0xff] %vm7601_vm1, %v9633_v26  ;;  %9994 = vrot.lane.b32.xlu0 %v9822_v28, %s11729_s17 }
 0x6ec   : > { %10302 = vst.msk [vmem:[%s13727_s21 + $0x60] sm:$0xff] %vm7601_vm1, %v10238_v27  ;;  %10176 = vst.msk [vmem:[#allocation2 + $0x70] sm:$0xff] %vm7601_vm1, %v10112_v25  ;;  %v9937_v33 = vpop.permute.xlu1 %9936 }
 0x6ed   : > { %v9491_v31 = vpop.permute.xlu0 %9490  ;;  %v10113_v36 = vadd.f32 %v9937_v33, %v9729_v32  ;;  %v9737_v32 = vld [vmem:[#allocation2 + $0xb8] sm:$0xff] }
 0x6ee   : > { %v9634_v35 = vadd.f32 %v9491_v31, %v9250_v30  ;;  %v10239_v38 = vld [vmem:[#allocation2 + $0x68] sm:$0xff]  ;;  %v9258_v30 = vld [vmem:[#allocation2 + $0x1c0] sm:$0xff] }
 0x6ef   : > { %v9823_v39 = vld [vmem:[#allocation2 + $0x16e] sm:$0xff]  ;;  %10303 = vst.msk [vmem:[%s13727_s21 + $0x68] sm:$0xff] %vm7601_vm1, %v10239_v38  ;;  %10177 = vst.msk [vmem:[#allocation2 + $0x78] sm:$0xff] %vm7601_vm1, %v10113_v36 }
 0x6f0   : > { %9698 = vst.msk [vmem:[#allocation2 + $0x180] sm:$0xff] %vm7601_vm1, %v9634_v35  ;;  %9996 = vrot.lane.b32.xlu1 %v9823_v39, %s11729_s17  ;;  %v9493_v48 = vpop.permute.xlu1 %9492 }
 0x6f1   : > { %v9939_v43 = vpop.permute.xlu0 %9938  ;;  %v9635_v51 = vadd.f32 %v9493_v48, %v9251_v46  ;;  %v9259_v46 = vld [vmem:[#allocation2 + $0x1c8] sm:$0xff] }
 0x6f2   : > { %v10114_v41 = vadd.f32 %v9939_v43, %v9730_v40  ;;  %v9824_v56 = vld [vmem:[#allocation2 + $0x176] sm:$0xff]  ;;  %v9738_v40 = vld [vmem:[#allocation2 + $0xc0] sm:$0xff] }
 0x6f3   : > { %v10240_v54 = vld [vmem:[#allocation2 + $0x70] sm:$0xff]  ;;  %9699 = vst.msk [vmem:[#allocation2 + $0x188] sm:$0xff] %vm7601_vm1, %v9635_v51  ;;  %9998 = vrot.lane.b32.xlu0 %v9824_v56, %s11729_s17 }
 0x6f4   : > { %10304 = vst.msk [vmem:[%s13727_s21 + $0x70] sm:$0xff] %vm7601_vm1, %v10240_v54  ;;  %10178 = vst.msk [vmem:[#allocation2 + $0x80] sm:$0xff] %vm7601_vm1, %v10114_v41  ;;  %v9941_v47 = vpop.permute.xlu1 %9940 }
 0x6f5   : > { %v9495_v60 = vpop.permute.xlu0 %9494  ;;  %v10115_v63 = vadd.f32 %v9941_v47, %v9731_v62  ;;  %v9739_v62 = vld [vmem:[#allocation2 + $0xc8] sm:$0xff] }
 0x6f6   : > { %v9636_v29 = vadd.f32 %v9495_v60, %v9252_v44  ;;  %v10241_v34 = vld [vmem:[#allocation2 + $0x78] sm:$0xff]  ;;  %v9260_v44 = vld [vmem:[#allocation2 + $0x1d0] sm:$0xff] }
 0x6f7   : > { %v9825_v37 = vld [vmem:[#allocation2 + $0x17e] sm:$0xff]  ;;  %10305 = vst.msk [vmem:[%s13727_s21 + $0x78] sm:$0xff] %vm7601_vm1, %v10241_v34  ;;  %10179 = vst.msk [vmem:[#allocation2 + $0x88] sm:$0xff] %vm7601_vm1, %v10115_v63 }
 0x6f8   : > { %9700 = vst.msk [vmem:[#allocation2 + $0x190] sm:$0xff] %vm7601_vm1, %v9636_v29  ;;  %10000 = vrot.lane.b32.xlu1 %v9825_v37, %s11729_s17  ;;  %v9497_v0 = vpop.permute.xlu1 %9496 }
 0x6f9   : > { %v9943_v49 = vpop.permute.xlu0 %9942  ;;  %v9637_v50 = vadd.f32 %v9497_v0, %v9253_v45  ;;  %v9261_v45 = vld [vmem:[#allocation2 + $0x1d8] sm:$0xff] }
 0x6fa   : > { %v10116_v52 = vadd.f32 %v9943_v49, %v9732_v42  ;;  %v9826_v2 = vld [vmem:[#allocation2 + $0x186] sm:$0xff]  ;;  %v9740_v42 = vld [vmem:[#allocation2 + $0xd0] sm:$0xff] }
 0x6fb   : > { %v10242_v53 = vld [vmem:[#allocation2 + $0x80] sm:$0xff]  ;;  %9701 = vst.msk [vmem:[#allocation2 + $0x198] sm:$0xff] %vm7601_vm1, %v9637_v50  ;;  %10002 = vrot.lane.b32.xlu0 %v9826_v2, %s11729_s17 }
 0x6fc   : > { %10306 = vst.msk [vmem:[%s13727_s21 + $0x80] sm:$0xff] %vm7601_vm1, %v10242_v53  ;;  %10180 = vst.msk [vmem:[#allocation2 + $0x90] sm:$0xff] %vm7601_vm1, %v10116_v52  ;;  %v9945_v5 = vpop.permute.xlu1 %9944 }
 0x6fd   : > { %v9499_v59 = vpop.permute.xlu0 %9498  ;;  %v10117_v7 = vadd.f32 %v9945_v5, %v9733_v61  ;;  %v9263_v61 = vld [vmem:[#allocation2 + $0x1e8] sm:$0xff] }
 0x6fe   : > { %v9638_v55 = vadd.f32 %v9499_v59, %v9254_v3  ;;  %v10243_v4 = vld [vmem:[#allocation2 + $0x88] sm:$0xff]  ;;  %v9262_v3 = vld [vmem:[#allocation2 + $0x1e0] sm:$0xff] }
 0x6ff   : > { %v9827_v57 = vld [vmem:[#allocation2 + $0x18e] sm:$0xff]  ;;  %10307 = vst.msk [vmem:[%s13727_s21 + $0x88] sm:$0xff] %vm7601_vm1, %v10243_v4  ;;  %10181 = vst.msk [vmem:[#allocation2 + $0x98] sm:$0xff] %vm7601_vm1, %v10117_v7 }
 0x700   : > { %9702 = vst.msk [vmem:[#allocation2 + $0x1a0] sm:$0xff] %vm7601_vm1, %v9638_v55  ;;  %10004 = vrot.lane.b32.xlu1 %v9827_v57, %s11729_s17  ;;  %v9501_v10 = vpop.permute.xlu1 %9500 }
 0x701   : > { %v9947_v8 = vpop.permute.xlu0 %9946  ;;  %v9639_v12 = vadd.f32 %v9501_v10, %v9255_v9  ;;  %v9265_v9 = vld [vmem:[#allocation2 + $0x1f8] sm:$0xff] }
 0x702   : > { %v10118_v11 = vadd.f32 %v9947_v8, %v9734_v6  ;;  %v9828_v14 = vld [vmem:[#allocation2 + $0x196] sm:$0xff] }
 0x703   : > { %v10244_v13 = vld [vmem:[#allocation2 + $0x90] sm:$0xff]  ;;  %9703 = vst.msk [vmem:[#allocation2 + $0x1a8] sm:$0xff] %vm7601_vm1, %v9639_v12  ;;  %10006 = vrot.lane.b32.xlu0 %v9828_v14, %s11729_s17 }
 0x704   : > { %10308 = vst.msk [vmem:[%s13727_s21 + $0x90] sm:$0xff] %vm7601_vm1, %v10244_v13  ;;  %10182 = vst.msk [vmem:[#allocation2 + $0xa0] sm:$0xff] %vm7601_vm1, %v10118_v11  ;;  %v9949_v17 = vpop.permute.xlu1 %9948  ;;  %v9264_v6 = vld [vmem:[#allocation2 + $0x1f0] sm:$0xff] }
 0x705   : > { %v9503_v15 = vpop.permute.xlu0 %9502  ;;  %v10119_v19 = vadd.f32 %v9949_v17, %v9735_v16  ;;  %v9741_v16 = vld [vmem:[#allocation2 + $0xd8] sm:$0xff] }
 0x706   : > { %v9640_v18 = vadd.f32 %v9503_v15, %v9256_v58  ;;  %v10245_v20 = vld [vmem:[#allocation2 + $0x98] sm:$0xff]  ;;  %v9742_v58 = vld [vmem:[#allocation2 + $0xe0] sm:$0xff] }
 0x707   : > { %v9829_v21 = vld [vmem:[#allocation2 + $0x19e] sm:$0xff]  ;;  %10309 = vst.msk [vmem:[%s13727_s21 + $0x98] sm:$0xff] %vm7601_vm1, %v10245_v20  ;;  %10183 = vst.msk [vmem:[#allocation2 + $0xa8] sm:$0xff] %vm7601_vm1, %v10119_v19 }
 0x708   : > { %9704 = vst.msk [vmem:[#allocation2 + $0x1b0] sm:$0xff] %vm7601_vm1, %v9640_v18  ;;  %10008 = vrot.lane.b32.xlu1 %v9829_v21, %s11729_s17  ;;  %v9505_v24 = vpop.permute.xlu1 %9504 }
 0x709   : > { %v9951_v22 = vpop.permute.xlu0 %9950  ;;  %v9641_v26 = vadd.f32 %v9505_v24, %v9257_v23  ;;  %v9743_v23 = vld [vmem:[#allocation2 + $0xe8] sm:$0xff] }
 0x70a   : > { %v10120_v25 = vadd.f32 %v9951_v22, %v9736_v1  ;;  %v9830_v28 = vld [vmem:[#allocation2 + $0x1a6] sm:$0xff]  ;;  %v9744_v1 = vld [vmem:[#allocation2 + $0xf0] sm:$0xff] }
 0x70b   : > { %v10246_v27 = vld [vmem:[#allocation2 + $0xa0] sm:$0xff]  ;;  %9705 = vst.msk [vmem:[#allocation2 + $0x1b8] sm:$0xff] %vm7601_vm1, %v9641_v26  ;;  %10010 = vrot.lane.b32.xlu0 %v9830_v28, %s11729_s17 }
 0x70c   : > { %10310 = vst.msk [vmem:[%s13727_s21 + $0xa0] sm:$0xff] %vm7601_vm1, %v10246_v27  ;;  %10184 = vst.msk [vmem:[#allocation2 + $0xb0] sm:$0xff] %vm7601_vm1, %v10120_v25  ;;  %v9953_v33 = vpop.permute.xlu1 %9952 }
 0x70d   : > { %v9507_v31 = vpop.permute.xlu0 %9506  ;;  %v10121_v36 = vadd.f32 %v9953_v33, %v9737_v32  ;;  %v9746_v33 = vld [vmem:[#allocation2 + $0x100] sm:$0xff] }
 0x70e   : > { %v9642_v35 = vadd.f32 %v9507_v31, %v9258_v30  ;;  %v10247_v38 = vld [vmem:[#allocation2 + $0xa8] sm:$0xff]  ;;  %v9745_v30 = vld [vmem:[#allocation2 + $0xf8] sm:$0xff] }
 0x70f   : > { %v9831_v39 = vld [vmem:[#allocation2 + $0x1ae] sm:$0xff]  ;;  %10311 = vst.msk [vmem:[%s13727_s21 + $0xa8] sm:$0xff] %vm7601_vm1, %v10247_v38  ;;  %10185 = vst.msk [vmem:[#allocation2 + $0xb8] sm:$0xff] %vm7601_vm1, %v10121_v36 }
 0x710   : > { %9706 = vst.msk [vmem:[#allocation2 + $0x1c0] sm:$0xff] %vm7601_vm1, %v9642_v35  ;;  %10012 = vrot.lane.b32.xlu1 %v9831_v39, %s11729_s17  ;;  %v9509_v48 = vpop.permute.xlu1 %9508 }
 0x711   : > { %v9955_v43 = vpop.permute.xlu0 %9954  ;;  %v9643_v51 = vadd.f32 %v9509_v48, %v9259_v46 }
 0x712   : > { %v10122_v41 = vadd.f32 %v9955_v43, %v9738_v40  ;;  %v9832_v56 = vld [vmem:[#allocation2 + $0x1b6] sm:$0xff]  ;;  %v9747_v43 = vld [vmem:[#allocation2 + $0x108] sm:$0xff] }
 0x713   : > { %v10248_v54 = vld [vmem:[#allocation2 + $0xb0] sm:$0xff]  ;;  %9707 = vst.msk [vmem:[#allocation2 + $0x1c8] sm:$0xff] %vm7601_vm1, %v9643_v51  ;;  %10014 = vrot.lane.b32.xlu0 %v9832_v56, %s11729_s17 }
 0x714   : > { %10312 = vst.msk [vmem:[%s13727_s21 + $0xb0] sm:$0xff] %vm7601_vm1, %v10248_v54  ;;  %10186 = vst.msk [vmem:[#allocation2 + $0xc0] sm:$0xff] %vm7601_vm1, %v10122_v41  ;;  %v9957_v47 = vpop.permute.xlu1 %9956  ;;  %v9748_v54 = vld [vmem:[#allocation2 + $0x110] sm:$0xff] }
 0x715   : > { %v9511_v60 = vpop.permute.xlu0 %9510  ;;  %v10123_v63 = vadd.f32 %v9957_v47, %v9739_v62  ;;  %v9749_v47 = vld [vmem:[#allocation2 + $0x118] sm:$0xff] }
 0x716   : > { %v9644_v29 = vadd.f32 %v9511_v60, %v9260_v44  ;;  %v10249_v34 = vld [vmem:[#allocation2 + $0xb8] sm:$0xff] }
 0x717   : > { %v9833_v37 = vld [vmem:[#allocation2 + $0x1be] sm:$0xff]  ;;  %10313 = vst.msk [vmem:[%s13727_s21 + $0xb8] sm:$0xff] %vm7601_vm1, %v10249_v34  ;;  %10187 = vst.msk [vmem:[#allocation2 + $0xc8] sm:$0xff] %vm7601_vm1, %v10123_v63 }
 0x718   : > { %9708 = vst.msk [vmem:[#allocation2 + $0x1d0] sm:$0xff] %vm7601_vm1, %v9644_v29  ;;  %10016 = vrot.lane.b32.xlu1 %v9833_v37, %s11729_s17  ;;  %v9513_v0 = vpop.permute.xlu1 %9512  ;;  %v9750_v37 = vld [vmem:[#allocation2 + $0x120] sm:$0xff] }
 0x719   : > { %v9959_v49 = vpop.permute.xlu0 %9958  ;;  %v9645_v50 = vadd.f32 %v9513_v0, %v9261_v45  ;;  %v9751_v0 = vld [vmem:[#allocation2 + $0x128] sm:$0xff] }
 0x71a   : > { %v10124_v52 = vadd.f32 %v9959_v49, %v9740_v42  ;;  %v9834_v2 = vld [vmem:[#allocation2 + $0x1c6] sm:$0xff] }
 0x71b   : > { %v10250_v53 = vld [vmem:[#allocation2 + $0xc0] sm:$0xff]  ;;  %9709 = vst.msk [vmem:[#allocation2 + $0x1d8] sm:$0xff] %vm7601_vm1, %v9645_v50  ;;  %10018 = vrot.lane.b32.xlu0 %v9834_v2, %s11729_s17  ;;  %v9752_v2 = vld [vmem:[#allocation2 + $0x130] sm:$0xff] }
 0x71c   : > { %10314 = vst.msk [vmem:[%s13727_s21 + $0xc0] sm:$0xff] %vm7601_vm1, %v10250_v53  ;;  %10188 = vst.msk [vmem:[#allocation2 + $0xd0] sm:$0xff] %vm7601_vm1, %v10124_v52 }
 0x71d   : > { %v9515_v59 = vpop.permute.xlu0 %9514  ;;  %v9517_v5 = vpop.permute.xlu1 %9516 }
 0x71e   : > { %v9646_v55 = vadd.f32 %v9515_v59, %v9262_v3  ;;  %v9647_v7 = vadd.f32 %v9517_v5, %v9263_v61  ;;  %v10251_v4 = vld [vmem:[#allocation2 + $0xc8] sm:$0xff]  ;;  %v9753_v5 = vld [vmem:[#allocation2 + $0x138] sm:$0xff] }
 0x71f   : > { %v9835_v57 = vld [vmem:[#allocation2 + $0x1ce] sm:$0xff]  ;;  %10315 = vst.msk [vmem:[%s13727_s21 + $0xc8] sm:$0xff] %vm7601_vm1, %v10251_v4 }
 0x720   : > { %9710 = vst.msk [vmem:[#allocation2 + $0x1e0] sm:$0xff] %vm7601_vm1, %v9646_v55  ;;  %9711 = vst.msk [vmem:[#allocation2 + $0x1e8] sm:$0xff] %vm7601_vm1, %v9647_v7  ;;  %10020 = vrot.lane.b32.xlu1 %v9835_v57, %s11729_s17  ;;  %v9754_v57 = vld [vmem:[#allocation2 + $0x140] sm:$0xff] }
 0x721   : > { %v9519_v8 = vpop.permute.xlu0 %9518  ;;  %v9521_v10 = vpop.permute.xlu1 %9520 }
 0x722   : > { %v9648_v11 = vadd.f32 %v9519_v8, %v9264_v6  ;;  %v9649_v12 = vadd.f32 %v9521_v10, %v9265_v9  ;;  %v9836_v14 = vld [vmem:[#allocation2 + $0x1d6] sm:$0xff]  ;;  %v9755_v10 = vld [vmem:[#allocation2 + $0x148] sm:$0xff] }
 0x723   : > { %v10252_v13 = vld [vmem:[#allocation2 + $0xd0] sm:$0xff]  ;;  %10022 = vrot.lane.b32.xlu0 %v9836_v14, %s11729_s17 }
 0x724   : > { %10316 = vst.msk [vmem:[%s13727_s21 + $0xd0] sm:$0xff] %vm7601_vm1, %v10252_v13  ;;  %9712 = vst.msk [vmem:[#allocation2 + $0x1f0] sm:$0xff] %vm7601_vm1, %v9648_v11  ;;  %v9756_v14 = vld [vmem:[#allocation2 + $0x150] sm:$0xff] }
 0x725   : > { %9713 = vst.msk [vmem:[#allocation2 + $0x1f8] sm:$0xff] %vm7601_vm1, %v9649_v12  ;;  %v9963_v15 = vpop.permute.xlu0 %9962  ;;  %v9961_v17 = vpop.permute.xlu1 %9960 }
 0x726   : > { %v10126_v18 = vadd.f32 %v9963_v15, %v9742_v58  ;;  %v10125_v19 = vadd.f32 %v9961_v17, %v9741_v16  ;;  %v9757_v17 = vld [vmem:[#allocation2 + $0x158] sm:$0xff] }
 0x727   : > { %v9837_v20 = vld [vmem:[#allocation2 + $0x1de] sm:$0xff]  ;;  %v9838_v21 = vld [vmem:[#allocation2 + $0x1e6] sm:$0xff] }
 0x728   : > { %10190 = vst.msk [vmem:[#allocation2 + $0xe0] sm:$0xff] %vm7601_vm1, %v10126_v18  ;;  %10189 = vst.msk [vmem:[#allocation2 + $0xd8] sm:$0xff] %vm7601_vm1, %v10125_v19  ;;  %10024 = vrot.lane.b32.xlu1 %v9837_v20, %s11729_s17  ;;  %10026 = vrot.lane.b32.xlu0 %v9838_v21, %s11729_s17  ;;  %v9758_v21 = vld [vmem:[#allocation2 + $0x160] sm:$0xff] }
 0x729   : > { %v9967_v22 = vpop.permute.xlu0 %9966  ;;  %v9965_v24 = vpop.permute.xlu1 %9964 }
 0x72a   : > { %v10128_v25 = vadd.f32 %v9967_v22, %v9744_v1  ;;  %v10127_v26 = vadd.f32 %v9965_v24, %v9743_v23  ;;  %v9759_v24 = vld [vmem:[#allocation2 + $0x168] sm:$0xff] }
 0x72b   : > { %v9839_v27 = vld [vmem:[#allocation2 + $0x1ee] sm:$0xff] }
 0x72c   : > { %v9840_v28 = vld [vmem:[#allocation2 + $0x1f6] sm:$0xff]  ;;  %10192 = vst.msk [vmem:[#allocation2 + $0xf0] sm:$0xff] %vm7601_vm1, %v10128_v25  ;;  %10191 = vst.msk [vmem:[#allocation2 + $0xe8] sm:$0xff] %vm7601_vm1, %v10127_v26  ;;  %10028 = vrot.lane.b32.xlu1 %v9839_v27, %s11729_s17  ;;  %v9841_v40 = vld [vmem:[#allocation2 + $0x1fe] sm:$0xff] }
 0x72d   : > { %10030 = vrot.lane.b32.xlu0 %v9840_v28, %s11729_s17  ;;  %v9969_v31 = vpop.permute.xlu1 %9968  ;;  %v9971_v35 = vpop.permute.xlu0 %9970  ;;  %v9760_v28 = vld [vmem:[#allocation2 + $0x170] sm:$0xff] }
 0x72e   : > { %v10129_v32 = vadd.f32 %v9969_v31, %v9745_v30  ;;  %v10130_v39 = vadd.f32 %v9971_v35, %v9746_v33  ;;  %v9761_v33 = vld [vmem:[#allocation2 + $0x178] sm:$0xff] }
 0x72f   : > { %v10254_v36 = vld [vmem:[#allocation2 + $0xe0] sm:$0xff]  ;;  %v10253_v38 = vld [vmem:[#allocation2 + $0xd8] sm:$0xff] }
 0x730   : > { %10318 = vst.msk [vmem:[%s13727_s21 + $0xe0] sm:$0xff] %vm7601_vm1, %v10254_v36  ;;  %10317 = vst.msk [vmem:[%s13727_s21 + $0xd8] sm:$0xff] %vm7601_vm1, %v10253_v38  ;;  %10032 = vrot.lane.b32.xlu1 %v9841_v40, %s11729_s17 }
 0x731   : > { %10193 = vst.msk [vmem:[#allocation2 + $0xf8] sm:$0xff] %vm7601_vm1, %v10129_v32  ;;  %10194 = vst.msk [vmem:[#allocation2 + $0x100] sm:$0xff] %vm7601_vm1, %v10130_v39  ;;  %v9762_v39 = vld [vmem:[#allocation2 + $0x180] sm:$0xff] }
 0x732   : > { %v9973_v46 = vpop.permute.xlu1 %9972 }
 0x733   : > { %v10256_v48 = vld [vmem:[#allocation2 + $0xf0] sm:$0xff]  ;;  %v10255_v41 = vld [vmem:[#allocation2 + $0xe8] sm:$0xff]  ;;  %v10131_v51 = vadd.f32 %v9973_v46, %v9747_v43 }
 0x734   : > { %10320 = vst.msk [vmem:[%s13727_s21 + $0xf0] sm:$0xff] %vm7601_vm1, %v10256_v48  ;;  %10319 = vst.msk [vmem:[%s13727_s21 + $0xe8] sm:$0xff] %vm7601_vm1, %v10255_v41  ;;  %v9763_v48 = vld [vmem:[#allocation2 + $0x188] sm:$0xff] }
 0x735   : > { %10195 = vst.msk [vmem:[#allocation2 + $0x108] sm:$0xff] %vm7601_vm1, %v10131_v51  ;;  %v9975_v56 = vpop.permute.xlu0 %9974 }
 0x736   : > { %v10132_v60 = vadd.f32 %v9975_v56, %v9748_v54  ;;  %v9764_v56 = vld [vmem:[#allocation2 + $0x190] sm:$0xff] }
 0x738   : > { %v10257_v44 = vld [vmem:[#allocation2 + $0xf8] sm:$0xff]  ;;  %v10258_v62 = vld [vmem:[#allocation2 + $0x100] sm:$0xff]  ;;  %10196 = vst.msk [vmem:[#allocation2 + $0x110] sm:$0xff] %vm7601_vm1, %v10132_v60 }
 0x739   : > { %10321 = vst.msk [vmem:[%s13727_s21 + $0xf8] sm:$0xff] %vm7601_vm1, %v10257_v44  ;;  %10322 = vst.msk [vmem:[%s13727_s21 + $0x100] sm:$0xff] %vm7601_vm1, %v10258_v62 }
 0x73a   : > { %v9977_v29 = vpop.permute.xlu1 %9976 }
 0x73b   : > { %v10133_v63 = vadd.f32 %v9977_v29, %v9749_v47  ;;  %v9765_v47 = vld [vmem:[#allocation2 + $0x198] sm:$0xff] }
 0x73c   : > { %v10259_v34 = vld [vmem:[#allocation2 + $0x108] sm:$0xff] }
 0x73d   : > { %10323 = vst.msk [vmem:[%s13727_s21 + $0x108] sm:$0xff] %vm7601_vm1, %v10259_v34  ;;  %10197 = vst.msk [vmem:[#allocation2 + $0x118] sm:$0xff] %vm7601_vm1, %v10133_v63  ;;  %v9979_v42 = vpop.permute.xlu0 %9978 }
 0x73e   : > { %v10134_v49 = vadd.f32 %v9979_v42, %v9750_v37  ;;  %v9766_v37 = vld [vmem:[#allocation2 + $0x1a0] sm:$0xff] }
 0x73f   : > { %v10260_v45 = vld [vmem:[#allocation2 + $0x110] sm:$0xff] }
 0x740   : > { %10324 = vst.msk [vmem:[%s13727_s21 + $0x110] sm:$0xff] %vm7601_vm1, %v10260_v45  ;;  %10198 = vst.msk [vmem:[#allocation2 + $0x120] sm:$0xff] %vm7601_vm1, %v10134_v49 }
 0x742   : > { %v9981_v52 = vpop.permute.xlu1 %9980 }
 0x743   : > { %v10135_v50 = vadd.f32 %v9981_v52, %v9751_v0  ;;  %v9767_v0 = vld [vmem:[#allocation2 + $0x1a8] sm:$0xff] }
 0x744   : > { %v10261_v53 = vld [vmem:[#allocation2 + $0x118] sm:$0xff] }
 0x745   : > { %10325 = vst.msk [vmem:[%s13727_s21 + $0x118] sm:$0xff] %vm7601_vm1, %v10261_v53  ;;  %10199 = vst.msk [vmem:[#allocation2 + $0x128] sm:$0xff] %vm7601_vm1, %v10135_v50  ;;  %v9983_v3 = vpop.permute.xlu0 %9982 }
 0x746   : > { %v10136_v59 = vadd.f32 %v9983_v3, %v9752_v2  ;;  %v9768_v2 = vld [vmem:[#allocation2 + $0x1b0] sm:$0xff] }
 0x747   : > { %v10262_v61 = vld [vmem:[#allocation2 + $0x120] sm:$0xff] }
 0x748   : > { %10326 = vst.msk [vmem:[%s13727_s21 + $0x120] sm:$0xff] %vm7601_vm1, %v10262_v61  ;;  %10200 = vst.msk [vmem:[#allocation2 + $0x130] sm:$0xff] %vm7601_vm1, %v10136_v59 }
 0x74a   : > { %v9985_v55 = vpop.permute.xlu1 %9984 }
 0x74b   : > { %v10137_v7 = vadd.f32 %v9985_v55, %v9753_v5  ;;  %v9769_v5 = vld [vmem:[#allocation2 + $0x1b8] sm:$0xff] }
 0x74c   : > { %v10263_v4 = vld [vmem:[#allocation2 + $0x128] sm:$0xff] }
 0x74d   : > { %10327 = vst.msk [vmem:[%s13727_s21 + $0x128] sm:$0xff] %vm7601_vm1, %v10263_v4  ;;  %10201 = vst.msk [vmem:[#allocation2 + $0x138] sm:$0xff] %vm7601_vm1, %v10137_v7  ;;  %v9987_v6 = vpop.permute.xlu0 %9986 }
 0x74e   : > { %v10138_v8 = vadd.f32 %v9987_v6, %v9754_v57  ;;  %v9770_v57 = vld [vmem:[#allocation2 + $0x1c0] sm:$0xff] }
 0x74f   : > { %v10264_v9 = vld [vmem:[#allocation2 + $0x130] sm:$0xff] }
 0x750   : > { %10328 = vst.msk [vmem:[%s13727_s21 + $0x130] sm:$0xff] %vm7601_vm1, %v10264_v9  ;;  %10202 = vst.msk [vmem:[#allocation2 + $0x140] sm:$0xff] %vm7601_vm1, %v10138_v8 }
 0x752   : > { %v9989_v11 = vpop.permute.xlu1 %9988 }
 0x753   : > { %v10139_v12 = vadd.f32 %v9989_v11, %v9755_v10  ;;  %v9771_v10 = vld [vmem:[#allocation2 + $0x1c8] sm:$0xff] }
 0x754   : > { %v10265_v13 = vld [vmem:[#allocation2 + $0x138] sm:$0xff] }
 0x755   : > { %10329 = vst.msk [vmem:[%s13727_s21 + $0x138] sm:$0xff] %vm7601_vm1, %v10265_v13  ;;  %10203 = vst.msk [vmem:[#allocation2 + $0x148] sm:$0xff] %vm7601_vm1, %v10139_v12  ;;  %v9991_v58 = vpop.permute.xlu0 %9990 }
 0x756   : > { %v10140_v15 = vadd.f32 %v9991_v58, %v9756_v14  ;;  %v9772_v14 = vld [vmem:[#allocation2 + $0x1d0] sm:$0xff] }
 0x757   : > { %v10266_v16 = vld [vmem:[#allocation2 + $0x140] sm:$0xff] }
 0x758   : > { %10330 = vst.msk [vmem:[%s13727_s21 + $0x140] sm:$0xff] %vm7601_vm1, %v10266_v16  ;;  %10204 = vst.msk [vmem:[#allocation2 + $0x150] sm:$0xff] %vm7601_vm1, %v10140_v15 }
 0x75a   : > { %v9993_v18 = vpop.permute.xlu1 %9992 }
 0x75b   : > { %v10141_v19 = vadd.f32 %v9993_v18, %v9757_v17  ;;  %v9774_v17 = vld [vmem:[#allocation2 + $0x1e0] sm:$0xff] }
 0x75c   : > { %v10267_v20 = vld [vmem:[#allocation2 + $0x148] sm:$0xff] }
 0x75d   : > { %10331 = vst.msk [vmem:[%s13727_s21 + $0x148] sm:$0xff] %vm7601_vm1, %v10267_v20  ;;  %10205 = vst.msk [vmem:[#allocation2 + $0x158] sm:$0xff] %vm7601_vm1, %v10141_v19  ;;  %v9995_v1 = vpop.permute.xlu0 %9994  ;;  %v9773_v19 = vld [vmem:[#allocation2 + $0x1d8] sm:$0xff] }
 0x75e   : > { %v10142_v22 = vadd.f32 %v9995_v1, %v9758_v21 }
 0x75f   : > { %v10268_v23 = vld [vmem:[#allocation2 + $0x150] sm:$0xff] }
 0x760   : > { %10332 = vst.msk [vmem:[%s13727_s21 + $0x150] sm:$0xff] %vm7601_vm1, %v10268_v23  ;;  %10206 = vst.msk [vmem:[#allocation2 + $0x160] sm:$0xff] %vm7601_vm1, %v10142_v22  ;;  %v9776_v23 = vld [vmem:[#allocation2 + $0x1f0] sm:$0xff] }
 0x762   : > { %v9997_v25 = vpop.permute.xlu1 %9996 }
 0x763   : > { %v10143_v26 = vadd.f32 %v9997_v25, %v9759_v24  ;;  %v9775_v25 = vld [vmem:[#allocation2 + $0x1e8] sm:$0xff] }
 0x764   : > { %v10269_v27 = vld [vmem:[#allocation2 + $0x158] sm:$0xff] }
 0x765   : > { %10333 = vst.msk [vmem:[%s13727_s21 + $0x158] sm:$0xff] %vm7601_vm1, %v10269_v27  ;;  %10207 = vst.msk [vmem:[#allocation2 + $0x168] sm:$0xff] %vm7601_vm1, %v10143_v26  ;;  %v9999_v30 = vpop.permute.xlu0 %9998 }
 0x766   : > { %v10144_v31 = vadd.f32 %v9999_v30, %v9760_v28 }
 0x767   : > { %v10270_v32 = vld [vmem:[#allocation2 + $0x160] sm:$0xff] }
 0x768   : > { %10334 = vst.msk [vmem:[%s13727_s21 + $0x160] sm:$0xff] %vm7601_vm1, %v10270_v32  ;;  %10208 = vst.msk [vmem:[#allocation2 + $0x170] sm:$0xff] %vm7601_vm1, %v10144_v31  ;;  %v9777_v31 = vld [vmem:[#allocation2 + $0x1f8] sm:$0xff] }
 0x76a   : > { %v10001_v35 = vpop.permute.xlu1 %10000 }
 0x76b   : > { %v10145_v36 = vadd.f32 %v10001_v35, %v9761_v33 }
 0x76c   : > { %v10271_v38 = vld [vmem:[#allocation2 + $0x168] sm:$0xff] }
 0x76d   : > { %10335 = vst.msk [vmem:[%s13727_s21 + $0x168] sm:$0xff] %vm7601_vm1, %v10271_v38  ;;  %10209 = vst.msk [vmem:[#allocation2 + $0x178] sm:$0xff] %vm7601_vm1, %v10145_v36  ;;  %v10003_v40 = vpop.permute.xlu0 %10002 }
 0x76e   : > { %v10146_v43 = vadd.f32 %v10003_v40, %v9762_v39 }
 0x76f   : > { %v10272_v46 = vld [vmem:[#allocation2 + $0x170] sm:$0xff] }
 0x770   : > { %10336 = vst.msk [vmem:[%s13727_s21 + $0x170] sm:$0xff] %vm7601_vm1, %v10272_v46  ;;  %10210 = vst.msk [vmem:[#allocation2 + $0x180] sm:$0xff] %vm7601_vm1, %v10146_v43 }
 0x772   : > { %v10005_v41 = vpop.permute.xlu1 %10004 }
 0x773   : > { %v10147_v51 = vadd.f32 %v10005_v41, %v9763_v48 }
 0x774   : > { %v10273_v54 = vld [vmem:[#allocation2 + $0x178] sm:$0xff] }
 0x775   : > { %10337 = vst.msk [vmem:[%s13727_s21 + $0x178] sm:$0xff] %vm7601_vm1, %v10273_v54  ;;  %10211 = vst.msk [vmem:[#allocation2 + $0x188] sm:$0xff] %vm7601_vm1, %v10147_v51  ;;  %v10007_v44 = vpop.permute.xlu0 %10006 }
 0x776   : > { %v10148_v60 = vadd.f32 %v10007_v44, %v9764_v56 }
 0x777   : > { %v10274_v62 = vld [vmem:[#allocation2 + $0x180] sm:$0xff] }
 0x778   : > { %10338 = vst.msk [vmem:[%s13727_s21 + $0x180] sm:$0xff] %vm7601_vm1, %v10274_v62  ;;  %10212 = vst.msk [vmem:[#allocation2 + $0x190] sm:$0xff] %vm7601_vm1, %v10148_v60 }
 0x77a   : > { %v10009_v29 = vpop.permute.xlu1 %10008 }
 0x77b   : > { %v10149_v63 = vadd.f32 %v10009_v29, %v9765_v47 }
 0x77c   : > { %v10275_v34 = vld [vmem:[#allocation2 + $0x188] sm:$0xff] }
 0x77d   : > { %10339 = vst.msk [vmem:[%s13727_s21 + $0x188] sm:$0xff] %vm7601_vm1, %v10275_v34  ;;  %10213 = vst.msk [vmem:[#allocation2 + $0x198] sm:$0xff] %vm7601_vm1, %v10149_v63  ;;  %v10011_v42 = vpop.permute.xlu0 %10010 }
 0x77e   : > { %v10150_v49 = vadd.f32 %v10011_v42, %v9766_v37 }
 0x77f   : > { %v10276_v45 = vld [vmem:[#allocation2 + $0x190] sm:$0xff] }
 0x780   : > { %10340 = vst.msk [vmem:[%s13727_s21 + $0x190] sm:$0xff] %vm7601_vm1, %v10276_v45  ;;  %10214 = vst.msk [vmem:[#allocation2 + $0x1a0] sm:$0xff] %vm7601_vm1, %v10150_v49 }
 0x782   : > { %v10013_v52 = vpop.permute.xlu1 %10012 }
 0x783   : > { %v10151_v50 = vadd.f32 %v10013_v52, %v9767_v0 }
 0x784   : > { %v10277_v53 = vld [vmem:[#allocation2 + $0x198] sm:$0xff] }
 0x785   : > { %10341 = vst.msk [vmem:[%s13727_s21 + $0x198] sm:$0xff] %vm7601_vm1, %v10277_v53  ;;  %10215 = vst.msk [vmem:[#allocation2 + $0x1a8] sm:$0xff] %vm7601_vm1, %v10151_v50  ;;  %v10015_v3 = vpop.permute.xlu0 %10014 }
 0x786   : > { %v10152_v59 = vadd.f32 %v10015_v3, %v9768_v2 }
 0x787   : > { %v10278_v61 = vld [vmem:[#allocation2 + $0x1a0] sm:$0xff] }
 0x788   : > { %10342 = vst.msk [vmem:[%s13727_s21 + $0x1a0] sm:$0xff] %vm7601_vm1, %v10278_v61  ;;  %10216 = vst.msk [vmem:[#allocation2 + $0x1b0] sm:$0xff] %vm7601_vm1, %v10152_v59 }
 0x78a   : > { %v10017_v55 = vpop.permute.xlu1 %10016 }
 0x78b   : > { %v10153_v7 = vadd.f32 %v10017_v55, %v9769_v5 }
 0x78c   : > { %v10279_v4 = vld [vmem:[#allocation2 + $0x1a8] sm:$0xff] }
 0x78d   : > { %10343 = vst.msk [vmem:[%s13727_s21 + $0x1a8] sm:$0xff] %vm7601_vm1, %v10279_v4  ;;  %10217 = vst.msk [vmem:[#allocation2 + $0x1b8] sm:$0xff] %vm7601_vm1, %v10153_v7  ;;  %v10019_v6 = vpop.permute.xlu0 %10018 }
 0x78e   : > { %v10154_v8 = vadd.f32 %v10019_v6, %v9770_v57 }
 0x78f   : > { %v10280_v9 = vld [vmem:[#allocation2 + $0x1b0] sm:$0xff] }
 0x790   : > { %10344 = vst.msk [vmem:[%s13727_s21 + $0x1b0] sm:$0xff] %vm7601_vm1, %v10280_v9  ;;  %10218 = vst.msk [vmem:[#allocation2 + $0x1c0] sm:$0xff] %vm7601_vm1, %v10154_v8 }
 0x792   : > { %v10021_v11 = vpop.permute.xlu1 %10020 }
 0x793   : > { %v10155_v12 = vadd.f32 %v10021_v11, %v9771_v10 }
 0x794   : > { %v10281_v13 = vld [vmem:[#allocation2 + $0x1b8] sm:$0xff] }
 0x795   : > { %10345 = vst.msk [vmem:[%s13727_s21 + $0x1b8] sm:$0xff] %vm7601_vm1, %v10281_v13  ;;  %10219 = vst.msk [vmem:[#allocation2 + $0x1c8] sm:$0xff] %vm7601_vm1, %v10155_v12  ;;  %v10023_v58 = vpop.permute.xlu0 %10022 }
 0x796   : > { %v10156_v15 = vadd.f32 %v10023_v58, %v9772_v14 }
 0x797   : > { %v10282_v16 = vld [vmem:[#allocation2 + $0x1c0] sm:$0xff] }
 0x798   : > { %10346 = vst.msk [vmem:[%s13727_s21 + $0x1c0] sm:$0xff] %vm7601_vm1, %v10282_v16  ;;  %10220 = vst.msk [vmem:[#allocation2 + $0x1d0] sm:$0xff] %vm7601_vm1, %v10156_v15 }
 0x79a   : > { %v10027_v18 = vpop.permute.xlu0 %10026  ;;  %v10025_v20 = vpop.permute.xlu1 %10024 }
 0x79b   : > { %v10158_v21 = vadd.f32 %v10027_v18, %v9774_v17  ;;  %v10157_v1 = vadd.f32 %v10025_v20, %v9773_v19 }
 0x79c   : > { %v10283_v22 = vld [vmem:[#allocation2 + $0x1c8] sm:$0xff] }
 0x79d   : > { %10347 = vst.msk [vmem:[%s13727_s21 + $0x1c8] sm:$0xff] %vm7601_vm1, %v10283_v22  ;;  %10222 = vst.msk [vmem:[#allocation2 + $0x1e0] sm:$0xff] %vm7601_vm1, %v10158_v21 }
 0x79e   : > { %10221 = vst.msk [vmem:[#allocation2 + $0x1d8] sm:$0xff] %vm7601_vm1, %v10157_v1  ;;  %v10029_v26 = vpop.permute.xlu1 %10028 }
 0x79f   : > { %v10031_v24 = vpop.permute.xlu0 %10030  ;;  %v10159_v28 = vadd.f32 %v10029_v26, %v9775_v25  ;;  %v10284_v30 = vld [vmem:[#allocation2 + $0x1d0] sm:$0xff] }
 0x7a0   : > { %v10160_v27 = vadd.f32 %v10031_v24, %v9776_v23  ;;  %10348 = vst.msk [vmem:[%s13727_s21 + $0x1d0] sm:$0xff] %vm7601_vm1, %v10284_v30 }
 0x7a1   : > { %10223 = vst.msk [vmem:[#allocation2 + $0x1e8] sm:$0xff] %vm7601_vm1, %v10159_v28 }
 0x7a2   : > { %10224 = vst.msk [vmem:[#allocation2 + $0x1f0] sm:$0xff] %vm7601_vm1, %v10160_v27  ;;  %v10033_v32 = vpop.permute.xlu1 %10032 }
 0x7a3   : > { %v10161_v33 = vadd.f32 %v10033_v32, %v9777_v31 }
 0x7a4   : > { %v10286_v35 = vld [vmem:[#allocation2 + $0x1e0] sm:$0xff] }
 0x7a5   : > { %v10285_v36 = vld [vmem:[#allocation2 + $0x1d8] sm:$0xff]  ;;  %10350 = vst.msk [vmem:[%s13727_s21 + $0x1e0] sm:$0xff] %vm7601_vm1, %v10286_v35  ;;  %10225 = vst.msk [vmem:[#allocation2 + $0x1f8] sm:$0xff] %vm7601_vm1, %v10161_v33 }
 0x7a6   : > { %10349 = vst.msk [vmem:[%s13727_s21 + $0x1d8] sm:$0xff] %vm7601_vm1, %v10285_v36 }
 0x7a8   : > { %v10287_v39 = vld [vmem:[#allocation2 + $0x1e8] sm:$0xff] }
 0x7a9   : > { %v10288_v38 = vld [vmem:[#allocation2 + $0x1f0] sm:$0xff]  ;;  %10351 = vst.msk [vmem:[%s13727_s21 + $0x1e8] sm:$0xff] %vm7601_vm1, %v10287_v39 }
 0x7aa   : > { %10352 = vst.msk [vmem:[%s13727_s21 + $0x1f0] sm:$0xff] %vm7601_vm1, %v10288_v38 }
 0x7ac   : > { %v10289_v40 = vld [vmem:[#allocation2 + $0x1f8] sm:$0xff] }
 0x7ad   : > { %10353 = vst.msk [vmem:[%s13727_s21 + $0x1f8] sm:$0xff] %vm7601_vm1, %v10289_v40 }
 0x7ae PF: > { %s12_s9 = sadd.s32 1, %s11721_s9  }
 0x7af   : > { %p9_p4 = scmp.ge.s32.totalorder %s12_s9, 4  }
 0x7b1   :  { %11 = sbr.rel (!%p9_p4) target bundleno = 1 (0x1), region = 64 }

</bundles_post_ra>
